<compile_context>
chip_gen: v7x
topology: tpu7x:2x2x1
jax: 0.10.0
libtpu: 0.0.40
codegen_flags: <defaults>
</compile_context>

<pallas_src>
import functools

import numpy as np
import jax
import jax.numpy as jnp
from jax.experimental import pallas as pl
from jax.experimental.pallas import tpu as pltpu


CONFIG = dict(
    N=32,                    # pupil grid (reference implicitly uses N=500)
    px=1e-6,
    wavelength=0.58e-6,
    focal_length=2e-3,
    psf_width_pixels=31,
    psf_edge_remove=0,
    laser_beam_FWHC=66e-6,
    refractive_index=1.518,
)


# --------------------------------------------------------------------------
# Pallas kernels
# --------------------------------------------------------------------------
def _optics_kernel(inv_n3,
                   cosm_ref, sinm_ref, cph_ref, sph_ref, tmat_ref, smat_ref,
                   bm_re_ref, bm_im_ref, a_re_ref, a_im_ref, at_re_ref, at_im_ref,
                   fq_re_ref, fq_im_ref, l_re_ref, l_im_ref, r_re_ref, r_im_ref,
                   wc_re_ref, wc_im_ref,
                   out_ref):
    """Fused optical pipeline (single invocation, everything resident in VMEM)."""
    f32 = jnp.float32

    def mm(a, b):
        return jnp.dot(a, b, preferred_element_type=f32)

    # pupil field M = (B1 * laser_profile) * exp(i * mask_param)
    cm = cosm_ref[...]
    sm = sinm_ref[...]
    m_re = bm_re_ref[...] * cm - bm_im_ref[...] * sm
    m_im = bm_re_ref[...] * sm + bm_im_ref[...] * cm

    # FE1 = fft2(zero-pad(M)) = A @ M @ At   (zero padding folded into W_2N slices)
    ar, ai = a_re_ref[...], a_im_ref[...]
    t1r = mm(ar, m_re) - mm(ai, m_im)
    t1i = mm(ar, m_im) + mm(ai, m_re)
    atr, ati = at_re_ref[...], at_im_ref[...]
    fer = mm(t1r, atr) - mm(t1i, ati)
    fei = mm(t1r, ati) + mm(t1i, atr)

    # multiply by the precomputed constant spectrum fft2(Q1)
    qr, qi = fq_re_ref[...], fq_im_ref[...]
    gr = fer * qr - fei * qi
    gi = fer * qi + fei * qr

    # F = fft2( crop( ifftshift( ifft2(G) ) ) ) = L @ G @ R
    # (ifft scale, ifftshift permutation, crop and the follow-up fft2 all folded)
    lr, li = l_re_ref[...], l_im_ref[...]
    t2r = mm(lr, gr) - mm(li, gi)
    t2i = mm(lr, gi) + mm(li, gr)
    rr_, ri_ = r_re_ref[...], r_im_ref[...]
    fr = mm(t2r, rr_) - mm(t2i, ri_)
    fi = mm(t2r, ri_) + mm(t2i, rr_)

    # tile F to the batched (E*N, N) layout (big-M MXU matmuls, never leaves VMEM)
    tm = tmat_ref[...]
    ftr = mm(tm, fr)
    fti = mm(tm, fi)

    # per-emitter defocus phase multiply (ifftshift folded into the gamma tables)
    cp = cph_ref[...]
    sp = sph_ref[...]
    yr = ftr * cp - fti * sp
    yi = ftr * sp + fti * cp

    # colsum |ifft2(Y_e)|^2 == (1/N^3) * colsum |Y_e @ conj(W_N)|^2   (Parseval)
    wr, wi = wc_re_ref[...], wc_im_ref[...]
    ur = mm(yr, wr) - mm(yi, wi)
    ui = mm(yr, wi) + mm(yi, wr)
    out_ref[...] = inv_n3 * mm(smat_ref[...], ur * ur + ui * ui)


def optics_colsums(cosm, sinm, cph, sph, tmat, smat, consts, n):
    """Run the fused optics kernel. Returns per-emitter column sums (E_pad, n)."""
    e_pad = smat.shape[0]
    ins = (cosm, sinm, cph, sph, tmat, smat) + tuple(consts)
    kern = functools.partial(_optics_kernel, float(1.0 / (n ** 3)))
    return pl.pallas_call(
        kern,
        out_shape=jax.ShapeDtypeStruct((e_pad, n), jnp.float32),
        grid=(1,),
        in_specs=[pl.BlockSpec(a.shape, lambda i: (0, 0)) for a in ins],
        out_specs=pl.BlockSpec((e_pad, n), lambda i: (0, 0)),
        compiler_params=pltpu.CompilerParams(dimension_semantics=("arbitrary",)),
    )(*ins)


def _noise_norm_kernel(img_ref, g1_ref, g2_ref, out_ref):
    # imgs3D / max_intensity, + uniform background
    x = img_ref[...] * (1.0 / 50000.0) + 100.0
    # poisson_noise_approx: + 1e5 + (std*randn + mean), clamp <=0 -> 0, shot noise
    x = x + 100000.0 + (2.0e8 * g1_ref[...] + 3.0e8)
    x = jnp.where(x <= 0.0, 0.0, x)
    x = x + 100.0 * jnp.sqrt(x) * g2_ref[...]
    # Normalize01
    x = jnp.where(x <= 10.0, 1.0, x)
    x = jnp.where(x >= 4.0e9, 4.0e9, x)
    out_ref[...] = x * (1.0 / 4.0e9)


def noise_norm(img2d, g1, g2):
    """Noise model + 0..1 normalization; whole batch in one invocation (2D layout)."""
    spec = pl.BlockSpec(img2d.shape, lambda i: (0, 0))
    return pl.pallas_call(
        _noise_norm_kernel,
        out_shape=jax.ShapeDtypeStruct(img2d.shape, jnp.float32),
        grid=(1,),
        in_specs=[spec, spec, spec],
        out_specs=spec,
        compiler_params=pltpu.CompilerParams(dimension_semantics=("arbitrary",)),
    )(img2d, g1, g2)


# --------------------------------------------------------------------------
# PhysicalLayer
# --------------------------------------------------------------------------
class PhysicalLayerPallas:
    def __init__(self, config):
        N = int(config['N'])
        px = config['px']
        wavelength = config['wavelength']
        focal_length = config['focal_length']
        laser_beam_FWHC = config['laser_beam_FWHC']
        refractive_index = config['refractive_index']
        self.N = N

        # --- pupil-plane constants -----------------------------------------
        x = np.arange(-N // 2, N // 2)
        X, Y = np.meshgrid(x, x)
        X = X * px
        Y = Y * px
        C1 = (np.pi / (wavelength * focal_length) * (X ** 2 + Y ** 2)) % (2 * np.pi)
        B1 = np.exp(-1j * C1)
        mask_real = np.exp(-(X ** 2 + Y ** 2) / (2 * laser_beam_FWHC ** 2))
        BM = B1 * mask_real                          # laser profile pre-folded into B1

        xx = np.arange(-N + 1, N + 1)
        XX, YY = np.meshgrid(xx, xx)
        XX = XX * px
        YY = YY * px
        Q1 = np.exp(1j * (np.pi * refractive_index / (wavelength * focal_length))
                    * (XX ** 2 + YY ** 2))
        FQ1 = np.fft.fft2(Q1)                        # constant spectrum: computed once

        self.k = float(2 * refractive_index * np.pi / wavelength)
        phy = N * px
        Fs = N / phy
        dF = Fs / N
        Fx = np.arange(-Fs / 2, Fs / 2, dF)[:N]
        alpha = refractive_index * wavelength * Fx
        ALPHA, BETA = np.meshgrid(alpha, alpha)
        gamma = np.sqrt(1.0 - ALPHA ** 2 - BETA ** 2)
        # ifftshift folded into gamma so no runtime roll is needed
        self.gamma_ishift = jnp.asarray(
            np.roll(gamma, (N // 2, N // 2), axis=(0, 1)), jnp.float32)

        # TODO(synk): reference loads beads_img_defocus/z??.tiff — replaced by a
        # deterministic synthetic 31x31 defocus PSF stack (wider with defocus z).
        yy31, xx31 = np.mgrid[-15:16, -15:16]
        psf = [np.exp(-(xx31 ** 2 + yy31 ** 2) / (2 * (1.5 + 0.2 * z) ** 2))
               for z in range(31)]
        self.imgs_stack = jnp.asarray(np.stack(psf, axis=0), jnp.float32)   # (31,31,31)

        # --- DFT matrices with pad / shifts / crop / scales folded in -------
        n2 = 2 * N
        pad = N // 2    # TODO(synk): reference hard-codes pad=250 (valid only for N=500)
        W2 = np.exp(-2j * np.pi * np.outer(np.arange(n2), np.arange(n2)) / n2)
        WN = np.exp(-2j * np.pi * np.outer(np.arange(N), np.arange(N)) / N)

        A = W2[:, pad:pad + N]                  # fft2 of the zero-padded pupil: A @ M @ At
        At = W2[pad:pad + N, :]

        Wc2 = np.conj(W2)
        sh = (np.arange(n2) + N) % n2           # ifftshift permutation (even size)
        S_l = Wc2[sh, :][pad:pad + N, :] / (n2 * n2)   # ifft2 scale applied once (left)
        S_r = Wc2[:, sh][:, pad:pad + N]
        L = WN @ S_l                            # fold the follow-up fft2 of the crop
        Rr = S_r @ WN
        WcN = np.conj(WN)                       # per-emitter column IFFT (Parseval trick)

        def f32(a):
            return jnp.asarray(np.asarray(a, np.float32))

        self.consts = (f32(BM.real), f32(BM.imag),
                       f32(A.real), f32(A.imag),
                       f32(At.real), f32(At.imag),
                       f32(FQ1.real), f32(FQ1.imag),
                       f32(L.real), f32(L.imag),
                       f32(Rr.real), f32(Rr.imag),
                       f32(WcN.real), f32(WcN.imag))

        self._fwd = jax.jit(self._forward)

    # ----------------------------------------------------------------------
    def _forward(self, mask_param, xyz, nphotons, noise_key):
        del nphotons                      # unused in the reference forward as well
        N = self.N
        Nbatch, Nemitters = xyz.shape[0], xyz.shape[1]
        E = Nbatch * Nemitters
        E_pad = ((E + 7) // 8) * 8        # pad the emitter axis to a sublane multiple
        f32 = jnp.float32

        xyz_i = xyz.astype(jnp.int32).reshape(E, 3)      # .type(LongTensor) semantics
        x_ori = xyz_i[:, 0]
        y_ori = xyz_i[:, 1]
        z_idx = xyz_i[:, 2]
        x_prop = (x_ori - 100).astype(f32)

        # tiny XLA glue tables (few KB) feeding the fused kernel
        cosm = jnp.cos(mask_param)
        sinm = jnp.sin(mask_param)
        phase = (self.k * 1e-6) * self.gamma_ishift[None, :, :] * x_prop[:, None, None]
        cph = jnp.cos(phase).reshape(E * N, N)
        sph = jnp.sin(phase).reshape(E * N, N)

        tmat = jnp.tile(jnp.eye(N, dtype=f32), (E, 1))                     # (E*N, N)
        smat = (jnp.arange(E_pad)[:, None]
                == (jnp.arange(E * N)[None, :] // N)).astype(f32)          # (E_pad, E*N)

        colsums = optics_colsums(cosm, sinm, cph, sph, tmat, smat,
                                 self.consts, N)[:E]                       # (E, N)

        col_base = N // 2 - 1             # reference uses 249 for N=500
        intensity = colsums[jnp.arange(E), col_base + z_idx]               # (E,)
        patches = jnp.take(self.imgs_stack, jnp.abs(z_idx), axis=0) \
            * intensity[:, None, None]                                      # (E,31,31)

        # device-side 31x31 patch scatter-add (no host sync, fully jitted)
        img = jnp.zeros((Nbatch, 200, 200), f32)
        bidx = jnp.repeat(jnp.arange(Nbatch), Nemitters)                   # (E,)
        rr = x_ori[:, None] - 15 + jnp.arange(31)[None, :]                 # (E,31)
        cc = y_ori[:, None] - 15 + jnp.arange(31)[None, :]                 # (E,31)
        img = img.at[bidx[:, None, None], rr[:, :, None], cc[:, None, :]].add(patches)

        # noise model + 0..1 normalization; whole batch in one Pallas call
        k1, k2 = jax.random.split(noise_key)
        g1 = jax.random.normal(k1, (Nbatch * 200, 200), f32)
        g2 = jax.random.normal(k2, (Nbatch * 200, 200), f32)
        out2d = noise_norm(img.reshape(Nbatch * 200, 200), g1, g2)
        return out2d.reshape(Nbatch, 1, 200, 200)

    def __call__(self, mask_param, xyz, nphotons, noise_key):
        return self._fwd(mask_param, xyz, nphotons, noise_key)


# --------------------------------------------------------------------------
if __name__ == "__main__":
    key = jax.random.PRNGKey(0)
    k_mask, k_xy, k_z, k_nph, k_noise = jax.random.split(key, 5)

    layer = PhysicalLayerPallas(CONFIG)
    N = CONFIG['N']
    Nbatch, Nemitters = 2, 3

    mask_param = jax.random.uniform(k_mask, (N, N), jnp.float32, 0.0, 2.0 * np.pi)
    xy = jax.random.randint(k_xy, (Nbatch, Nemitters, 2), 60, 140)
    zc = jax.random.randint(k_z, (Nbatch, Nemitters, 1), 0, 15)
    xyz = jnp.concatenate([xy, zc], axis=-1).astype(jnp.float32)   # (Nbatch, Nemitters, 3)
    nphotons = jax.random.uniform(k_nph, (Nbatch, Nemitters), jnp.float32, 1e3, 1e4)

    out = layer(mask_param, xyz, nphotons, k_noise)
    out = jax.block_until_ready(out)

    assert out.shape == (Nbatch, 1, 200, 200), out.shape
    assert bool(jnp.all(jnp.isfinite(out)))
    print("KERNEL_OK")
</pallas_src>

<mosaic_0001>
module attributes {stable_mosaic.version = 11 : i64} {
  func.func @_optics_kernel(%arg0: i32, %arg1: memref<32x32xf32, #tpu.memory_space<vmem>>, %arg2: memref<32x32xf32, #tpu.memory_space<vmem>>, %arg3: memref<192x32xf32, #tpu.memory_space<vmem>>, %arg4: memref<192x32xf32, #tpu.memory_space<vmem>>, %arg5: memref<192x32xf32, #tpu.memory_space<vmem>>, %arg6: memref<8x192xf32, #tpu.memory_space<vmem>>, %arg7: memref<32x32xf32, #tpu.memory_space<vmem>>, %arg8: memref<32x32xf32, #tpu.memory_space<vmem>>, %arg9: memref<64x32xf32, #tpu.memory_space<vmem>>, %arg10: memref<64x32xf32, #tpu.memory_space<vmem>>, %arg11: memref<32x64xf32, #tpu.memory_space<vmem>>, %arg12: memref<32x64xf32, #tpu.memory_space<vmem>>, %arg13: memref<64x64xf32, #tpu.memory_space<vmem>>, %arg14: memref<64x64xf32, #tpu.memory_space<vmem>>, %arg15: memref<32x64xf32, #tpu.memory_space<vmem>>, %arg16: memref<32x64xf32, #tpu.memory_space<vmem>>, %arg17: memref<64x32xf32, #tpu.memory_space<vmem>>, %arg18: memref<64x32xf32, #tpu.memory_space<vmem>>, %arg19: memref<32x32xf32, #tpu.memory_space<vmem>>, %arg20: memref<32x32xf32, #tpu.memory_space<vmem>>, %arg21: memref<8x32xf32, #tpu.memory_space<vmem>>) attributes {dimension_semantics = [#tpu.dimension_semantics<arbitrary>], iteration_bounds = array<i64: 1>, scalar_prefetch = 0 : i64, scratch_operands = 0 : i64, tpu.core_type = #tpu.core_type<tc>, window_params = [{pipeline_mode = #tpu.pipeline_mode<synchronous>, transform_indices = @transform_0, window_bounds = array<i64: 32, 32>}, {pipeline_mode = #tpu.pipeline_mode<synchronous>, transform_indices = @transform_1, window_bounds = array<i64: 32, 32>}, {pipeline_mode = #tpu.pipeline_mode<synchronous>, transform_indices = @transform_2, window_bounds = array<i64: 192, 32>}, {pipeline_mode = #tpu.pipeline_mode<synchronous>, transform_indices = @transform_3, window_bounds = array<i64: 192, 32>}, {pipeline_mode = #tpu.pipeline_mode<synchronous>, transform_indices = @transform_4, window_bounds = array<i64: 192, 32>}, {pipeline_mode = #tpu.pipeline_mode<synchronous>, transform_indices = @transform_5, window_bounds = array<i64: 8, 192>}, {pipeline_mode = #tpu.pipeline_mode<synchronous>, transform_indices = @transform_6, window_bounds = array<i64: 32, 32>}, {pipeline_mode = #tpu.pipeline_mode<synchronous>, transform_indices = @transform_7, window_bounds = array<i64: 32, 32>}, {pipeline_mode = #tpu.pipeline_mode<synchronous>, transform_indices = @transform_8, window_bounds = array<i64: 64, 32>}, {pipeline_mode = #tpu.pipeline_mode<synchronous>, transform_indices = @transform_9, window_bounds = array<i64: 64, 32>}, {pipeline_mode = #tpu.pipeline_mode<synchronous>, transform_indices = @transform_10, window_bounds = array<i64: 32, 64>}, {pipeline_mode = #tpu.pipeline_mode<synchronous>, transform_indices = @transform_11, window_bounds = array<i64: 32, 64>}, {pipeline_mode = #tpu.pipeline_mode<synchronous>, transform_indices = @transform_12, window_bounds = array<i64: 64, 64>}, {pipeline_mode = #tpu.pipeline_mode<synchronous>, transform_indices = @transform_13, window_bounds = array<i64: 64, 64>}, {pipeline_mode = #tpu.pipeline_mode<synchronous>, transform_indices = @transform_14, window_bounds = array<i64: 32, 64>}, {pipeline_mode = #tpu.pipeline_mode<synchronous>, transform_indices = @transform_15, window_bounds = array<i64: 32, 64>}, {pipeline_mode = #tpu.pipeline_mode<synchronous>, transform_indices = @transform_16, window_bounds = array<i64: 64, 32>}, {pipeline_mode = #tpu.pipeline_mode<synchronous>, transform_indices = @transform_17, window_bounds = array<i64: 64, 32>}, {pipeline_mode = #tpu.pipeline_mode<synchronous>, transform_indices = @transform_18, window_bounds = array<i64: 32, 32>}, {pipeline_mode = #tpu.pipeline_mode<synchronous>, transform_indices = @transform_19, window_bounds = array<i64: 32, 32>}, {pipeline_mode = #tpu.pipeline_mode<synchronous>, transform_indices = @transform_20, window_bounds = array<i64: 8, 32>}]} {
    %c0 = arith.constant 0 : index
    %c0_0 = arith.constant 0 : index
    %0 = vector.load %arg1[%c0, %c0_0] : memref<32x32xf32, #tpu.memory_space<vmem>>, vector<32x32xf32>
    %c0_1 = arith.constant 0 : index
    %c0_2 = arith.constant 0 : index
    %1 = vector.load %arg2[%c0_1, %c0_2] : memref<32x32xf32, #tpu.memory_space<vmem>>, vector<32x32xf32>
    %c0_3 = arith.constant 0 : index
    %c0_4 = arith.constant 0 : index
    %2 = vector.load %arg7[%c0_3, %c0_4] : memref<32x32xf32, #tpu.memory_space<vmem>>, vector<32x32xf32>
    %3 = arith.mulf %2, %0 : vector<32x32xf32>
    %c0_5 = arith.constant 0 : index
    %c0_6 = arith.constant 0 : index
    %4 = vector.load %arg8[%c0_5, %c0_6] : memref<32x32xf32, #tpu.memory_space<vmem>>, vector<32x32xf32>
    %5 = arith.mulf %4, %1 : vector<32x32xf32>
    %6 = arith.subf %3, %5 : vector<32x32xf32>
    %c0_7 = arith.constant 0 : index
    %c0_8 = arith.constant 0 : index
    %7 = vector.load %arg7[%c0_7, %c0_8] : memref<32x32xf32, #tpu.memory_space<vmem>>, vector<32x32xf32>
    %8 = arith.mulf %7, %1 : vector<32x32xf32>
    %c0_9 = arith.constant 0 : index
    %c0_10 = arith.constant 0 : index
    %9 = vector.load %arg8[%c0_9, %c0_10] : memref<32x32xf32, #tpu.memory_space<vmem>>, vector<32x32xf32>
    %10 = arith.mulf %9, %0 : vector<32x32xf32>
    %11 = arith.addf %8, %10 : vector<32x32xf32>
    %c0_11 = arith.constant 0 : index
    %c0_12 = arith.constant 0 : index
    %12 = vector.load %arg9[%c0_11, %c0_12] : memref<64x32xf32, #tpu.memory_space<vmem>>, vector<64x32xf32>
    %c0_13 = arith.constant 0 : index
    %c0_14 = arith.constant 0 : index
    %13 = vector.load %arg10[%c0_13, %c0_14] : memref<64x32xf32, #tpu.memory_space<vmem>>, vector<64x32xf32>
    %cst = arith.constant dense<0.000000e+00> : vector<64x32xf32>
    %14 = tpu.matmul %12, %6, %cst {dimension_numbers = #tpu.dot_dimension_numbers<[1], [0], [0], [1], [0, 0, 1, 1], [], []>} : vector<64x32xf32>, vector<32x32xf32>, vector<64x32xf32> -> vector<64x32xf32>
    %cst_15 = arith.constant dense<0.000000e+00> : vector<64x32xf32>
    %15 = tpu.matmul %13, %11, %cst_15 {dimension_numbers = #tpu.dot_dimension_numbers<[1], [0], [0], [1], [0, 0, 1, 1], [], []>} : vector<64x32xf32>, vector<32x32xf32>, vector<64x32xf32> -> vector<64x32xf32>
    %16 = arith.subf %14, %15 : vector<64x32xf32>
    %cst_16 = arith.constant dense<0.000000e+00> : vector<64x32xf32>
    %17 = tpu.matmul %12, %11, %cst_16 {dimension_numbers = #tpu.dot_dimension_numbers<[1], [0], [0], [1], [0, 0, 1, 1], [], []>} : vector<64x32xf32>, vector<32x32xf32>, vector<64x32xf32> -> vector<64x32xf32>
    %cst_17 = arith.constant dense<0.000000e+00> : vector<64x32xf32>
    %18 = tpu.matmul %13, %6, %cst_17 {dimension_numbers = #tpu.dot_dimension_numbers<[1], [0], [0], [1], [0, 0, 1, 1], [], []>} : vector<64x32xf32>, vector<32x32xf32>, vector<64x32xf32> -> vector<64x32xf32>
    %19 = arith.addf %17, %18 : vector<64x32xf32>
    %c0_18 = arith.constant 0 : index
    %c0_19 = arith.constant 0 : index
    %20 = vector.load %arg11[%c0_18, %c0_19] : memref<32x64xf32, #tpu.memory_space<vmem>>, vector<32x64xf32>
    %c0_20 = arith.constant 0 : index
    %c0_21 = arith.constant 0 : index
    %21 = vector.load %arg12[%c0_20, %c0_21] : memref<32x64xf32, #tpu.memory_space<vmem>>, vector<32x64xf32>
    %cst_22 = arith.constant dense<0.000000e+00> : vector<64x64xf32>
    %22 = tpu.matmul %16, %20, %cst_22 {dimension_numbers = #tpu.dot_dimension_numbers<[1], [0], [0], [1], [0, 0, 1, 1], [], []>} : vector<64x32xf32>, vector<32x64xf32>, vector<64x64xf32> -> vector<64x64xf32>
    %cst_23 = arith.constant dense<0.000000e+00> : vector<64x64xf32>
    %23 = tpu.matmul %19, %21, %cst_23 {dimension_numbers = #tpu.dot_dimension_numbers<[1], [0], [0], [1], [0, 0, 1, 1], [], []>} : vector<64x32xf32>, vector<32x64xf32>, vector<64x64xf32> -> vector<64x64xf32>
    %24 = arith.subf %22, %23 : vector<64x64xf32>
    %cst_24 = arith.constant dense<0.000000e+00> : vector<64x64xf32>
    %25 = tpu.matmul %16, %21, %cst_24 {dimension_numbers = #tpu.dot_dimension_numbers<[1], [0], [0], [1], [0, 0, 1, 1], [], []>} : vector<64x32xf32>, vector<32x64xf32>, vector<64x64xf32> -> vector<64x64xf32>
    %cst_25 = arith.constant dense<0.000000e+00> : vector<64x64xf32>
    %26 = tpu.matmul %19, %20, %cst_25 {dimension_numbers = #tpu.dot_dimension_numbers<[1], [0], [0], [1], [0, 0, 1, 1], [], []>} : vector<64x32xf32>, vector<32x64xf32>, vector<64x64xf32> -> vector<64x64xf32>
    %27 = arith.addf %25, %26 : vector<64x64xf32>
    %c0_26 = arith.constant 0 : index
    %c0_27 = arith.constant 0 : index
    %28 = vector.load %arg13[%c0_26, %c0_27] : memref<64x64xf32, #tpu.memory_space<vmem>>, vector<64x64xf32>
    %c0_28 = arith.constant 0 : index
    %c0_29 = arith.constant 0 : index
    %29 = vector.load %arg14[%c0_28, %c0_29] : memref<64x64xf32, #tpu.memory_space<vmem>>, vector<64x64xf32>
    %30 = arith.mulf %24, %28 : vector<64x64xf32>
    %31 = arith.mulf %27, %29 : vector<64x64xf32>
    %32 = arith.subf %30, %31 : vector<64x64xf32>
    %33 = arith.mulf %24, %29 : vector<64x64xf32>
    %34 = arith.mulf %27, %28 : vector<64x64xf32>
    %35 = arith.addf %33, %34 : vector<64x64xf32>
    %c0_30 = arith.constant 0 : index
    %c0_31 = arith.constant 0 : index
    %36 = vector.load %arg15[%c0_30, %c0_31] : memref<32x64xf32, #tpu.memory_space<vmem>>, vector<32x64xf32>
    %c0_32 = arith.constant 0 : index
    %c0_33 = arith.constant 0 : index
    %37 = vector.load %arg16[%c0_32, %c0_33] : memref<32x64xf32, #tpu.memory_space<vmem>>, vector<32x64xf32>
    %cst_34 = arith.constant dense<0.000000e+00> : vector<32x64xf32>
    %38 = tpu.matmul %36, %32, %cst_34 {dimension_numbers = #tpu.dot_dimension_numbers<[1], [0], [0], [1], [0, 0, 1, 1], [], []>} : vector<32x64xf32>, vector<64x64xf32>, vector<32x64xf32> -> vector<32x64xf32>
    %cst_35 = arith.constant dense<0.000000e+00> : vector<32x64xf32>
    %39 = tpu.matmul %37, %35, %cst_35 {dimension_numbers = #tpu.dot_dimension_numbers<[1], [0], [0], [1], [0, 0, 1, 1], [], []>} : vector<32x64xf32>, vector<64x64xf32>, vector<32x64xf32> -> vector<32x64xf32>
    %40 = arith.subf %38, %39 : vector<32x64xf32>
    %cst_36 = arith.constant dense<0.000000e+00> : vector<32x64xf32>
    %41 = tpu.matmul %36, %35, %cst_36 {dimension_numbers = #tpu.dot_dimension_numbers<[1], [0], [0], [1], [0, 0, 1, 1], [], []>} : vector<32x64xf32>, vector<64x64xf32>, vector<32x64xf32> -> vector<32x64xf32>
    %cst_37 = arith.constant dense<0.000000e+00> : vector<32x64xf32>
    %42 = tpu.matmul %37, %32, %cst_37 {dimension_numbers = #tpu.dot_dimension_numbers<[1], [0], [0], [1], [0, 0, 1, 1], [], []>} : vector<32x64xf32>, vector<64x64xf32>, vector<32x64xf32> -> vector<32x64xf32>
    %43 = arith.addf %41, %42 : vector<32x64xf32>
    %c0_38 = arith.constant 0 : index
    %c0_39 = arith.constant 0 : index
    %44 = vector.load %arg17[%c0_38, %c0_39] : memref<64x32xf32, #tpu.memory_space<vmem>>, vector<64x32xf32>
    %c0_40 = arith.constant 0 : index
    %c0_41 = arith.constant 0 : index
    %45 = vector.load %arg18[%c0_40, %c0_41] : memref<64x32xf32, #tpu.memory_space<vmem>>, vector<64x32xf32>
    %cst_42 = arith.constant dense<0.000000e+00> : vector<32x32xf32>
    %46 = tpu.matmul %40, %44, %cst_42 {dimension_numbers = #tpu.dot_dimension_numbers<[1], [0], [0], [1], [0, 0, 1, 1], [], []>} : vector<32x64xf32>, vector<64x32xf32>, vector<32x32xf32> -> vector<32x32xf32>
    %cst_43 = arith.constant dense<0.000000e+00> : vector<32x32xf32>
    %47 = tpu.matmul %43, %45, %cst_43 {dimension_numbers = #tpu.dot_dimension_numbers<[1], [0], [0], [1], [0, 0, 1, 1], [], []>} : vector<32x64xf32>, vector<64x32xf32>, vector<32x32xf32> -> vector<32x32xf32>
    %48 = arith.subf %46, %47 : vector<32x32xf32>
    %cst_44 = arith.constant dense<0.000000e+00> : vector<32x32xf32>
    %49 = tpu.matmul %40, %45, %cst_44 {dimension_numbers = #tpu.dot_dimension_numbers<[1], [0], [0], [1], [0, 0, 1, 1], [], []>} : vector<32x64xf32>, vector<64x32xf32>, vector<32x32xf32> -> vector<32x32xf32>
    %cst_45 = arith.constant dense<0.000000e+00> : vector<32x32xf32>
    %50 = tpu.matmul %43, %44, %cst_45 {dimension_numbers = #tpu.dot_dimension_numbers<[1], [0], [0], [1], [0, 0, 1, 1], [], []>} : vector<32x64xf32>, vector<64x32xf32>, vector<32x32xf32> -> vector<32x32xf32>
    %51 = arith.addf %49, %50 : vector<32x32xf32>
    %c0_46 = arith.constant 0 : index
    %c0_47 = arith.constant 0 : index
    %52 = vector.load %arg5[%c0_46, %c0_47] : memref<192x32xf32, #tpu.memory_space<vmem>>, vector<192x32xf32>
    %cst_48 = arith.constant dense<0.000000e+00> : vector<192x32xf32>
    %53 = tpu.matmul %52, %48, %cst_48 {dimension_numbers = #tpu.dot_dimension_numbers<[1], [0], [0], [1], [0, 0, 1, 1], [], []>} : vector<192x32xf32>, vector<32x32xf32>, vector<192x32xf32> -> vector<192x32xf32>
    %cst_49 = arith.constant dense<0.000000e+00> : vector<192x32xf32>
    %54 = tpu.matmul %52, %51, %cst_49 {dimension_numbers = #tpu.dot_dimension_numbers<[1], [0], [0], [1], [0, 0, 1, 1], [], []>} : vector<192x32xf32>, vector<32x32xf32>, vector<192x32xf32> -> vector<192x32xf32>
    %c0_50 = arith.constant 0 : index
    %c0_51 = arith.constant 0 : index
    %55 = vector.load %arg3[%c0_50, %c0_51] : memref<192x32xf32, #tpu.memory_space<vmem>>, vector<192x32xf32>
    %c0_52 = arith.constant 0 : index
    %c0_53 = arith.constant 0 : index
    %56 = vector.load %arg4[%c0_52, %c0_53] : memref<192x32xf32, #tpu.memory_space<vmem>>, vector<192x32xf32>
    %57 = arith.mulf %53, %55 : vector<192x32xf32>
    %58 = arith.mulf %54, %56 : vector<192x32xf32>
    %59 = arith.subf %57, %58 : vector<192x32xf32>
    %60 = arith.mulf %53, %56 : vector<192x32xf32>
    %61 = arith.mulf %54, %55 : vector<192x32xf32>
    %62 = arith.addf %60, %61 : vector<192x32xf32>
    %c0_54 = arith.constant 0 : index
    %c0_55 = arith.constant 0 : index
    %63 = vector.load %arg19[%c0_54, %c0_55] : memref<32x32xf32, #tpu.memory_space<vmem>>, vector<32x32xf32>
    %c0_56 = arith.constant 0 : index
    %c0_57 = arith.constant 0 : index
    %64 = vector.load %arg20[%c0_56, %c0_57] : memref<32x32xf32, #tpu.memory_space<vmem>>, vector<32x32xf32>
    %cst_58 = arith.constant dense<0.000000e+00> : vector<192x32xf32>
    %65 = tpu.matmul %59, %63, %cst_58 {dimension_numbers = #tpu.dot_dimension_numbers<[1], [0], [0], [1], [0, 0, 1, 1], [], []>} : vector<192x32xf32>, vector<32x32xf32>, vector<192x32xf32> -> vector<192x32xf32>
    %cst_59 = arith.constant dense<0.000000e+00> : vector<192x32xf32>
    %66 = tpu.matmul %62, %64, %cst_59 {dimension_numbers = #tpu.dot_dimension_numbers<[1], [0], [0], [1], [0, 0, 1, 1], [], []>} : vector<192x32xf32>, vector<32x32xf32>, vector<192x32xf32> -> vector<192x32xf32>
    %67 = arith.subf %65, %66 : vector<192x32xf32>
    %cst_60 = arith.constant dense<0.000000e+00> : vector<192x32xf32>
    %68 = tpu.matmul %59, %64, %cst_60 {dimension_numbers = #tpu.dot_dimension_numbers<[1], [0], [0], [1], [0, 0, 1, 1], [], []>} : vector<192x32xf32>, vector<32x32xf32>, vector<192x32xf32> -> vector<192x32xf32>
    %cst_61 = arith.constant dense<0.000000e+00> : vector<192x32xf32>
    %69 = tpu.matmul %62, %63, %cst_61 {dimension_numbers = #tpu.dot_dimension_numbers<[1], [0], [0], [1], [0, 0, 1, 1], [], []>} : vector<192x32xf32>, vector<32x32xf32>, vector<192x32xf32> -> vector<192x32xf32>
    %70 = arith.addf %68, %69 : vector<192x32xf32>
    %c0_62 = arith.constant 0 : index
    %c0_63 = arith.constant 0 : index
    %71 = vector.load %arg6[%c0_62, %c0_63] : memref<8x192xf32, #tpu.memory_space<vmem>>, vector<8x192xf32>
    %72 = arith.mulf %67, %67 : vector<192x32xf32>
    %73 = arith.mulf %70, %70 : vector<192x32xf32>
    %74 = arith.addf %72, %73 : vector<192x32xf32>
    %cst_64 = arith.constant dense<0.000000e+00> : vector<8x32xf32>
    %75 = tpu.matmul %71, %74, %cst_64 {dimension_numbers = #tpu.dot_dimension_numbers<[1], [0], [0], [1], [0, 0, 1, 1], [], []>} : vector<8x192xf32>, vector<192x32xf32>, vector<8x32xf32> -> vector<8x32xf32>
    %cst_65 = arith.constant 3.05175781E-5 : f32
    %76 = vector.broadcast %cst_65 : f32 to vector<8x32xf32>
    %77 = arith.mulf %76, %75 : vector<8x32xf32>
    %c0_66 = arith.constant 0 : index
    %c0_67 = arith.constant 0 : index
    %78 = vector.load %arg21[%c0_66, %c0_67] : memref<8x32xf32, #tpu.memory_space<vmem>>, vector<8x32xf32>
    tpu.vector_store %arg21[%c0_66, %c0_67], %77 {strides = array<i32>} : memref<8x32xf32, #tpu.memory_space<vmem>>, vector<8x32xf32>,
    return
  }
  func.func @transform_0(%arg0: i32) -> (i32, i32) {
    %c0_i32 = arith.constant 0 : i32
    %c0_i32_0 = arith.constant 0 : i32
    %c0_i32_1 = arith.constant 0 : i32
    return %c0_i32, %c0_i32_0 : i32, i32
  }
  func.func @transform_1(%arg0: i32) -> (i32, i32) {
    %c0_i32 = arith.constant 0 : i32
    %c0_i32_0 = arith.constant 0 : i32
    %c0_i32_1 = arith.constant 0 : i32
    return %c0_i32, %c0_i32_0 : i32, i32
  }
  func.func @transform_2(%arg0: i32) -> (i32, i32) {
    %c0_i32 = arith.constant 0 : i32
    %c0_i32_0 = arith.constant 0 : i32
    %c0_i32_1 = arith.constant 0 : i32
    return %c0_i32, %c0_i32_0 : i32, i32
  }
  func.func @transform_3(%arg0: i32) -> (i32, i32) {
    %c0_i32 = arith.constant 0 : i32
    %c0_i32_0 = arith.constant 0 : i32
    %c0_i32_1 = arith.constant 0 : i32
    return %c0_i32, %c0_i32_0 : i32, i32
  }
  func.func @transform_4(%arg0: i32) -> (i32, i32) {
    %c0_i32 = arith.constant 0 : i32
    %c0_i32_0 = arith.constant 0 : i32
    %c0_i32_1 = arith.constant 0 : i32
    return %c0_i32, %c0_i32_0 : i32, i32
  }
  func.func @transform_5(%arg0: i32) -> (i32, i32) {
    %c0_i32 = arith.constant 0 : i32
    %c0_i32_0 = arith.constant 0 : i32
    %c0_i32_1 = arith.constant 0 : i32
    return %c0_i32, %c0_i32_0 : i32, i32
  }
  func.func @transform_6(%arg0: i32) -> (i32, i32) {
    %c0_i32 = arith.constant 0 : i32
    %c0_i32_0 = arith.constant 0 : i32
    %c0_i32_1 = arith.constant 0 : i32
    return %c0_i32, %c0_i32_0 : i32, i32
  }
  func.func @transform_7(%arg0: i32) -> (i32, i32) {
    %c0_i32 = arith.constant 0 : i32
    %c0_i32_0 = arith.constant 0 : i32
    %c0_i32_1 = arith.constant 0 : i32
    return %c0_i32, %c0_i32_0 : i32, i32
  }
  func.func @transform_8(%arg0: i32) -> (i32, i32) {
    %c0_i32 = arith.constant 0 : i32
    %c0_i32_0 = arith.constant 0 : i32
    %c0_i32_1 = arith.constant 0 : i32
    return %c0_i32, %c0_i32_0 : i32, i32
  }
  func.func @transform_9(%arg0: i32) -> (i32, i32) {
    %c0_i32 = arith.constant 0 : i32
    %c0_i32_0 = arith.constant 0 : i32
    %c0_i32_1 = arith.constant 0 : i32
    return %c0_i32, %c0_i32_0 : i32, i32
  }
  func.func @transform_10(%arg0: i32) -> (i32, i32) {
    %c0_i32 = arith.constant 0 : i32
    %c0_i32_0 = arith.constant 0 : i32
    %c0_i32_1 = arith.constant 0 : i32
    return %c0_i32, %c0_i32_0 : i32, i32
  }
  func.func @transform_11(%arg0: i32) -> (i32, i32) {
    %c0_i32 = arith.constant 0 : i32
    %c0_i32_0 = arith.constant 0 : i32
    %c0_i32_1 = arith.constant 0 : i32
    return %c0_i32, %c0_i32_0 : i32, i32
  }
  func.func @transform_12(%arg0: i32) -> (i32, i32) {
    %c0_i32 = arith.constant 0 : i32
    %c0_i32_0 = arith.constant 0 : i32
    %c0_i32_1 = arith.constant 0 : i32
    return %c0_i32, %c0_i32_0 : i32, i32
  }
  func.func @transform_13(%arg0: i32) -> (i32, i32) {
    %c0_i32 = arith.constant 0 : i32
    %c0_i32_0 = arith.constant 0 : i32
    %c0_i32_1 = arith.constant 0 : i32
    return %c0_i32, %c0_i32_0 : i32, i32
  }
  func.func @transform_14(%arg0: i32) -> (i32, i32) {
    %c0_i32 = arith.constant 0 : i32
    %c0_i32_0 = arith.constant 0 : i32
    %c0_i32_1 = arith.constant 0 : i32
    return %c0_i32, %c0_i32_0 : i32, i32
  }
  func.func @transform_15(%arg0: i32) -> (i32, i32) {
    %c0_i32 = arith.constant 0 : i32
    %c0_i32_0 = arith.constant 0 : i32
    %c0_i32_1 = arith.constant 0 : i32
    return %c0_i32, %c0_i32_0 : i32, i32
  }
  func.func @transform_16(%arg0: i32) -> (i32, i32) {
    %c0_i32 = arith.constant 0 : i32
    %c0_i32_0 = arith.constant 0 : i32
    %c0_i32_1 = arith.constant 0 : i32
    return %c0_i32, %c0_i32_0 : i32, i32
  }
  func.func @transform_17(%arg0: i32) -> (i32, i32) {
    %c0_i32 = arith.constant 0 : i32
    %c0_i32_0 = arith.constant 0 : i32
    %c0_i32_1 = arith.constant 0 : i32
    return %c0_i32, %c0_i32_0 : i32, i32
  }
  func.func @transform_18(%arg0: i32) -> (i32, i32) {
    %c0_i32 = arith.constant 0 : i32
    %c0_i32_0 = arith.constant 0 : i32
    %c0_i32_1 = arith.constant 0 : i32
    return %c0_i32, %c0_i32_0 : i32, i32
  }
  func.func @transform_19(%arg0: i32) -> (i32, i32) {
    %c0_i32 = arith.constant 0 : i32
    %c0_i32_0 = arith.constant 0 : i32
    %c0_i32_1 = arith.constant 0 : i32
    return %c0_i32, %c0_i32_0 : i32, i32
  }
  func.func @transform_20(%arg0: i32) -> (i32, i32) {
    %c0_i32 = arith.constant 0 : i32
    %c0_i32_0 = arith.constant 0 : i32
    %c0_i32_1 = arith.constant 0 : i32
    return %c0_i32, %c0_i32_0 : i32, i32
  }
}

module attributes {stable_mosaic.version = 11 : i64} {
  func.func @_noise_norm_kernel(%arg0: i32, %arg1: memref<400x200xf32, #tpu.memory_space<vmem>>, %arg2: memref<400x200xf32, #tpu.memory_space<vmem>>, %arg3: memref<400x200xf32, #tpu.memory_space<vmem>>, %arg4: memref<400x200xf32, #tpu.memory_space<vmem>>) attributes {dimension_semantics = [#tpu.dimension_semantics<arbitrary>], iteration_bounds = array<i64: 1>, scalar_prefetch = 0 : i64, scratch_operands = 0 : i64, tpu.core_type = #tpu.core_type<tc>, window_params = [{pipeline_mode = #tpu.pipeline_mode<synchronous>, transform_indices = @transform_0, window_bounds = array<i64: 400, 200>}, {pipeline_mode = #tpu.pipeline_mode<synchronous>, transform_indices = @transform_1, window_bounds = array<i64: 400, 200>}, {pipeline_mode = #tpu.pipeline_mode<synchronous>, transform_indices = @transform_2, window_bounds = array<i64: 400, 200>}, {pipeline_mode = #tpu.pipeline_mode<synchronous>, transform_indices = @transform_3, window_bounds = array<i64: 400, 200>}]} {
    %c0 = arith.constant 0 : index
    %c0_0 = arith.constant 0 : index
    %0 = vector.load %arg1[%c0, %c0_0] : memref<400x200xf32, #tpu.memory_space<vmem>>, vector<400x200xf32>
    %cst = arith.constant 2.000000e-05 : f32
    %1 = vector.broadcast %cst : f32 to vector<400x200xf32>
    %2 = arith.mulf %0, %1 : vector<400x200xf32>
    %cst_1 = arith.constant 1.000000e+02 : f32
    %3 = vector.broadcast %cst_1 : f32 to vector<400x200xf32>
    %4 = arith.addf %2, %3 : vector<400x200xf32>
    %cst_2 = arith.constant 1.000000e+05 : f32
    %5 = vector.broadcast %cst_2 : f32 to vector<400x200xf32>
    %6 = arith.addf %4, %5 : vector<400x200xf32>
    %c0_3 = arith.constant 0 : index
    %c0_4 = arith.constant 0 : index
    %7 = vector.load %arg2[%c0_3, %c0_4] : memref<400x200xf32, #tpu.memory_space<vmem>>, vector<400x200xf32>
    %cst_5 = arith.constant 2.000000e+08 : f32
    %8 = vector.broadcast %cst_5 : f32 to vector<400x200xf32>
    %9 = arith.mulf %8, %7 : vector<400x200xf32>
    %cst_6 = arith.constant 3.000000e+08 : f32
    %10 = vector.broadcast %cst_6 : f32 to vector<400x200xf32>
    %11 = arith.addf %9, %10 : vector<400x200xf32>
    %12 = arith.addf %6, %11 : vector<400x200xf32>
    %cst_7 = arith.constant 0.000000e+00 : f32
    %13 = vector.broadcast %cst_7 : f32 to vector<400x200xf32>
    %14 = arith.cmpf ole, %12, %13 : vector<400x200xf32>
    %cst_8 = arith.constant 0.000000e+00 : f32
    %15 = vector.broadcast %cst_8 : f32 to vector<400x200xf32>
    %16 = arith.select %14, %15, %12 : vector<400x200xi1>, vector<400x200xf32>
    %17 = math.sqrt %16 : vector<400x200xf32>
    %cst_9 = arith.constant 1.000000e+02 : f32
    %18 = vector.broadcast %cst_9 : f32 to vector<400x200xf32>
    %19 = arith.mulf %18, %17 : vector<400x200xf32>
    %c0_10 = arith.constant 0 : index
    %c0_11 = arith.constant 0 : index
    %20 = vector.load %arg3[%c0_10, %c0_11] : memref<400x200xf32, #tpu.memory_space<vmem>>, vector<400x200xf32>
    %21 = arith.mulf %19, %20 : vector<400x200xf32>
    %22 = arith.addf %16, %21 : vector<400x200xf32>
    %cst_12 = arith.constant 1.000000e+01 : f32
    %23 = vector.broadcast %cst_12 : f32 to vector<400x200xf32>
    %24 = arith.cmpf ole, %22, %23 : vector<400x200xf32>
    %cst_13 = arith.constant 1.000000e+00 : f32
    %25 = vector.broadcast %cst_13 : f32 to vector<400x200xf32>
    %26 = arith.select %24, %25, %22 : vector<400x200xi1>, vector<400x200xf32>
    %cst_14 = arith.constant 4.000000e+09 : f32
    %27 = vector.broadcast %cst_14 : f32 to vector<400x200xf32>
    %28 = arith.cmpf oge, %26, %27 : vector<400x200xf32>
    %cst_15 = arith.constant 4.000000e+09 : f32
    %29 = vector.broadcast %cst_15 : f32 to vector<400x200xf32>
    %30 = arith.select %28, %29, %26 : vector<400x200xi1>, vector<400x200xf32>
    %cst_16 = arith.constant 2.500000e-10 : f32
    %31 = vector.broadcast %cst_16 : f32 to vector<400x200xf32>
    %32 = arith.mulf %30, %31 : vector<400x200xf32>
    %c0_17 = arith.constant 0 : index
    %c0_18 = arith.constant 0 : index
    %33 = vector.load %arg4[%c0_17, %c0_18] : memref<400x200xf32, #tpu.memory_space<vmem>>, vector<400x200xf32>
    tpu.vector_store %arg4[%c0_17, %c0_18], %32 {strides = array<i32>} : memref<400x200xf32, #tpu.memory_space<vmem>>, vector<400x200xf32>,
    return
  }
  func.func @transform_0(%arg0: i32) -> (i32, i32) {
    %c0_i32 = arith.constant 0 : i32
    %c0_i32_0 = arith.constant 0 : i32
    %c0_i32_1 = arith.constant 0 : i32
    return %c0_i32, %c0_i32_0 : i32, i32
  }
  func.func @transform_1(%arg0: i32) -> (i32, i32) {
    %c0_i32 = arith.constant 0 : i32
    %c0_i32_0 = arith.constant 0 : i32
    %c0_i32_1 = arith.constant 0 : i32
    return %c0_i32, %c0_i32_0 : i32, i32
  }
  func.func @transform_2(%arg0: i32) -> (i32, i32) {
    %c0_i32 = arith.constant 0 : i32
    %c0_i32_0 = arith.constant 0 : i32
    %c0_i32_1 = arith.constant 0 : i32
    return %c0_i32, %c0_i32_0 : i32, i32
  }
  func.func @transform_3(%arg0: i32) -> (i32, i32) {
    %c0_i32 = arith.constant 0 : i32
    %c0_i32_0 = arith.constant 0 : i32
    %c0_i32_1 = arith.constant 0 : i32
    return %c0_i32, %c0_i32_0 : i32, i32
  }
}

</mosaic_0001>

<bundles_post_ra>
// kernel: _forward.2
= control target key start
LH: loop header
LB: loop body
LE: loop exit
PB: predicated region body
PF: predicated region fallthrough
CT: control target
= control target key end

     0   :  { %vm121_vm0 = vcmask 261120   ;;  %vm1154_vm1 = vcmask 523264   ;;  %s6419_s0 = inlined_call_operand.vmem [shape: f32[32,32], index: 0, kind: input, shape index: {}]   ;;  %s6420_s1 = inlined_call_operand.vmem [shape: f32[32,32], index: 1, kind: input, shape index: {}]   ;;  %s6421_s6 = inlined_call_operand.vmem [shape: f32[32,32], index: 6, kind: input, shape index: {}]   ;;  %s6422_s7 = inlined_call_operand.vmem [shape: f32[32,32], index: 7, kind: input, shape index: {}]   ;;  %s6423_s8 = inlined_call_operand.vmem [shape: f32[64,32], index: 8, kind: input, shape index: {}]   ;;  %s6424_s9 = inlined_call_operand.vmem [shape: f32[64,32], index: 9, kind: input, shape index: {}]   ;;  %s6425_s10 = inlined_call_operand.vmem [shape: f32[32,64], index: 10, kind: input, shape index: {}]   ;;  %s6426_s11 = inlined_call_operand.vmem [shape: f32[32,64], index: 11, kind: input, shape index: {}]   ;;  %s6427_s14 = inlined_call_operand.vmem [shape: f32[32,64], index: 14, kind: input, shape index: {}]   ;;  %s6428_s15 = inlined_call_operand.vmem [shape: f32[32,64], index: 15, kind: input, shape index: {}]   ;;  %s6429_s12 = inlined_call_operand.vmem [shape: f32[64,64], index: 12, kind: input, shape index: {}]   ;;  %s6430_s13 = inlined_call_operand.vmem [shape: f32[64,64], index: 13, kind: input, shape index: {}]   ;;  %s6431_s16 = inlined_call_operand.vmem [shape: f32[64,32], index: 16, kind: input, shape index: {}]   ;;  %s6432_s17 = inlined_call_operand.vmem [shape: f32[64,32], index: 17, kind: input, shape index: {}]   ;;  %s6433_s4 = inlined_call_operand.vmem [shape: f32[192,32], index: 4, kind: input, shape index: {}]   ;;  %s6434_s18 = inlined_call_operand.vmem [shape: f32[32,32], index: 18, kind: input, shape index: {}]   ;;  %s6435_s19 = inlined_call_operand.vmem [shape: f32[32,32], index: 19, kind: input, shape index: {}]   ;;  %s6436_s2 = inlined_call_operand.vmem [shape: f32[192,32], index: 2, kind: input, shape index: {}]   ;;  %s6437_s3 = inlined_call_operand.vmem [shape: f32[192,32], index: 3, kind: input, shape index: {}]   ;;  %s6438_s5 = inlined_call_operand.vmem [shape: f32[8,192], index: 5, kind: input, shape index: {}]   ;;  %s6439_s20 = inlined_call_operand.vmem [shape: f32[8,32], index: 20, kind: output, shape index: {}]  }
   0x1   :  { %6448 = sst [smem:[#allocation5_spill]] %s6419_s0  ;;  %v5326_v29 = vld [vmem:[%s6424_s9] sm:$0xff]  ;;  %v599_v46 = vld [vmem:[%s6425_s10 + $0x8] sm:$0xff]  ;;  %v115_v52 = vld [vmem:[%s6424_s9 + $0x10] sm:$0xff] }
   0x2   :  { %6449 = sst [smem:[#allocation6_spill]] %s6420_s1  ;;  %s6454_s23 = sld [smem:[#allocation5_spill]]  ;;  %4263 = vmatprep.mubr.msk.f32.mxu1 %vm121_vm0, %v5326_v29  ;;  %v598_v45 = vld [vmem:[%s6425_s10] sm:$0xff]  ;;  %v114_v50 = vld [vmem:[%s6424_s9 + $0x8] sm:$0xff]  ;;  %v116_v54 = vld [vmem:[%s6424_s9 + $0x18] sm:$0xff] }
   0x3   :  { %6450 = sst [smem:[#allocation7_spill]] %s6421_s6  ;;  %s6455_s26 = sld [smem:[#allocation6_spill]]  ;;  %v4867_v48 = vpack.c.bf16 %v599_v46, %v598_v45  ;;  %v117_v56 = vld [vmem:[%s6424_s9 + $0x20] sm:$0xff]  ;;  %v118_v58 = vld [vmem:[%s6424_s9 + $0x28] sm:$0xff]  ;;  %v119_v60 = vld [vmem:[%s6424_s9 + $0x30] sm:$0xff] }
   0x4   :  { %6451 = sst [smem:[#allocation8_spill]] %s6422_s7  ;;  %s6456_s30 = sld [smem:[#allocation7_spill]]  ;;  %v120_v62 = vld [vmem:[%s6424_s9 + $0x38] sm:$0xff]  ;;  %v600_v63 = vld [vmem:[%s6425_s10 + $0x10] sm:$0xff] }
   0x5   :  { %6452 = sst [smem:[#allocation9_spill]] %s6423_s8  ;;  %s6457_s24 = sld [smem:[#allocation8_spill]] }
   0x6   :  { %6453 = sst [smem:[#allocation10_spill]] %s6439_s20  ;;  %s6458_s29 = sld [smem:[#allocation9_spill]] }
   0x7   :  { %s6465_s7 = sld [smem:[#allocation10_spill]] }
   0x8   :  { %v65_v0 = vld [vmem:[%s6454_s23] sm:$0xff]  ;;  %v66_v1 = vld [vmem:[%s6454_s23 + $0x8] sm:$0xff]  ;;  %v67_v12 = vld [vmem:[%s6454_s23 + $0x10] sm:$0xff] }
   0x9   :  { %v69_v2 = vld [vmem:[%s6455_s26] sm:$0xff]  ;;  %v70_v3 = vld [vmem:[%s6455_s26 + $0x8] sm:$0xff]  ;;  %v68_v17 = vld [vmem:[%s6454_s23 + $0x18] sm:$0xff] }
   0xa   :  { %v73_v4 = vld [vmem:[%s6456_s30] sm:$0xff]  ;;  %v74_v5 = vld [vmem:[%s6456_s30 + $0x8] sm:$0xff]  ;;  %v71_v18 = vld [vmem:[%s6455_s26 + $0x10] sm:$0xff] }
   0xb   :  { %v77_v6 = vmul.f32 %v73_v4, %v65_v0  ;;  %v78_v7 = vmul.f32 %v74_v5, %v66_v1  ;;  %v81_v8 = vld [vmem:[%s6457_s24] sm:$0xff]  ;;  %v82_v9 = vld [vmem:[%s6457_s24 + $0x8] sm:$0xff]  ;;  %v93_v10 = vmul.f32 %v73_v4, %v69_v2  ;;  %v94_v11 = vmul.f32 %v74_v5, %v70_v3  ;;  %v72_v19 = vld [vmem:[%s6455_s26 + $0x18] sm:$0xff] }
   0xc   :  { %v85_v13 = vmul.f32 %v81_v8, %v69_v2  ;;  %v86_v14 = vmul.f32 %v82_v9, %v70_v3  ;;  %v97_v15 = vmul.f32 %v81_v8, %v65_v0  ;;  %v98_v16 = vmul.f32 %v82_v9, %v66_v1  ;;  %v75_v20 = vld [vmem:[%s6456_s30 + $0x10] sm:$0xff]  ;;  %v76_v21 = vld [vmem:[%s6456_s30 + $0x18] sm:$0xff]  ;;  %v5321_v28 = vld [vmem:[%s6458_s29] sm:$0xff] }
   0xd   :  { %v83_v22 = vld [vmem:[%s6457_s24 + $0x10] sm:$0xff]  ;;  %v84_v27 = vld [vmem:[%s6457_s24 + $0x18] sm:$0xff]  ;;  %v79_v30 = vmul.f32 %v75_v20, %v67_v12  ;;  %v80_v31 = vmul.f32 %v76_v21, %v68_v17  ;;  %4243 = vmatprep.mubr.msk.f32.mxu0 %vm121_vm0, %v5321_v28  ;;  %v95_v36 = vmul.f32 %v75_v20, %v71_v18  ;;  %v96_v37 = vmul.f32 %v76_v21, %v72_v19  ;;  %v106_v49 = vld [vmem:[%s6458_s29 + $0x8] sm:$0xff] }
   0xe   :  { %v89_v23 = vsub.f32 %v77_v6, %v85_v13  ;;  %v90_v24 = vsub.f32 %v78_v7, %v86_v14  ;;  %v101_v25 = vadd.f32 %v97_v15, %v93_v10  ;;  %v102_v26 = vadd.f32 %v98_v16, %v94_v11  ;;  %v107_v51 = vld [vmem:[%s6458_s29 + $0x10] sm:$0xff]  ;;  %v108_v53 = vld [vmem:[%s6458_s29 + $0x18] sm:$0xff]  ;;  %v109_v55 = vld [vmem:[%s6458_s29 + $0x20] sm:$0xff] }
   0xf   :  { %v87_v32 = vmul.f32 %v83_v22, %v71_v18  ;;  %v88_v33 = vmul.f32 %v84_v27, %v72_v19  ;;  %v99_v40 = vmul.f32 %v83_v22, %v67_v12  ;;  %v100_v41 = vmul.f32 %v84_v27, %v68_v17  ;;  %v110_v57 = vld [vmem:[%s6458_s29 + $0x28] sm:$0xff]  ;;  %v111_v59 = vld [vmem:[%s6458_s29 + $0x30] sm:$0xff]  ;;  %v112_v61 = vld [vmem:[%s6458_s29 + $0x38] sm:$0xff] }
  0x10   :  { %v4835_v34 = vpack.c.bf16 %v90_v24, %v89_v23  ;;  %v4843_v35 = vpack.c.bf16 %v102_v26, %v101_v25  ;;  %v601_v0 = vld [vmem:[%s6425_s10 + $0x18] sm:$0xff]  ;;  %v602_v2 = vld [vmem:[%s6426_s11] sm:$0xff]  ;;  %v603_v3 = vld [vmem:[%s6426_s11 + $0x8] sm:$0xff] }
  0x11   :  { %v91_v38 = vsub.f32 %v79_v30, %v87_v32  ;;  %v92_v39 = vsub.f32 %v80_v31, %v88_v33  ;;  %v103_v43 = vadd.f32 %v99_v40, %v95_v36  ;;  %v104_v44 = vadd.f32 %v100_v41, %v96_v37  ;;  %v604_v8 = vld [vmem:[%s6426_s11 + $0x10] sm:$0xff]  ;;  %v605_v9 = vld [vmem:[%s6426_s11 + $0x18] sm:$0xff]  ;;  %v5465_v40 = vld [vmem:[%s6427_s14] sm:$0xff] }
  0x12   :  { %4836 = vmatprep.subr.bf16.mxu0 %v4835_v34  ;;  %4844 = vmatprep.subr.bf16.mxu1 %v4843_v35  ;;  %v4871_v1 = vpack.c.bf16 %v601_v0, %v600_v63  ;;  %v4875_v4 = vpack.c.bf16 %v603_v3, %v602_v2  ;;  %v4879_v14 = vpack.c.bf16 %v605_v9, %v604_v8  ;;  %v5472_v41 = vld [vmem:[%s6428_s15] sm:$0xff]  ;;  %v1091_v2 = vld [vmem:[%s6430_s13 + $0x8] sm:$0xff]  ;;  %v1085_v9 = vld [vmem:[%s6429_s12 + $0x18] sm:$0xff] }
  0x13   :  { %4838 = vmatpush3.bf16.msra.mxu0 %v4835_v34  ;;  %4846 = vmatpush3.bf16.msra.mxu1 %v4843_v35  ;;  %v4839_v42 = vpack.c.bf16 %v92_v39, %v91_v38  ;;  %v4847_v47 = vpack.c.bf16 %v104_v44, %v103_v43 }
  0x15   :  { %4840 = vmatprep.subr.bf16.mxu0 %v4839_v42  ;;  %4848 = vmatprep.subr.bf16.mxu1 %v4847_v47 }
  0x17   :  { %4842 = vmatpush3.bf16.msra.mxu0 %v4839_v42  ;;  %4850 = vmatpush3.bf16.msra.mxu1 %v4847_v47 }
  0x18   :  { %4852 = vmatprep.subr.bf16.mxu0 %v4835_v34  ;;  %4868 = vmatprep.subr.bf16.mxu1 %v4867_v48 }
  0x1a   :  { %4244 = vmatmul.mubr.msk.f32.vlgmr.msra.gmra.mrb[0].mxu0 %vm121_vm0, %v106_v49  ;;  %4264 = vmatmul.mubr.msk.f32.vlgmr.msra.gmra.mrb[0].mxu1 %vm121_vm0, %v114_v50 }
  0x1b   :  { %4854 = vmatpush3.bf16.msra.mxu0 %v4835_v34  ;;  %4246 = vmatprep.mubr.msk.f32.mxu0 %vm121_vm0, %v107_v51 }
  0x1c   :  { %4266 = vmatprep.mubr.msk.f32.mxu1 %vm121_vm0, %v115_v52  ;;  %4856 = vmatprep.subr.bf16.mxu0 %v4839_v42 }
  0x1d   :  { %4870 = vmatpush3.bf16.msra.mxu1 %v4867_v48 }
  0x1e   :  { %4247 = vmatmul.mubr.msk.f32.gmra.mrb[2].mxu0 %vm121_vm0, %v108_v53  ;;  %4267 = vmatmul.mubr.msk.f32.gmra.mrb[2].mxu1 %vm121_vm0, %v116_v54 }
  0x1f   :  { %4249 = vmatprep.mubr.msk.f32.mxu0 %vm121_vm0, %v109_v55  ;;  %4269 = vmatprep.mubr.msk.f32.mxu1 %vm121_vm0, %v117_v56 }
  0x20   :  { %4858 = vmatpush3.bf16.msra.mxu0 %v4839_v42  ;;  %4872 = vmatprep.subr.bf16.mxu1 %v4871_v1 }
  0x21   :  { %4860 = vmatprep.subr.bf16.mxu0 %v4843_v35  ;;  %4874 = vmatpush3.bf16.msra.mxu1 %v4871_v1 }
  0x22   :  { %4250 = vmatmul.mubr.msk.f32.gmra.mrb[4].mxu0 %vm121_vm0, %v110_v57  ;;  %4270 = vmatmul.mubr.msk.f32.gmra.mrb[4].mxu1 %vm121_vm0, %v118_v58 }
  0x23   :  { %4252 = vmatprep.mubr.msk.f32.mxu0 %vm121_vm0, %v111_v59  ;;  %4272 = vmatprep.mubr.msk.f32.mxu1 %vm121_vm0, %v119_v60 }
  0x24   :  { %4876 = vmatprep.subr.bf16.mxu1 %v4875_v4 }
  0x26   :  { %4253 = vmatmul.mubr.msk.f32.gmra.mrb[6].mxu0 %vm121_vm0, %v112_v61  ;;  %4273 = vmatmul.mubr.msk.f32.gmra.mrb[6].mxu1 %vm121_vm0, %v120_v62 }
  0x27   :  { %4283 = vmatprep.mubr.msk.f32.mxu0 %vm121_vm0, %v5326_v29 }
  0x2a   :  { %4284 = vmatmul.mubr.msk.f32.vlgmr.msra.gmra.mrb[8].mxu0 %vm121_vm0, %v114_v50 }
  0x2b   :  { %4862 = vmatpush3.bf16.msra.mxu0 %v4843_v35  ;;  %4286 = vmatprep.mubr.msk.f32.mxu0 %vm121_vm0, %v115_v52 }
  0x2c   :  { %4864 = vmatprep.subr.bf16.mxu0 %v4847_v47 }
  0x2e   :  { %4287 = vmatmul.mubr.msk.f32.gmra.mrb[10].mxu0 %vm121_vm0, %v116_v54 }
  0x2f   :  { %4289 = vmatprep.mubr.msk.f32.mxu0 %vm121_vm0, %v117_v56  ;;  %4866 = vmatpush3.bf16.msra.mxu0 %v4847_v47 }
  0x30   :  { %4884 = vmatprep.subr.bf16.mxu0 %v4867_v48 }
  0x32   :  { %4290 = vmatmul.mubr.msk.f32.gmra.mrb[12].mxu0 %vm121_vm0, %v118_v58 }
  0x33   :  { %4292 = vmatprep.mubr.msk.f32.mxu0 %vm121_vm0, %v119_v60 }
  0x36   :  { %4293 = vmatmul.mubr.msk.f32.gmra.mrb[14].mxu0 %vm121_vm0, %v120_v62 }
  0x37   :  { %4303 = vmatprep.mubr.msk.f32.mxu0 %vm121_vm0, %v5321_v28 }
  0x3a   :  { %4304 = vmatmul.mubr.msk.f32.vlgmr.msra.gmra.mrb[8].mxu0 %vm121_vm0, %v106_v49 }
  0x3b   :  { %4306 = vmatprep.mubr.msk.f32.mxu0 %vm121_vm0, %v107_v51  ;;  %4886 = vmatpush3.bf16.msra.mxu0 %v4867_v48 }
  0x3c   :  { %4888 = vmatprep.subr.bf16.mxu0 %v4871_v1 }
  0x3e   :  { %4307 = vmatmul.mubr.msk.f32.gmra.mrb[10].mxu0 %vm121_vm0, %v108_v53 }
  0x3f   :  { %4309 = vmatprep.mubr.msk.f32.mxu0 %vm121_vm0, %v109_v55  ;;  %4890 = vmatpush3.bf16.msra.mxu0 %v4871_v1  ;;  %v1083_v1 = vld [vmem:[%s6429_s12 + $0x8] sm:$0xff] }
  0x40   :  { %4892 = vmatprep.subr.bf16.mxu0 %v4875_v4 }
  0x42   :  { %4310 = vmatmul.mubr.msk.f32.gmra.mrb[12].mxu0 %vm121_vm0, %v110_v57 }
  0x43   :  { %4312 = vmatprep.mubr.msk.f32.mxu0 %vm121_vm0, %v111_v59 }
  0x46   :  { %4313 = vmatmul.mubr.msk.f32.gmra.mrb[14].mxu0 %vm121_vm0, %v112_v61 }
  0xed   :  { %v4245_v5 = vpop.f32.mrb[0].mxu0  ;;  %v4265_v6 = vpop.f32.mrb[0].mxu1 }
  0xee   :  { %v212_v7 = vpop.f32.mrb[1].mxu0  ;;  %v381_v10 = vsub.f32 %v4245_v5, %v4265_v6  ;;  %v341_v11 = vpop.f32.mrb[1].mxu1  ;;  %v1090_v5 = vld [vmem:[%s6430_s13] sm:$0xff] }
  0xef   :  { %v380_v12 = vsub.f32 %v212_v7, %v341_v11 }
  0xf1   :  { %v4248_v13 = vpop.f32.mrb[2].mxu0  ;;  %v4268_v15 = vpop.f32.mrb[2].mxu1  ;;  %4323 = vmatprep.mubr.msk.f32.mxu1 %vm121_vm0, %v380_v12 }
  0xf2   :  { %v222_v16 = vpop.f32.mrb[3].mxu0  ;;  %v383_v17 = vsub.f32 %v4248_v13, %v4268_v15  ;;  %v351_v18 = vpop.f32.mrb[3].mxu1  ;;  %4324 = vmatmul.mubr.msk.f32.vlgmr.msra.gmra.mrb[8].mxu1 %vm121_vm0, %v381_v10 }
  0xf3   :  { %v382_v19 = vsub.f32 %v222_v16, %v351_v18  ;;  %4878 = vmatpush3.bf16.msra.mxu1 %v4875_v4  ;;  %v1084_v16 = vld [vmem:[%s6429_s12 + $0x10] sm:$0xff] }
  0xf4   :  { %4880 = vmatprep.subr.bf16.mxu1 %v4879_v14 }
  0xf5   :  { %v4251_v20 = vpop.f32.mrb[4].mxu0  ;;  %v4271_v21 = vpop.f32.mrb[4].mxu1  ;;  %4326 = vmatprep.mubr.msk.f32.mxu1 %vm121_vm0, %v382_v19 }
  0xf6   :  { %v232_v22 = vpop.f32.mrb[5].mxu0  ;;  %v385_v23 = vsub.f32 %v4251_v20, %v4271_v21  ;;  %v361_v24 = vpop.f32.mrb[5].mxu1  ;;  %4327 = vmatmul.mubr.msk.f32.gmra.mrb[10].mxu1 %vm121_vm0, %v383_v17 }
  0xf7   :  { %v384_v25 = vsub.f32 %v232_v22, %v361_v24  ;;  %4882 = vmatpush3.bf16.msra.mxu1 %v4879_v14  ;;  %v1087_v24 = vld [vmem:[%s6429_s12 + $0x28] sm:$0xff] }
  0xf9   :  { %v4254_v26 = vpop.f32.mrb[6].mxu0  ;;  %v4274_v27 = vpop.f32.mrb[6].mxu1  ;;  %4329 = vmatprep.mubr.msk.f32.mxu1 %vm121_vm0, %v384_v25 }
  0xfa   :  { %v242_v28 = vpop.f32.mrb[7].mxu0  ;;  %v387_v29 = vsub.f32 %v4254_v26, %v4274_v27  ;;  %v371_v30 = vpop.f32.mrb[7].mxu1  ;;  %4330 = vmatmul.mubr.msk.f32.gmra.mrb[12].mxu1 %vm121_vm0, %v385_v23 }
  0xfb   :  { %v386_v31 = vsub.f32 %v242_v28, %v371_v30 }
  0xfd   :  { %4332 = vmatprep.mubr.msk.f32.mxu1 %vm121_vm0, %v386_v31 }
  0xfe   :  { %4333 = vmatmul.mubr.msk.f32.gmra.mrb[14].mxu1 %vm121_vm0, %v387_v29 }
 0x10d   :  { %v4305_v32 = vpop.f32.mrb[8].mxu0 }
 0x10e   :  { %v559_v33 = vpop.f32.mrb[9].mxu0 }
 0x10f   :  { %4343 = vmatprep.mubr.msk.f32.mxu1 %vm121_vm0, %v559_v33  ;;  %4363 = vmatprep.mubr.msk.f32.mxu0 %vm121_vm0, %v559_v33 }
 0x110   :  { %4344 = vmatmul.mubr.msk.f32.vlgmr.msra.gmra.mrb[16].mxu1 %vm121_vm0, %v4305_v32  ;;  %4364 = vmatmul.mubr.msk.f32.vlgmr.msra.gmra.mrb[16].mxu0 %vm121_vm0, %v4305_v32 }
 0x111   :  { %v4308_v34 = vpop.f32.mrb[10].mxu0  ;;  %4894 = vmatpush3.bf16.msra.mxu0 %v4875_v4  ;;  %v1082_v4 = vld [vmem:[%s6429_s12] sm:$0xff] }
 0x112   :  { %v569_v35 = vpop.f32.mrb[11].mxu0  ;;  %4896 = vmatprep.subr.bf16.mxu0 %v4879_v14 }
 0x113   :  { %4346 = vmatprep.mubr.msk.f32.mxu1 %vm121_vm0, %v569_v35  ;;  %4366 = vmatprep.mubr.msk.f32.mxu0 %vm121_vm0, %v569_v35  ;;  %v1094_v35 = vld [vmem:[%s6430_s13 + $0x20] sm:$0xff] }
 0x114   :  { %4347 = vmatmul.mubr.msk.f32.gmra.mrb[18].mxu1 %vm121_vm0, %v4308_v34  ;;  %4367 = vmatmul.mubr.msk.f32.gmra.mrb[18].mxu0 %vm121_vm0, %v4308_v34 }
 0x115   :  { %v4311_v36 = vpop.f32.mrb[12].mxu0  ;;  %4898 = vmatpush3.bf16.msra.mxu0 %v4879_v14 }
 0x116   :  { %v579_v37 = vpop.f32.mrb[13].mxu0 }
 0x117   :  { %4349 = vmatprep.mubr.msk.f32.mxu1 %vm121_vm0, %v579_v37  ;;  %4369 = vmatprep.mubr.msk.f32.mxu0 %vm121_vm0, %v579_v37 }
 0x118   :  { %4350 = vmatmul.mubr.msk.f32.gmra.mrb[20].mxu1 %vm121_vm0, %v4311_v36  ;;  %4370 = vmatmul.mubr.msk.f32.gmra.mrb[20].mxu0 %vm121_vm0, %v4311_v36 }
 0x119   :  { %v4314_v38 = vpop.f32.mrb[14].mxu0 }
 0x11a   :  { %v589_v39 = vpop.f32.mrb[15].mxu0 }
 0x11b   :  { %4352 = vmatprep.mubr.msk.f32.mxu1 %vm121_vm0, %v589_v39  ;;  %4372 = vmatprep.mubr.msk.f32.mxu0 %vm121_vm0, %v589_v39 }
 0x11c   :  { %4353 = vmatmul.mubr.msk.f32.gmra.mrb[22].mxu1 %vm121_vm0, %v4314_v38  ;;  %4373 = vmatmul.mubr.msk.f32.gmra.mrb[22].mxu0 %vm121_vm0, %v4314_v38 }
 0x11d   :  { %4383 = vmatprep.mubr.msk.f32.mxu0 %vm121_vm0, %v380_v12  ;;  %4411 = vmatprep.mubr.msk.f32.mxu1 %vm1154_vm1, %v5465_v40 }
 0x120   :  { %4384 = vmatmul.mubr.msk.f32.vlgmr.msra.gmra.mrb[16].mxu0 %vm121_vm0, %v381_v10  ;;  %v1093_v10 = vld [vmem:[%s6430_s13 + $0x18] sm:$0xff] }
 0x121   :  { %4386 = vmatprep.mubr.msk.f32.mxu0 %vm121_vm0, %v382_v19 }
 0x124   :  { %4387 = vmatmul.mubr.msk.f32.gmra.mrb[18].mxu0 %vm121_vm0, %v383_v17  ;;  %v1092_v17 = vld [vmem:[%s6430_s13 + $0x10] sm:$0xff] }
 0x125   :  { %4389 = vmatprep.mubr.msk.f32.mxu0 %vm121_vm0, %v384_v25  ;;  %v1095_v25 = vld [vmem:[%s6430_s13 + $0x28] sm:$0xff] }
 0x128   :  { %4390 = vmatmul.mubr.msk.f32.gmra.mrb[20].mxu0 %vm121_vm0, %v385_v23 }
 0x129   :  { %4392 = vmatprep.mubr.msk.f32.mxu0 %vm121_vm0, %v386_v31  ;;  %v1086_v31 = vld [vmem:[%s6429_s12 + $0x20] sm:$0xff] }
 0x12c   :  { %4393 = vmatmul.mubr.msk.f32.gmra.mrb[22].mxu0 %vm121_vm0, %v387_v29 }
 0x12d   :  { %4455 = vmatprep.mubr.msk.f32.mxu0 %vm1154_vm1, %v5472_v41 }
 0x1c5   :  { %v4325_v42 = vpop.f32.mrb[8].mxu1 }
 0x1c6   :  { %v696_v43 = vpop.f32.mrb[9].mxu1 }
 0x1c9   :  { %v4328_v44 = vpop.f32.mrb[10].mxu1 }
 0x1ca   :  { %v706_v45 = vpop.f32.mrb[11].mxu1 }
 0x1cd   :  { %v4331_v46 = vpop.f32.mrb[12].mxu1 }
 0x1ce   :  { %v716_v47 = vpop.f32.mrb[13].mxu1 }
 0x1d1   :  { %v4334_v48 = vpop.f32.mrb[14].mxu1 }
 0x1d2   :  { %v726_v49 = vpop.f32.mrb[15].mxu1 }
 0x1e3   :  { %v4345_v50 = vpop.f32.mrb[16].mxu1 }
 0x1e4   :  { %v865_v51 = vsub.f32 %v4325_v42, %v4345_v50  ;;  %v825_v52 = vpop.f32.mrb[17].mxu1 }
 0x1e5   :  { %v864_v53 = vsub.f32 %v696_v43, %v825_v52 }
 0x1e6   :  { %v1099_v7 = vmul.f32 %v1083_v1, %v865_v51  ;;  %v1123_v8 = vmul.f32 %v1091_v2, %v865_v51 }
 0x1e7   :  { %v4348_v54 = vpop.f32.mrb[18].mxu1  ;;  %v1098_v14 = vmul.f32 %v1082_v4, %v864_v53  ;;  %v1122_v15 = vmul.f32 %v1090_v5, %v864_v53  ;;  %v1088_v53 = vld [vmem:[%s6429_s12 + $0x30] sm:$0xff] }
 0x1e8   :  { %v867_v55 = vsub.f32 %v4328_v44, %v4348_v54  ;;  %v835_v56 = vpop.f32.mrb[19].mxu1 }
 0x1e9   :  { %v866_v57 = vsub.f32 %v706_v45, %v835_v56 }
 0x1ea   :  { %v1101_v22 = vmul.f32 %v1085_v9, %v867_v55  ;;  %v1125_v23 = vmul.f32 %v1093_v10, %v867_v55 }
 0x1eb   :  { %v4351_v58 = vpop.f32.mrb[20].mxu1  ;;  %v1100_v29 = vmul.f32 %v1084_v16, %v866_v57  ;;  %v1124_v30 = vmul.f32 %v1092_v17, %v866_v57  ;;  %v1096_v57 = vld [vmem:[%s6430_s13 + $0x30] sm:$0xff] }
 0x1ec   :  { %v869_v59 = vsub.f32 %v4331_v46, %v4351_v58  ;;  %v845_v60 = vpop.f32.mrb[21].mxu1 }
 0x1ed   :  { %v868_v61 = vsub.f32 %v716_v47, %v845_v60  ;;  %v1089_v47 = vld [vmem:[%s6429_s12 + $0x38] sm:$0xff] }
 0x1ee   :  { %v1103_v42 = vmul.f32 %v1087_v24, %v869_v59  ;;  %v1127_v43 = vmul.f32 %v1095_v25, %v869_v59 }
 0x1ef   :  { %v4354_v62 = vpop.f32.mrb[22].mxu1  ;;  %v1102_v46 = vmul.f32 %v1086_v31, %v868_v61  ;;  %v1126_v52 = vmul.f32 %v1094_v35, %v868_v61 }
 0x1f0   :  { %v5476_v63 = vsub.f32 %v4334_v48, %v4354_v62  ;;  %v855_v0 = vpop.f32.mrb[23].mxu1  ;;  %v1097_v48 = vld [vmem:[%s6430_s13 + $0x38] sm:$0xff] }
 0x1f1   :  { %v5484_v3 = vsub.f32 %v726_v49, %v855_v0 }
 0x1f2   :  { %v1105_v0 = vmul.f32 %v1089_v47, %v5476_v63  ;;  %v1129_v61 = vmul.f32 %v1097_v48, %v5476_v63 }
 0x1f3   :  { %v4385_v6 = vpop.f32.mrb[16].mxu0 }
 0x1f4   :  { %v1107_v11 = vmul.f32 %v4385_v6, %v1091_v2  ;;  %v1131_v12 = vmul.f32 %v4385_v6, %v1083_v1  ;;  %v1043_v13 = vpop.f32.mrb[17].mxu0 }
 0x1f5   :  { %v1106_v18 = vmul.f32 %v1090_v5, %v1043_v13  ;;  %v1130_v19 = vmul.f32 %v1082_v4, %v1043_v13  ;;  %v1104_v4 = vmul.f32 %v1088_v53, %v5484_v3 }
 0x1f6   :  { %v1115_v20 = vsub.f32 %v1099_v7, %v1107_v11  ;;  %v1139_v21 = vadd.f32 %v1131_v12, %v1123_v8  ;;  %v1128_v8 = vmul.f32 %v1096_v57, %v5484_v3  ;;  %v1147_v3 = vld [vmem:[%s6427_s14 + $0x8] sm:$0xff] }
 0x1f7   :  { %v1114_v26 = vsub.f32 %v1098_v14, %v1106_v18  ;;  %v1138_v27 = vadd.f32 %v1130_v19, %v1122_v15  ;;  %v4388_v28 = vpop.f32.mrb[18].mxu0 }
 0x1f8   :  { %v1109_v32 = vmul.f32 %v4388_v28, %v1093_v10  ;;  %v1133_v33 = vmul.f32 %v4388_v28, %v1085_v9  ;;  %v1053_v34 = vpop.f32.mrb[19].mxu0  ;;  %v1526_v28 = vld [vmem:[%s6431_s16 + $0x18] sm:$0xff] }
 0x1f9   :  { %v4899_v36 = vpack.c.bf16 %v1115_v20, %v1114_v26  ;;  %v5516_v37 = vpack.c.bf16 %v1139_v21, %v1138_v27  ;;  %v1108_v38 = vmul.f32 %v1092_v17, %v1053_v34  ;;  %v1132_v39 = vmul.f32 %v1084_v16, %v1053_v34  ;;  %v1151_v21 = vld [vmem:[%s6428_s15 + $0x8] sm:$0xff]  ;;  %v1525_v27 = vld [vmem:[%s6431_s16 + $0x10] sm:$0xff]  ;;  %v1530_v34 = vld [vmem:[%s6431_s16 + $0x38] sm:$0xff] }
 0x1fa   :  { %v1117_v44 = vsub.f32 %v1101_v22, %v1109_v32  ;;  %v1141_v45 = vadd.f32 %v1133_v33, %v1125_v23  ;;  %v1148_v22 = vld [vmem:[%s6427_s14 + $0x10] sm:$0xff] }
 0x1fb   :  { %v1116_v49 = vsub.f32 %v1100_v29, %v1108_v38  ;;  %v1140_v50 = vadd.f32 %v1132_v39, %v1124_v30  ;;  %v4391_v51 = vpop.f32.mrb[20].mxu0  ;;  %4900 = vmatprep.subr.bf16.mxu1 %v4899_v36  ;;  %4932 = vmatprep.subr.bf16.mxu0 %v4899_v36  ;;  %v1152_v23 = vld [vmem:[%s6428_s15 + $0x10] sm:$0xff]  ;;  %v4967_v29 = vpack.c.bf16 %v1526_v28, %v1525_v27  ;;  %v1527_v30 = vld [vmem:[%s6431_s16 + $0x20] sm:$0xff]  ;;  %v1924_v27 = vld [vmem:[%s6433_s4 + $0x88] sm:$0xff] }
 0x1fc   :  { %v1111_v54 = vmul.f32 %v4391_v51, %v1095_v25  ;;  %v1135_v55 = vmul.f32 %v4391_v51, %v1087_v24  ;;  %v1063_v56 = vpop.f32.mrb[21].mxu0  ;;  %4902 = vmatpush3.bf16.msra.mxu1 %v4899_v36  ;;  %4934 = vmatpush3.bf16.msra.mxu0 %v4899_v36  ;;  %v1149_v24 = vld [vmem:[%s6427_s14 + $0x18] sm:$0xff]  ;;  %v1529_v33 = vld [vmem:[%s6431_s16 + $0x30] sm:$0xff]  ;;  %v1531_v36 = vld [vmem:[%s6432_s17] sm:$0xff] }
 0x1fd   :  { %v4903_v58 = vpack.c.bf16 %v1117_v44, %v1116_v49  ;;  %v4919_v59 = vpack.c.bf16 %v1141_v45, %v1140_v50  ;;  %v1110_v60 = vmul.f32 %v1094_v35, %v1063_v56  ;;  %v1134_v62 = vmul.f32 %v1086_v31, %v1063_v56  ;;  %v1153_v25 = vld [vmem:[%s6428_s15 + $0x18] sm:$0xff]  ;;  %v1528_v31 = vld [vmem:[%s6431_s16 + $0x28] sm:$0xff]  ;;  %v1533_v45 = vld [vmem:[%s6432_s17 + $0x10] sm:$0xff] }
 0x1fe   :  { %v1119_v1 = vsub.f32 %v1103_v42, %v1111_v54  ;;  %v1143_v2 = vadd.f32 %v1135_v55, %v1127_v43  ;;  %v4971_v32 = vpack.c.bf16 %v1528_v31, %v1527_v30  ;;  %v4975_v35 = vpack.c.bf16 %v1530_v34, %v1529_v33  ;;  %v1535_v56 = vld [vmem:[%s6432_s17 + $0x20] sm:$0xff]  ;;  %v1912_v30 = vld [vmem:[%s6433_s4 + $0x28] sm:$0xff]  ;;  %v1926_v31 = vld [vmem:[%s6433_s4 + $0x98] sm:$0xff] }
 0x1ff   :  { %v1118_v5 = vsub.f32 %v1102_v46, %v1110_v60  ;;  %v1142_v6 = vadd.f32 %v1134_v62, %v1126_v52  ;;  %v4394_v7 = vpop.f32.mrb[22].mxu0  ;;  %4904 = vmatprep.subr.bf16.mxu1 %v4903_v58  ;;  %4936 = vmatprep.subr.bf16.mxu0 %v4903_v58  ;;  %v1534_v46 = vld [vmem:[%s6432_s17 + $0x18] sm:$0xff]  ;;  %v1911_v28 = vld [vmem:[%s6433_s4 + $0x20] sm:$0xff] }
 0x200   :  { %v1113_v9 = vmul.f32 %v4394_v7, %v1097_v48  ;;  %v1137_v10 = vmul.f32 %v4394_v7, %v1089_v47  ;;  %v1073_v11 = vpop.f32.mrb[23].mxu0  ;;  %4906 = vmatpush3.bf16.msra.mxu1 %v4903_v58  ;;  %4938 = vmatpush3.bf16.msra.mxu0 %v4903_v58  ;;  %v4983_v52 = vpack.c.bf16 %v1534_v46, %v1533_v45  ;;  %v1927_v33 = vld [vmem:[%s6433_s4 + $0xa0] sm:$0xff]  ;;  %v1914_v34 = vld [vmem:[%s6433_s4 + $0x38] sm:$0xff]  ;;  %v1920_v45 = vld [vmem:[%s6433_s4 + $0x68] sm:$0xff] }
 0x201   :  { %v4907_v12 = vpack.c.bf16 %v1119_v1, %v1118_v5  ;;  %v4923_v13 = vpack.c.bf16 %v1143_v2, %v1142_v6  ;;  %v1112_v14 = vmul.f32 %v1096_v57, %v1073_v11  ;;  %v1136_v63 = vmul.f32 %v1088_v53, %v1073_v11  ;;  %v1536_v57 = vld [vmem:[%s6432_s17 + $0x28] sm:$0xff]  ;;  %v5646_v5 = vld [vmem:[%s6433_s4 + $0x70] sm:$0xff]  ;;  %v2565_v46 = vld [vmem:[%s6434_s18] sm:$0xff] }
 0x202   :  { %v1121_v15 = vsub.f32 %v1105_v0, %v1113_v9  ;;  %v1145_v16 = vadd.f32 %v1137_v10, %v1129_v61  ;;  %v1537_v0 = vld [vmem:[%s6432_s17 + $0x30] sm:$0xff]  ;;  %v1538_v61 = vld [vmem:[%s6432_s17 + $0x38] sm:$0xff]  ;;  %v4987_v1 = vpack.c.bf16 %v1536_v57, %v1535_v56 }
 0x203   :  { %v1120_v17 = vsub.f32 %v1104_v4, %v1112_v14  ;;  %v1144_v18 = vadd.f32 %v1136_v63, %v1128_v8  ;;  %4908 = vmatprep.subr.bf16.mxu1 %v4907_v12  ;;  %4940 = vmatprep.subr.bf16.mxu0 %v4907_v12  ;;  %v4991_v2 = vpack.c.bf16 %v1538_v61, %v1537_v0  ;;  %v5639_v4 = vld [vmem:[%s6433_s4] sm:$0xff]  ;;  %v2572_v56 = vld [vmem:[%s6435_s19 + $0x18] sm:$0xff] }
 0x204   :  { %4910 = vmatpush3.bf16.msra.mxu1 %v4907_v12  ;;  %4942 = vmatpush3.bf16.msra.mxu0 %v4907_v12 }
 0x205   :  { %v4911_v19 = vpack.c.bf16 %v1121_v15, %v1120_v17  ;;  %v4927_v20 = vpack.c.bf16 %v1145_v16, %v1144_v18 }
 0x207   :  { %4912 = vmatprep.subr.bf16.mxu1 %v4911_v19  ;;  %4944 = vmatprep.subr.bf16.mxu0 %v4911_v19 }
 0x208   :  { %4914 = vmatpush3.bf16.msra.mxu1 %v4911_v19  ;;  %4946 = vmatpush3.bf16.msra.mxu0 %v4911_v19 }
 0x209   :  { %4916 = vmatprep.subr.bf16.mxu1 %v5516_v37  ;;  %4948 = vmatprep.subr.bf16.mxu0 %v5516_v37 }
 0x20b   :  { %4412 = vmatmul.mubr.msk.f32.vlgmr.msra.gmra.mrb[24].mxu1 %vm1154_vm1, %v1147_v3  ;;  %4456 = vmatmul.mubr.msk.f32.vlgmr.msra.gmra.mrb[24].mxu0 %vm1154_vm1, %v1151_v21 }
 0x20c   :  { %4918 = vmatpush3.bf16.msra.mxu1 %v5516_v37  ;;  %4950 = vmatpush3.bf16.msra.mxu0 %v5516_v37  ;;  %v1532_v37 = vld [vmem:[%s6432_s17 + $0x8] sm:$0xff] }
 0x20d   :  { %4920 = vmatprep.subr.bf16.mxu1 %v4919_v59  ;;  %4952 = vmatprep.subr.bf16.mxu0 %v4919_v59  ;;  %v4979_v38 = vpack.c.bf16 %v1532_v37, %v1531_v36  ;;  %v1915_v36 = vld [vmem:[%s6433_s4 + $0x40] sm:$0xff]  ;;  %v1929_v37 = vld [vmem:[%s6433_s4 + $0xb0] sm:$0xff] }
 0x20e   :  { %4414 = vmatprep.mubr.msk.f32.mxu1 %vm1154_vm1, %v1148_v22  ;;  %4458 = vmatprep.mubr.msk.f32.mxu0 %vm1154_vm1, %v1152_v23 }
 0x20f   :  { %4415 = vmatmul.mubr.msk.f32.gmra.mrb[26].mxu1 %vm1154_vm1, %v1149_v24  ;;  %4459 = vmatmul.mubr.msk.f32.gmra.mrb[26].mxu0 %vm1154_vm1, %v1153_v25 }
 0x210   :  { %4922 = vmatpush3.bf16.msra.mxu1 %v4919_v59  ;;  %4954 = vmatpush3.bf16.msra.mxu0 %v4919_v59 }
 0x211   :  { %4924 = vmatprep.subr.bf16.mxu1 %v4923_v13  ;;  %4956 = vmatprep.subr.bf16.mxu0 %v4923_v13 }
 0x212   :  { %4433 = vmatprep.mubr.msk.f32.mxu1 %vm1154_vm1, %v5472_v41  ;;  %4477 = vmatprep.mubr.msk.f32.mxu0 %vm1154_vm1, %v5465_v40  ;;  %v1523_v40 = vld [vmem:[%s6431_s16] sm:$0xff]  ;;  %v1524_v41 = vld [vmem:[%s6431_s16 + $0x8] sm:$0xff] }
 0x213   :  { %v4963_v26 = vpack.c.bf16 %v1524_v41, %v1523_v40  ;;  %v1909_v40 = vld [vmem:[%s6433_s4 + $0x10] sm:$0xff]  ;;  %v1923_v41 = vld [vmem:[%s6433_s4 + $0x80] sm:$0xff] }
 0x214   :  { %4926 = vmatpush3.bf16.msra.mxu1 %v4923_v13  ;;  %4958 = vmatpush3.bf16.msra.mxu0 %v4923_v13 }
 0x215   :  { %4928 = vmatprep.subr.bf16.mxu1 %v4927_v20  ;;  %4960 = vmatprep.subr.bf16.mxu0 %v4927_v20 }
 0x218   :  { %4930 = vmatpush3.bf16.msra.mxu1 %v4927_v20  ;;  %4962 = vmatpush3.bf16.msra.mxu0 %v4927_v20 }
 0x219   :  { %4996 = vmatprep.subr.bf16.mxu0 %v4963_v26  ;;  %4964 = vmatprep.subr.bf16.mxu1 %v4963_v26 }
 0x21b   :  { %4434 = vmatmul.mubr.msk.f32.vlgmr.msra.gmra.mrb[28].mxu1 %vm1154_vm1, %v1151_v21  ;;  %4478 = vmatmul.mubr.msk.f32.vlgmr.msra.gmra.mrb[24].mxu0 %vm1154_vm1, %v1147_v3 }
 0x21c   :  { %4436 = vmatprep.mubr.msk.f32.mxu1 %vm1154_vm1, %v1152_v23  ;;  %4480 = vmatprep.mubr.msk.f32.mxu0 %vm1154_vm1, %v1148_v22 }
 0x21d   :  { %4998 = vmatpush3.bf16.msra.mxu0 %v4963_v26  ;;  %4966 = vmatpush3.bf16.msra.mxu1 %v4963_v26  ;;  %v1910_v26 = vld [vmem:[%s6433_s4 + $0x18] sm:$0xff] }
 0x21e   :  { %5000 = vmatprep.subr.bf16.mxu0 %v4967_v29  ;;  %4968 = vmatprep.subr.bf16.mxu1 %v4967_v29 }
 0x21f   :  { %4437 = vmatmul.mubr.msk.f32.gmra.mrb[30].mxu1 %vm1154_vm1, %v1153_v25  ;;  %4481 = vmatmul.mubr.msk.f32.gmra.mrb[26].mxu0 %vm1154_vm1, %v1149_v24  ;;  %v1908_v24 = vld [vmem:[%s6433_s4 + $0x8] sm:$0xff]  ;;  %v1922_v25 = vld [vmem:[%s6433_s4 + $0x78] sm:$0xff] }
 0x221   :  { %5002 = vmatpush3.bf16.msra.mxu0 %v4967_v29  ;;  %4970 = vmatpush3.bf16.msra.mxu1 %v4967_v29  ;;  %v1925_v29 = vld [vmem:[%s6433_s4 + $0x90] sm:$0xff] }
 0x222   :  { %5004 = vmatprep.subr.bf16.mxu0 %v4971_v32  ;;  %4972 = vmatprep.subr.bf16.mxu1 %v4971_v32 }
 0x225   :  { %5006 = vmatpush3.bf16.msra.mxu0 %v4971_v32  ;;  %4974 = vmatpush3.bf16.msra.mxu1 %v4971_v32  ;;  %v1913_v32 = vld [vmem:[%s6433_s4 + $0x30] sm:$0xff] }
 0x226   :  { %5008 = vmatprep.subr.bf16.mxu0 %v4975_v35  ;;  %4976 = vmatprep.subr.bf16.mxu1 %v4975_v35 }
 0x229   :  { %5010 = vmatpush3.bf16.msra.mxu0 %v4975_v35  ;;  %4978 = vmatpush3.bf16.msra.mxu1 %v4975_v35  ;;  %v1928_v35 = vld [vmem:[%s6433_s4 + $0xa8] sm:$0xff] }
 0x22a   :  { %5012 = vmatprep.subr.bf16.mxu0 %v4979_v38  ;;  %4980 = vmatprep.subr.bf16.mxu1 %v4979_v38 }
 0x2de   :  { %v4413_v39 = vpop.f32.mrb[24].mxu1 }
 0x2df   :  { %v1233_v42 = vpop.f32.mrb[25].mxu1 }
 0x2e2   :  { %v4416_v43 = vpop.f32.mrb[26].mxu1 }
 0x2e3   :  { %v1243_v44 = vpop.f32.mrb[27].mxu1 }
 0x2ee   :  { %v4435_v47 = vpop.f32.mrb[28].mxu1  ;;  %v4479_v48 = vpop.f32.mrb[24].mxu0 }
 0x2ef   :  { %v1350_v49 = vsub.f32 %v4413_v39, %v4435_v47  ;;  %v1330_v50 = vpop.f32.mrb[29].mxu1  ;;  %v1504_v51 = vpop.f32.mrb[25].mxu0  ;;  %v1930_v39 = vld [vmem:[%s6433_s4 + $0xb8] sm:$0xff]  ;;  %v2566_v47 = vld [vmem:[%s6434_s18 + $0x8] sm:$0xff] }
 0x2f0   :  { %v1349_v53 = vsub.f32 %v1233_v42, %v1330_v50  ;;  %4543 = vmatprep.mubr.msk.f32.mxu0 %vm1154_vm1, %v1504_v51  ;;  %v1917_v42 = vld [vmem:[%s6433_s4 + $0x50] sm:$0xff]  ;;  %v2570_v50 = vld [vmem:[%s6435_s19 + $0x8] sm:$0xff] }
 0x2f1   :  { %4544 = vmatmul.mubr.msk.f32.vlgmr.msra.gmra.mrb[28].mxu0 %vm1154_vm1, %v4479_v48 }
 0x2f2   :  { %5014 = vmatpush3.bf16.msra.mxu0 %v4979_v38  ;;  %v4438_v54 = vpop.f32.mrb[30].mxu1  ;;  %v4482_v55 = vpop.f32.mrb[26].mxu0  ;;  %4499 = vmatprep.mubr.msk.f32.mxu1 %vm1154_vm1, %v1349_v53 }
 0x2f3   :  { %v1352_v58 = vsub.f32 %v4416_v43, %v4438_v54  ;;  %v1340_v59 = vpop.f32.mrb[31].mxu1  ;;  %v1514_v60 = vpop.f32.mrb[27].mxu0  ;;  %4500 = vmatmul.mubr.msk.f32.vlgmr.msra.gmra.mrb[32].mxu1 %vm1154_vm1, %v1350_v49  ;;  %5016 = vmatprep.subr.bf16.mxu0 %v4983_v52  ;;  %v1918_v43 = vld [vmem:[%s6433_s4 + $0x58] sm:$0xff] }
 0x2f4   :  { %v1351_v62 = vsub.f32 %v1243_v44, %v1340_v59  ;;  %4982 = vmatpush3.bf16.msra.mxu1 %v4979_v38  ;;  %4546 = vmatprep.mubr.msk.f32.mxu0 %vm1154_vm1, %v1514_v60  ;;  %v1916_v38 = vld [vmem:[%s6433_s4 + $0x48] sm:$0xff]  ;;  %v1919_v44 = vld [vmem:[%s6433_s4 + $0x60] sm:$0xff] }
 0x2f5   :  { %4547 = vmatmul.mubr.msk.f32.gmra.mrb[30].mxu0 %vm1154_vm1, %v4482_v55  ;;  %4984 = vmatprep.subr.bf16.mxu1 %v4983_v52 }
 0x2f6   :  { %5018 = vmatpush3.bf16.msra.mxu0 %v4983_v52  ;;  %4502 = vmatprep.mubr.msk.f32.mxu1 %vm1154_vm1, %v1351_v62 }
 0x2f7   :  { %4565 = vmatprep.mubr.msk.f32.mxu0 %vm1154_vm1, %v1349_v53  ;;  %4503 = vmatmul.mubr.msk.f32.gmra.mrb[34].mxu1 %vm1154_vm1, %v1352_v58 }
 0x2f8   :  { %4986 = vmatpush3.bf16.msra.mxu1 %v4983_v52  ;;  %4521 = vmatprep.mubr.msk.f32.mxu1 %vm1154_vm1, %v1504_v51  ;;  %v2567_v51 = vld [vmem:[%s6434_s18 + $0x10] sm:$0xff]  ;;  %v2568_v52 = vld [vmem:[%s6434_s18 + $0x18] sm:$0xff] }
 0x2f9   :  { %5020 = vmatprep.subr.bf16.mxu0 %v4987_v1  ;;  %4988 = vmatprep.subr.bf16.mxu1 %v4987_v1  ;;  %v5788_v54 = vpack.c.bf16 %v2568_v52, %v2567_v51  ;;  %v2377_v51 = vld [vmem:[%s6436_s2 + $0x20] sm:$0xff] }
 0x2fa   :  { %5022 = vmatpush3.bf16.msra.mxu0 %v4987_v1 }
 0x2fb   :  { %5024 = vmatprep.subr.bf16.mxu0 %v4991_v2 }
 0x2fc   :  { %4990 = vmatpush3.bf16.msra.mxu1 %v4987_v1 }
 0x2fd   :  { %4992 = vmatprep.subr.bf16.mxu1 %v4991_v2 }
 0x2fe   :  { %5026 = vmatpush3.bf16.msra.mxu0 %v4991_v2 }
 0x300   :  { %4994 = vmatpush3.bf16.msra.mxu1 %v4991_v2 }
 0x301   :  { %4566 = vmatmul.mubr.msk.f32.vlgmr.msra.gmra.mrb[28].mxu0 %vm1154_vm1, %v1350_v49  ;;  %v2569_v49 = vld [vmem:[%s6435_s19] sm:$0xff] }
 0x302   :  { %4568 = vmatprep.mubr.msk.f32.mxu0 %vm1154_vm1, %v1351_v62  ;;  %v5786_v53 = vpack.c.bf16 %v2570_v50, %v2569_v49  ;;  %v2402_v50 = vld [vmem:[%s6437_s3 + $0x28] sm:$0xff] }
 0x303   :  { %4522 = vmatmul.mubr.msk.f32.vlgmr.msra.gmra.mrb[36].mxu1 %vm1154_vm1, %v4479_v48  ;;  %v5770_v48 = vpack.c.bf16 %v2566_v47, %v2565_v46 }
 0x304   :  { %4524 = vmatprep.mubr.msk.f32.mxu1 %vm1154_vm1, %v1514_v60 }
 0x305   :  { %4569 = vmatmul.mubr.msk.f32.gmra.mrb[30].mxu0 %vm1154_vm1, %v1352_v58 }
 0x306   :  { %4579 = vmatprep.mubr.msk.f32.mxu0 %vm121_vm0, %v5639_v4 }
 0x307   :  { %4525 = vmatmul.mubr.msk.f32.gmra.mrb[38].mxu1 %vm1154_vm1, %v4482_v55  ;;  %v2571_v55 = vld [vmem:[%s6435_s19 + $0x10] sm:$0xff] }
 0x308   :  { %4600 = vmatprep.mubr.msk.f32.mxu1 %vm121_vm0, %v5646_v5  ;;  %v5799_v57 = vpack.c.bf16 %v2572_v56, %v2571_v55  ;;  %v2401_v56 = vld [vmem:[%s6437_s3 + $0x20] sm:$0xff] }
 0x3c6   :  { %v4501_v6 = vpop.f32.mrb[32].mxu1 }
 0x3c7   :  { %v1617_v7 = vpop.f32.mrb[33].mxu1 }
 0x3ca   :  { %v4504_v8 = vpop.f32.mrb[34].mxu1 }
 0x3cb   :  { %v1627_v9 = vpop.f32.mrb[35].mxu1 }
 0x3d4   :  { %v4567_v10 = vpop.f32.mrb[28].mxu0 }
 0x3d5   :  { %v1888_v11 = vpop.f32.mrb[29].mxu0 }
 0x3d6   :  { %v5035_v12 = vpack.c.bf16 %v4567_v10, %v1888_v11  ;;  %v4523_v13 = vpop.f32.mrb[36].mxu1 }
 0x3d7   :  { %v1734_v14 = vsub.f32 %v4501_v6, %v4523_v13  ;;  %v1714_v63 = vpop.f32.mrb[37].mxu1 }
 0x3d8   :  { %v1733_v15 = vsub.f32 %v1617_v7, %v1714_v63  ;;  %v4570_v16 = vpop.f32.mrb[30].mxu0 }
 0x3d9   :  { %v1898_v17 = vpop.f32.mrb[31].mxu0 }
 0x3da   :  { %v5027_v18 = vpack.c.bf16 %v1734_v14, %v1733_v15  ;;  %v5039_v19 = vpack.c.bf16 %v4570_v16, %v1898_v17  ;;  %v4526_v20 = vpop.f32.mrb[38].mxu1 }
 0x3db   :  { %v1736_v3 = vsub.f32 %v4504_v8, %v4526_v20  ;;  %v1724_v21 = vpop.f32.mrb[39].mxu1  ;;  %v2398_v20 = vld [vmem:[%s6437_s3 + $0x8] sm:$0xff] }
 0x3dc   :  { %v1735_v22 = vsub.f32 %v1627_v9, %v1724_v21  ;;  %5028 = vmatprep.subr.bf16.mxu0 %v5027_v18  ;;  %5111 = vmatprep.subr.bf16.mxu1 %v5027_v18  ;;  %v2397_v21 = vld [vmem:[%s6437_s3] sm:$0xff] }
 0x3dd   :  { %5030 = vmatpush3.bf16.msra.mxu0 %v5027_v18  ;;  %5113 = vmatpush3.bf16.msra.mxu1 %v5027_v18 }
 0x3de   :  { %v5031_v23 = vpack.c.bf16 %v1736_v3, %v1735_v22  ;;  %v2373_v3 = vld [vmem:[%s6436_s2] sm:$0xff] }
 0x3e0   :  { %5032 = vmatprep.subr.bf16.mxu0 %v5031_v23  ;;  %5112 = vmatprep.subr.bf16.mxu1 %v5031_v23 }
 0x3e1   :  { %5034 = vmatpush3.bf16.msra.mxu0 %v5031_v23  ;;  %5114 = vmatpush3.bf16.msra.mxu1 %v5031_v23 }
 0x3e2   :  { %5036 = vmatprep.subr.bf16.mxu0 %v5035_v12  ;;  %5044 = vmatprep.subr.bf16.mxu1 %v5770_v48 }
 0x3e4   :  { %4580 = vmatmul.mubr.msk.f32.vlgmr.msra.gmra.mrb[32].mxu0 %vm121_vm0, %v1908_v24  ;;  %4601 = vmatmul.mubr.msk.f32.vlgmr.msra.gmra.mrb[40].mxu1 %vm121_vm0, %v1922_v25 }
 0x3e5   :  { %5038 = vmatpush3.bf16.msra.mxu0 %v5035_v12  ;;  %4582 = vmatprep.mubr.msk.f32.mxu0 %vm121_vm0, %v1909_v40 }
 0x3e6   :  { %5040 = vmatprep.subr.bf16.mxu0 %v5039_v19  ;;  %4603 = vmatprep.mubr.msk.f32.mxu1 %vm121_vm0, %v1923_v41 }
 0x3e7   :  { %5046 = vmatpush3.bf16.msra.mxu1 %v5770_v48 }
 0x3e8   :  { %4583 = vmatmul.mubr.msk.f32.gmra.mrb[34].mxu0 %vm121_vm0, %v1910_v26  ;;  %4604 = vmatmul.mubr.msk.f32.gmra.mrb[42].mxu1 %vm121_vm0, %v1924_v27 }
 0x3e9   :  { %5042 = vmatpush3.bf16.msra.mxu0 %v5039_v19  ;;  %4585 = vmatprep.mubr.msk.f32.mxu0 %vm121_vm0, %v1911_v28  ;;  %v2374_v19 = vld [vmem:[%s6436_s2 + $0x8] sm:$0xff] }
 0x3ea   :  { %4606 = vmatprep.mubr.msk.f32.mxu1 %vm121_vm0, %v1925_v29  ;;  %5052 = vmatprep.subr.bf16.mxu0 %v5786_v53 }
 0x3eb   :  { %5048 = vmatprep.subr.bf16.mxu1 %v5788_v54 }
 0x3ec   :  { %4586 = vmatmul.mubr.msk.f32.gmra.mrb[36].mxu0 %vm121_vm0, %v1912_v30  ;;  %4607 = vmatmul.mubr.msk.f32.gmra.mrb[44].mxu1 %vm121_vm0, %v1926_v31 }
 0x3ed   :  { %4588 = vmatprep.mubr.msk.f32.mxu0 %vm121_vm0, %v1913_v32  ;;  %4609 = vmatprep.mubr.msk.f32.mxu1 %vm121_vm0, %v1927_v33 }
 0x3ee   :  { %5050 = vmatpush3.bf16.msra.mxu1 %v5788_v54 }
 0x3ef   :  { %5060 = vmatprep.subr.bf16.mxu1 %v5770_v48 }
 0x3f0   :  { %4589 = vmatmul.mubr.msk.f32.gmra.mrb[38].mxu0 %vm121_vm0, %v1914_v34  ;;  %4610 = vmatmul.mubr.msk.f32.gmra.mrb[46].mxu1 %vm121_vm0, %v1928_v35 }
 0x3f1   :  { %4591 = vmatprep.mubr.msk.f32.mxu0 %vm121_vm0, %v1915_v36  ;;  %4612 = vmatprep.mubr.msk.f32.mxu1 %vm121_vm0, %v1929_v37 }
 0x3f4   :  { %4592 = vmatmul.mubr.msk.f32.gmra.mrb[40].mxu0 %vm121_vm0, %v1916_v38  ;;  %4613 = vmatmul.mubr.msk.f32.gmra.mrb[48].mxu1 %vm121_vm0, %v1930_v39 }
 0x3f5   :  { %4594 = vmatprep.mubr.msk.f32.mxu0 %vm121_vm0, %v1917_v42 }
 0x3f8   :  { %4595 = vmatmul.mubr.msk.f32.gmra.mrb[42].mxu0 %vm121_vm0, %v1918_v43 }
 0x3f9   :  { %4597 = vmatprep.mubr.msk.f32.mxu0 %vm121_vm0, %v1919_v44 }
 0x3fc   :  { %4598 = vmatmul.mubr.msk.f32.gmra.mrb[44].mxu0 %vm121_vm0, %v1920_v45 }
 0x3fd   :  { %4623 = vmatprep.mubr.msk.f32.mxu0 %vm121_vm0, %v5639_v4 }
 0x400   :  { %4624 = vmatmul.mubr.msk.f32.vlgmr.msra.gmra.mrb[46].mxu0 %vm121_vm0, %v1908_v24 }
 0x401   :  { %4626 = vmatprep.mubr.msk.f32.mxu0 %vm121_vm0, %v1909_v40  ;;  %5054 = vmatpush3.bf16.msra.mxu0 %v5786_v53 }
 0x402   :  { %5056 = vmatprep.subr.bf16.mxu0 %v5799_v57 }
 0x404   :  { %4627 = vmatmul.mubr.msk.f32.gmra.mrb[48].mxu0 %vm121_vm0, %v1910_v26 }
 0x405   :  { %4629 = vmatprep.mubr.msk.f32.mxu0 %vm121_vm0, %v1911_v28  ;;  %5058 = vmatpush3.bf16.msra.mxu0 %v5799_v57 }
 0x408   :  { %4630 = vmatmul.mubr.msk.f32.gmra.mrb[50].mxu0 %vm121_vm0, %v1912_v30  ;;  %v2375_v30 = vld [vmem:[%s6436_s2 + $0x10] sm:$0xff] }
 0x409   :  { %4632 = vmatprep.mubr.msk.f32.mxu0 %vm121_vm0, %v1913_v32 }
 0x40c   :  { %4633 = vmatmul.mubr.msk.f32.gmra.mrb[52].mxu0 %vm121_vm0, %v1914_v34 }
 0x40d   :  { %4635 = vmatprep.mubr.msk.f32.mxu0 %vm121_vm0, %v1915_v36 }
 0x410   :  { %4636 = vmatmul.mubr.msk.f32.gmra.mrb[54].mxu0 %vm121_vm0, %v1916_v38 }
 0x411   :  { %4638 = vmatprep.mubr.msk.f32.mxu0 %vm121_vm0, %v1917_v42 }
 0x414   :  { %4639 = vmatmul.mubr.msk.f32.gmra.mrb[56].mxu0 %vm121_vm0, %v1918_v43 }
 0x415   :  { %4641 = vmatprep.mubr.msk.f32.mxu0 %vm121_vm0, %v1919_v44  ;;  %v2378_v44 = vld [vmem:[%s6436_s2 + $0x28] sm:$0xff] }
 0x418   :  { %4642 = vmatmul.mubr.msk.f32.gmra.mrb[58].mxu0 %vm121_vm0, %v1920_v45 }
 0x419   :  { %4644 = vmatprep.mubr.msk.f32.mxu0 %vm121_vm0, %v5646_v5 }
 0x41c   :  { %4645 = vmatmul.mubr.msk.f32.gmra.mrb[60].mxu0 %vm121_vm0, %v1922_v25  ;;  %v2376_v25 = vld [vmem:[%s6436_s2 + $0x18] sm:$0xff] }
 0x41d   :  { %4647 = vmatprep.mubr.msk.f32.mxu0 %vm121_vm0, %v1923_v41 }
 0x420   :  { %4648 = vmatmul.mubr.msk.f32.gmra.mrb[62].mxu0 %vm121_vm0, %v1924_v27 }
 0x421   :  { %4650 = vmatprep.mubr.msk.f32.mxu0 %vm121_vm0, %v1925_v29  ;;  %v2400_v29 = vld [vmem:[%s6437_s3 + $0x18] sm:$0xff] }
 0x424   :  { %4651 = vmatmul.mubr.msk.f32.gmra.mrb[64].mxu0 %vm121_vm0, %v1926_v31 }
 0x425   :  { %4653 = vmatprep.mubr.msk.f32.mxu0 %vm121_vm0, %v1927_v33  ;;  %v2399_v33 = vld [vmem:[%s6437_s3 + $0x10] sm:$0xff] }
 0x428   :  { %4654 = vmatmul.mubr.msk.f32.gmra.mrb[66].mxu0 %vm121_vm0, %v1928_v35 }
 0x429   :  { %4656 = vmatprep.mubr.msk.f32.mxu0 %vm121_vm0, %v1929_v37 }
 0x42c   :  { %4657 = vmatmul.mubr.msk.f32.gmra.mrb[68].mxu0 %vm121_vm0, %v1930_v39 }
 0x4b7   :  { %v4581_v58 = vpop.f32.mrb[32].mxu0  ;;  %v5805_v59 = vpop.f32.mrb[40].mxu1 }
 0x4b8   :  { %v2069_v60 = vpop.f32.mrb[33].mxu0  ;;  %v5807_v62 = vpop.f32.mrb[41].mxu1  ;;  %v2422_v23 = vmul.f32 %v4581_v58, %v2374_v19  ;;  %v2494_v24 = vmul.f32 %v4581_v58, %v2398_v20 }
 0x4b9   :  { %v2421_v27 = vmul.f32 %v2373_v3, %v2069_v60  ;;  %v2493_v28 = vmul.f32 %v2397_v21, %v2069_v60 }
 0x4bb   :  { %v4584_v0 = vpop.f32.mrb[34].mxu0  ;;  %v5809_v61 = vpop.f32.mrb[42].mxu1 }
 0x4bc   :  { %v2079_v1 = vpop.f32.mrb[35].mxu0  ;;  %v5811_v2 = vpop.f32.mrb[43].mxu1  ;;  %v2424_v36 = vmul.f32 %v4584_v0, %v2376_v25  ;;  %v2496_v42 = vmul.f32 %v4584_v0, %v2400_v29 }
 0x4bd   :  { %v2423_v43 = vmul.f32 %v2375_v30, %v2079_v1  ;;  %v2495_v49 = vmul.f32 %v2399_v33, %v2079_v1 }
 0x4bf   :  { %v5813_v4 = vpop.f32.mrb[36].mxu0  ;;  %v5815_v5 = vpop.f32.mrb[44].mxu1 }
 0x4c0   :  { %v5817_v6 = vpop.f32.mrb[37].mxu0  ;;  %v5819_v7 = vpop.f32.mrb[45].mxu1  ;;  %v2426_v0 = vmul.f32 %v5813_v4, %v2378_v44 }
 0x4c3   :  { %v5821_v8 = vpop.f32.mrb[38].mxu0  ;;  %v5823_v9 = vpop.f32.mrb[46].mxu1 }
 0x4c4   :  { %v5825_v10 = vpop.f32.mrb[39].mxu0  ;;  %v5827_v11 = vpop.f32.mrb[47].mxu1 }
 0x4c7   :  { %v5829_v12 = vpop.f32.mrb[40].mxu0  ;;  %v5831_v13 = vpop.f32.mrb[48].mxu1 }
 0x4c8   :  { %v5833_v14 = vpop.f32.mrb[41].mxu0  ;;  %v5835_v63 = vpop.f32.mrb[49].mxu1 }
 0x4cb   :  { %v5837_v15 = vpop.f32.mrb[42].mxu0 }
 0x4cc   :  { %v5839_v16 = vpop.f32.mrb[43].mxu0 }
 0x4cf   :  { %v5841_v17 = vpop.f32.mrb[44].mxu0 }
 0x4d0   :  { %v5843_v18 = vpop.f32.mrb[45].mxu0 }
 0x4d3   :  { %v4625_v22 = vpop.f32.mrb[46].mxu0 }
 0x4d4   :  { %v2446_v40 = vmul.f32 %v4625_v22, %v2398_v20  ;;  %v2518_v41 = vmul.f32 %v4625_v22, %v2374_v19  ;;  %v2254_v26 = vpop.f32.mrb[47].mxu0  ;;  %v2380_v22 = vld [vmem:[%s6436_s2 + $0x38] sm:$0xff] }
 0x4d5   :  { %v2445_v31 = vmul.f32 %v2397_v21, %v2254_v26  ;;  %v2517_v32 = vmul.f32 %v2373_v3, %v2254_v26  ;;  %v2498_v3 = vmul.f32 %v5813_v4, %v2402_v50  ;;  %v2425_v21 = vmul.f32 %v2377_v51, %v5817_v6 }
 0x4d6   :  { %v5869_v34 = vsub.f32 %v2422_v23, %v2446_v40  ;;  %v5871_v35 = vadd.f32 %v2518_v41, %v2494_v24  ;;  %v2497_v40 = vmul.f32 %v2401_v56, %v5817_v6  ;;  %v2404_v41 = vld [vmem:[%s6437_s3 + $0x38] sm:$0xff]  ;;  %v2403_v6 = vld [vmem:[%s6437_s3 + $0x30] sm:$0xff] }
 0x4d7   :  { %v5873_v37 = vsub.f32 %v2421_v27, %v2445_v31  ;;  %v5875_v38 = vadd.f32 %v2517_v32, %v2493_v28  ;;  %v4628_v39 = vpop.f32.mrb[48].mxu0 }
 0x4d8   :  { %v2448_v45 = vmul.f32 %v4628_v39, %v2400_v29  ;;  %v2520_v46 = vmul.f32 %v4628_v39, %v2376_v25  ;;  %v2264_v47 = vpop.f32.mrb[49].mxu0  ;;  %v2428_v29 = vmul.f32 %v5821_v8, %v2380_v22  ;;  %v2382_v39 = vld [vmem:[%s6436_s2 + $0x48] sm:$0xff] }
 0x4d9   :  { %v2447_v52 = vmul.f32 %v2399_v33, %v2264_v47  ;;  %v2519_v55 = vmul.f32 %v2375_v30, %v2264_v47  ;;  %4667 = vmatprep.mubr.msk.f32.mxu1 %vm121_vm0, %v5873_v37  ;;  %4711 = vmatprep.mubr.msk.f32.mxu0 %vm121_vm0, %v5875_v38  ;;  %v2500_v33 = vmul.f32 %v5821_v8, %v2404_v41 }
 0x4da   :  { %v5893_v58 = vsub.f32 %v2424_v36, %v2448_v45  ;;  %v5895_v60 = vadd.f32 %v2520_v46, %v2496_v42  ;;  %4668 = vmatmul.mubr.msk.f32.vlgmr.msra.gmra.mrb[50].mxu1 %vm121_vm0, %v5869_v34  ;;  %4712 = vmatmul.mubr.msk.f32.vlgmr.msra.gmra.mrb[70].mxu0 %vm121_vm0, %v5871_v35  ;;  %v2499_v45 = vmul.f32 %v2403_v6, %v5825_v10  ;;  %v2406_v46 = vld [vmem:[%s6437_s3 + $0x48] sm:$0xff] }
 0x4db   :  { %v5902_v1 = vsub.f32 %v2423_v43, %v2447_v52  ;;  %v5904_v19 = vadd.f32 %v2519_v55, %v2495_v49  ;;  %v4631_v20 = vpop.f32.mrb[50].mxu0  ;;  %5062 = vmatpush3.bf16.msra.mxu1 %v5770_v48  ;;  %v2379_v48 = vld [vmem:[%s6436_s2 + $0x30] sm:$0xff] }
 0x4dc   :  { %v2450_v23 = vmul.f32 %v4631_v20, %v2402_v50  ;;  %v2522_v24 = vmul.f32 %v4631_v20, %v2378_v44  ;;  %v2274_v25 = vpop.f32.mrb[51].mxu0  ;;  %5064 = vmatprep.subr.bf16.mxu1 %v5788_v54  ;;  %v2427_v36 = vmul.f32 %v2379_v48, %v5825_v10  ;;  %v2405_v10 = vld [vmem:[%s6437_s3 + $0x40] sm:$0xff] }
 0x4dd   :  { %v2449_v4 = vmul.f32 %v2401_v56, %v2274_v25  ;;  %v2521_v26 = vmul.f32 %v2377_v51, %v2274_v25  ;;  %4670 = vmatprep.mubr.msk.f32.mxu1 %vm121_vm0, %v5902_v1  ;;  %4714 = vmatprep.mubr.msk.f32.mxu0 %vm121_vm0, %v5904_v19  ;;  %v2430_v51 = vmul.f32 %v5829_v12, %v2382_v39  ;;  %v2408_v25 = vld [vmem:[%s6437_s3 + $0x58] sm:$0xff] }
 0x4de   :  { %v5927_v27 = vsub.f32 %v2426_v0, %v2450_v23  ;;  %v5929_v28 = vadd.f32 %v2522_v24, %v2498_v3  ;;  %4671 = vmatmul.mubr.msk.f32.gmra.mrb[52].mxu1 %vm121_vm0, %v5893_v58  ;;  %4715 = vmatmul.mubr.msk.f32.gmra.mrb[72].mxu0 %vm121_vm0, %v5895_v60  ;;  %v2502_v0 = vmul.f32 %v5829_v12, %v2406_v46  ;;  %v2384_v3 = vld [vmem:[%s6436_s2 + $0x58] sm:$0xff] }
 0x4df   :  { %v5936_v30 = vsub.f32 %v2425_v21, %v2449_v4  ;;  %v5938_v31 = vadd.f32 %v2521_v26, %v2497_v40  ;;  %v4634_v32 = vpop.f32.mrb[52].mxu0  ;;  %5066 = vmatpush3.bf16.msra.mxu1 %v5788_v54  ;;  %v2381_v54 = vld [vmem:[%s6436_s2 + $0x40] sm:$0xff]  ;;  %v2501_v24 = vmul.f32 %v2405_v10, %v5833_v14  ;;  %v2383_v40 = vld [vmem:[%s6436_s2 + $0x50] sm:$0xff]  ;;  %v2432_v26 = vmul.f32 %v5837_v15, %v2384_v3 }
 0x4e0   :  { %v2452_v42 = vmul.f32 %v4634_v32, %v2404_v41  ;;  %v2524_v43 = vmul.f32 %v4634_v32, %v2380_v22  ;;  %v2284_v44 = vpop.f32.mrb[53].mxu0  ;;  %5068 = vmatprep.subr.bf16.mxu1 %v5786_v53  ;;  %v2429_v20 = vmul.f32 %v2381_v54, %v5833_v14  ;;  %v2407_v14 = vld [vmem:[%s6437_s3 + $0x50] sm:$0xff] }
 0x4e1   :  { %v2451_v8 = vmul.f32 %v2403_v6, %v2284_v44  ;;  %v2523_v47 = vmul.f32 %v2379_v48, %v2284_v44  ;;  %4673 = vmatprep.mubr.msk.f32.mxu1 %vm121_vm0, %v5936_v30  ;;  %4717 = vmatprep.mubr.msk.f32.mxu0 %vm121_vm0, %v5938_v31 }
 0x4e2   :  { %v5961_v49 = vsub.f32 %v2428_v29, %v2452_v42  ;;  %v5963_v50 = vadd.f32 %v2524_v43, %v2500_v33  ;;  %4674 = vmatmul.mubr.msk.f32.gmra.mrb[54].mxu1 %vm121_vm0, %v5927_v27  ;;  %4718 = vmatmul.mubr.msk.f32.gmra.mrb[74].mxu0 %vm121_vm0, %v5929_v28  ;;  %v2504_v33 = vmul.f32 %v5837_v15, %v2408_v25  ;;  %v2385_v15 = vld [vmem:[%s6436_s2 + $0x60] sm:$0xff] }
 0x4e3   :  { %v5970_v52 = vsub.f32 %v2427_v36, %v2451_v8  ;;  %v5972_v55 = vadd.f32 %v2523_v47, %v2499_v45  ;;  %v4637_v56 = vpop.f32.mrb[54].mxu0  ;;  %v2431_v36 = vmul.f32 %v2383_v40, %v5839_v16  ;;  %v2388_v45 = vld [vmem:[%s6436_s2 + $0x78] sm:$0xff] }
 0x4e4   :  { %v2454_v21 = vmul.f32 %v4637_v56, %v2406_v46  ;;  %v2526_v22 = vmul.f32 %v4637_v56, %v2382_v39  ;;  %v2294_v23 = vpop.f32.mrb[55].mxu0  ;;  %v2386_v39 = vld [vmem:[%s6436_s2 + $0x68] sm:$0xff]  ;;  %v2503_v46 = vmul.f32 %v2407_v14, %v5839_v16  ;;  %v2409_v16 = vld [vmem:[%s6437_s3 + $0x60] sm:$0xff] }
 0x4e5   :  { %v2453_v12 = vmul.f32 %v2405_v10, %v2294_v23  ;;  %v2525_v41 = vmul.f32 %v2381_v54, %v2294_v23  ;;  %4676 = vmatprep.mubr.msk.f32.mxu1 %vm121_vm0, %v5970_v52  ;;  %4720 = vmatprep.mubr.msk.f32.mxu0 %vm121_vm0, %v5972_v55  ;;  %v2410_v54 = vld [vmem:[%s6437_s3 + $0x68] sm:$0xff]  ;;  %v2434_v56 = vmul.f32 %v5841_v17, %v2386_v39 }
 0x4e6   :  { %v5993_v48 = vsub.f32 %v2430_v51, %v2454_v21  ;;  %v5995_v4 = vadd.f32 %v2526_v22, %v2502_v0  ;;  %4677 = vmatmul.mubr.msk.f32.gmra.mrb[56].mxu1 %vm121_vm0, %v5961_v49  ;;  %4721 = vmatmul.mubr.msk.f32.gmra.mrb[76].mxu0 %vm121_vm0, %v5963_v50  ;;  %v2412_v21 = vld [vmem:[%s6437_s3 + $0x78] sm:$0xff]  ;;  %v2436_v22 = vmul.f32 %v5805_v59, %v2388_v45 }
 0x4e7   :  { %v6002_v6 = vsub.f32 %v2429_v20, %v2453_v12  ;;  %v6004_v29 = vadd.f32 %v2525_v41, %v2501_v24  ;;  %v4640_v32 = vpop.f32.mrb[56].mxu0  ;;  %v2506_v23 = vmul.f32 %v5841_v17, %v2410_v54  ;;  %v2433_v24 = vmul.f32 %v2385_v15, %v5843_v18  ;;  %v2387_v41 = vld [vmem:[%s6436_s2 + $0x70] sm:$0xff] }
 0x4e8   :  { %v2456_v42 = vmul.f32 %v4640_v32, %v2408_v25  ;;  %v2528_v43 = vmul.f32 %v4640_v32, %v2384_v3  ;;  %v2304_v44 = vpop.f32.mrb[57].mxu0 }
 0x4e9   :  { %v2455_v8 = vmul.f32 %v2407_v14, %v2304_v44  ;;  %v2527_v47 = vmul.f32 %v2383_v40, %v2304_v44  ;;  %4679 = vmatprep.mubr.msk.f32.mxu1 %vm121_vm0, %v6002_v6  ;;  %4723 = vmatprep.mubr.msk.f32.mxu0 %vm121_vm0, %v6004_v29  ;;  %v2411_v14 = vld [vmem:[%s6437_s3 + $0x70] sm:$0xff]  ;;  %v2435_v44 = vmul.f32 %v2387_v41, %v5807_v62 }
 0x4ea   :  { %v6028_v10 = vsub.f32 %v2432_v26, %v2456_v42  ;;  %v6030_v51 = vadd.f32 %v2528_v43, %v2504_v33  ;;  %4680 = vmatmul.mubr.msk.f32.gmra.mrb[58].mxu1 %vm121_vm0, %v5993_v48  ;;  %4724 = vmatmul.mubr.msk.f32.gmra.mrb[78].mxu0 %vm121_vm0, %v5995_v4  ;;  %v2505_v26 = vmul.f32 %v2409_v16, %v5843_v18  ;;  %v2390_v18 = vld [vmem:[%s6436_s2 + $0x88] sm:$0xff] }
 0x4eb   :  { %v6037_v0 = vsub.f32 %v2431_v36, %v2455_v8  ;;  %v6039_v20 = vadd.f32 %v2527_v47, %v2503_v46  ;;  %v4643_v3 = vpop.f32.mrb[58].mxu0  ;;  %v2507_v46 = vmul.f32 %v2411_v14, %v5807_v62  ;;  %v2438_v62 = vmul.f32 %v5809_v61, %v2390_v18 }
 0x4ec   :  { %v2458_v25 = vmul.f32 %v4643_v3, %v2410_v54  ;;  %v2530_v40 = vmul.f32 %v4643_v3, %v2386_v39  ;;  %v2314_v12 = vpop.f32.mrb[59].mxu0  ;;  %v2508_v39 = vmul.f32 %v5805_v59, %v2412_v21  ;;  %v2414_v59 = vld [vmem:[%s6437_s3 + $0x88] sm:$0xff] }
 0x4ed   :  { %v2457_v32 = vmul.f32 %v2409_v16, %v2314_v12  ;;  %v2529_v33 = vmul.f32 %v2385_v15, %v2314_v12  ;;  %4682 = vmatprep.mubr.msk.f32.mxu1 %vm121_vm0, %v6037_v0  ;;  %4726 = vmatprep.mubr.msk.f32.mxu0 %vm121_vm0, %v6039_v20  ;;  %v2389_v16 = vld [vmem:[%s6436_s2 + $0x80] sm:$0xff] }
 0x4ee   :  { %v6058_v17 = vsub.f32 %v2434_v56, %v2458_v25  ;;  %v6060_v36 = vadd.f32 %v2530_v40, %v2506_v23  ;;  %4683 = vmatmul.mubr.msk.f32.gmra.mrb[60].mxu1 %vm121_vm0, %v6028_v10  ;;  %4727 = vmatmul.mubr.msk.f32.gmra.mrb[80].mxu0 %vm121_vm0, %v6030_v51  ;;  %v2413_v56 = vld [vmem:[%s6437_s3 + $0x80] sm:$0xff]  ;;  %v2392_v25 = vld [vmem:[%s6436_s2 + $0x98] sm:$0xff] }
 0x4ef   :  { %v6070_v42 = vsub.f32 %v2433_v24, %v2457_v32  ;;  %v6072_v43 = vadd.f32 %v2529_v33, %v2505_v26  ;;  %v4646_v54 = vpop.f32.mrb[60].mxu0  ;;  %v2510_v24 = vmul.f32 %v5809_v61, %v2414_v59  ;;  %v2416_v61 = vld [vmem:[%s6437_s3 + $0x98] sm:$0xff] }
 0x4f0   :  { %v2460_v15 = vmul.f32 %v4646_v54, %v2412_v21  ;;  %v2532_v8 = vmul.f32 %v4646_v54, %v2388_v45  ;;  %v2324_v47 = vpop.f32.mrb[61].mxu0 }
 0x4f1   :  { %v2459_v3 = vmul.f32 %v2411_v14, %v2324_v47  ;;  %v2531_v23 = vmul.f32 %v2387_v41, %v2324_v47  ;;  %4685 = vmatprep.mubr.msk.f32.mxu1 %vm121_vm0, %v6070_v42  ;;  %4729 = vmatprep.mubr.msk.f32.mxu0 %vm121_vm0, %v6072_v43  ;;  %v2509_v41 = vmul.f32 %v2413_v56, %v5811_v2 }
 0x4f2   :  { %v6090_v45 = vsub.f32 %v2436_v22, %v2460_v15  ;;  %v6092_v21 = vadd.f32 %v2532_v8, %v2508_v39  ;;  %4686 = vmatmul.mubr.msk.f32.gmra.mrb[62].mxu1 %vm121_vm0, %v6058_v17  ;;  %4730 = vmatmul.mubr.msk.f32.gmra.mrb[82].mxu0 %vm121_vm0, %v6060_v36  ;;  %v2437_v22 = vmul.f32 %v2389_v16, %v5811_v2  ;;  %v2391_v39 = vld [vmem:[%s6436_s2 + $0x90] sm:$0xff]  ;;  %v2394_v8 = vld [vmem:[%s6436_s2 + $0xa8] sm:$0xff] }
 0x4f3   :  { %v6102_v40 = vsub.f32 %v2435_v44, %v2459_v3  ;;  %v6104_v12 = vadd.f32 %v2531_v23, %v2507_v46  ;;  %v4649_v14 = vpop.f32.mrb[62].mxu0  ;;  %v2415_v44 = vld [vmem:[%s6437_s3 + $0x90] sm:$0xff]  ;;  %v2440_v2 = vmul.f32 %v5815_v5, %v2392_v25  ;;  %v2512_v15 = vmul.f32 %v5815_v5, %v2416_v61  ;;  %v2418_v5 = vld [vmem:[%s6437_s3 + $0xa8] sm:$0xff] }
 0x4f4   :  { %v2462_v26 = vmul.f32 %v4649_v14, %v2414_v59  ;;  %v2534_v32 = vmul.f32 %v4649_v14, %v2390_v18  ;;  %v2334_v33 = vpop.f32.mrb[63].mxu0  ;;  %v2511_v3 = vmul.f32 %v2415_v44, %v5819_v7 }
 0x4f5   :  { %v2461_v46 = vmul.f32 %v2413_v56, %v2334_v33  ;;  %v2533_v54 = vmul.f32 %v2389_v16, %v2334_v33  ;;  %4688 = vmatprep.mubr.msk.f32.mxu1 %vm121_vm0, %v6102_v40  ;;  %4732 = vmatprep.mubr.msk.f32.mxu0 %vm121_vm0, %v6104_v12  ;;  %v2439_v56 = vmul.f32 %v2391_v39, %v5819_v7 }
 0x4f6   :  { %v6122_v18 = vsub.f32 %v2438_v62, %v2462_v26  ;;  %v6124_v59 = vadd.f32 %v2534_v32, %v2510_v24  ;;  %4689 = vmatmul.mubr.msk.f32.gmra.mrb[64].mxu1 %vm121_vm0, %v6090_v45  ;;  %4733 = vmatmul.mubr.msk.f32.gmra.mrb[84].mxu0 %vm121_vm0, %v6092_v21  ;;  %v2393_v26 = vld [vmem:[%s6436_s2 + $0xa0] sm:$0xff]  ;;  %v2442_v7 = vmul.f32 %v5823_v9, %v2394_v8 }
 0x4f7   :  { %v6134_v47 = vsub.f32 %v2437_v22, %v2461_v46  ;;  %v6136_v16 = vadd.f32 %v2533_v54, %v2509_v41  ;;  %v4652_v23 = vpop.f32.mrb[64].mxu0  ;;  %v2417_v22 = vld [vmem:[%s6437_s3 + $0xa0] sm:$0xff]  ;;  %v2514_v33 = vmul.f32 %v5823_v9, %v2418_v5  ;;  %v2441_v54 = vmul.f32 %v2393_v26, %v5827_v11  ;;  %v2420_v9 = vld [vmem:[%s6437_s3 + $0xb8] sm:$0xff] }
 0x4f8   :  { %6459 = vst [vmem:[#allocation2_spill] sm:$0xff] %v6122_v18  ;;  %v2464_v62 = vmul.f32 %v4652_v23, %v2416_v61  ;;  %v2536_v24 = vmul.f32 %v4652_v23, %v2392_v25  ;;  %v2344_v14 = vpop.f32.mrb[65].mxu0 }
 0x4f9   :  { %v2463_v41 = vmul.f32 %v2415_v44, %v2344_v14  ;;  %v2535_v32 = vmul.f32 %v2391_v39, %v2344_v14  ;;  %4691 = vmatprep.mubr.msk.f32.mxu1 %vm121_vm0, %v6134_v47  ;;  %4735 = vmatprep.mubr.msk.f32.mxu0 %vm121_vm0, %v6136_v16  ;;  %v2396_v39 = vld [vmem:[%s6436_s2 + $0xb8] sm:$0xff]  ;;  %v2395_v14 = vld [vmem:[%s6436_s2 + $0xb0] sm:$0xff] }
 0x4fa   :  { %v6154_v25 = vsub.f32 %v2440_v2, %v2464_v62  ;;  %v6156_v61 = vadd.f32 %v2536_v24, %v2512_v15  ;;  %4692 = vmatmul.mubr.msk.f32.gmra.mrb[66].mxu1 %vm121_vm0, %v6122_v18  ;;  %4736 = vmatmul.mubr.msk.f32.gmra.mrb[86].mxu0 %vm121_vm0, %v6124_v59  ;;  %v2513_v2 = vmul.f32 %v2417_v22, %v5827_v11 }
 0x4fb   :  { %v6166_v44 = vsub.f32 %v2439_v56, %v2463_v41  ;;  %v6168_v46 = vadd.f32 %v2535_v32, %v2511_v3  ;;  %v4655_v15 = vpop.f32.mrb[66].mxu0  ;;  %v2419_v56 = vld [vmem:[%s6437_s3 + $0xb0] sm:$0xff]  ;;  %v2444_v11 = vmul.f32 %v5831_v13, %v2396_v39  ;;  %v2516_v32 = vmul.f32 %v5831_v13, %v2420_v9 }
 0x4fc   :  { %6460 = vst [vmem:[#allocation3_spill] sm:$0xff] %v6154_v25  ;;  %v2466_v23 = vmul.f32 %v4655_v15, %v2418_v5  ;;  %v2538_v62 = vmul.f32 %v4655_v15, %v2394_v8  ;;  %v2354_v24 = vpop.f32.mrb[67].mxu0  ;;  %v2443_v15 = vmul.f32 %v2395_v14, %v5835_v63 }
 0x4fd   :  { %6461 = vst [vmem:[#allocation4_spill] sm:$0xff] %v6166_v44  ;;  %v2465_v3 = vmul.f32 %v2417_v22, %v2354_v24  ;;  %v2537_v41 = vmul.f32 %v2393_v26, %v2354_v24  ;;  %4694 = vmatprep.mubr.msk.f32.mxu1 %vm121_vm0, %v6166_v44  ;;  %4738 = vmatprep.mubr.msk.f32.mxu0 %vm121_vm0, %v6168_v46 }
 0x4fe   :  { %v6186_v8 = vsub.f32 %v2442_v7, %v2466_v23  ;;  %v2562_v5 = vadd.f32 %v2538_v62, %v2514_v33  ;;  %4695 = vmatmul.mubr.msk.f32.gmra.mrb[68].mxu1 %vm121_vm0, %v6154_v25  ;;  %4739 = vmatmul.mubr.msk.f32.gmra.mrb[88].mxu0 %vm121_vm0, %v6156_v61  ;;  %v2515_v24 = vmul.f32 %v2419_v56, %v5835_v63 }
 0x4ff   :  { %v6193_v26 = vsub.f32 %v2441_v54, %v2465_v3  ;;  %v2561_v22 = vadd.f32 %v2537_v41, %v2513_v2  ;;  %v4658_v44 = vpop.f32.mrb[68].mxu0 }
 0x500   :  { %v2468_v18 = vmul.f32 %v4658_v44, %v2420_v9  ;;  %v2540_v7 = vmul.f32 %v4658_v44, %v2396_v39  ;;  %v2364_v23 = vpop.f32.mrb[69].mxu0 }
 0x501   :  { %v2467_v33 = vmul.f32 %v2419_v56, %v2364_v23  ;;  %v2539_v62 = vmul.f32 %v2395_v14, %v2364_v23  ;;  %4697 = vmatprep.mubr.msk.f32.mxu1 %vm121_vm0, %v6193_v26  ;;  %4741 = vmatprep.mubr.msk.f32.mxu0 %vm121_vm0, %v2561_v22 }
 0x502   :  { %v2492_v13 = vsub.f32 %v2444_v11, %v2468_v18  ;;  %v2564_v25 = vadd.f32 %v2540_v7, %v2516_v32  ;;  %4698 = vmatmul.mubr.msk.f32.gmra.mrb[70].mxu1 %vm121_vm0, %v6186_v8  ;;  %4742 = vmatmul.mubr.msk.f32.gmra.mrb[90].mxu0 %vm121_vm0, %v2562_v5 }
 0x503   :  { %v2491_v54 = vsub.f32 %v2443_v15, %v2467_v33  ;;  %v2563_v63 = vadd.f32 %v2539_v62, %v2515_v24 }
 0x505   :  { %4700 = vmatprep.mubr.msk.f32.mxu1 %vm121_vm0, %v2491_v54  ;;  %4744 = vmatprep.mubr.msk.f32.mxu0 %vm121_vm0, %v2563_v63 }
 0x506   :  { %4701 = vmatmul.mubr.msk.f32.gmra.mrb[72].mxu1 %vm121_vm0, %v2492_v13  ;;  %4745 = vmatmul.mubr.msk.f32.gmra.mrb[92].mxu0 %vm121_vm0, %v2564_v25 }
 0x507   :  { %4755 = vmatprep.mubr.msk.f32.mxu1 %vm121_vm0, %v5875_v38 }
 0x50a   :  { %4756 = vmatmul.mubr.msk.f32.vlgmr.msra.gmra.mrb[74].mxu1 %vm121_vm0, %v5871_v35  ;;  %v5164_v35 = vmov 0.0|0.0  }
 0x50b   :  { %4758 = vmatprep.mubr.msk.f32.mxu1 %vm121_vm0, %v5904_v19  ;;  %5070 = vmatpush3.bf16.msra.mxu1 %v5786_v53  ;;  %v6462_v53 = vld [vmem:[#allocation2_spill] sm:$0xff] }
 0x50c   :  { %5072 = vmatprep.subr.bf16.mxu1 %v5799_v57  ;;  %5075 = vmatprep.subr.bf16.mxu0 %v5164_v35 }
 0x50e   :  { %4759 = vmatmul.mubr.msk.f32.gmra.mrb[76].mxu1 %vm121_vm0, %v5895_v60 }
 0x50f   :  { %4761 = vmatprep.mubr.msk.f32.mxu1 %vm121_vm0, %v5938_v31  ;;  %5074 = vmatpush3.bf16.msra.mxu1 %v5799_v57  ;;  %v6463_v57 = vld [vmem:[#allocation4_spill] sm:$0xff] }
 0x512   :  { %4762 = vmatmul.mubr.msk.f32.gmra.mrb[78].mxu1 %vm121_vm0, %v5929_v28 }
 0x513   :  { %4764 = vmatprep.mubr.msk.f32.mxu1 %vm121_vm0, %v5972_v55 }
 0x516   :  { %4765 = vmatmul.mubr.msk.f32.gmra.mrb[80].mxu1 %vm121_vm0, %v5963_v50 }
 0x517   :  { %4767 = vmatprep.mubr.msk.f32.mxu1 %vm121_vm0, %v6004_v29 }
 0x51a   :  { %4768 = vmatmul.mubr.msk.f32.gmra.mrb[82].mxu1 %vm121_vm0, %v5995_v4 }
 0x51b   :  { %4770 = vmatprep.mubr.msk.f32.mxu1 %vm121_vm0, %v6039_v20 }
 0x51e   :  { %4771 = vmatmul.mubr.msk.f32.gmra.mrb[84].mxu1 %vm121_vm0, %v6030_v51 }
 0x51f   :  { %4773 = vmatprep.mubr.msk.f32.mxu1 %vm121_vm0, %v6072_v43 }
 0x522   :  { %4774 = vmatmul.mubr.msk.f32.gmra.mrb[86].mxu1 %vm121_vm0, %v6060_v36 }
 0x523   :  { %4776 = vmatprep.mubr.msk.f32.mxu1 %vm121_vm0, %v6104_v12 }
 0x526   :  { %4777 = vmatmul.mubr.msk.f32.gmra.mrb[88].mxu1 %vm121_vm0, %v6092_v21 }
 0x527   :  { %4779 = vmatprep.mubr.msk.f32.mxu1 %vm121_vm0, %v6136_v16 }
 0x52a   :  { %4780 = vmatmul.mubr.msk.f32.gmra.mrb[90].mxu1 %vm121_vm0, %v6124_v59 }
 0x52b   :  { %4782 = vmatprep.mubr.msk.f32.mxu1 %vm121_vm0, %v6168_v46 }
 0x52e   :  { %4783 = vmatmul.mubr.msk.f32.gmra.mrb[92].mxu1 %vm121_vm0, %v6156_v61  ;;  %v3482_v61 = vld [vmem:[%s6438_s5 + $0x8] sm:$0xff] }
 0x52f   :  { %4785 = vmatprep.mubr.msk.f32.mxu1 %vm121_vm0, %v2561_v22  ;;  %3874 = vmatprep.mubr.msk.f32.mxu0 %vm1154_vm1, %v3482_v61 }
 0x532   :  { %4786 = vmatmul.mubr.msk.f32.gmra.mrb[94].mxu1 %vm121_vm0, %v2562_v5 }
 0x533   :  { %4788 = vmatprep.mubr.msk.f32.mxu1 %vm121_vm0, %v2563_v63 }
 0x536   :  { %4789 = vmatmul.mubr.msk.f32.gmra.mrb[96].mxu1 %vm121_vm0, %v2564_v25 }
 0x537   :  { %4799 = vmatprep.mubr.msk.f32.mxu1 %vm121_vm0, %v5873_v37 }
 0x53a   :  { %4800 = vmatmul.mubr.msk.f32.vlgmr.msra.gmra.mrb[74].mxu1 %vm121_vm0, %v5869_v34  ;;  %v6464_v34 = vld [vmem:[#allocation3_spill] sm:$0xff] }
 0x53b   :  { %4802 = vmatprep.mubr.msk.f32.mxu1 %vm121_vm0, %v5902_v1 }
 0x53e   :  { %4803 = vmatmul.mubr.msk.f32.gmra.mrb[76].mxu1 %vm121_vm0, %v5893_v58 }
 0x53f   :  { %4805 = vmatprep.mubr.msk.f32.mxu1 %vm121_vm0, %v5936_v30 }
 0x542   :  { %4806 = vmatmul.mubr.msk.f32.gmra.mrb[78].mxu1 %vm121_vm0, %v5927_v27 }
 0x543   :  { %4808 = vmatprep.mubr.msk.f32.mxu1 %vm121_vm0, %v5970_v52 }
 0x546   :  { %4809 = vmatmul.mubr.msk.f32.gmra.mrb[80].mxu1 %vm121_vm0, %v5961_v49 }
 0x547   :  { %4811 = vmatprep.mubr.msk.f32.mxu1 %vm121_vm0, %v6002_v6 }
 0x54a   :  { %4812 = vmatmul.mubr.msk.f32.gmra.mrb[82].mxu1 %vm121_vm0, %v5993_v48 }
 0x54b   :  { %4814 = vmatprep.mubr.msk.f32.mxu1 %vm121_vm0, %v6037_v0 }
 0x54e   :  { %4815 = vmatmul.mubr.msk.f32.gmra.mrb[84].mxu1 %vm121_vm0, %v6028_v10 }
 0x54f   :  { %4817 = vmatprep.mubr.msk.f32.mxu1 %vm121_vm0, %v6070_v42 }
 0x552   :  { %4818 = vmatmul.mubr.msk.f32.gmra.mrb[86].mxu1 %vm121_vm0, %v6058_v17 }
 0x553   :  { %4820 = vmatprep.mubr.msk.f32.mxu1 %vm121_vm0, %v6102_v40 }
 0x556   :  { %4821 = vmatmul.mubr.msk.f32.gmra.mrb[88].mxu1 %vm121_vm0, %v6090_v45 }
 0x557   :  { %4823 = vmatprep.mubr.msk.f32.mxu1 %vm121_vm0, %v6134_v47 }
 0x55a   :  { %4824 = vmatmul.mubr.msk.f32.gmra.mrb[90].mxu1 %vm121_vm0, %v6462_v53 }
 0x55b   :  { %4826 = vmatprep.mubr.msk.f32.mxu1 %vm121_vm0, %v6463_v57 }
 0x55e   :  { %4827 = vmatmul.mubr.msk.f32.gmra.mrb[92].mxu1 %vm121_vm0, %v6464_v34 }
 0x55f   :  { %4829 = vmatprep.mubr.msk.f32.mxu1 %vm121_vm0, %v6193_v26 }
 0x562   :  { %4830 = vmatmul.mubr.msk.f32.gmra.mrb[94].mxu1 %vm121_vm0, %v6186_v8 }
 0x563   :  { %4832 = vmatprep.mubr.msk.f32.mxu1 %vm121_vm0, %v2491_v54 }
 0x566   :  { %4833 = vmatmul.mubr.msk.f32.gmra.mrb[96].mxu1 %vm121_vm0, %v2492_v13 }
 0x5ad   :  { %v4669_v37 = vpop.f32.mrb[50].mxu1  ;;  %v4713_v38 = vpop.f32.mrb[70].mxu0 }
 0x5ae   :  { %v6301_v58 = vsub.f32 %v4669_v37, %v4713_v38  ;;  %v2711_v60 = vpop.f32.mrb[51].mxu1  ;;  %v2968_v1 = vpop.f32.mrb[71].mxu0 }
 0x5af   :  { %v6303_v19 = vsub.f32 %v2711_v60, %v2968_v1 }
 0x5b1   :  { %v4672_v27 = vpop.f32.mrb[52].mxu1  ;;  %v4716_v28 = vpop.f32.mrb[72].mxu0 }
 0x5b2   :  { %v6305_v30 = vsub.f32 %v4672_v27, %v4716_v28  ;;  %v2721_v31 = vpop.f32.mrb[53].mxu1  ;;  %v2978_v49 = vpop.f32.mrb[73].mxu0 }
 0x5b3   :  { %v6307_v50 = vsub.f32 %v2721_v31, %v2978_v49 }
 0x5b5   :  { %v4675_v52 = vpop.f32.mrb[54].mxu1  ;;  %v4719_v55 = vpop.f32.mrb[74].mxu0 }
 0x5b6   :  { %v6309_v48 = vsub.f32 %v4675_v52, %v4719_v55  ;;  %v2731_v4 = vpop.f32.mrb[55].mxu1  ;;  %v2988_v6 = vpop.f32.mrb[75].mxu0 }
 0x5b7   :  { %v6311_v29 = vsub.f32 %v2731_v4, %v2988_v6  ;;  %v3484_v6 = vmul.f32 %v6301_v58, %v6301_v58 }
 0x5b9   :  { %v4678_v10 = vpop.f32.mrb[56].mxu1  ;;  %v4722_v51 = vpop.f32.mrb[76].mxu0 }
 0x5ba   :  { %v6313_v0 = vsub.f32 %v4678_v10, %v4722_v51  ;;  %v2741_v20 = vpop.f32.mrb[57].mxu1  ;;  %v2998_v17 = vpop.f32.mrb[77].mxu0 }
 0x5bb   :  { %v6315_v36 = vsub.f32 %v2741_v20, %v2998_v17  ;;  %v3483_v20 = vmul.f32 %v6303_v19, %v6303_v19  ;;  %v3488_v19 = vmul.f32 %v6309_v48, %v6309_v48 }
 0x5bd   :  { %v4681_v42 = vpop.f32.mrb[58].mxu1  ;;  %v4725_v43 = vpop.f32.mrb[78].mxu0  ;;  %v3489_v48 = vmul.f32 %v6315_v36, %v6315_v36 }
 0x5be   :  { %v6317_v45 = vsub.f32 %v4681_v42, %v4725_v43  ;;  %v2751_v21 = vpop.f32.mrb[59].mxu1  ;;  %v3008_v40 = vpop.f32.mrb[79].mxu0 }
 0x5bf   :  { %v6319_v12 = vsub.f32 %v2751_v21, %v3008_v40  ;;  %v3486_v40 = vmul.f32 %v6305_v30, %v6305_v30  ;;  %v3487_v30 = vmul.f32 %v6311_v29, %v6311_v29 }
 0x5c1   :  { %v4684_v18 = vpop.f32.mrb[60].mxu1  ;;  %v4728_v59 = vpop.f32.mrb[80].mxu0 }
 0x5c2   :  { %v6321_v47 = vsub.f32 %v4684_v18, %v4728_v59  ;;  %v2761_v16 = vpop.f32.mrb[61].mxu1  ;;  %v3018_v25 = vpop.f32.mrb[81].mxu0 }
 0x5c3   :  { %v6326_v39 = vsub.f32 %v2761_v16, %v3018_v25  ;;  %v3485_v16 = vmul.f32 %v6307_v50, %v6307_v50 }
 0x5c5   :  { %v4687_v44 = vpop.f32.mrb[62].mxu1  ;;  %v4731_v46 = vpop.f32.mrb[82].mxu0 }
 0x5c6   :  { %v6329_v2 = vsub.f32 %v4687_v44, %v4731_v46  ;;  %v2771_v9 = vpop.f32.mrb[63].mxu1  ;;  %v3028_v14 = vpop.f32.mrb[83].mxu0 }
 0x5c7   :  { %v6331_v56 = vsub.f32 %v2771_v9, %v3028_v14 }
 0x5c9   :  { %v4690_v3 = vpop.f32.mrb[64].mxu1  ;;  %v4734_v41 = vpop.f32.mrb[84].mxu0 }
 0x5ca   :  { %v6333_v11 = vsub.f32 %v4690_v3, %v4734_v41  ;;  %v2781_v8 = vpop.f32.mrb[65].mxu1  ;;  %v3038_v5 = vpop.f32.mrb[85].mxu0 }
 0x5cb   :  { %v6335_v32 = vsub.f32 %v2781_v8, %v3038_v5 }
 0x5cd   :  { %v4693_v26 = vpop.f32.mrb[66].mxu1  ;;  %v4737_v22 = vpop.f32.mrb[86].mxu0 }
 0x5ce   :  { %v6337_v15 = vsub.f32 %v4693_v26, %v4737_v22  ;;  %v2791_v24 = vpop.f32.mrb[67].mxu1  ;;  %v3048_v7 = vpop.f32.mrb[87].mxu0  ;;  %v3490_v26 = vmul.f32 %v6313_v0, %v6313_v0  ;;  %v3491_v0 = vmul.f32 %v6319_v12, %v6319_v12 }
 0x5cf   :  { %v6339_v23 = vsub.f32 %v2791_v24, %v3048_v7 }
 0x5d1   :  { %v4696_v33 = vpop.f32.mrb[68].mxu1  ;;  %v4740_v62 = vpop.f32.mrb[88].mxu0 }
 0x5d2   :  { %v6341_v13 = vsub.f32 %v4696_v33, %v4740_v62  ;;  %v2801_v54 = vpop.f32.mrb[69].mxu1  ;;  %v3058_v63 = vpop.f32.mrb[89].mxu0 }
 0x5d3   :  { %v6343_v53 = vsub.f32 %v2801_v54, %v3058_v63  ;;  %v3492_v63 = vmul.f32 %v6317_v45, %v6317_v45  ;;  %v3493_v45 = vmul.f32 %v6326_v39, %v6326_v39 }
 0x5d5   :  { %v4699_v57 = vpop.f32.mrb[70].mxu1  ;;  %v4743_v34 = vpop.f32.mrb[90].mxu0 }
 0x5d6   :  { %v6345_v37 = vsub.f32 %v4699_v57, %v4743_v34  ;;  %v2811_v38 = vpop.f32.mrb[71].mxu1  ;;  %v3068_v60 = vpop.f32.mrb[91].mxu0 }
 0x5d7   :  { %v6347_v1 = vsub.f32 %v2811_v38, %v3068_v60 }
 0x5d9   :  { %v4702_v27 = vpop.f32.mrb[72].mxu1  ;;  %v4746_v28 = vpop.f32.mrb[92].mxu0 }
 0x5da   :  { %v6349_v31 = vsub.f32 %v4702_v27, %v4746_v28  ;;  %v2821_v49 = vpop.f32.mrb[73].mxu1  ;;  %v3078_v52 = vpop.f32.mrb[93].mxu0 }
 0x5db   :  { %v6351_v55 = vsub.f32 %v2821_v49, %v3078_v52  ;;  %v3494_v49 = vmul.f32 %v6321_v47, %v6321_v47  ;;  %v3495_v47 = vmul.f32 %v6331_v56, %v6331_v56 }
 0x60d   :  { %v4801_v4 = vpop.f32.mrb[74].mxu1 }
 0x60e   :  { %v3508_v10 = vmul.f32 %v4801_v4, %v4801_v4  ;;  %v3362_v51 = vpop.f32.mrb[75].mxu1 }
 0x60f   :  { %v3507_v17 = vmul.f32 %v3362_v51, %v3362_v51 }
 0x610   :  { %v3532_v42 = vadd.f32 %v3508_v10, %v3484_v6 }
 0x611   :  { %v3531_v43 = vadd.f32 %v3507_v17, %v3483_v20  ;;  %v4804_v21 = vpop.f32.mrb[76].mxu1  ;;  %v3496_v17 = vmul.f32 %v6329_v2, %v6329_v2  ;;  %v3497_v2 = vmul.f32 %v6335_v32, %v6335_v32 }
 0x612   :  { %v3510_v18 = vmul.f32 %v4804_v21, %v4804_v21  ;;  %v3372_v59 = vpop.f32.mrb[77].mxu1 }
 0x613   :  { %v5076_v25 = vpack.c.bf16 %v3532_v42, %v3531_v43  ;;  %v3509_v61 = vmul.f32 %v3372_v59, %v3372_v59 }
 0x614   :  { %v3534_v58 = vadd.f32 %v3510_v18, %v3486_v40 }
 0x615   :  { %v3533_v44 = vadd.f32 %v3509_v61, %v3485_v16  ;;  %v4807_v46 = vpop.f32.mrb[78].mxu1  ;;  %5077 = vmatpush1.bf16.msra.mxu0 %v5076_v25  ;;  %v3498_v16 = vmul.f32 %v6333_v11, %v6333_v11  ;;  %v3499_v11 = vmul.f32 %v6339_v23, %v6339_v23 }
 0x616   :  { %v3512_v9 = vmul.f32 %v4807_v46, %v4807_v46  ;;  %v3382_v14 = vpop.f32.mrb[79].mxu1  ;;  %5078 = vmatprep.subr.bf16.mxu0 %v5164_v35 }
 0x617   :  { %v5079_v3 = vpack.c.bf16 %v3534_v58, %v3533_v44  ;;  %v3511_v41 = vmul.f32 %v3382_v14, %v3382_v14 }
 0x618   :  { %v3536_v8 = vadd.f32 %v3512_v9, %v3488_v19  ;;  %v3500_v9 = vmul.f32 %v6337_v15, %v6337_v15  ;;  %v3501_v15 = vmul.f32 %v6343_v53, %v6343_v53 }
 0x619   :  { %v3535_v50 = vadd.f32 %v3511_v41, %v3487_v30  ;;  %v4810_v5 = vpop.f32.mrb[80].mxu1  ;;  %5080 = vmatpush1.bf16.msra.mxu0 %v5079_v3 }
 0x61a   :  { %v3514_v22 = vmul.f32 %v4810_v5, %v4810_v5  ;;  %v3392_v24 = vpop.f32.mrb[81].mxu1  ;;  %5081 = vmatprep.subr.bf16.mxu0 %v5164_v35  ;;  %v3502_v5 = vmul.f32 %v6341_v13, %v6341_v13  ;;  %v3503_v13 = vmul.f32 %v6347_v1, %v6347_v1 }
 0x61b   :  { %v5082_v7 = vpack.c.bf16 %v3536_v8, %v3535_v50  ;;  %v3513_v33 = vmul.f32 %v3392_v24, %v3392_v24 }
 0x61c   :  { %v3538_v62 = vadd.f32 %v3514_v22, %v3490_v26 }
 0x61d   :  { %v3537_v29 = vadd.f32 %v3513_v33, %v3489_v48  ;;  %v4813_v54 = vpop.f32.mrb[82].mxu1  ;;  %5083 = vmatpush1.bf16.msra.mxu0 %v5082_v7 }
 0x61e   :  { %v3516_v57 = vmul.f32 %v4813_v54, %v4813_v54  ;;  %v3402_v34 = vpop.f32.mrb[83].mxu1  ;;  %5084 = vmatprep.subr.bf16.mxu0 %v5164_v35 }
 0x61f   :  { %v5085_v38 = vpack.c.bf16 %v3538_v62, %v3537_v29  ;;  %v3515_v60 = vmul.f32 %v3402_v34, %v3402_v34  ;;  %v3504_v62 = vmul.f32 %v6345_v37, %v6345_v37  ;;  %v3505_v37 = vmul.f32 %v6351_v55, %v6351_v55 }
 0x620   :  { %v3540_v27 = vadd.f32 %v3516_v57, %v3492_v63 }
 0x621   :  { %v3539_v36 = vadd.f32 %v3515_v60, %v3491_v0  ;;  %v4816_v28 = vpop.f32.mrb[84].mxu1  ;;  %5086 = vmatpush1.bf16.msra.mxu0 %v5085_v38  ;;  %v3506_v38 = vmul.f32 %v6349_v31, %v6349_v31  ;;  %v3481_v31 = vld [vmem:[%s6438_s5] sm:$0xff] }
 0x622   :  { %v3518_v52 = vmul.f32 %v4816_v28, %v4816_v28  ;;  %v3412_v4 = vpop.f32.mrb[85].mxu1  ;;  %5087 = vmatprep.subr.bf16.mxu0 %v5164_v35 }
 0x623   :  { %v5088_v6 = vpack.c.bf16 %v3540_v27, %v3539_v36  ;;  %v3517_v10 = vmul.f32 %v3412_v4, %v3412_v4 }
 0x624   :  { %v3542_v51 = vadd.f32 %v3518_v52, %v3494_v49 }
 0x625   :  { %v3541_v12 = vadd.f32 %v3517_v10, %v3493_v45  ;;  %v4819_v20 = vpop.f32.mrb[86].mxu1  ;;  %5089 = vmatpush1.bf16.msra.mxu0 %v5088_v6 }
 0x626   :  { %v3520_v42 = vmul.f32 %v4819_v20, %v4819_v20  ;;  %v3422_v43 = vpop.f32.mrb[87].mxu1  ;;  %5090 = vmatprep.subr.bf16.mxu0 %v5164_v35 }
 0x627   :  { %v5091_v21 = vpack.c.bf16 %v3542_v51, %v3541_v12  ;;  %v3519_v40 = vmul.f32 %v3422_v43, %v3422_v43 }
 0x628   :  { %v3544_v18 = vadd.f32 %v3520_v42, %v3496_v17 }
 0x629   :  { %v3543_v39 = vadd.f32 %v3519_v40, %v3495_v47  ;;  %v4822_v59 = vpop.f32.mrb[88].mxu1  ;;  %5092 = vmatpush1.bf16.msra.mxu0 %v5091_v21 }
 0x62a   :  { %v3522_v25 = vmul.f32 %v4822_v59, %v4822_v59  ;;  %v3432_v61 = vpop.f32.mrb[89].mxu1  ;;  %5093 = vmatprep.subr.bf16.mxu0 %v5164_v35 }
 0x62b   :  { %v5094_v58 = vpack.c.bf16 %v3544_v18, %v3543_v39  ;;  %v3521_v44 = vmul.f32 %v3432_v61, %v3432_v61 }
 0x62c   :  { %v3546_v46 = vadd.f32 %v3522_v25, %v3498_v16 }
 0x62d   :  { %v3545_v56 = vadd.f32 %v3521_v44, %v3497_v2  ;;  %v4825_v19 = vpop.f32.mrb[90].mxu1  ;;  %5095 = vmatpush1.bf16.msra.mxu0 %v5094_v58 }
 0x62e   :  { %v3524_v14 = vmul.f32 %v4825_v19, %v4825_v19  ;;  %v3442_v30 = vpop.f32.mrb[91].mxu1  ;;  %5096 = vmatprep.subr.bf16.mxu0 %v5164_v35 }
 0x62f   :  { %v5097_v3 = vpack.c.bf16 %v3546_v46, %v3545_v56  ;;  %v3523_v41 = vmul.f32 %v3442_v30, %v3442_v30 }
 0x630   :  { %v3548_v8 = vadd.f32 %v3524_v14, %v3500_v9 }
 0x631   :  { %v3547_v32 = vadd.f32 %v3523_v41, %v3499_v11  ;;  %v4828_v50 = vpop.f32.mrb[92].mxu1  ;;  %5098 = vmatpush1.bf16.msra.mxu0 %v5097_v3 }
 0x632   :  { %v3526_v26 = vmul.f32 %v4828_v50, %v4828_v50  ;;  %v3452_v22 = vpop.f32.mrb[93].mxu1  ;;  %5099 = vmatprep.subr.bf16.mxu0 %v5164_v35 }
 0x633   :  { %v5100_v24 = vpack.c.bf16 %v3548_v8, %v3547_v32  ;;  %v3525_v48 = vmul.f32 %v3452_v22, %v3452_v22 }
 0x634   :  { %v3550_v7 = vadd.f32 %v3526_v26, %v3502_v5 }
 0x635   :  { %v3549_v23 = vadd.f32 %v3525_v48, %v3501_v15  ;;  %v4831_v33 = vpop.f32.mrb[94].mxu1  ;;  %5101 = vmatpush1.bf16.msra.mxu0 %v5100_v24 }
 0x636   :  { %v3528_v29 = vmul.f32 %v4831_v33, %v4831_v33  ;;  %v3462_v54 = vpop.f32.mrb[95].mxu1  ;;  %5102 = vmatprep.subr.bf16.mxu0 %v5164_v35 }
 0x637   :  { %v5103_v63 = vpack.c.bf16 %v3550_v7, %v3549_v23  ;;  %v3527_v57 = vmul.f32 %v3462_v54, %v3462_v54 }
 0x638   :  { %v3552_v34 = vadd.f32 %v3528_v29, %v3504_v62 }
 0x639   :  { %v3551_v53 = vadd.f32 %v3527_v57, %v3503_v13  ;;  %v4834_v0 = vpop.f32.mrb[96].mxu1  ;;  %5104 = vmatpush1.bf16.msra.mxu0 %v5103_v63 }
 0x63a   :  { %v3530_v60 = vmul.f32 %v4834_v0, %v4834_v0  ;;  %v3472_v27 = vpop.f32.mrb[97].mxu1  ;;  %5105 = vmatprep.subr.bf16.mxu0 %v5164_v35 }
 0x63b   :  { %v5106_v36 = vpack.c.bf16 %v3552_v34, %v3551_v53  ;;  %v3529_v28 = vmul.f32 %v3472_v27, %v3472_v27 }
 0x63c   :  { %v3554_v49 = vadd.f32 %v3530_v60, %v3506_v38 }
 0x63d   :  { %v3553_v1 = vadd.f32 %v3529_v28, %v3505_v37  ;;  %5107 = vmatpush1.bf16.msra.mxu0 %v5106_v36 }
 0x63e   :  { %5108 = vmatprep.subr.bf16.mxu0 %v5164_v35 }
 0x63f   :  { %v5109_v52 = vpack.c.bf16 %v3554_v49, %v3553_v1 }
 0x641   :  { %5110 = vmatpush1.bf16.msra.mxu0 %v5109_v52 }
 0x644   :  { %3623 = vmatmul.mubr.f32.vlgmr.msra.gmra.mrb[94].mxu0 %v3481_v31 }
 0x717   :  { %v3624_v4 = vpop.f32.mrb[94].mxu0 }
 0x718   :  { %v3628_v45 = vmul.f32 3.0517578e-05, %v3624_v4  ;;  %v3626_v6 = vpop.f32.mrb[95].mxu0 }
 0x71a   :  { %3629 = vst.msk [vmem:[%s6465_s7] sm:$0xff] %vm121_vm0, %v3628_v45 }

// kernel: _forward.3
= control target key start
LH: loop header
LB: loop body
LE: loop exit
PB: predicated region body
PF: predicated region fallthrough
CT: control target
= control target key end

     0   :  { %s5201_s0 = inlined_call_operand.vmem [shape: f32[400,200], index: 0, kind: input, shape index: {}]   ;;  %s5202_s1 = inlined_call_operand.vmem [shape: f32[400,200], index: 1, kind: input, shape index: {}]   ;;  %s5203_s2 = inlined_call_operand.vmem [shape: f32[400,200], index: 2, kind: input, shape index: {}]   ;;  %s5204_s3 = inlined_call_operand.hbm [shape: f32[400,200], index: 3, kind: output, shape index: {}]  }
   0x1   :  { %v15_v0 = vld [vmem:[%s5201_s0] sm:$0xff]  ;;  %v16_v4 = vld [vmem:[%s5201_s0 + $0x8] sm:$0xff]  ;;  %v17_v8 = vld [vmem:[%s5201_s0 + $0x10] sm:$0xff] }
   0x2   :  { %v415_v1 = vld [vmem:[%s5202_s1] sm:$0xff]  ;;  %v115_v2 = vmul.f32 2e-05, %v15_v0  ;;  %v416_v5 = vld [vmem:[%s5202_s1 + $0x8] sm:$0xff]  ;;  %v116_v6 = vmul.f32 2e-05, %v16_v4 }
   0x3   :  { %v515_v3 = vmul.f32 2e+08, %v415_v1  ;;  %v516_v7 = vmul.f32 2e+08, %v416_v5  ;;  %v117_v11 = vmul.f32 2e-05, %v17_v8 }
   0x4   :  { %v215_v9 = vadd.f32 100.0, %v115_v2  ;;  %v417_v12 = vld [vmem:[%s5202_s1 + $0x10] sm:$0xff]  ;;  %v216_v13 = vadd.f32 100.0, %v116_v6  ;;  %v18_v18 = vld [vmem:[%s5201_s0 + $0x18] sm:$0xff]  ;;  %v19_v23 = vld [vmem:[%s5201_s0 + $0x20] sm:$0xff] }
   0x5   :  { %v615_v10 = vadd.f32 3e+08, %v515_v3  ;;  %v616_v14 = vadd.f32 3e+08, %v516_v7  ;;  %v517_v15 = vmul.f32 2e+08, %v417_v12 }
   0x6   :  { %v315_v16 = vadd.f32 100000.0, %v215_v9  ;;  %v217_v17 = vadd.f32 100.0, %v117_v11  ;;  %v418_v19 = vld [vmem:[%s5202_s1 + $0x18] sm:$0xff]  ;;  %v316_v20 = vadd.f32 100000.0, %v216_v13  ;;  %v118_v22 = vmul.f32 2e-05, %v18_v18 }
   0x7   :  { %v617_v21 = vadd.f32 3e+08, %v517_v15  ;;  %v518_v26 = vmul.f32 2e+08, %v418_v19  ;;  %v119_v27 = vmul.f32 2e-05, %v19_v23 }
   0x8   :  { %v715_v24 = vadd.f32 %v615_v10, %v315_v16  ;;  %v317_v25 = vadd.f32 100000.0, %v217_v17  ;;  %v419_v28 = vld [vmem:[%s5202_s1 + $0x20] sm:$0xff]  ;;  %v716_v29 = vadd.f32 %v616_v14, %v316_v20  ;;  %v218_v30 = vadd.f32 100.0, %v118_v22  ;;  %v20_v38 = vld [vmem:[%s5201_s0 + $0x28] sm:$0xff]  ;;  %v21_v47 = vld [vmem:[%s5201_s0 + $0x30] sm:$0xff] }
   0x9   :  { %v519_v31 = vmul.f32 2e+08, %v419_v28  ;;  %v618_v33 = vadd.f32 3e+08, %v518_v26  ;;  %v219_v34 = vadd.f32 100.0, %v119_v27  ;;  %v420_v42 = vld [vmem:[%s5202_s1 + $0x28] sm:$0xff] }
   0xa   :  { %vm815_vm0 = vcmp.le.f32.partialorder %v715_v24, 0.0  ;;  %v717_v32 = vadd.f32 %v617_v21, %v317_v25  ;;  %vm816_vm1 = vcmp.le.f32.partialorder %v716_v29, 0.0  ;;  %v318_v36 = vadd.f32 100000.0, %v218_v30  ;;  %v421_v51 = vld [vmem:[%s5202_s1 + $0x30] sm:$0xff]  ;;  %v22_v53 = vld [vmem:[%s5201_s0 + $0x38] sm:$0xff]  ;;  %v23_v55 = vld [vmem:[%s5201_s0 + $0x40] sm:$0xff] }
   0xb   :  { %v3012_v35 = vsel %vm815_vm0, 0.0, %v715_v24  ;;  %v619_v37 = vadd.f32 3e+08, %v519_v31  ;;  %v3018_v39 = vsel %vm816_vm1, 0.0, %v716_v29  ;;  %v319_v41 = vadd.f32 100000.0, %v219_v34  ;;  %v422_v54 = vld [vmem:[%s5202_s1 + $0x38] sm:$0xff] }
   0xc   :  { %2735 = vrsqrt.f32 %v3012_v35  ;;  %vm817_vm2 = vcmp.le.f32.partialorder %v717_v32, 0.0  ;;  %v718_v40 = vadd.f32 %v618_v33, %v318_v36  ;;  %vm1017_vm3 = vcmp.eq.f32.partialorder %v3012_v35, inf  ;;  %v423_v1 = vld [vmem:[%s5202_s1 + $0x40] sm:$0xff]  ;;  %v1816_v28 = vld [vmem:[%s5203_s2 + $0x8] sm:$0xff] }
   0xd   :  { %2737 = vrsqrt.f32 %v3018_v39  ;;  %v3025_v43 = vsel %vm817_vm2, 0.0, %v717_v32  ;;  %v719_v44 = vadd.f32 %v619_v37, %v319_v41  ;;  %v120_v45 = vmul.f32 2e-05, %v20_v38  ;;  %v1815_v18 = vld [vmem:[%s5203_s2] sm:$0xff]  ;;  %v1817_v38 = vld [vmem:[%s5203_s2 + $0x10] sm:$0xff] }
   0xe   :  { %vm818_vm4 = vcmp.le.f32.partialorder %v718_v40, 0.0  ;;  %vm1019_vm5 = vcmp.eq.f32.partialorder %v3012_v35, 0.0  ;;  %v1020_v46 = vand.u32 2147483648, %v3012_v35  ;;  %vm1024_vm6 = vcmp.eq.f32.partialorder %v3018_v39, inf }
   0xf   :  { %2739 = vrsqrt.f32 %v3025_v43  ;;  %v3034_v48 = vsel %vm818_vm4, 0.0, %v718_v40  ;;  %vm819_vm7 = vcmp.le.f32.partialorder %v719_v44, 0.0  ;;  %v220_v49 = vadd.f32 100.0, %v120_v45 }
  0x10   :  { %v520_v50 = vmul.f32 2e+08, %v420_v42  ;;  %vm1026_vm8 = vcmp.eq.f32.partialorder %v3018_v39, 0.0  ;;  %v1027_v52 = vand.u32 2147483648, %v3018_v39  ;;  %vm1031_vm9 = vcmp.eq.f32.partialorder %v3025_v43, inf }
  0x11   :  { %2741 = vrsqrt.f32 %v3034_v48  ;;  %v3052_v56 = vsel %vm819_vm7, 0.0, %v719_v44  ;;  %v320_v57 = vadd.f32 100000.0, %v220_v49  ;;  %v121_v59 = vmul.f32 2e-05, %v21_v47 }
  0x12   :  { %v620_v58 = vadd.f32 3e+08, %v520_v50  ;;  %vm1033_vm10 = vcmp.eq.f32.partialorder %v3025_v43, 0.0  ;;  %v1034_v60 = vand.u32 2147483648, %v3025_v43  ;;  %vm1038_vm11 = vcmp.eq.f32.partialorder %v3034_v48, inf  ;;  %v1818_v50 = vld [vmem:[%s5203_s2 + $0x18] sm:$0xff] }
  0x13   :  { %2743 = vrsqrt.f32 %v3052_v56  ;;  %v221_v62 = vadd.f32 100.0, %v121_v59  ;;  %v521_v63 = vmul.f32 2e+08, %v421_v51  ;;  %v122_v0 = vmul.f32 2e-05, %v22_v53 }
  0x14   :  { %v720_v61 = vadd.f32 %v620_v58, %v320_v57  ;;  %vm1040_vm12 = vcmp.eq.f32.partialorder %v3034_v48, 0.0  ;;  %v1041_v3 = vand.u32 2147483648, %v3034_v48  ;;  %v522_v4 = vmul.f32 2e+08, %v422_v54 }
  0x15   :  { %v123_v5 = vmul.f32 2e-05, %v23_v55  ;;  %vm1045_vm13 = vcmp.eq.f32.partialorder %v3052_v56, inf  ;;  %v321_v7 = vadd.f32 100000.0, %v221_v62  ;;  %v621_v8 = vadd.f32 3e+08, %v521_v63 }
  0x16   :  { %v2736_v2 = vpop.eup %2735  ;;  %vm820_vm14 = vcmp.le.f32.partialorder %v720_v61, 0.0  ;;  %v222_v11 = vadd.f32 100.0, %v122_v0  ;;  %v523_v13 = vmul.f32 2e+08, %v423_v1  ;;  %vm1047_vm15 = vcmp.eq.f32.partialorder %v3052_v56, 0.0 }
  0x17   :  { %v1016_v6 = vmul.f32 %v2736_v2, %v3012_v35  ;;  %v2738_v9 = vpop.eup %2737  ;;  %v3065_v10 = vsel %vm820_vm14, 0.0, %v720_v61  ;;  %v223_v12 = vadd.f32 100.0, %v123_v5  ;;  %v1048_v19 = vand.u32 2147483648, %v3052_v56 }
  0x18   :  { %v1023_v15 = vmul.f32 %v2738_v9, %v3018_v39  ;;  %2745 = vrsqrt.f32 %v3065_v10  ;;  %v721_v20 = vadd.f32 %v621_v8, %v321_v7  ;;  %v622_v21 = vadd.f32 3e+08, %v522_v4 }
  0x19   :  { %v1018_v14 = vsel %vm1017_vm3, %v3012_v35, %v1016_v6  ;;  %v2740_v16 = vpop.eup %2739  ;;  %vm1052_vm0 = vcmp.eq.f32.partialorder %v3065_v10, inf  ;;  %v322_v25 = vadd.f32 100000.0, %v222_v11  ;;  %vm1054_vm1 = vcmp.eq.f32.partialorder %v3065_v10, 0.0 }
  0x1a   :  { %v1021_v17 = vsel %vm1019_vm5, %v1020_v46, %v1018_v14  ;;  %v1025_v23 = vsel %vm1024_vm6, %v3018_v39, %v1023_v15  ;;  %v1030_v24 = vmul.f32 %v2740_v16, %v3025_v43  ;;  %vm821_vm2 = vcmp.le.f32.partialorder %v721_v20, 0.0 }
  0x1b   :  { %v1715_v22 = vmul.f32 100.0, %v1021_v17  ;;  %v2742_v26 = vpop.eup %2741  ;;  %v1028_v27 = vsel %vm1026_vm8, %v1027_v52, %v1025_v23  ;;  %v323_v29 = vadd.f32 100000.0, %v223_v12  ;;  %v623_v30 = vadd.f32 3e+08, %v523_v13 }
  0x1c   :  { %v1716_v32 = vmul.f32 100.0, %v1028_v27  ;;  %v1032_v33 = vsel %vm1031_vm9, %v3025_v43, %v1030_v24  ;;  %v1037_v34 = vmul.f32 %v2742_v26, %v3034_v48  ;;  %vm2616_vm3 = vcmask 588800  }
  0x1d   :  { %v1915_v31 = vmul.f32 %v1815_v18, %v1715_v22  ;;  %v2744_v36 = vpop.eup %2743  ;;  %v1035_v37 = vsel %vm1033_vm10, %v1034_v60, %v1032_v33  ;;  %v1055_v40 = vand.u32 2147483648, %v3065_v10  ;;  %v3100_v41 = vsel %vm821_vm2, 0.0, %v721_v20  ;;  %v24_v20 = vld [vmem:[%s5201_s0 + $0x48] sm:$0xff] }
  0x1e   :  { %v722_v42 = vadd.f32 %v622_v21, %v322_v25  ;;  %v1916_v45 = vmul.f32 %v1816_v28, %v1716_v32  ;;  %v1717_v46 = vmul.f32 100.0, %v1035_v37  ;;  %v1039_v47 = vsel %vm1038_vm11, %v3034_v48, %v1037_v34 }
  0x1f   :  { %v2015_v44 = vadd.f32 %v1915_v31, %v3012_v35  ;;  %v1042_v49 = vsel %vm1040_vm12, %v1041_v3, %v1039_v47  ;;  %v1044_v51 = vmul.f32 %v2744_v36, %v3052_v56  ;;  %2747 = vrsqrt.f32 %v3100_v41  ;;  %v1819_v3 = vld [vmem:[%s5203_s2 + $0x20] sm:$0xff] }
  0x20   :  { %v723_v52 = vadd.f32 %v623_v30, %v323_v29  ;;  %v2016_v35 = vadd.f32 %v1916_v45, %v3018_v39  ;;  %v1917_v53 = vmul.f32 %v1817_v38, %v1717_v46  ;;  %v1718_v54 = vmul.f32 100.0, %v1042_v49 }
  0x21   :  { %vm2115_vm4 = vcmp.le.f32.partialorder %v2015_v44, 10.0  ;;  %v1046_v57 = vsel %vm1045_vm13, %v3052_v56, %v1044_v51  ;;  %vm1059_vm5 = vcmp.eq.f32.partialorder %v3100_v41, inf  ;;  %v1062_v58 = vand.u32 2147483648, %v3100_v41 }
  0x22   :  { %v2215_v55 = vsel %vm2115_vm4, 1.0, %v2015_v44  ;;  %v2746_v59 = vpop.eup %2745  ;;  %vm2116_vm7 = vcmp.le.f32.partialorder %v2016_v35, 10.0  ;;  %v2017_v60 = vadd.f32 %v1917_v53, %v3025_v43  ;;  %v1918_v61 = vmul.f32 %v1818_v50, %v1718_v54 }
  0x23   :  { %vm2315_vm6 = vcmp.ge.f32.partialorder %v2215_v55, 4e+09  ;;  %v2216_v63 = vsel %vm2116_vm7, 1.0, %v2016_v35  ;;  %v1049_v39 = vsel %vm1047_vm15, %v1048_v19, %v1046_v57  ;;  %v1051_v0 = vmul.f32 %v2746_v59, %v3065_v10 }
  0x24   :  { %v2415_v62 = vsel %vm2315_vm6, 4e+09, %v2215_v55  ;;  %vm2316_vm8 = vcmp.ge.f32.partialorder %v2216_v63, 4e+09  ;;  %vm2117_vm9 = vcmp.le.f32.partialorder %v2017_v60, 10.0  ;;  %v2018_v2 = vadd.f32 %v1918_v61, %v3034_v48  ;;  %v1820_v48 = vld [vmem:[%s5203_s2 + $0x28] sm:$0xff] }
  0x25   :  { %v2515_v1 = vmul.f32 2.5e-10, %v2415_v62  ;;  %v2416_v4 = vsel %vm2316_vm8, 4e+09, %v2216_v63  ;;  %v2217_v5 = vsel %vm2117_vm9, 1.0, %v2017_v60  ;;  %v1719_v43 = vmul.f32 100.0, %v1049_v39 }
  0x26   :  { %v1053_v6 = vsel %vm1052_vm0, %v3065_v10, %v1051_v0  ;;  %v2516_v7 = vmul.f32 2.5e-10, %v2416_v4  ;;  %vm2317_vm10 = vcmp.ge.f32.partialorder %v2217_v5, 4e+09  ;;  %vm2118_vm11 = vcmp.le.f32.partialorder %v2018_v2, 10.0 }
  0x27   :  { %2615 = vst [vmem:[#allocation2] sm:$0xff] %v2515_v1  ;;  %v1056_v8 = vsel %vm1054_vm1, %v1055_v40, %v1053_v6  ;;  %v2417_v9 = vsel %vm2317_vm10, 4e+09, %v2217_v5  ;;  %v2218_v11 = vsel %vm2118_vm11, 1.0, %v2018_v2  ;;  %v1919_v12 = vmul.f32 %v1819_v3, %v1719_v43 }
  0x28   :  { %v1720_v13 = vmul.f32 100.0, %v1056_v8  ;;  %2617 = vst.msk [vmem:[#allocation2 + $0x8] sm:$0xff] %vm2616_vm3, %v2516_v7  ;;  %v2517_v14 = vmul.f32 2.5e-10, %v2417_v9  ;;  %vm2318_vm12 = vcmp.ge.f32.partialorder %v2218_v11, 4e+09 }
  0x29   :  { %vm822_vm13 = vcmp.le.f32.partialorder %v722_v42, 0.0  ;;  %vm823_vm14 = vcmp.le.f32.partialorder %v723_v52, 0.0  ;;  %v2748_v15 = vpop.eup %2747  ;;  %v2418_v16 = vsel %vm2318_vm12, 4e+09, %v2218_v11  ;;  %v2019_v17 = vadd.f32 %v1919_v12, %v3052_v56 }
  0x2a   :  { %v1920_v18 = vmul.f32 %v1820_v48, %v1720_v13  ;;  %v3137_v19 = vsel %vm822_vm13, 0.0, %v722_v42  ;;  %2618 = vst [vmem:[#allocation2 + $0x10] sm:$0xff] %v2517_v14  ;;  %v2518_v21 = vmul.f32 2.5e-10, %v2418_v16  ;;  %v1058_v22 = vmul.f32 %v2748_v15, %v3100_v41 }
  0x2b   :  { %vm1061_vm15 = vcmp.eq.f32.partialorder %v3100_v41, 0.0  ;;  %2749 = vrsqrt.f32 %v3137_v19  ;;  %vm2119_vm0 = vcmp.le.f32.partialorder %v2019_v17, 10.0 }
  0x2c   :  { %v2020_v23 = vadd.f32 %v1920_v18, %v3065_v10 }
  0x2d   :  { %8 = vsyncpa [#allocation3], 0  ;;  %2619 = vst.msk [vmem:[#allocation2 + $0x18] sm:$0xff] %vm2616_vm3, %v2518_v21  ;;  %v2219_v56 = vsel %vm2119_vm0, 1.0, %v2019_v17  ;;  %v1060_v24 = vsel %vm1059_vm5, %v3100_v41, %v1058_v22  ;;  %v1821_v25 = vld [vmem:[%s5203_s2 + $0x30] sm:$0xff]  ;;  %vm1066_vm1 = vcmp.eq.f32.partialorder %v3137_v19, inf }
  0x2e   :  { %v3155_v26 = vsel %vm823_vm14, 0.0, %v723_v52  ;;  %v124_v27 = vmul.f32 2e-05, %v24_v20  ;;  %v424_v10 = vld [vmem:[%s5202_s1 + $0x48] sm:$0xff]  ;;  %vm2319_vm2 = vcmp.ge.f32.partialorder %v2219_v56, 4e+09  ;;  %v1063_v28 = vsel %vm1061_vm15, %v1062_v58, %v1060_v24 }
  0x2f   :  { %vm2120_vm4 = vcmp.le.f32.partialorder %v2020_v23, 10.0  ;;  %2751 = vrsqrt.f32 %v3155_v26  ;;  %v25_v29 = vld [vmem:[%s5201_s0 + $0x50] sm:$0xff]  ;;  %v26_v31 = vld [vmem:[%s5201_s0 + $0x58] sm:$0xff]  ;;  %v2419_v32 = vsel %vm2319_vm2, 4e+09, %v2219_v56  ;;  %v1721_v34 = vmul.f32 100.0, %v1063_v28 }
  0x30   :  { %v425_v30 = vld [vmem:[%s5202_s1 + $0x50] sm:$0xff]  ;;  %v2220_v33 = vsel %vm2120_vm4, 1.0, %v2020_v23  ;;  %vm1068_vm5 = vcmp.eq.f32.partialorder %v3137_v19, 0.0  ;;  %v426_v36 = vld [vmem:[%s5202_s1 + $0x58] sm:$0xff]  ;;  %v2519_v37 = vmul.f32 2.5e-10, %v2419_v32 }
  0x31   :  { %vm2320_vm6 = vcmp.ge.f32.partialorder %v2220_v33, 4e+09  ;;  %v1069_v38 = vand.u32 2147483648, %v3137_v19  ;;  %vm1073_vm7 = vcmp.eq.f32.partialorder %v3155_v26, inf  ;;  %v1921_v42 = vmul.f32 %v1821_v25, %v1721_v34  ;;  %v27_v46 = vld [vmem:[%s5201_s0 + $0x60] sm:$0xff]  ;;  %v1822_v48 = vld [vmem:[%s5203_s2 + $0x38] sm:$0xff] }
  0x32   :  { %v2420_v40 = vsel %vm2320_vm6, 4e+09, %v2220_v33  ;;  %vm1075_vm8 = vcmp.eq.f32.partialorder %v3155_v26, 0.0  ;;  %v224_v44 = vadd.f32 100.0, %v124_v27  ;;  %v524_v45 = vmul.f32 2e+08, %v424_v10 }
  0x33   :  { %2620 = vst [vmem:[#allocation2 + $0x20] sm:$0xff] %v2519_v37  ;;  %v2520_v47 = vmul.f32 2.5e-10, %v2420_v40  ;;  %v125_v49 = vmul.f32 2e-05, %v25_v29  ;;  %v2021_v51 = vadd.f32 %v1921_v42, %v3100_v41  ;;  %v1076_v54 = vand.u32 2147483648, %v3155_v26 }
  0x34   :  { %v525_v50 = vmul.f32 2e+08, %v425_v30  ;;  %v324_v52 = vadd.f32 100000.0, %v224_v44  ;;  %v624_v35 = vadd.f32 3e+08, %v524_v45  ;;  %v427_v11 = vld [vmem:[%s5202_s1 + $0x60] sm:$0xff] }
  0x35   :  { %v126_v53 = vmul.f32 2e-05, %v26_v31  ;;  %2621 = vst.msk [vmem:[#allocation2 + $0x28] sm:$0xff] %vm2616_vm3, %v2520_v47  ;;  %v225_v55 = vadd.f32 100.0, %v125_v49  ;;  %v526_v58 = vmul.f32 2e+08, %v426_v36  ;;  %v2750_v59 = vpop.eup %2749 }
  0x36   :  { %v625_v57 = vadd.f32 3e+08, %v525_v50  ;;  %vm2121_vm9 = vcmp.le.f32.partialorder %v2021_v51, 10.0  ;;  %v724_v60 = vadd.f32 %v624_v35, %v324_v52  ;;  %v127_v62 = vmul.f32 2e-05, %v27_v46  ;;  %v1823_v17 = vld [vmem:[%s5203_s2 + $0x40] sm:$0xff] }
  0x37   :  { %v226_v61 = vadd.f32 100.0, %v126_v53  ;;  %v2221_v63 = vsel %vm2121_vm9, 1.0, %v2021_v51  ;;  %v1065_v39 = vmul.f32 %v2750_v59, %v3137_v19  ;;  %v325_v0 = vadd.f32 100000.0, %v225_v55  ;;  %v28_v21 = vld [vmem:[%s5201_s0 + $0x68] sm:$0xff]  ;;  %v30_v52 = vld [vmem:[%s5201_s0 + $0x78] sm:$0xff]  ;;  %s2959_s16 = smov [#allocation2]  }
  0x38   :  { %v626_v41 = vadd.f32 3e+08, %v526_v58  ;;  %vm2321_vm10 = vcmp.ge.f32.partialorder %v2221_v63, 4e+09  ;;  %vm824_vm11 = vcmp.le.f32.partialorder %v724_v60, 0.0  ;;  %v227_v2 = vadd.f32 100.0, %v127_v62 }
  0x39   :  { %v326_v1 = vadd.f32 100000.0, %v226_v61  ;;  %v2752_v3 = vpop.eup %2751  ;;  %v2421_v4 = vsel %vm2321_vm10, 4e+09, %v2221_v63  ;;  %v1067_v5 = vsel %vm1066_vm1, %v3137_v19, %v1065_v39  ;;  %v3187_v43 = vsel %vm824_vm11, 0.0, %v724_v60  ;;  %v428_v22 = vld [vmem:[%s5202_s1 + $0x68] sm:$0xff]  ;;  %s2721_s17 = sshll.u32 %s2959_s16, 4  ;;  %s2722_s17 = int_to_ptr.vmem [resolvable:$true] %s2721_s17 }
  0x3a   :  { %v725_v6 = vadd.f32 %v625_v57, %v325_v0  ;;  %v2521_v7 = vmul.f32 2.5e-10, %v2421_v4  ;;  %v1070_v8 = vsel %vm1068_vm5, %v1069_v38, %v1067_v5  ;;  %v1072_v9 = vmul.f32 %v2752_v3, %v3155_v26  ;;  %v1824_v55 = vld [vmem:[%s5203_s2 + $0x48] sm:$0xff]  ;;  %v430_v3 = vld [vmem:[%s5202_s1 + $0x78] sm:$0xff]  ;;  %v1825_v5 = vld [vmem:[%s5203_s2 + $0x50] sm:$0xff]  ;;  %p2940_p1 = scmp.lt.s32.totalorder %s2722_s17, %s2722_s17 }
  0x3b   :  { %2753 = vrsqrt.f32 %v3187_v43  ;;  %v1722_v12 = vmul.f32 100.0, %v1070_v8  ;;  %v726_v14 = vadd.f32 %v626_v41, %v326_v1  ;;  %v527_v20 = vmul.f32 2e+08, %v427_v11 }
  0x3c   :  { %2622 = vst [vmem:[#allocation2 + $0x30] sm:$0xff] %v2521_v7  ;;  %v1074_v13 = vsel %vm1073_vm7, %v3155_v26, %v1072_v9  ;;  %vm825_vm12 = vcmp.le.f32.partialorder %v725_v6, 0.0  ;;  %v327_v56 = vadd.f32 100000.0, %v227_v2  ;;  %vm1080_vm13 = vcmp.eq.f32.partialorder %v3187_v43, inf }
  0x3d   :  { %v1922_v15 = vmul.f32 %v1822_v48, %v1722_v12  ;;  %v1077_v16 = vsel %vm1075_vm8, %v1076_v54, %v1074_v13  ;;  %v3207_v18 = vsel %vm825_vm12, 0.0, %v725_v6  ;;  %vm826_vm14 = vcmp.le.f32.partialorder %v726_v14, 0.0 }
  0x3e   :  { %v1723_v23 = vmul.f32 100.0, %v1077_v16  ;;  %2755 = vrsqrt.f32 %v3207_v18  ;;  %v627_v25 = vadd.f32 3e+08, %v527_v20  ;;  %v3218_v10 = vsel %vm826_vm14, 0.0, %v726_v14 }
  0x3f   :  { %v2022_v24 = vadd.f32 %v1922_v15, %v3137_v19  ;;  %v128_v28 = vmul.f32 2e-05, %v28_v21  ;;  %v528_v29 = vmul.f32 2e+08, %v428_v22  ;;  %vm1082_vm0 = vcmp.eq.f32.partialorder %v3187_v43, 0.0  ;;  %v29_v19 = vld [vmem:[%s5201_s0 + $0x70] sm:$0xff] }
  0x40   :  { %v1923_v27 = vmul.f32 %v1823_v17, %v1723_v23  ;;  %v1083_v30 = vand.u32 2147483648, %v3187_v43  ;;  %2757 = vrsqrt.f32 %v3218_v10  ;;  %vm1087_vm1 = vcmp.eq.f32.partialorder %v3207_v18, inf }
  0x41   :  { %vm2122_vm15 = vcmp.le.f32.partialorder %v2022_v24, 10.0  ;;  %v727_v33 = vadd.f32 %v627_v25, %v327_v56  ;;  %vm1089_vm4 = vcmp.eq.f32.partialorder %v3207_v18, 0.0  ;;  %v228_v34 = vadd.f32 100.0, %v128_v28 }
  0x42   :  { %v2222_v31 = vsel %vm2122_vm15, 1.0, %v2022_v24  ;;  %v2023_v32 = vadd.f32 %v1923_v27, %v3155_v26  ;;  %v628_v36 = vadd.f32 3e+08, %v528_v29  ;;  %v129_v40 = vmul.f32 2e-05, %v29_v19  ;;  %v429_v26 = vld [vmem:[%s5202_s1 + $0x70] sm:$0xff] }
  0x43   :  { %vm2322_vm2 = vcmp.ge.f32.partialorder %v2222_v31, 4e+09  ;;  %vm827_vm6 = vcmp.le.f32.partialorder %v727_v33, 0.0  ;;  %v1090_v47 = vand.u32 2147483648, %v3207_v18  ;;  %vm1094_vm8 = vcmp.eq.f32.partialorder %v3218_v10, inf  ;;  %v31_v24 = vld [vmem:[%s5201_s0 + $0x80] sm:$0xff] }
  0x44   :  { %v2422_v38 = vsel %vm2322_vm2, 4e+09, %v2222_v31  ;;  %vm2123_vm5 = vcmp.le.f32.partialorder %v2023_v32, 10.0  ;;  %v3230_v46 = vsel %vm827_vm6, 0.0, %v727_v33  ;;  %vm1096_vm9 = vcmp.eq.f32.partialorder %v3218_v10, 0.0  ;;  %v431_v31 = vld [vmem:[%s5202_s1 + $0x80] sm:$0xff] }
  0x45   :  { %v2754_v37 = vpop.eup %2753  ;;  %v2522_v42 = vmul.f32 2.5e-10, %v2422_v38  ;;  %v2223_v44 = vsel %vm2123_vm5, 1.0, %v2023_v32  ;;  %2759 = vrsqrt.f32 %v3230_v46  ;;  %v328_v51 = vadd.f32 100000.0, %v228_v34 }
  0x46   :  { %v1079_v45 = vmul.f32 %v2754_v37, %v3187_v43  ;;  %vm2323_vm7 = vcmp.ge.f32.partialorder %v2223_v44, 4e+09  ;;  %v229_v57 = vadd.f32 100.0, %v129_v40  ;;  %v529_v58 = vmul.f32 2e+08, %v429_v26 }
  0x47   :  { %2623 = vst.msk [vmem:[#allocation2 + $0x38] sm:$0xff] %vm2616_vm3, %v2522_v42  ;;  %v2423_v49 = vsel %vm2323_vm7, 4e+09, %v2223_v44  ;;  %v1097_v61 = vand.u32 2147483648, %v3218_v10  ;;  %v728_v62 = vadd.f32 %v628_v36, %v328_v51  ;;  %vm1101_vm10 = vcmp.eq.f32.partialorder %v3230_v46, inf  ;;  %v1827_v36 = vld [vmem:[%s5203_s2 + $0x60] sm:$0xff] }
  0x48   :  { %v1081_v50 = vsel %vm1080_vm13, %v3187_v43, %v1079_v45  ;;  %v2756_v35 = vpop.eup %2755  ;;  %v2523_v53 = vmul.f32 2.5e-10, %v2423_v49  ;;  %v329_v63 = vadd.f32 100000.0, %v229_v57  ;;  %v629_v39 = vadd.f32 3e+08, %v529_v58  ;;  %v32_v42 = vld [vmem:[%s5201_s0 + $0x88] sm:$0xff] }
  0x49   :  { %v1084_v54 = vsel %vm1082_vm0, %v1083_v30, %v1081_v50  ;;  %v1086_v60 = vmul.f32 %v2756_v35, %v3207_v18  ;;  %v130_v0 = vmul.f32 2e-05, %v30_v52  ;;  %vm1103_vm11 = vcmp.eq.f32.partialorder %v3230_v46, 0.0  ;;  %v432_v57 = vld [vmem:[%s5202_s1 + $0x88] sm:$0xff] }
  0x4a   :  { %v1724_v59 = vmul.f32 100.0, %v1084_v54  ;;  %2624 = vst [vmem:[#allocation2 + $0x40] sm:$0xff] %v2523_v53  ;;  %v2758_v41 = vpop.eup %2757  ;;  %vm828_vm12 = vcmp.le.f32.partialorder %v728_v62, 0.0  ;;  %v729_v8 = vadd.f32 %v629_v39, %v329_v63  ;;  %v1104_v11 = vand.u32 2147483648, %v3230_v46  ;;  %v1828_v63 = vld [vmem:[%s5203_s2 + $0x68] sm:$0xff] }
  0x4b   :  { %v1088_v2 = vsel %vm1087_vm1, %v3207_v18, %v1086_v60  ;;  %v1093_v6 = vmul.f32 %v2758_v41, %v3218_v10  ;;  %v3267_v7 = vsel %vm828_vm12, 0.0, %v728_v62  ;;  %v230_v13 = vadd.f32 100.0, %v130_v0 }
  0x4c   :  { %v1924_v1 = vmul.f32 %v1824_v55, %v1724_v59  ;;  %v1091_v4 = vsel %vm1089_vm4, %v1090_v47, %v1088_v2  ;;  %2761 = vrsqrt.f32 %v3267_v7  ;;  %vm829_vm13 = vcmp.le.f32.partialorder %v729_v8, 0.0 }
  0x4d   :  { %v1725_v9 = vmul.f32 100.0, %v1091_v4  ;;  %v1095_v12 = vsel %vm1094_vm8, %v3218_v10, %v1093_v6  ;;  %v530_v14 = vmul.f32 2e+08, %v430_v3  ;;  %v3280_v17 = vsel %vm829_vm13, 0.0, %v729_v8  ;;  %v433_v8 = vld [vmem:[%s5202_s1 + $0x90] sm:$0xff] }
  0x4e   :  { %v2024_v48 = vadd.f32 %v1924_v1, %v3187_v43  ;;  %v1098_v16 = vsel %vm1096_vm9, %v1097_v61, %v1095_v12  ;;  %v1826_v43 = vld [vmem:[%s5203_s2 + $0x58] sm:$0xff]  ;;  %vm1108_vm15 = vcmp.eq.f32.partialorder %v3267_v7, inf  ;;  %2763 = vrsqrt.f32 %v3280_v17  ;;  %v1829_v12 = vld [vmem:[%s5203_s2 + $0x70] sm:$0xff] }
  0x4f   :  { %v1925_v15 = vmul.f32 %v1825_v5, %v1725_v9  ;;  %v2760_v20 = vpop.eup %2759  ;;  %v1726_v22 = vmul.f32 100.0, %v1098_v16  ;;  %vm1110_vm1 = vcmp.eq.f32.partialorder %v3267_v7, 0.0  ;;  %v1111_v28 = vand.u32 2147483648, %v3267_v7 }
  0x50   :  { %vm2124_vm14 = vcmp.le.f32.partialorder %v2024_v48, 10.0  ;;  %v1100_v56 = vmul.f32 %v2760_v20, %v3230_v46  ;;  %v330_v29 = vadd.f32 100000.0, %v230_v13  ;;  %v131_v37 = vmul.f32 2e-05, %v31_v24 }
  0x51   :  { %v2224_v21 = vsel %vm2124_vm14, 1.0, %v2024_v48  ;;  %v2025_v23 = vadd.f32 %v1925_v15, %v3207_v18  ;;  %v1926_v27 = vmul.f32 %v1826_v43, %v1726_v22  ;;  %v630_v18 = vadd.f32 3e+08, %v530_v14 }
  0x52   :  { %vm2324_vm0 = vcmp.ge.f32.partialorder %v2224_v21, 4e+09  ;;  %v1102_v19 = vsel %vm1101_vm10, %v3230_v46, %v1100_v56  ;;  %vm1115_vm5 = vcmp.eq.f32.partialorder %v3280_v17, inf  ;;  %v231_v44 = vadd.f32 100.0, %v131_v37 }
  0x53   :  { %v2424_v25 = vsel %vm2324_vm0, 4e+09, %v2224_v21  ;;  %vm2125_vm2 = vcmp.le.f32.partialorder %v2025_v23, 10.0  ;;  %v2026_v33 = vadd.f32 %v1926_v27, %v3218_v10  ;;  %v1105_v34 = vsel %vm1103_vm11, %v1104_v11, %v1102_v19 }
  0x54   :  { %v2524_v30 = vmul.f32 2.5e-10, %v2424_v25  ;;  %v2225_v32 = vsel %vm2125_vm2, 1.0, %v2025_v23  ;;  %v1727_v38 = vmul.f32 100.0, %v1105_v34  ;;  %v730_v40 = vadd.f32 %v630_v18, %v330_v29  ;;  %v34_v23 = vld [vmem:[%s5201_s0 + $0x98] sm:$0xff] }
  0x55   :  { %vm2325_vm4 = vcmp.ge.f32.partialorder %v2225_v32, 4e+09  ;;  %vm2126_vm6 = vcmp.le.f32.partialorder %v2026_v33, 10.0  ;;  %v531_v45 = vmul.f32 2e+08, %v431_v31  ;;  %v331_v55 = vadd.f32 100000.0, %v231_v44 }
  0x56   :  { %2625 = vst.msk [vmem:[#allocation2 + $0x48] sm:$0xff] %vm2616_vm3, %v2524_v30  ;;  %v2425_v10 = vsel %vm2325_vm4, 4e+09, %v2225_v32  ;;  %v2762_v26 = vpop.eup %2761  ;;  %v2226_v49 = vsel %vm2126_vm6, 1.0, %v2026_v33  ;;  %v1927_v50 = vmul.f32 %v1827_v36, %v1727_v38  ;;  %vm830_vm7 = vcmp.le.f32.partialorder %v730_v40, 0.0  ;;  %v435_v44 = vld [vmem:[%s5202_s1 + $0xa0] sm:$0xff] }
  0x57   :  { %v2525_v47 = vmul.f32 2.5e-10, %v2425_v10  ;;  %vm2326_vm8 = vcmp.ge.f32.partialorder %v2226_v49, 4e+09  ;;  %v1107_v51 = vmul.f32 %v2762_v26, %v3267_v7  ;;  %v3309_v52 = vsel %vm830_vm7, 0.0, %v730_v40 }
  0x58   :  { %v132_v35 = vmul.f32 2e-05, %v32_v42  ;;  %v2426_v53 = vsel %vm2326_vm8, 4e+09, %v2226_v49  ;;  %v2027_v54 = vadd.f32 %v1927_v50, %v3230_v46  ;;  %2765 = vrsqrt.f32 %v3309_v52  ;;  %v2764_v58 = vpop.eup %2763  ;;  %v33_v46 = vld [vmem:[%s5201_s0 + $0x90] sm:$0xff]  ;;  %v35_v42 = vld [vmem:[%s5201_s0 + $0xa0] sm:$0xff] }
  0x59   :  { %2626 = vst [vmem:[#allocation2 + $0x50] sm:$0xff] %v2525_v47  ;;  %v2526_v59 = vmul.f32 2.5e-10, %v2426_v53  ;;  %v1109_v60 = vsel %vm1108_vm15, %v3267_v7, %v1107_v51  ;;  %vm1117_vm9 = vcmp.eq.f32.partialorder %v3280_v17, 0.0  ;;  %v1118_v61 = vand.u32 2147483648, %v3280_v17  ;;  %v436_v50 = vld [vmem:[%s5202_s1 + $0xa8] sm:$0xff] }
  0x5a   :  { %vm2127_vm10 = vcmp.le.f32.partialorder %v2027_v54, 10.0  ;;  %v1112_v62 = vsel %vm1110_vm1, %v1111_v28, %v1109_v60  ;;  %v1114_v39 = vmul.f32 %v2764_v58, %v3280_v17  ;;  %v631_v0 = vadd.f32 3e+08, %v531_v45  ;;  %v36_v45 = vld [vmem:[%s5201_s0 + $0xa8] sm:$0xff] }
  0x5b   :  { %2627 = vst.msk [vmem:[#allocation2 + $0x58] sm:$0xff] %vm2616_vm3, %v2526_v59  ;;  %v2227_v41 = vsel %vm2127_vm10, 1.0, %v2027_v54  ;;  %v1728_v1 = vmul.f32 100.0, %v1112_v62  ;;  %v232_v2 = vadd.f32 100.0, %v132_v35  ;;  %v532_v3 = vmul.f32 2e+08, %v432_v57 }
  0x5c   :  { %vm2327_vm11 = vcmp.ge.f32.partialorder %v2227_v41, 4e+09  ;;  %v1116_v4 = vsel %vm1115_vm5, %v3280_v17, %v1114_v39  ;;  %v731_v5 = vadd.f32 %v631_v0, %v331_v55  ;;  %v133_v6 = vmul.f32 2e-05, %v33_v46  ;;  %v37_v57 = vld [vmem:[%s5201_s0 + $0xb0] sm:$0xff] }
  0x5d   :  { %v2427_v48 = vsel %vm2327_vm11, 4e+09, %v2227_v41  ;;  %v1928_v9 = vmul.f32 %v1828_v63, %v1728_v1  ;;  %v1119_v11 = vsel %vm1117_vm9, %v1118_v61, %v1116_v4  ;;  %v332_v13 = vadd.f32 100000.0, %v232_v2 }
  0x5e   :  { %v2527_v14 = vmul.f32 2.5e-10, %v2427_v48  ;;  %v1729_v15 = vmul.f32 100.0, %v1119_v11  ;;  %vm831_vm12 = vcmp.le.f32.partialorder %v731_v5, 0.0  ;;  %v632_v16 = vadd.f32 3e+08, %v532_v3 }
  0x5f   :  { %v2028_v43 = vadd.f32 %v1928_v9, %v3267_v7  ;;  %v3343_v20 = vsel %vm831_vm12, 0.0, %v731_v5  ;;  %v233_v21 = vadd.f32 100.0, %v133_v6  ;;  %v533_v22 = vmul.f32 2e+08, %v433_v8  ;;  %v434_v7 = vld [vmem:[%s5202_s1 + $0x98] sm:$0xff] }
  0x60   :  { %2628 = vst [vmem:[#allocation2 + $0x60] sm:$0xff] %v2527_v14  ;;  %v1929_v56 = vmul.f32 %v1829_v12, %v1729_v15  ;;  %vm1122_vm13 = vcmp.eq.f32.partialorder %v3309_v52, inf  ;;  %vm1124_vm14 = vcmp.eq.f32.partialorder %v3309_v52, 0.0  ;;  %2767 = vrsqrt.f32 %v3343_v20 }
  0x61   :  { %vm2128_vm15 = vcmp.le.f32.partialorder %v2028_v43, 10.0  ;;  %v1125_v24 = vand.u32 2147483648, %v3309_v52  ;;  %v732_v25 = vadd.f32 %v632_v16, %v332_v13  ;;  %v333_v27 = vadd.f32 100000.0, %v233_v21 }
  0x62   :  { %v2766_v28 = vpop.eup %2765  ;;  %v2228_v29 = vsel %vm2128_vm15, 1.0, %v2028_v43  ;;  %v2029_v30 = vadd.f32 %v1929_v56, %v3280_v17  ;;  %v633_v19 = vadd.f32 3e+08, %v533_v22  ;;  %v134_v18 = vmul.f32 2e-05, %v34_v23  ;;  %v1830_v17 = vld [vmem:[%s5203_s2 + $0x78] sm:$0xff] }
  0x63   :  { %vm2328_vm0 = vcmp.ge.f32.partialorder %v2228_v29, 4e+09  ;;  %v1121_v31 = vmul.f32 %v2766_v28, %v3309_v52  ;;  %vm832_vm1 = vcmp.le.f32.partialorder %v732_v25, 0.0  ;;  %v534_v32 = vmul.f32 2e+08, %v434_v7 }
  0x64   :  { %v2428_v33 = vsel %vm2328_vm0, 4e+09, %v2228_v29  ;;  %vm2129_vm2 = vcmp.le.f32.partialorder %v2029_v30, 10.0  ;;  %v3357_v34 = vsel %vm832_vm1, 0.0, %v732_v25  ;;  %v733_v36 = vadd.f32 %v633_v19, %v333_v27  ;;  %v1832_v29 = vld [vmem:[%s5203_s2 + $0x88] sm:$0xff] }
  0x65   :  { %v2528_v37 = vmul.f32 2.5e-10, %v2428_v33  ;;  %v2229_v38 = vsel %vm2129_vm2, 1.0, %v2029_v30  ;;  %v1123_v40 = vsel %vm1122_vm13, %v3309_v52, %v1121_v31  ;;  %2769 = vrsqrt.f32 %v3357_v34  ;;  %v38_v31 = vld [vmem:[%s5201_s0 + $0xb8] sm:$0xff] }
  0x66   :  { %vm2329_vm4 = vcmp.ge.f32.partialorder %v2229_v38, 4e+09  ;;  %v1126_v10 = vsel %vm1124_vm14, %v1125_v24, %v1123_v40  ;;  %vm1129_vm5 = vcmp.eq.f32.partialorder %v3343_v20, inf  ;;  %vm1131_vm6 = vcmp.eq.f32.partialorder %v3343_v20, 0.0  ;;  %v437_v24 = vld [vmem:[%s5202_s1 + $0xb0] sm:$0xff] }
  0x67   :  { %2629 = vst.msk [vmem:[#allocation2 + $0x68] sm:$0xff] %vm2616_vm3, %v2528_v37  ;;  %v2429_v26 = vsel %vm2329_vm4, 4e+09, %v2229_v38  ;;  %v1730_v47 = vmul.f32 100.0, %v1126_v10  ;;  %v1132_v49 = vand.u32 2147483648, %v3343_v20  ;;  %vm833_vm7 = vcmp.le.f32.partialorder %v733_v36, 0.0 }
  0x68   :  { %v2529_v51 = vmul.f32 2.5e-10, %v2429_v26  ;;  %v3384_v35 = vsel %vm833_vm7, 0.0, %v733_v36  ;;  %v234_v53 = vadd.f32 100.0, %v134_v18  ;;  %v634_v54 = vadd.f32 3e+08, %v534_v32 }
  0x69   :  { %v1930_v55 = vmul.f32 %v1830_v17, %v1730_v47  ;;  %vm1136_vm8 = vcmp.eq.f32.partialorder %v3357_v34, inf  ;;  %vm1138_vm9 = vcmp.eq.f32.partialorder %v3357_v34, 0.0  ;;  %2771 = vrsqrt.f32 %v3384_v35  ;;  %v1833_v17 = vld [vmem:[%s5203_s2 + $0x90] sm:$0xff] }
  0x6a   :  { %v2768_v58 = vpop.eup %2767  ;;  %2630 = vst [vmem:[#allocation2 + $0x70] sm:$0xff] %v2529_v51  ;;  %v1139_v59 = vand.u32 2147483648, %v3357_v34  ;;  %v334_v60 = vadd.f32 100000.0, %v234_v53  ;;  %v135_v61 = vmul.f32 2e-05, %v35_v42  ;;  %vm1143_vm13 = vcmp.eq.f32.partialorder %v3384_v35, inf }
  0x6b   :  { %v535_v46 = vmul.f32 2e+08, %v435_v44  ;;  %v2030_v62 = vadd.f32 %v1930_v55, %v3309_v52  ;;  %v1128_v63 = vmul.f32 %v2768_v58, %v3343_v20  ;;  %v136_v39 = vmul.f32 2e-05, %v36_v45  ;;  %v1831_v52 = vld [vmem:[%s5203_s2 + $0x80] sm:$0xff] }
  0x6c   :  { %v536_v0 = vmul.f32 2e+08, %v436_v50  ;;  %v734_v41 = vadd.f32 %v634_v54, %v334_v60  ;;  %v235_v1 = vadd.f32 100.0, %v135_v61  ;;  %v137_v3 = vmul.f32 2e-05, %v37_v57  ;;  %v39_v51 = vld [vmem:[%s5201_s0 + $0xc0] sm:$0xff] }
  0x6d   :  { %v635_v2 = vadd.f32 3e+08, %v535_v46  ;;  %vm2130_vm10 = vcmp.le.f32.partialorder %v2030_v62, 10.0  ;;  %v1130_v4 = vsel %vm1129_vm5, %v3343_v20, %v1128_v63  ;;  %v236_v5 = vadd.f32 100.0, %v136_v39 }
  0x6e   :  { %v636_v6 = vadd.f32 3e+08, %v536_v0  ;;  %v2230_v8 = vsel %vm2130_vm10, 1.0, %v2030_v62  ;;  %v1133_v48 = vsel %vm1131_vm6, %v1132_v49, %v1130_v4  ;;  %vm834_vm11 = vcmp.le.f32.partialorder %v734_v41, 0.0  ;;  %v438_v49 = vld [vmem:[%s5202_s1 + $0xb8] sm:$0xff] }
  0x6f   :  { %v335_v9 = vadd.f32 100000.0, %v235_v1  ;;  %v2770_v11 = vpop.eup %2769  ;;  %vm2330_vm12 = vcmp.ge.f32.partialorder %v2230_v8, 4e+09  ;;  %v1731_v12 = vmul.f32 100.0, %v1133_v48  ;;  %v3403_v13 = vsel %vm834_vm11, 0.0, %v734_v41 }
  0x70   :  { %v336_v14 = vadd.f32 100000.0, %v236_v5  ;;  %v2430_v15 = vsel %vm2330_vm12, 4e+09, %v2230_v8  ;;  %v1135_v16 = vmul.f32 %v2770_v11, %v3357_v34  ;;  %2773 = vrsqrt.f32 %v3403_v13  ;;  %v439_v8 = vld [vmem:[%s5202_s1 + $0xc0] sm:$0xff] }
  0x71   :  { %v2530_v43 = vmul.f32 2.5e-10, %v2430_v15  ;;  %v1931_v21 = vmul.f32 %v1831_v52, %v1731_v12  ;;  %vm1145_vm14 = vcmp.eq.f32.partialorder %v3384_v35, 0.0  ;;  %v1146_v22 = vand.u32 2147483648, %v3384_v35  ;;  %v40_v52 = vld [vmem:[%s5201_s0 + $0xc8] sm:$0xff] }
  0x72   :  { %v1137_v23 = vsel %vm1136_vm8, %v3357_v34, %v1135_v16  ;;  %vm1150_vm15 = vcmp.eq.f32.partialorder %v3403_v13, inf  ;;  %v735_v56 = vadd.f32 %v635_v2, %v335_v9  ;;  %v736_v7 = vadd.f32 %v636_v6, %v336_v14 }
  0x73   :  { %v2772_v25 = vpop.eup %2771  ;;  %2631 = vst.msk [vmem:[#allocation2 + $0x78] sm:$0xff] %vm2616_vm3, %v2530_v43  ;;  %v2031_v27 = vadd.f32 %v1931_v21, %v3343_v20  ;;  %v1140_v28 = vsel %vm1138_vm9, %v1139_v59, %v1137_v23  ;;  %vm1152_vm0 = vcmp.eq.f32.partialorder %v3403_v13, 0.0  ;;  %v237_v30 = vadd.f32 100.0, %v137_v3  ;;  %v1834_v3 = vld [vmem:[%s5203_s2 + $0x98] sm:$0xff] }
  0x74   :  { %v1732_v19 = vmul.f32 100.0, %v1140_v28  ;;  %v1142_v18 = vmul.f32 %v2772_v25, %v3384_v35  ;;  %vm835_vm1 = vcmp.le.f32.partialorder %v735_v56, 0.0  ;;  %vm836_vm2 = vcmp.le.f32.partialorder %v736_v7, 0.0  ;;  %v1835_v25 = vld [vmem:[%s5203_s2 + $0xa0] sm:$0xff] }
  0x75   :  { %vm2131_vm4 = vcmp.le.f32.partialorder %v2031_v27, 10.0  ;;  %v3429_v20 = vsel %vm835_vm1, 0.0, %v735_v56  ;;  %v3431_v32 = vsel %vm836_vm2, 0.0, %v736_v7  ;;  %v537_v33 = vmul.f32 2e+08, %v437_v24 }
  0x76   :  { %v2231_v36 = vsel %vm2131_vm4, 1.0, %v2031_v27  ;;  %v1932_v37 = vmul.f32 %v1832_v29, %v1732_v19  ;;  %v1144_v38 = vsel %vm1143_vm13, %v3384_v35, %v1142_v18  ;;  %2775 = vrsqrt.f32 %v3429_v20  ;;  %v440_v29 = vld [vmem:[%s5202_s1 + $0xc8] sm:$0xff] }
  0x77   :  { %vm2331_vm5 = vcmp.ge.f32.partialorder %v2231_v36, 4e+09  ;;  %v1147_v40 = vsel %vm1145_vm14, %v1146_v22, %v1144_v38  ;;  %v1153_v42 = vand.u32 2147483648, %v3403_v13  ;;  %v138_v10 = vmul.f32 2e-05, %v38_v31  ;;  %v1836_v38 = vld [vmem:[%s5203_s2 + $0xa8] sm:$0xff] }
  0x78   :  { %v2431_v44 = vsel %vm2331_vm5, 4e+09, %v2231_v36  ;;  %v2032_v45 = vadd.f32 %v1932_v37, %v3357_v34  ;;  %v1733_v26 = vmul.f32 100.0, %v1147_v40  ;;  %v337_v47 = vadd.f32 100000.0, %v237_v30 }
  0x79   :  { %v2531_v50 = vmul.f32 2.5e-10, %v2431_v44  ;;  %vm1157_vm6 = vcmp.eq.f32.partialorder %v3429_v20, inf  ;;  %vm1159_vm7 = vcmp.eq.f32.partialorder %v3429_v20, 0.0  ;;  %2777 = vrsqrt.f32 %v3431_v32 }
  0x7a   :  { %v2774_v53 = vpop.eup %2773  ;;  %vm2132_vm8 = vcmp.le.f32.partialorder %v2032_v45, 10.0  ;;  %v1933_v34 = vmul.f32 %v1833_v17, %v1733_v26  ;;  %v1160_v54 = vand.u32 2147483648, %v3429_v20  ;;  %v637_v55 = vadd.f32 3e+08, %v537_v33  ;;  %v41_v33 = vld [vmem:[%s5201_s0 + $0xd0] sm:$0xff] }
  0x7b   :  { %2632 = vst [vmem:[#allocation2 + $0x80] sm:$0xff] %v2531_v50  ;;  %v2232_v57 = vsel %vm2132_vm8, 1.0, %v2032_v45  ;;  %v1149_v58 = vmul.f32 %v2774_v53, %v3403_v13  ;;  %v238_v59 = vadd.f32 100.0, %v138_v10  ;;  %v538_v60 = vmul.f32 2e+08, %v438_v49  ;;  %v441_v45 = vld [vmem:[%s5202_s1 + $0xd0] sm:$0xff] }
  0x7c   :  { %vm2332_vm9 = vcmp.ge.f32.partialorder %v2232_v57, 4e+09  ;;  %v2033_v61 = vadd.f32 %v1933_v34, %v3384_v35  ;;  %v737_v46 = vadd.f32 %v637_v55, %v337_v47  ;;  %v139_v62 = vmul.f32 2e-05, %v39_v51 }
  0x7d   :  { %v2432_v63 = vsel %vm2332_vm9, 4e+09, %v2232_v57  ;;  %v1151_v39 = vsel %vm1150_vm15, %v3403_v13, %v1149_v58  ;;  %v338_v0 = vadd.f32 100000.0, %v238_v59  ;;  %v638_v41 = vadd.f32 3e+08, %v538_v60 }
  0x7e   :  { %v2532_v1 = vmul.f32 2.5e-10, %v2432_v63  ;;  %vm2133_vm10 = vcmp.le.f32.partialorder %v2033_v61, 10.0  ;;  %v1154_v2 = vsel %vm1152_vm0, %v1153_v42, %v1151_v39  ;;  %vm837_vm11 = vcmp.le.f32.partialorder %v737_v46, 0.0 }
  0x7f   :  { %v2233_v35 = vsel %vm2133_vm10, 1.0, %v2033_v61  ;;  %v1734_v4 = vmul.f32 100.0, %v1154_v2  ;;  %v3464_v5 = vsel %vm837_vm11, 0.0, %v737_v46  ;;  %v738_v6 = vadd.f32 %v638_v41, %v338_v0 }
  0x80   :  { %v2776_v48 = vpop.eup %2775  ;;  %2633 = vst.msk [vmem:[#allocation2 + $0x88] sm:$0xff] %vm2616_vm3, %v2532_v1  ;;  %vm2333_vm12 = vcmp.ge.f32.partialorder %v2233_v35, 4e+09  ;;  %vm1164_vm13 = vcmp.eq.f32.partialorder %v3431_v32, inf  ;;  %vm1166_vm14 = vcmp.eq.f32.partialorder %v3431_v32, 0.0  ;;  %2779 = vrsqrt.f32 %v3464_v5 }
  0x81   :  { %v2433_v9 = vsel %vm2333_vm12, 4e+09, %v2233_v35  ;;  %v1934_v11 = vmul.f32 %v1834_v3, %v1734_v4  ;;  %v1156_v12 = vmul.f32 %v2776_v48, %v3429_v20  ;;  %v1167_v14 = vand.u32 2147483648, %v3431_v32 }
  0x82   :  { %v2533_v15 = vmul.f32 2.5e-10, %v2433_v9  ;;  %vm838_vm15 = vcmp.le.f32.partialorder %v738_v6, 0.0  ;;  %v239_v16 = vadd.f32 100.0, %v139_v62  ;;  %v539_v43 = vmul.f32 2e+08, %v439_v8 }
  0x83   :  { %v2778_v21 = vpop.eup %2777  ;;  %v2034_v22 = vadd.f32 %v1934_v11, %v3403_v13  ;;  %v1158_v23 = vsel %vm1157_vm6, %v3429_v20, %v1156_v12  ;;  %v3482_v56 = vsel %vm838_vm15, 0.0, %v738_v6  ;;  %v140_v7 = vmul.f32 2e-05, %v40_v52  ;;  %v42_v52 = vld [vmem:[%s5201_s0 + $0xd8] sm:$0xff] }
  0x84   :  { %2634 = vst [vmem:[#allocation2 + $0x90] sm:$0xff] %v2533_v15  ;;  %v1161_v24 = vsel %vm1159_vm7, %v1160_v54, %v1158_v23  ;;  %v1163_v27 = vmul.f32 %v2778_v21, %v3431_v32  ;;  %vm1171_vm0 = vcmp.eq.f32.partialorder %v3464_v5, inf  ;;  %2781 = vrsqrt.f32 %v3482_v56  ;;  %v442_v9 = vld [vmem:[%s5202_s1 + $0xd8] sm:$0xff]  ;;  %v43_v15 = vld [vmem:[%s5201_s0 + $0xe0] sm:$0xff]  ;;  %v44_v23 = vld [vmem:[%s5201_s0 + $0xe8] sm:$0xff] }
  0x85   :  { %vm2134_vm1 = vcmp.le.f32.partialorder %v2034_v22, 10.0  ;;  %v1735_v13 = vmul.f32 100.0, %v1161_v24  ;;  %vm1173_vm2 = vcmp.eq.f32.partialorder %v3464_v5, 0.0  ;;  %v1174_v28 = vand.u32 2147483648, %v3464_v5 }
  0x86   :  { %v2234_v30 = vsel %vm2134_vm1, 1.0, %v2034_v22  ;;  %v1165_v19 = vsel %vm1164_vm13, %v3431_v32, %v1163_v27  ;;  %v339_v18 = vadd.f32 100000.0, %v239_v16  ;;  %v639_v31 = vadd.f32 3e+08, %v539_v43  ;;  %v443_v16 = vld [vmem:[%s5202_s1 + $0xe0] sm:$0xff] }
  0x87   :  { %vm2334_vm4 = vcmp.ge.f32.partialorder %v2234_v30, 4e+09  ;;  %v1935_v36 = vmul.f32 %v1835_v25, %v1735_v13  ;;  %v1168_v37 = vsel %vm1166_vm14, %v1167_v14, %v1165_v19  ;;  %v240_v40 = vadd.f32 100.0, %v140_v7  ;;  %v1838_v14 = vld [vmem:[%s5203_s2 + $0xb8] sm:$0xff] }
  0x88   :  { %v2434_v17 = vsel %vm2334_vm4, 4e+09, %v2234_v30  ;;  %v1736_v42 = vmul.f32 100.0, %v1168_v37  ;;  %v739_v10 = vadd.f32 %v639_v31, %v339_v18  ;;  %v540_v44 = vmul.f32 2e+08, %v440_v29 }
  0x89   :  { %v2534_v26 = vmul.f32 2.5e-10, %v2434_v17  ;;  %v2035_v47 = vadd.f32 %v1935_v36, %v3429_v20  ;;  %vm1178_vm5 = vcmp.eq.f32.partialorder %v3482_v56, inf  ;;  %v141_v49 = vmul.f32 2e-05, %v41_v33 }
  0x8a   :  { %v2780_v50 = vpop.eup %2779  ;;  %v1936_v51 = vmul.f32 %v1836_v38, %v1736_v42  ;;  %vm839_vm6 = vcmp.le.f32.partialorder %v739_v10, 0.0  ;;  %v340_v53 = vadd.f32 100000.0, %v240_v40  ;;  %v640_v34 = vadd.f32 3e+08, %v540_v44  ;;  %v1839_v44 = vld [vmem:[%s5203_s2 + $0xc0] sm:$0xff] }
  0x8b   :  { %2635 = vst.msk [vmem:[#allocation2 + $0x98] sm:$0xff] %vm2616_vm3, %v2534_v26  ;;  %vm2135_vm7 = vcmp.le.f32.partialorder %v2035_v47, 10.0  ;;  %v1170_v54 = vmul.f32 %v2780_v50, %v3464_v5  ;;  %v3515_v55 = vsel %vm839_vm6, 0.0, %v739_v10  ;;  %v541_v57 = vmul.f32 2e+08, %v441_v45 }
  0x8c   :  { %v2235_v58 = vsel %vm2135_vm7, 1.0, %v2035_v47  ;;  %v2036_v59 = vadd.f32 %v1936_v51, %v3431_v32  ;;  %2783 = vrsqrt.f32 %v3515_v55  ;;  %v241_v20 = vadd.f32 100.0, %v141_v49  ;;  %v1837_v32 = vld [vmem:[%s5203_s2 + $0xb0] sm:$0xff] }
  0x8d   :  { %vm2335_vm8 = vcmp.ge.f32.partialorder %v2235_v58, 4e+09  ;;  %v1172_v60 = vsel %vm1171_vm0, %v3464_v5, %v1170_v54  ;;  %vm1180_vm9 = vcmp.eq.f32.partialorder %v3482_v56, 0.0  ;;  %v1181_v61 = vand.u32 2147483648, %v3482_v56  ;;  %v45_v47 = vld [vmem:[%s5201_s0 + $0xf0] sm:$0xff] }
  0x8e   :  { %v2782_v46 = vpop.eup %2781  ;;  %v2435_v62 = vsel %vm2335_vm8, 4e+09, %v2235_v58  ;;  %vm2136_vm10 = vcmp.le.f32.partialorder %v2036_v59, 10.0  ;;  %v1175_v63 = vsel %vm1173_vm2, %v1174_v28, %v1172_v60  ;;  %v740_v39 = vadd.f32 %v640_v34, %v340_v53 }
  0x8f   :  { %v2535_v0 = vmul.f32 2.5e-10, %v2435_v62  ;;  %v2236_v41 = vsel %vm2136_vm10, 1.0, %v2036_v59  ;;  %v1737_v1 = vmul.f32 100.0, %v1175_v63  ;;  %v1177_v2 = vmul.f32 %v2782_v46, %v3482_v56 }
  0x90   :  { %vm2336_vm11 = vcmp.ge.f32.partialorder %v2236_v41, 4e+09  ;;  %vm840_vm12 = vcmp.le.f32.partialorder %v740_v39, 0.0  ;;  %v341_v3 = vadd.f32 100000.0, %v241_v20  ;;  %v641_v35 = vadd.f32 3e+08, %v541_v57 }
  0x91   :  { %2636 = vst [vmem:[#allocation2 + $0xa0] sm:$0xff] %v2535_v0  ;;  %v2436_v4 = vsel %vm2336_vm11, 4e+09, %v2236_v41  ;;  %v1937_v6 = vmul.f32 %v1837_v32, %v1737_v1  ;;  %v1179_v8 = vsel %vm1178_vm5, %v3482_v56, %v1177_v2  ;;  %v3533_v48 = vsel %vm840_vm12, 0.0, %v740_v39  ;;  %v445_v32 = vld [vmem:[%s5202_s1 + $0xf0] sm:$0xff]  ;;  %v1840_v2 = vld [vmem:[%s5203_s2 + $0xc8] sm:$0xff] }
  0x92   :  { %v2536_v11 = vmul.f32 2.5e-10, %v2436_v4  ;;  %v1182_v12 = vsel %vm1180_vm9, %v1181_v61, %v1179_v8  ;;  %vm1185_vm13 = vcmp.eq.f32.partialorder %v3515_v55, inf  ;;  %2785 = vrsqrt.f32 %v3533_v48 }
  0x93   :  { %v2037_v43 = vadd.f32 %v1937_v6, %v3464_v5  ;;  %v1738_v21 = vmul.f32 100.0, %v1182_v12  ;;  %vm1187_vm14 = vcmp.eq.f32.partialorder %v3515_v55, 0.0  ;;  %v1188_v22 = vand.u32 2147483648, %v3515_v55 }
  0x94   :  { %2637 = vst.msk [vmem:[#allocation2 + $0xa8] sm:$0xff] %vm2616_vm3, %v2536_v11  ;;  %vm1192_vm15 = vcmp.eq.f32.partialorder %v3533_v48, inf  ;;  %v741_v7 = vadd.f32 %v641_v35, %v341_v3  ;;  %v142_v24 = vmul.f32 2e-05, %v42_v52  ;;  %v542_v25 = vmul.f32 2e+08, %v442_v9 }
  0x95   :  { %vm2137_vm0 = vcmp.le.f32.partialorder %v2037_v43, 10.0  ;;  %v1938_v27 = vmul.f32 %v1838_v14, %v1738_v21  ;;  %v143_v13 = vmul.f32 2e-05, %v43_v15  ;;  %v543_v5 = vmul.f32 2e+08, %v443_v16  ;;  %v1841_v21 = vld [vmem:[%s5203_s2 + $0xd0] sm:$0xff] }
  0x96   :  { %v2784_v28 = vpop.eup %2783  ;;  %v2237_v29 = vsel %vm2137_vm0, 1.0, %v2037_v43  ;;  %vm841_vm1 = vcmp.le.f32.partialorder %v741_v7, 0.0  ;;  %v242_v30 = vadd.f32 100.0, %v142_v24  ;;  %v144_v19 = vmul.f32 2e-05, %v44_v23 }
  0x97   :  { %vm2337_vm2 = vcmp.ge.f32.partialorder %v2237_v29, 4e+09  ;;  %v2038_v18 = vadd.f32 %v1938_v27, %v3482_v56  ;;  %v1184_v31 = vmul.f32 %v2784_v28, %v3515_v55  ;;  %v3564_v33 = vsel %vm841_vm1, 0.0, %v741_v7  ;;  %v444_v56 = vld [vmem:[%s5202_s1 + $0xe8] sm:$0xff] }
  0x98   :  { %v2437_v36 = vsel %vm2337_vm2, 4e+09, %v2237_v29  ;;  %vm1194_vm4 = vcmp.eq.f32.partialorder %v3533_v48, 0.0  ;;  %2787 = vrsqrt.f32 %v3564_v33  ;;  %v642_v37 = vadd.f32 3e+08, %v542_v25  ;;  %v446_v25 = vld [vmem:[%s5202_s1 + $0xf8] sm:$0xff] }
  0x99   :  { %v2537_v38 = vmul.f32 2.5e-10, %v2437_v36  ;;  %vm2138_vm5 = vcmp.le.f32.partialorder %v2038_v18, 10.0  ;;  %v1186_v40 = vsel %vm1185_vm13, %v3515_v55, %v1184_v31  ;;  %v1195_v17 = vand.u32 2147483648, %v3533_v48 }
  0x9a   :  { %v2238_v42 = vsel %vm2138_vm5, 1.0, %v2038_v18  ;;  %v1189_v10 = vsel %vm1187_vm14, %v1188_v22, %v1186_v40  ;;  %v342_v45 = vadd.f32 100000.0, %v242_v30  ;;  %v243_v26 = vadd.f32 100.0, %v143_v13 }
  0x9b   :  { %2638 = vst [vmem:[#allocation2 + $0xb0] sm:$0xff] %v2537_v38  ;;  %vm2338_vm6 = vcmp.ge.f32.partialorder %v2238_v42, 4e+09  ;;  %v1739_v49 = vmul.f32 100.0, %v1189_v10  ;;  %v643_v50 = vadd.f32 3e+08, %v543_v5 }
  0x9c   :  { %v244_v51 = vadd.f32 100.0, %v144_v19  ;;  %v2786_v53 = vpop.eup %2785  ;;  %v2438_v34 = vsel %vm2338_vm6, 4e+09, %v2238_v42  ;;  %v742_v54 = vadd.f32 %v642_v37, %v342_v45  ;;  %v343_v57 = vadd.f32 100000.0, %v243_v26  ;;  %v47_v5 = vld [vmem:[%s5201_s0 + $0x100] sm:$0xff] }
  0x9d   :  { %v544_v58 = vmul.f32 2e+08, %v444_v56  ;;  %v2538_v59 = vmul.f32 2.5e-10, %v2438_v34  ;;  %v1939_v20 = vmul.f32 %v1839_v44, %v1739_v49  ;;  %v1191_v60 = vmul.f32 %v2786_v53, %v3533_v48  ;;  %v447_v44 = vld [vmem:[%s5202_s1 + $0x100] sm:$0xff]  ;;  %v48_v49 = vld [vmem:[%s5201_s0 + $0x108] sm:$0xff] }
  0x9e   :  { %v344_v61 = vadd.f32 100000.0, %v244_v51  ;;  %vm842_vm7 = vcmp.le.f32.partialorder %v742_v54, 0.0  ;;  %v743_v46 = vadd.f32 %v643_v50, %v343_v57  ;;  %v145_v63 = vmul.f32 2e-05, %v45_v47  ;;  %v1842_v53 = vld [vmem:[%s5203_s2 + $0xd8] sm:$0xff] }
  0x9f   :  { %v644_v62 = vadd.f32 3e+08, %v544_v58  ;;  %2639 = vst.msk [vmem:[#allocation2 + $0xb8] sm:$0xff] %vm2616_vm3, %v2538_v59  ;;  %v2039_v39 = vadd.f32 %v1939_v20, %v3515_v55  ;;  %v1193_v0 = vsel %vm1192_vm15, %v3533_v48, %v1191_v60  ;;  %vm1199_vm8 = vcmp.eq.f32.partialorder %v3564_v33, inf }
  0xa0   :  { %v3593_v41 = vsel %vm842_vm7, 0.0, %v742_v54  ;;  %v1196_v1 = vsel %vm1194_vm4, %v1195_v17, %v1193_v0  ;;  %vm1201_vm9 = vcmp.eq.f32.partialorder %v3564_v33, 0.0  ;;  %v1202_v3 = vand.u32 2147483648, %v3564_v33  ;;  %v1843_v0 = vld [vmem:[%s5203_s2 + $0xe0] sm:$0xff] }
  0xa1   :  { %2789 = vrsqrt.f32 %v3593_v41  ;;  %vm2139_vm10 = vcmp.le.f32.partialorder %v2039_v39, 10.0  ;;  %v1740_v55 = vmul.f32 100.0, %v1196_v1  ;;  %vm843_vm11 = vcmp.le.f32.partialorder %v743_v46, 0.0 }
  0xa2   :  { %v545_v35 = vmul.f32 2e+08, %v445_v32  ;;  %v2788_v4 = vpop.eup %2787  ;;  %v2239_v6 = vsel %vm2139_vm10, 1.0, %v2039_v39  ;;  %v3603_v8 = vsel %vm843_vm11, 0.0, %v743_v46  ;;  %v744_v52 = vadd.f32 %v644_v62, %v344_v61 }
  0xa3   :  { %v245_v9 = vadd.f32 100.0, %v145_v63  ;;  %vm2339_vm12 = vcmp.ge.f32.partialorder %v2239_v6, 4e+09  ;;  %v1940_v11 = vmul.f32 %v1840_v2, %v1740_v55  ;;  %v1198_v12 = vmul.f32 %v2788_v4, %v3564_v33 }
  0xa4   :  { %2791 = vrsqrt.f32 %v3603_v8  ;;  %v2439_v14 = vsel %vm2339_vm12, 4e+09, %v2239_v6  ;;  %vm1206_vm13 = vcmp.eq.f32.partialorder %v3593_v41, inf  ;;  %vm1208_vm14 = vcmp.eq.f32.partialorder %v3593_v41, 0.0  ;;  %v448_v6 = vld [vmem:[%s5202_s1 + $0x108] sm:$0xff] }
  0xa5   :  { %v2539_v15 = vmul.f32 2.5e-10, %v2439_v14  ;;  %v2040_v16 = vadd.f32 %v1940_v11, %v3533_v48  ;;  %v1200_v43 = vsel %vm1199_vm8, %v3564_v33, %v1198_v12  ;;  %vm844_vm15 = vcmp.le.f32.partialorder %v744_v52, 0.0  ;;  %v46_v48 = vld [vmem:[%s5201_s0 + $0xf8] sm:$0xff] }
  0xa6   :  { %v1203_v22 = vsel %vm1201_vm9, %v1202_v3, %v1200_v43  ;;  %v3618_v23 = vsel %vm844_vm15, 0.0, %v744_v52  ;;  %v345_v7 = vadd.f32 100000.0, %v245_v9  ;;  %v645_v24 = vadd.f32 3e+08, %v545_v35 }
  0xa7   :  { %2640 = vst [vmem:[#allocation2 + $0xc0] sm:$0xff] %v2539_v15  ;;  %vm2140_vm0 = vcmp.le.f32.partialorder %v2040_v16, 10.0  ;;  %v1741_v27 = vmul.f32 100.0, %v1203_v22  ;;  %v1209_v13 = vand.u32 2147483648, %v3593_v41  ;;  %2793 = vrsqrt.f32 %v3618_v23  ;;  %v1844_v15 = vld [vmem:[%s5203_s2 + $0xe8] sm:$0xff] }
  0xa8   :  { %v2240_v28 = vsel %vm2140_vm0, 1.0, %v2040_v16  ;;  %vm1213_vm1 = vcmp.eq.f32.partialorder %v3603_v8, inf  ;;  %vm1215_vm2 = vcmp.eq.f32.partialorder %v3603_v8, 0.0  ;;  %v745_v29 = vadd.f32 %v645_v24, %v345_v7 }
  0xa9   :  { %vm2340_vm4 = vcmp.ge.f32.partialorder %v2240_v28, 4e+09  ;;  %v1941_v30 = vmul.f32 %v1841_v21, %v1741_v27  ;;  %v146_v19 = vmul.f32 2e-05, %v46_v48  ;;  %v546_v18 = vmul.f32 2e+08, %v446_v25 }
  0xaa   :  { %v2440_v36 = vsel %vm2340_vm4, 4e+09, %v2240_v28  ;;  %v1216_v37 = vand.u32 2147483648, %v3603_v8  ;;  %vm845_vm5 = vcmp.le.f32.partialorder %v745_v29, 0.0  ;;  %v147_v38 = vmul.f32 2e-05, %v47_v5 }
  0xab   :  { %v2790_v31 = vpop.eup %2789  ;;  %v2540_v40 = vmul.f32 2.5e-10, %v2440_v36  ;;  %v2041_v17 = vadd.f32 %v1941_v30, %v3564_v33  ;;  %v3636_v42 = vsel %vm845_vm5, 0.0, %v745_v29  ;;  %vm1220_vm6 = vcmp.eq.f32.partialorder %v3618_v23, inf  ;;  %v50_v36 = vld [vmem:[%s5201_s0 + $0x118] sm:$0xff] }
  0xac   :  { %v1205_v56 = vmul.f32 %v2790_v31, %v3593_v41  ;;  %vm1222_vm7 = vcmp.eq.f32.partialorder %v3618_v23, 0.0  ;;  %v1223_v10 = vand.u32 2147483648, %v3618_v23  ;;  %2795 = vrsqrt.f32 %v3636_v42  ;;  %v449_v31 = vld [vmem:[%s5202_s1 + $0x110] sm:$0xff] }
  0xad   :  { %2641 = vst.msk [vmem:[#allocation2 + $0xc8] sm:$0xff] %vm2616_vm3, %v2540_v40  ;;  %vm2141_vm8 = vcmp.le.f32.partialorder %v2041_v17, 10.0  ;;  %v246_v26 = vadd.f32 100.0, %v146_v19  ;;  %v646_v47 = vadd.f32 3e+08, %v546_v18  ;;  %v247_v54 = vadd.f32 100.0, %v147_v38 }
  0xae   :  { %v2792_v45 = vpop.eup %2791  ;;  %v1207_v33 = vsel %vm1206_vm13, %v3593_v41, %v1205_v56  ;;  %v2241_v50 = vsel %vm2141_vm8, 1.0, %v2041_v17  ;;  %v547_v59 = vmul.f32 2e+08, %v447_v44  ;;  %v148_v46 = vmul.f32 2e-05, %v48_v49  ;;  %v1845_v18 = vld [vmem:[%s5203_s2 + $0xf0] sm:$0xff] }
  0xaf   :  { %v1210_v51 = vsel %vm1208_vm14, %v1209_v13, %v1207_v33  ;;  %v1212_v34 = vmul.f32 %v2792_v45, %v3603_v8  ;;  %vm2341_vm9 = vcmp.ge.f32.partialorder %v2241_v50, 4e+09  ;;  %v346_v58 = vadd.f32 100000.0, %v246_v26  ;;  %v450_v40 = vld [vmem:[%s5202_s1 + $0x118] sm:$0xff] }
  0xb0   :  { %v1742_v57 = vmul.f32 100.0, %v1210_v51  ;;  %v2441_v20 = vsel %vm2341_vm9, 4e+09, %v2241_v50  ;;  %v347_v61 = vadd.f32 100000.0, %v247_v54  ;;  %vm1227_vm10 = vcmp.eq.f32.partialorder %v3636_v42, inf }
  0xb1   :  { %v1214_v60 = vsel %vm1213_vm1, %v3603_v8, %v1212_v34  ;;  %v2794_v62 = vpop.eup %2793  ;;  %v2541_v63 = vmul.f32 2.5e-10, %v2441_v20  ;;  %v746_v1 = vadd.f32 %v646_v47, %v346_v58  ;;  %v647_v55 = vadd.f32 3e+08, %v547_v59 }
  0xb2   :  { %v1942_v32 = vmul.f32 %v1842_v53, %v1742_v57  ;;  %v1217_v39 = vsel %vm1215_vm2, %v1216_v37, %v1214_v60  ;;  %v1219_v3 = vmul.f32 %v2794_v62, %v3618_v23  ;;  %vm1229_vm11 = vcmp.eq.f32.partialorder %v3636_v42, 0.0  ;;  %v51_v62 = vld [vmem:[%s5201_s0 + $0x120] sm:$0xff] }
  0xb3   :  { %v1743_v2 = vmul.f32 100.0, %v1217_v39  ;;  %2642 = vst [vmem:[#allocation2 + $0xd0] sm:$0xff] %v2541_v63  ;;  %v1230_v4 = vand.u32 2147483648, %v3636_v42  ;;  %vm846_vm12 = vcmp.le.f32.partialorder %v746_v1, 0.0  ;;  %v747_v12 = vadd.f32 %v647_v55, %v347_v61  ;;  %v1846_v39 = vld [vmem:[%s5203_s2 + $0xf8] sm:$0xff] }
  0xb4   :  { %v2042_v35 = vadd.f32 %v1942_v32, %v3593_v41  ;;  %v1221_v9 = vsel %vm1220_vm6, %v3618_v23, %v1219_v3  ;;  %v3677_v11 = vsel %vm846_vm12, 0.0, %v746_v1  ;;  %v49_v41 = vld [vmem:[%s5201_s0 + $0x110] sm:$0xff]  ;;  %v248_v16 = vadd.f32 100.0, %v148_v46 }
  0xb5   :  { %v1943_v52 = vmul.f32 %v1843_v0, %v1743_v2  ;;  %v1224_v14 = vsel %vm1222_vm7, %v1223_v10, %v1221_v9  ;;  %2797 = vrsqrt.f32 %v3677_v11  ;;  %v548_v24 = vmul.f32 2e+08, %v448_v6 }
  0xb6   :  { %vm2142_vm13 = vcmp.le.f32.partialorder %v2042_v35, 10.0  ;;  %v2796_v43 = vpop.eup %2795  ;;  %v1744_v7 = vmul.f32 100.0, %v1224_v14  ;;  %vm847_vm15 = vcmp.le.f32.partialorder %v747_v12, 0.0  ;;  %v149_v25 = vmul.f32 2e-05, %v49_v41  ;;  %v52_v14 = vld [vmem:[%s5201_s0 + $0x128] sm:$0xff] }
  0xb7   :  { %v2242_v21 = vsel %vm2142_vm13, 1.0, %v2042_v35  ;;  %v2043_v22 = vadd.f32 %v1943_v52, %v3603_v8  ;;  %v1226_v48 = vmul.f32 %v2796_v43, %v3636_v42  ;;  %v3690_v5 = vsel %vm847_vm15, 0.0, %v747_v12  ;;  %v451_v35 = vld [vmem:[%s5202_s1 + $0x120] sm:$0xff] }
  0xb8   :  { %vm2342_vm14 = vcmp.ge.f32.partialorder %v2242_v21, 4e+09  ;;  %v1944_v13 = vmul.f32 %v1844_v15, %v1744_v7  ;;  %2799 = vrsqrt.f32 %v3690_v5  ;;  %vm1234_vm2 = vcmp.eq.f32.partialorder %v3677_v11, inf  ;;  %v452_v15 = vld [vmem:[%s5202_s1 + $0x128] sm:$0xff]  ;;  %v1847_v43 = vld [vmem:[%s5203_s2 + $0x100] sm:$0xff] }
  0xb9   :  { %v2442_v27 = vsel %vm2342_vm14, 4e+09, %v2242_v21  ;;  %vm2143_vm0 = vcmp.le.f32.partialorder %v2043_v22, 10.0  ;;  %v1228_v30 = vsel %vm1227_vm10, %v3636_v42, %v1226_v48  ;;  %vm1236_vm4 = vcmp.eq.f32.partialorder %v3677_v11, 0.0 }
  0xba   :  { %v2542_v28 = vmul.f32 2.5e-10, %v2442_v27  ;;  %v2243_v29 = vsel %vm2143_vm0, 1.0, %v2043_v22  ;;  %v2044_v8 = vadd.f32 %v1944_v13, %v3618_v23  ;;  %v1231_v19 = vsel %vm1229_vm11, %v1230_v4, %v1228_v30 }
  0xbb   :  { %vm2343_vm1 = vcmp.ge.f32.partialorder %v2243_v29, 4e+09  ;;  %v1745_v37 = vmul.f32 100.0, %v1231_v19  ;;  %v1237_v38 = vand.u32 2147483648, %v3677_v11  ;;  %v348_v56 = vadd.f32 100000.0, %v248_v16 }
  0xbc   :  { %2643 = vst.msk [vmem:[#allocation2 + $0xd8] sm:$0xff] %vm2616_vm3, %v2542_v28  ;;  %v2443_v23 = vsel %vm2343_vm1, 4e+09, %v2243_v29  ;;  %vm2144_vm5 = vcmp.le.f32.partialorder %v2044_v8, 10.0  ;;  %v648_v10 = vadd.f32 3e+08, %v548_v24 }
  0xbd   :  { %v2543_v17 = vmul.f32 2.5e-10, %v2443_v23  ;;  %v2244_v44 = vsel %vm2144_vm5, 1.0, %v2044_v8  ;;  %v1945_v45 = vmul.f32 %v1845_v18, %v1745_v37  ;;  %v249_v33 = vadd.f32 100.0, %v149_v25  ;;  %v453_v23 = vld [vmem:[%s5202_s1 + $0x130] sm:$0xff] }
  0xbe   :  { %v549_v26 = vmul.f32 2e+08, %v449_v31  ;;  %vm2344_vm6 = vcmp.ge.f32.partialorder %v2244_v44, 4e+09  ;;  %v748_v47 = vadd.f32 %v648_v10, %v348_v56  ;;  %v150_v49 = vmul.f32 2e-05, %v50_v36 }
  0xbf   :  { %2644 = vst [vmem:[#allocation2 + $0xe0] sm:$0xff] %v2543_v17  ;;  %v550_v50 = vmul.f32 2e+08, %v450_v40  ;;  %v2798_v51 = vpop.eup %2797  ;;  %v2444_v53 = vsel %vm2344_vm6, 4e+09, %v2244_v44  ;;  %v2045_v34 = vadd.f32 %v1945_v45, %v3636_v42  ;;  %v349_v54 = vadd.f32 100000.0, %v249_v33 }
  0xc0   :  { %v649_v57 = vadd.f32 3e+08, %v549_v26  ;;  %v2544_v58 = vmul.f32 2.5e-10, %v2444_v53  ;;  %v1233_v59 = vmul.f32 %v2798_v51, %v3677_v11  ;;  %vm1241_vm7 = vcmp.eq.f32.partialorder %v3690_v5, inf }
  0xc1   :  { %vm848_vm8 = vcmp.le.f32.partialorder %v748_v47, 0.0  ;;  %vm2145_vm9 = vcmp.le.f32.partialorder %v2045_v34, 10.0  ;;  %v250_v61 = vadd.f32 100.0, %v150_v49  ;;  %vm1243_vm10 = vcmp.eq.f32.partialorder %v3690_v5, 0.0 }
  0xc2   :  { %v3718_v20 = vsel %vm848_vm8, 0.0, %v748_v47  ;;  %v749_v60 = vadd.f32 %v649_v57, %v349_v54  ;;  %2645 = vst.msk [vmem:[#allocation2 + $0xe8] sm:$0xff] %vm2616_vm3, %v2544_v58  ;;  %v2245_v46 = vsel %vm2145_vm9, 1.0, %v2045_v34  ;;  %v1235_v42 = vsel %vm1234_vm2, %v3677_v11, %v1233_v59  ;;  %v2800_v63 = vpop.eup %2799  ;;  %v54_v58 = vld [vmem:[%s5201_s0 + $0x138] sm:$0xff] }
  0xc3   :  { %2801 = vrsqrt.f32 %v3718_v20  ;;  %vm2345_vm11 = vcmp.ge.f32.partialorder %v2245_v46, 4e+09  ;;  %v1238_v32 = vsel %vm1236_vm4, %v1237_v38, %v1235_v42  ;;  %v1244_v0 = vand.u32 2147483648, %v3690_v5 }
  0xc4   :  { %v650_v1 = vadd.f32 3e+08, %v550_v50  ;;  %v2445_v2 = vsel %vm2345_vm11, 4e+09, %v2245_v46  ;;  %v1746_v3 = vmul.f32 100.0, %v1238_v32  ;;  %v1240_v55 = vmul.f32 %v2800_v63, %v3690_v5  ;;  %v1848_v50 = vld [vmem:[%s5203_s2 + $0x108] sm:$0xff] }
  0xc5   :  { %vm849_vm12 = vcmp.le.f32.partialorder %v749_v60, 0.0  ;;  %v2545_v4 = vmul.f32 2.5e-10, %v2445_v2  ;;  %v350_v52 = vadd.f32 100000.0, %v250_v61  ;;  %v151_v9 = vmul.f32 2e-05, %v51_v62 }
  0xc6   :  { %v3739_v6 = vsel %vm849_vm12, 0.0, %v749_v60  ;;  %v1946_v12 = vmul.f32 %v1846_v39, %v1746_v3  ;;  %v1242_v41 = vsel %vm1241_vm7, %v3690_v5, %v1240_v55  ;;  %vm1248_vm13 = vcmp.eq.f32.partialorder %v3718_v20, inf  ;;  %v1849_v63 = vld [vmem:[%s5203_s2 + $0x110] sm:$0xff]  ;;  %v454_v55 = vld [vmem:[%s5202_s1 + $0x138] sm:$0xff] }
  0xc7   :  { %2803 = vrsqrt.f32 %v3739_v6  ;;  %2646 = vst [vmem:[#allocation2 + $0xf0] sm:$0xff] %v2545_v4  ;;  %v1245_v16 = vsel %vm1243_vm10, %v1244_v0, %v1242_v41  ;;  %vm1250_vm14 = vcmp.eq.f32.partialorder %v3718_v20, 0.0  ;;  %v750_v21 = vadd.f32 %v650_v1, %v350_v52 }
  0xc8   :  { %v2046_v22 = vadd.f32 %v1946_v12, %v3677_v11  ;;  %v1747_v7 = vmul.f32 100.0, %v1245_v16  ;;  %v251_v24 = vadd.f32 100.0, %v151_v9  ;;  %v551_v48 = vmul.f32 2e+08, %v451_v35  ;;  %v53_v11 = vld [vmem:[%s5201_s0 + $0x130] sm:$0xff] }
  0xc9   :  { %v1251_v25 = vand.u32 2147483648, %v3718_v20  ;;  %vm850_vm15 = vcmp.le.f32.partialorder %v750_v21, 0.0  ;;  %v152_v27 = vmul.f32 2e-05, %v52_v14  ;;  %v552_v13 = vmul.f32 2e+08, %v452_v15 }
  0xca   :  { %vm2146_vm0 = vcmp.le.f32.partialorder %v2046_v22, 10.0  ;;  %v1947_v28 = vmul.f32 %v1847_v43, %v1747_v7  ;;  %v3760_v29 = vsel %vm850_vm15, 0.0, %v750_v21  ;;  %v351_v30 = vadd.f32 100000.0, %v251_v24  ;;  %v1850_v21 = vld [vmem:[%s5203_s2 + $0x118] sm:$0xff] }
  0xcb   :  { %v2246_v8 = vsel %vm2146_vm0, 1.0, %v2046_v22  ;;  %vm1255_vm1 = vcmp.eq.f32.partialorder %v3739_v6, inf  ;;  %vm1257_vm2 = vcmp.eq.f32.partialorder %v3739_v6, 0.0  ;;  %2805 = vrsqrt.f32 %v3760_v29 }
  0xcc   :  { %vm2346_vm4 = vcmp.ge.f32.partialorder %v2246_v8, 4e+09  ;;  %v2047_v18 = vadd.f32 %v1947_v28, %v3690_v5  ;;  %v1258_v31 = vand.u32 2147483648, %v3739_v6  ;;  %v651_v36 = vadd.f32 3e+08, %v551_v48  ;;  %v55_v48 = vld [vmem:[%s5201_s0 + $0x140] sm:$0xff] }
  0xcd   :  { %v2802_v19 = vpop.eup %2801  ;;  %v2446_v37 = vsel %vm2346_vm4, 4e+09, %v2246_v8  ;;  %v252_v40 = vadd.f32 100.0, %v152_v27  ;;  %v652_v17 = vadd.f32 3e+08, %v552_v13  ;;  %vm1262_vm8 = vcmp.eq.f32.partialorder %v3760_v29, inf }
  0xce   :  { %v1247_v38 = vmul.f32 %v2802_v19, %v3718_v20  ;;  %v2546_v56 = vmul.f32 2.5e-10, %v2446_v37  ;;  %vm2147_vm5 = vcmp.le.f32.partialorder %v2047_v18, 10.0  ;;  %v751_v10 = vadd.f32 %v651_v36, %v351_v30  ;;  %v455_v27 = vld [vmem:[%s5202_s1 + $0x140] sm:$0xff]  ;;  %v56_v13 = vld [vmem:[%s5201_s0 + $0x148] sm:$0xff] }
  0xcf   :  { %v153_v44 = vmul.f32 2e-05, %v53_v11  ;;  %v2247_v45 = vsel %vm2147_vm5, 1.0, %v2047_v18  ;;  %v352_v33 = vadd.f32 100000.0, %v252_v40  ;;  %v553_v26 = vmul.f32 2e+08, %v453_v23 }
  0xd0   :  { %v1249_v5 = vsel %vm1248_vm13, %v3718_v20, %v1247_v38  ;;  %2647 = vst.msk [vmem:[#allocation2 + $0xf8] sm:$0xff] %vm2616_vm3, %v2546_v56  ;;  %vm2347_vm6 = vcmp.ge.f32.partialorder %v2247_v45, 4e+09  ;;  %vm851_vm7 = vcmp.le.f32.partialorder %v751_v10, 0.0  ;;  %vm1264_vm9 = vcmp.eq.f32.partialorder %v3760_v29, 0.0 }
  0xd1   :  { %v2804_v47 = vpop.eup %2803  ;;  %v1252_v49 = vsel %vm1250_vm14, %v1251_v25, %v1249_v5  ;;  %v253_v51 = vadd.f32 100.0, %v153_v44  ;;  %v2447_v53 = vsel %vm2347_vm6, 4e+09, %v2247_v45  ;;  %v3784_v57 = vsel %vm851_vm7, 0.0, %v751_v10  ;;  %v1851_v45 = vld [vmem:[%s5203_s2 + $0x120] sm:$0xff] }
  0xd2   :  { %v1748_v34 = vmul.f32 100.0, %v1252_v49  ;;  %v1254_v54 = vmul.f32 %v2804_v47, %v3739_v6  ;;  %v2547_v59 = vmul.f32 2.5e-10, %v2447_v53  ;;  %2807 = vrsqrt.f32 %v3784_v57  ;;  %v456_v53 = vld [vmem:[%s5202_s1 + $0x148] sm:$0xff] }
  0xd3   :  { %v1265_v46 = vand.u32 2147483648, %v3760_v29  ;;  %v752_v42 = vadd.f32 %v652_v17, %v352_v33  ;;  %v353_v32 = vadd.f32 100000.0, %v253_v51  ;;  %v653_v39 = vadd.f32 3e+08, %v553_v26 }
  0xd4   :  { %v1948_v60 = vmul.f32 %v1848_v50, %v1748_v34  ;;  %v1256_v61 = vsel %vm1255_vm1, %v3739_v6, %v1254_v54  ;;  %2648 = vst [vmem:[#allocation2 + $0x100] sm:$0xff] %v2547_v59  ;;  %v154_v0 = vmul.f32 2e-05, %v54_v58  ;;  %vm1269_vm10 = vcmp.eq.f32.partialorder %v3784_v57, inf  ;;  %v57_v58 = vld [vmem:[%s5201_s0 + $0x150] sm:$0xff] }
  0xd5   :  { %v1259_v62 = vsel %vm1257_vm2, %v1258_v31, %v1256_v61  ;;  %v2806_v1 = vpop.eup %2805  ;;  %vm852_vm11 = vcmp.le.f32.partialorder %v752_v42, 0.0  ;;  %vm1271_vm12 = vcmp.eq.f32.partialorder %v3784_v57, 0.0  ;;  %v753_v52 = vadd.f32 %v653_v39, %v353_v32  ;;  %v457_v59 = vld [vmem:[%s5202_s1 + $0x150] sm:$0xff] }
  0xd6   :  { %v2048_v2 = vadd.f32 %v1948_v60, %v3718_v20  ;;  %v1749_v3 = vmul.f32 100.0, %v1259_v62  ;;  %v1261_v35 = vmul.f32 %v2806_v1, %v3760_v29  ;;  %v3808_v4 = vsel %vm852_vm11, 0.0, %v752_v42  ;;  %v58_v62 = vld [vmem:[%s5201_s0 + $0x158] sm:$0xff] }
  0xd7   :  { %2809 = vrsqrt.f32 %v3808_v4  ;;  %v254_v20 = vadd.f32 100.0, %v154_v0  ;;  %v1272_v14 = vand.u32 2147483648, %v3784_v57  ;;  %v554_v15 = vmul.f32 2e+08, %v454_v55  ;;  %v1852_v0 = vld [vmem:[%s5203_s2 + $0x128] sm:$0xff] }
  0xd8   :  { %vm2148_vm13 = vcmp.le.f32.partialorder %v2048_v2, 10.0  ;;  %v1949_v9 = vmul.f32 %v1849_v63, %v1749_v3  ;;  %v1263_v41 = vsel %vm1262_vm8, %v3760_v29, %v1261_v35  ;;  %vm853_vm15 = vcmp.le.f32.partialorder %v753_v52, 0.0 }
  0xd9   :  { %v2248_v12 = vsel %vm2148_vm13, 1.0, %v2048_v2  ;;  %v1266_v43 = vsel %vm1264_vm9, %v1265_v46, %v1263_v41  ;;  %vm1276_vm0 = vcmp.eq.f32.partialorder %v3808_v4, inf  ;;  %v3822_v24 = vsel %vm853_vm15, 0.0, %v753_v52 }
  0xda   :  { %vm2348_vm14 = vcmp.ge.f32.partialorder %v2248_v12, 4e+09  ;;  %v2049_v16 = vadd.f32 %v1949_v9, %v3739_v6  ;;  %v1750_v7 = vmul.f32 100.0, %v1266_v43  ;;  %2811 = vrsqrt.f32 %v3822_v24 }
  0xdb   :  { %v2448_v22 = vsel %vm2348_vm14, 4e+09, %v2248_v12  ;;  %v354_v6 = vadd.f32 100000.0, %v254_v20  ;;  %vm1278_vm2 = vcmp.eq.f32.partialorder %v3808_v4, 0.0  ;;  %v1279_v11 = vand.u32 2147483648, %v3808_v4 }
  0xdc   :  { %v2548_v25 = vmul.f32 2.5e-10, %v2448_v22  ;;  %vm2149_vm1 = vcmp.le.f32.partialorder %v2049_v16, 10.0  ;;  %v2808_v28 = vpop.eup %2807  ;;  %v1950_v8 = vmul.f32 %v1850_v21, %v1750_v7  ;;  %v654_v18 = vadd.f32 3e+08, %v554_v15  ;;  %v458_v7 = vld [vmem:[%s5202_s1 + $0x158] sm:$0xff] }
  0xdd   :  { %v2249_v30 = vsel %vm2149_vm1, 1.0, %v2049_v16  ;;  %v1268_v19 = vmul.f32 %v2808_v28, %v3784_v57  ;;  %v155_v31 = vmul.f32 2e-05, %v55_v48  ;;  %v555_v37 = vmul.f32 2e+08, %v455_v27  ;;  %v1853_v16 = vld [vmem:[%s5203_s2 + $0x130] sm:$0xff] }
  0xde   :  { %2649 = vst.msk [vmem:[#allocation2 + $0x108] sm:$0xff] %vm2616_vm3, %v2548_v25  ;;  %vm2349_vm4 = vcmp.ge.f32.partialorder %v2249_v30, 4e+09  ;;  %v2050_v23 = vadd.f32 %v1950_v8, %v3760_v29  ;;  %v156_v38 = vmul.f32 2e-05, %v56_v13  ;;  %v754_v56 = vadd.f32 %v654_v18, %v354_v6 }
  0xdf   :  { %v2449_v36 = vsel %vm2349_vm4, 4e+09, %v2249_v30  ;;  %v1270_v17 = vsel %vm1269_vm10, %v3784_v57, %v1268_v19  ;;  %v255_v10 = vadd.f32 100.0, %v155_v31  ;;  %v655_v5 = vadd.f32 3e+08, %v555_v37 }
  0xe0   :  { %v2549_v40 = vmul.f32 2.5e-10, %v2449_v36  ;;  %vm2150_vm5 = vcmp.le.f32.partialorder %v2050_v23, 10.0  ;;  %v1273_v44 = vsel %vm1271_vm12, %v1272_v14, %v1270_v17  ;;  %v256_v33 = vadd.f32 100.0, %v156_v38 }
  0xe1   :  { %v2810_v29 = vpop.eup %2809  ;;  %v2250_v26 = vsel %vm2150_vm5, 1.0, %v2050_v23  ;;  %v1751_v47 = vmul.f32 100.0, %v1273_v44  ;;  %vm854_vm6 = vcmp.le.f32.partialorder %v754_v56, 0.0  ;;  %v355_v49 = vadd.f32 100000.0, %v255_v10 }
  0xe2   :  { %2650 = vst [vmem:[#allocation2 + $0x110] sm:$0xff] %v2549_v40  ;;  %vm2350_vm7 = vcmp.ge.f32.partialorder %v2250_v26, 4e+09  ;;  %v1275_v50 = vmul.f32 %v2810_v29, %v3808_v4  ;;  %vm1283_vm8 = vcmp.eq.f32.partialorder %v3822_v24, inf  ;;  %v3849_v51 = vsel %vm854_vm6, 0.0, %v754_v56  ;;  %v59_v40 = vld [vmem:[%s5201_s0 + $0x160] sm:$0xff] }
  0xe3   :  { %v2450_v34 = vsel %vm2350_vm7, 4e+09, %v2250_v26  ;;  %v1951_v54 = vmul.f32 %v1851_v45, %v1751_v47  ;;  %vm1285_vm9 = vcmp.eq.f32.partialorder %v3822_v24, 0.0  ;;  %2813 = vrsqrt.f32 %v3849_v51  ;;  %v1854_v56 = vld [vmem:[%s5203_s2 + $0x138] sm:$0xff] }
  0xe4   :  { %v2550_v60 = vmul.f32 2.5e-10, %v2450_v34  ;;  %v1277_v61 = vsel %vm1276_vm0, %v3808_v4, %v1275_v50  ;;  %v1286_v46 = vand.u32 2147483648, %v3822_v24  ;;  %v356_v42 = vadd.f32 100000.0, %v256_v33  ;;  %v2812_v63 = vpop.eup %2811 }
  0xe5   :  { %v2051_v32 = vadd.f32 %v1951_v54, %v3784_v57  ;;  %v1280_v39 = vsel %vm1278_vm2, %v1279_v11, %v1277_v61  ;;  %v755_v1 = vadd.f32 %v655_v5, %v355_v49  ;;  %v556_v2 = vmul.f32 2e+08, %v456_v53  ;;  %v459_v54 = vld [vmem:[%s5202_s1 + $0x160] sm:$0xff] }
  0xe6   :  { %2651 = vst.msk [vmem:[#allocation2 + $0x118] sm:$0xff] %vm2616_vm3, %v2550_v60  ;;  %v1752_v3 = vmul.f32 100.0, %v1280_v39  ;;  %v1282_v55 = vmul.f32 %v2812_v63, %v3822_v24  ;;  %v157_v35 = vmul.f32 2e-05, %v57_v58  ;;  %v557_v52 = vmul.f32 2e+08, %v457_v59 }
  0xe7   :  { %vm2151_vm10 = vcmp.le.f32.partialorder %v2051_v32, 10.0  ;;  %vm855_vm11 = vcmp.le.f32.partialorder %v755_v1, 0.0  ;;  %v656_v9 = vadd.f32 3e+08, %v556_v2  ;;  %v158_v57 = vmul.f32 2e-05, %v58_v62 }
  0xe8   :  { %v2251_v20 = vsel %vm2151_vm10, 1.0, %v2051_v32  ;;  %v1952_v12 = vmul.f32 %v1852_v0, %v1752_v3  ;;  %v1284_v41 = vsel %vm1283_vm8, %v3822_v24, %v1282_v55  ;;  %v3880_v14 = vsel %vm855_vm11, 0.0, %v755_v1  ;;  %v60_v58 = vld [vmem:[%s5201_s0 + $0x168] sm:$0xff] }
  0xe9   :  { %vm2351_vm12 = vcmp.ge.f32.partialorder %v2251_v20, 4e+09  ;;  %v1287_v15 = vsel %vm1285_vm9, %v1286_v46, %v1284_v41  ;;  %vm1290_vm13 = vcmp.eq.f32.partialorder %v3849_v51, inf  ;;  %2815 = vrsqrt.f32 %v3880_v14  ;;  %v460_v59 = vld [vmem:[%s5202_s1 + $0x168] sm:$0xff] }
  0xea   :  { %v2451_v43 = vsel %vm2351_vm12, 4e+09, %v2251_v20  ;;  %v2052_v21 = vadd.f32 %v1952_v12, %v3808_v4  ;;  %v1753_v22 = vmul.f32 100.0, %v1287_v15  ;;  %vm1292_vm14 = vcmp.eq.f32.partialorder %v3849_v51, 0.0  ;;  %v61_v12 = vld [vmem:[%s5201_s0 + $0x170] sm:$0xff] }
  0xeb   :  { %v2551_v48 = vmul.f32 2.5e-10, %v2451_v43  ;;  %v1293_v25 = vand.u32 2147483648, %v3849_v51  ;;  %v756_v6 = vadd.f32 %v656_v9, %v356_v42  ;;  %v257_v27 = vadd.f32 100.0, %v157_v35  ;;  %v1855_v42 = vld [vmem:[%s5203_s2 + $0x140] sm:$0xff] }
  0xec   :  { %vm2152_vm15 = vcmp.le.f32.partialorder %v2052_v21, 10.0  ;;  %v1953_v13 = vmul.f32 %v1853_v16, %v1753_v22  ;;  %v657_v28 = vadd.f32 3e+08, %v557_v52  ;;  %v258_v30 = vadd.f32 100.0, %v158_v57  ;;  %v461_v16 = vld [vmem:[%s5202_s1 + $0x170] sm:$0xff] }
  0xed   :  { %v2814_v8 = vpop.eup %2813  ;;  %2652 = vst [vmem:[#allocation2 + $0x120] sm:$0xff] %v2551_v48  ;;  %v2252_v11 = vsel %vm2152_vm15, 1.0, %v2052_v21  ;;  %vm856_vm0 = vcmp.le.f32.partialorder %v756_v6, 0.0  ;;  %v357_v4 = vadd.f32 100000.0, %v257_v27  ;;  %v558_v19 = vmul.f32 2e+08, %v458_v7 }
  0xee   :  { %vm2352_vm1 = vcmp.ge.f32.partialorder %v2252_v11, 4e+09  ;;  %v2053_v18 = vadd.f32 %v1953_v13, %v3822_v24  ;;  %v1289_v31 = vmul.f32 %v2814_v8, %v3849_v51  ;;  %v3897_v36 = vsel %vm856_vm0, 0.0, %v756_v6 }
  0xef   :  { %v2452_v23 = vsel %vm2352_vm1, 4e+09, %v2252_v11  ;;  %2817 = vrsqrt.f32 %v3897_v36  ;;  %vm1297_vm4 = vcmp.eq.f32.partialorder %v3880_v14, inf  ;;  %vm1299_vm5 = vcmp.eq.f32.partialorder %v3880_v14, 0.0 }
  0xf0   :  { %v2552_v37 = vmul.f32 2.5e-10, %v2452_v23  ;;  %vm2153_vm2 = vcmp.le.f32.partialorder %v2053_v18, 10.0  ;;  %v1291_v38 = vsel %vm1290_vm13, %v3849_v51, %v1289_v31  ;;  %v757_v10 = vadd.f32 %v657_v28, %v357_v4 }
  0xf1   :  { %v2253_v24 = vsel %vm2153_vm2, 1.0, %v2053_v18  ;;  %v1294_v17 = vsel %vm1292_vm14, %v1293_v25, %v1291_v38  ;;  %v358_v45 = vadd.f32 100000.0, %v258_v30  ;;  %v658_v5 = vadd.f32 3e+08, %v558_v19  ;;  %v1856_v25 = vld [vmem:[%s5203_s2 + $0x148] sm:$0xff] }
  0xf2   :  { %2653 = vst.msk [vmem:[#allocation2 + $0x128] sm:$0xff] %vm2616_vm3, %v2552_v37  ;;  %vm2353_vm6 = vcmp.ge.f32.partialorder %v2253_v24, 4e+09  ;;  %v1754_v44 = vmul.f32 100.0, %v1294_v17  ;;  %v1300_v26 = vand.u32 2147483648, %v3880_v14  ;;  %vm857_vm7 = vcmp.le.f32.partialorder %v757_v10, 0.0 }
  0xf3   :  { %v2816_v33 = vpop.eup %2815  ;;  %v2453_v29 = vsel %vm2353_vm6, 4e+09, %v2253_v24  ;;  %v159_v47 = vmul.f32 2e-05, %v59_v40  ;;  %v3916_v34 = vsel %vm857_vm7, 0.0, %v757_v10  ;;  %vm1304_vm8 = vcmp.eq.f32.partialorder %v3897_v36, inf }
  0xf4   :  { %v2553_v49 = vmul.f32 2.5e-10, %v2453_v29  ;;  %v1954_v50 = vmul.f32 %v1854_v56, %v1754_v44  ;;  %v1296_v53 = vmul.f32 %v2816_v33, %v3880_v14  ;;  %vm1306_vm9 = vcmp.eq.f32.partialorder %v3897_v36, 0.0  ;;  %v1857_v56 = vld [vmem:[%s5203_s2 + $0x150] sm:$0xff]  ;;  %v462_v29 = vld [vmem:[%s5202_s1 + $0x178] sm:$0xff] }
  0xf5   :  { %v1307_v60 = vand.u32 2147483648, %v3897_v36  ;;  %2819 = vrsqrt.f32 %v3916_v34  ;;  %v758_v62 = vadd.f32 %v658_v5, %v358_v45  ;;  %v259_v63 = vadd.f32 100.0, %v159_v47 }
  0xf6   :  { %2654 = vst [vmem:[#allocation2 + $0x130] sm:$0xff] %v2553_v49  ;;  %v2054_v61 = vadd.f32 %v1954_v50, %v3849_v51  ;;  %v1298_v46 = vsel %vm1297_vm4, %v3880_v14, %v1296_v53  ;;  %v559_v39 = vmul.f32 2e+08, %v459_v54  ;;  %v160_v0 = vmul.f32 2e-05, %v60_v58 }
  0xf7   :  { %v1301_v32 = vsel %vm1299_vm5, %v1300_v26, %v1298_v46  ;;  %v560_v1 = vmul.f32 2e+08, %v460_v59  ;;  %vm858_vm11 = vcmp.le.f32.partialorder %v758_v62, 0.0  ;;  %v359_v51 = vadd.f32 100000.0, %v259_v63  ;;  %v63_v26 = vld [vmem:[%s5201_s0 + $0x180] sm:$0xff] }
  0xf8   :  { %vm2154_vm10 = vcmp.le.f32.partialorder %v2054_v61, 10.0  ;;  %v1755_v2 = vmul.f32 100.0, %v1301_v32  ;;  %v3940_v35 = vsel %vm858_vm11, 0.0, %v758_v62  ;;  %v659_v52 = vadd.f32 3e+08, %v559_v39  ;;  %v1858_v32 = vld [vmem:[%s5203_s2 + $0x158] sm:$0xff] }
  0xf9   :  { %v2818_v3 = vpop.eup %2817  ;;  %v2254_v55 = vsel %vm2154_vm10, 1.0, %v2054_v61  ;;  %v260_v9 = vadd.f32 100.0, %v160_v0  ;;  %2821 = vrsqrt.f32 %v3940_v35  ;;  %vm1311_vm13 = vcmp.eq.f32.partialorder %v3916_v34, inf }
  0xfa   :  { %vm2354_vm12 = vcmp.ge.f32.partialorder %v2254_v55, 4e+09  ;;  %v1955_v57 = vmul.f32 %v1855_v42, %v1755_v2  ;;  %v1303_v20 = vmul.f32 %v2818_v3, %v3897_v36  ;;  %vm1313_vm14 = vcmp.eq.f32.partialorder %v3916_v34, 0.0  ;;  %v463_v2 = vld [vmem:[%s5202_s1 + $0x180] sm:$0xff]  ;;  %v64_v3 = vld [vmem:[%s5201_s0 + $0x188] sm:$0xff] }
  0xfb   :  { %v2454_v41 = vsel %vm2354_vm12, 4e+09, %v2254_v55  ;;  %v1314_v15 = vand.u32 2147483648, %v3916_v34  ;;  %v759_v7 = vadd.f32 %v659_v52, %v359_v51  ;;  %v360_v6 = vadd.f32 100000.0, %v260_v9 }
  0xfc   :  { %v2554_v43 = vmul.f32 2.5e-10, %v2454_v41  ;;  %v2055_v21 = vadd.f32 %v1955_v57, %v3880_v14  ;;  %v1305_v22 = vsel %vm1304_vm8, %v3897_v36, %v1303_v20  ;;  %v660_v27 = vadd.f32 3e+08, %v560_v1 }
  0xfd   :  { %v1308_v48 = vsel %vm1306_vm9, %v1307_v60, %v1305_v22  ;;  %v161_v13 = vmul.f32 2e-05, %v61_v12  ;;  %vm859_vm0 = vcmp.le.f32.partialorder %v759_v7, 0.0  ;;  %v561_v14 = vmul.f32 2e+08, %v461_v16  ;;  %v464_v22 = vld [vmem:[%s5202_s1 + $0x188] sm:$0xff] }
  0xfe   :  { %2655 = vst.msk [vmem:[#allocation2 + $0x138] sm:$0xff] %vm2616_vm3, %v2554_v43  ;;  %vm2155_vm15 = vcmp.le.f32.partialorder %v2055_v21, 10.0  ;;  %v1756_v28 = vmul.f32 100.0, %v1308_v48  ;;  %v3963_v11 = vsel %vm859_vm0, 0.0, %v759_v7  ;;  %v760_v4 = vadd.f32 %v660_v27, %v360_v6  ;;  %v1859_v6 = vld [vmem:[%s5203_s2 + $0x160] sm:$0xff] }
  0xff   :  { %v2820_v30 = vpop.eup %2819  ;;  %v2255_v8 = vsel %vm2155_vm15, 1.0, %v2055_v21  ;;  %v261_v19 = vadd.f32 100.0, %v161_v13  ;;  %2823 = vrsqrt.f32 %v3963_v11  ;;  %vm1318_vm2 = vcmp.eq.f32.partialorder %v3940_v35, inf }
 0x100   :  { %vm2355_vm1 = vcmp.ge.f32.partialorder %v2255_v8, 4e+09  ;;  %v1956_v18 = vmul.f32 %v1856_v25, %v1756_v28  ;;  %v1310_v31 = vmul.f32 %v2820_v30, %v3916_v34  ;;  %vm1320_vm4 = vcmp.eq.f32.partialorder %v3940_v35, 0.0 }
 0x101   :  { %v2455_v23 = vsel %vm2355_vm1, 4e+09, %v2255_v8  ;;  %v1321_v37 = vand.u32 2147483648, %v3940_v35  ;;  %vm860_vm5 = vcmp.le.f32.partialorder %v760_v4, 0.0  ;;  %v361_v44 = vadd.f32 100000.0, %v261_v19 }
 0x102   :  { %v2555_v38 = vmul.f32 2.5e-10, %v2455_v23  ;;  %v2056_v40 = vadd.f32 %v1956_v18, %v3897_v36  ;;  %v1312_v24 = vsel %vm1311_vm13, %v3916_v34, %v1310_v31  ;;  %v3979_v10 = vsel %vm860_vm5, 0.0, %v760_v4  ;;  %v62_v36 = vld [vmem:[%s5201_s0 + $0x178] sm:$0xff] }
 0x103   :  { %v1315_v17 = vsel %vm1313_vm14, %v1314_v15, %v1312_v24  ;;  %v661_v45 = vadd.f32 3e+08, %v561_v14  ;;  %v2822_v5 = vpop.eup %2821  ;;  %vm1325_vm7 = vcmp.eq.f32.partialorder %v3963_v11, inf  ;;  %2825 = vrsqrt.f32 %v3979_v10 }
 0x104   :  { %2656 = vst [vmem:[#allocation2 + $0x140] sm:$0xff] %v2555_v38  ;;  %vm2156_vm6 = vcmp.le.f32.partialorder %v2056_v40, 10.0  ;;  %v1757_v33 = vmul.f32 100.0, %v1315_v17  ;;  %v1317_v49 = vmul.f32 %v2822_v5, %v3940_v35  ;;  %vm1327_vm8 = vcmp.eq.f32.partialorder %v3963_v11, 0.0  ;;  %v1860_v38 = vld [vmem:[%s5203_s2 + $0x168] sm:$0xff] }
 0x105   :  { %v2256_v47 = vsel %vm2156_vm6, 1.0, %v2056_v40  ;;  %v1328_v50 = vand.u32 2147483648, %v3963_v11  ;;  %v761_v54 = vadd.f32 %v661_v45, %v361_v44  ;;  %v162_v58 = vmul.f32 2e-05, %v62_v36 }
 0x106   :  { %vm2356_vm9 = vcmp.ge.f32.partialorder %v2256_v47, 4e+09  ;;  %v1957_v53 = vmul.f32 %v1857_v56, %v1757_v33  ;;  %v1319_v60 = vsel %vm1318_vm2, %v3940_v35, %v1317_v49  ;;  %v562_v61 = vmul.f32 2e+08, %v462_v29  ;;  %v65_v56 = vld [vmem:[%s5201_s0 + $0x190] sm:$0xff] }
 0x107   :  { %v2456_v59 = vsel %vm2356_vm9, 4e+09, %v2256_v47  ;;  %v163_v46 = vmul.f32 2e-05, %v63_v26  ;;  %v1322_v63 = vsel %vm1320_vm4, %v1321_v37, %v1319_v60  ;;  %vm861_vm10 = vcmp.le.f32.partialorder %v761_v54, 0.0 }
 0x108   :  { %v2556_v42 = vmul.f32 2.5e-10, %v2456_v59  ;;  %v2057_v62 = vadd.f32 %v1957_v53, %v3916_v34  ;;  %v1758_v39 = vmul.f32 100.0, %v1322_v63  ;;  %vm1332_vm11 = vcmp.eq.f32.partialorder %v3979_v10, inf }
 0x109   :  { %v4005_v0 = vsel %vm861_vm10, 0.0, %v761_v54  ;;  %v262_v1 = vadd.f32 100.0, %v162_v58  ;;  %v2824_v51 = vpop.eup %2823  ;;  %vm1334_vm13 = vcmp.eq.f32.partialorder %v3979_v10, 0.0  ;;  %v662_v34 = vadd.f32 3e+08, %v562_v61  ;;  %v1861_v61 = vld [vmem:[%s5203_s2 + $0x170] sm:$0xff] }
 0x10a   :  { %2657 = vst.msk [vmem:[#allocation2 + $0x148] sm:$0xff] %vm2616_vm3, %v2556_v42  ;;  %vm2157_vm12 = vcmp.le.f32.partialorder %v2057_v62, 10.0  ;;  %2827 = vrsqrt.f32 %v4005_v0  ;;  %v1958_v52 = vmul.f32 %v1858_v32, %v1758_v39  ;;  %v1324_v9 = vmul.f32 %v2824_v51, %v3963_v11  ;;  %v66_v32 = vld [vmem:[%s5201_s0 + $0x198] sm:$0xff] }
 0x10b   :  { %v2257_v55 = vsel %vm2157_vm12, 1.0, %v2057_v62  ;;  %v1335_v57 = vand.u32 2147483648, %v3979_v10  ;;  %v362_v20 = vadd.f32 100000.0, %v262_v1  ;;  %v263_v12 = vadd.f32 100.0, %v163_v46  ;;  %v466_v51 = vld [vmem:[%s5202_s1 + $0x198] sm:$0xff] }
 0x10c   :  { %vm2357_vm14 = vcmp.ge.f32.partialorder %v2257_v55, 4e+09  ;;  %v563_v41 = vmul.f32 2e+08, %v463_v2  ;;  %v2058_v16 = vadd.f32 %v1958_v52, %v3940_v35  ;;  %v1326_v43 = vsel %vm1325_vm7, %v3963_v11, %v1324_v9  ;;  %v467_v9 = vld [vmem:[%s5202_s1 + $0x1a0] sm:$0xff] }
 0x10d   :  { %v2457_v15 = vsel %vm2357_vm14, 4e+09, %v2257_v55  ;;  %v164_v21 = vmul.f32 2e-05, %v64_v3  ;;  %v2826_v7 = vpop.eup %2825  ;;  %v1329_v25 = vsel %vm1327_vm8, %v1328_v50, %v1326_v43  ;;  %v762_v27 = vadd.f32 %v662_v34, %v362_v20  ;;  %v67_v34 = vld [vmem:[%s5201_s0 + $0x1a0] sm:$0xff] }
 0x10e   :  { %v2557_v48 = vmul.f32 2.5e-10, %v2457_v15  ;;  %v363_v35 = vadd.f32 100000.0, %v263_v12  ;;  %vm2158_vm15 = vcmp.le.f32.partialorder %v2058_v16, 10.0  ;;  %v1759_v13 = vmul.f32 100.0, %v1329_v25  ;;  %v1862_v25 = vld [vmem:[%s5203_s2 + $0x178] sm:$0xff] }
 0x10f   :  { %v1331_v28 = vmul.f32 %v2826_v7, %v3979_v10  ;;  %v663_v14 = vadd.f32 3e+08, %v563_v41  ;;  %v2258_v30 = vsel %vm2158_vm15, 1.0, %v2058_v16  ;;  %vm862_vm0 = vcmp.le.f32.partialorder %v762_v27, 0.0 }
 0x110   :  { %2658 = vst [vmem:[#allocation2 + $0x150] sm:$0xff] %v2557_v48  ;;  %v264_v8 = vadd.f32 100.0, %v164_v21  ;;  %v564_v4 = vmul.f32 2e+08, %v464_v22  ;;  %vm2358_vm1 = vcmp.ge.f32.partialorder %v2258_v30, 4e+09  ;;  %v1959_v19 = vmul.f32 %v1859_v6, %v1759_v13 }
 0x111   :  { %v1333_v18 = vsel %vm1332_vm11, %v3979_v10, %v1331_v28  ;;  %v4034_v31 = vsel %vm862_vm0, 0.0, %v762_v27  ;;  %v2458_v23 = vsel %vm2358_vm1, 4e+09, %v2258_v30  ;;  %vm1339_vm2 = vcmp.eq.f32.partialorder %v4005_v0, inf }
 0x112   :  { %v1336_v37 = vsel %vm1334_vm13, %v1335_v57, %v1333_v18  ;;  %2829 = vrsqrt.f32 %v4034_v31  ;;  %v2558_v40 = vmul.f32 2.5e-10, %v2458_v23  ;;  %v2059_v24 = vadd.f32 %v1959_v19, %v3963_v11  ;;  %v465_v11 = vld [vmem:[%s5202_s1 + $0x190] sm:$0xff] }
 0x113   :  { %v1760_v17 = vmul.f32 100.0, %v1336_v37  ;;  %v1342_v45 = vand.u32 2147483648, %v4005_v0  ;;  %v763_v36 = vadd.f32 %v663_v14, %v363_v35  ;;  %v364_v5 = vadd.f32 100000.0, %v264_v8  ;;  %v68_v37 = vld [vmem:[%s5201_s0 + $0x1a8] sm:$0xff] }
 0x114   :  { %v2828_v44 = vpop.eup %2827  ;;  %v664_v33 = vadd.f32 3e+08, %v564_v4  ;;  %2659 = vst.msk [vmem:[#allocation2 + $0x158] sm:$0xff] %vm2616_vm3, %v2558_v40  ;;  %vm2159_vm4 = vcmp.le.f32.partialorder %v2059_v24, 10.0  ;;  %vm1341_vm5 = vcmp.eq.f32.partialorder %v4005_v0, 0.0  ;;  %vm1346_vm9 = vcmp.eq.f32.partialorder %v4034_v31, inf }
 0x115   :  { %v1960_v29 = vmul.f32 %v1860_v38, %v1760_v17  ;;  %v1338_v26 = vmul.f32 %v2828_v44, %v4005_v0  ;;  %v2259_v47 = vsel %vm2159_vm4, 1.0, %v2059_v24  ;;  %vm863_vm6 = vcmp.le.f32.partialorder %v763_v36, 0.0  ;;  %v468_v38 = vld [vmem:[%s5202_s1 + $0x1a8] sm:$0xff]  ;;  %v69_v40 = vld [vmem:[%s5201_s0 + $0x1b0] sm:$0xff] }
 0x116   :  { %v764_v49 = vadd.f32 %v664_v33, %v364_v5  ;;  %v165_v50 = vmul.f32 2e-05, %v65_v56  ;;  %vm2359_vm7 = vcmp.ge.f32.partialorder %v2259_v47, 4e+09  ;;  %v4058_v58 = vsel %vm863_vm6, 0.0, %v763_v36 }
 0x117   :  { %v2060_v53 = vadd.f32 %v1960_v29, %v3979_v10  ;;  %v1340_v54 = vsel %vm1339_vm2, %v4005_v0, %v1338_v26  ;;  %v2459_v59 = vsel %vm2359_vm7, 4e+09, %v2259_v47  ;;  %2831 = vrsqrt.f32 %v4058_v58 }
 0x118   :  { %v1343_v60 = vsel %vm1341_vm5, %v1342_v45, %v1340_v54  ;;  %v565_v46 = vmul.f32 2e+08, %v465_v11  ;;  %v2559_v42 = vmul.f32 2.5e-10, %v2459_v59  ;;  %vm1348_vm10 = vcmp.eq.f32.partialorder %v4034_v31, 0.0  ;;  %v1863_v45 = vld [vmem:[%s5203_s2 + $0x180] sm:$0xff] }
 0x119   :  { %vm2160_vm8 = vcmp.le.f32.partialorder %v2060_v53, 10.0  ;;  %v1761_v62 = vmul.f32 100.0, %v1343_v60  ;;  %vm864_vm11 = vcmp.le.f32.partialorder %v764_v49, 0.0  ;;  %v265_v63 = vadd.f32 100.0, %v165_v50 }
 0x11a   :  { %v2260_v10 = vsel %vm2160_vm8, 1.0, %v2060_v53  ;;  %2660 = vst [vmem:[#allocation2 + $0x160] sm:$0xff] %v2559_v42  ;;  %v1349_v1 = vand.u32 2147483648, %v4034_v31  ;;  %v4070_v2 = vsel %vm864_vm11, 0.0, %v764_v49  ;;  %vm1353_vm13 = vcmp.eq.f32.partialorder %v4058_v58, inf }
 0x11b   :  { %vm2360_vm12 = vcmp.ge.f32.partialorder %v2260_v10, 4e+09  ;;  %v1961_v39 = vmul.f32 %v1861_v61, %v1761_v62  ;;  %2833 = vrsqrt.f32 %v4070_v2  ;;  %v665_v52 = vadd.f32 3e+08, %v565_v46  ;;  %v1864_v62 = vld [vmem:[%s5203_s2 + $0x188] sm:$0xff] }
 0x11c   :  { %v2830_v3 = vpop.eup %2829  ;;  %v2460_v55 = vsel %vm2360_vm12, 4e+09, %v2260_v10  ;;  %vm1355_vm14 = vcmp.eq.f32.partialorder %v4058_v58, 0.0  ;;  %v1356_v41 = vand.u32 2147483648, %v4058_v58  ;;  %v365_v15 = vadd.f32 100000.0, %v265_v63  ;;  %v469_v10 = vld [vmem:[%s5202_s1 + $0x1b0] sm:$0xff] }
 0x11d   :  { %v2560_v57 = vmul.f32 2.5e-10, %v2460_v55  ;;  %v2061_v20 = vadd.f32 %v1961_v39, %v4005_v0  ;;  %v1345_v12 = vmul.f32 %v2830_v3, %v4034_v31  ;;  %v166_v16 = vmul.f32 2e-05, %v66_v32 }
 0x11e   :  { %v566_v43 = vmul.f32 2e+08, %v466_v51  ;;  %v167_v22 = vmul.f32 2e-05, %v67_v34  ;;  %v567_v7 = vmul.f32 2e+08, %v467_v9  ;;  %v765_v6 = vadd.f32 %v665_v52, %v365_v15 }
 0x11f   :  { %2661 = vst.msk [vmem:[#allocation2 + $0x168] sm:$0xff] %vm2616_vm3, %v2560_v57  ;;  %vm2161_vm15 = vcmp.le.f32.partialorder %v2061_v20, 10.0  ;;  %v1347_v21 = vsel %vm1346_vm9, %v4034_v31, %v1345_v12  ;;  %v266_v27 = vadd.f32 100.0, %v166_v16  ;;  %vm1360_vm1 = vcmp.eq.f32.partialorder %v4070_v2, inf }
 0x120   :  { %v2261_v48 = vsel %vm2161_vm15, 1.0, %v2061_v20  ;;  %v1350_v0 = vsel %vm1348_vm10, %v1349_v1, %v1347_v21  ;;  %v666_v13 = vadd.f32 3e+08, %v566_v43  ;;  %v267_v28 = vadd.f32 100.0, %v167_v22 }
 0x121   :  { %vm2361_vm0 = vcmp.ge.f32.partialorder %v2261_v48, 4e+09  ;;  %v1762_v35 = vmul.f32 100.0, %v1350_v0  ;;  %v2832_v14 = vpop.eup %2831  ;;  %vm865_vm2 = vcmp.le.f32.partialorder %v765_v6, 0.0  ;;  %v366_v8 = vadd.f32 100000.0, %v266_v27 }
 0x122   :  { %v2461_v30 = vsel %vm2361_vm0, 4e+09, %v2261_v48  ;;  %v1352_v18 = vmul.f32 %v2832_v14, %v4058_v58  ;;  %v4098_v23 = vsel %vm865_vm2, 0.0, %v765_v6  ;;  %vm1362_vm4 = vcmp.eq.f32.partialorder %v4070_v2, 0.0 }
 0x123   :  { %v2561_v4 = vmul.f32 2.5e-10, %v2461_v30  ;;  %v1962_v19 = vmul.f32 %v1862_v25, %v1762_v35  ;;  %v1363_v24 = vand.u32 2147483648, %v4070_v2  ;;  %2835 = vrsqrt.f32 %v4098_v23  ;;  %v470_v30 = vld [vmem:[%s5202_s1 + $0x1b8] sm:$0xff] }
 0x124   :  { %v667_v17 = vadd.f32 3e+08, %v567_v7  ;;  %v1354_v44 = vsel %vm1353_vm13, %v4058_v58, %v1352_v18  ;;  %v766_v36 = vadd.f32 %v666_v13, %v366_v8  ;;  %v367_v5 = vadd.f32 100000.0, %v267_v28 }
 0x125   :  { %2662 = vst [vmem:[#allocation2 + $0x170] sm:$0xff] %v2561_v4  ;;  %v2062_v56 = vadd.f32 %v1962_v19, %v4034_v31  ;;  %v2834_v33 = vpop.eup %2833  ;;  %v1357_v29 = vsel %vm1355_vm14, %v1356_v41, %v1354_v44  ;;  %v168_v26 = vmul.f32 2e-05, %v68_v37  ;;  %v568_v11 = vmul.f32 2e+08, %v468_v38  ;;  %v71_v19 = vld [vmem:[%s5201_s0 + $0x1c0] sm:$0xff] }
 0x126   :  { %v169_v47 = vmul.f32 2e-05, %v69_v40  ;;  %v1763_v49 = vmul.f32 100.0, %v1357_v29  ;;  %v1359_v31 = vmul.f32 %v2834_v33, %v4070_v2  ;;  %vm866_vm6 = vcmp.le.f32.partialorder %v766_v36, 0.0  ;;  %v471_v33 = vld [vmem:[%s5202_s1 + $0x1c0] sm:$0xff] }
 0x127   :  { %vm2162_vm5 = vcmp.le.f32.partialorder %v2062_v56, 10.0  ;;  %v4122_v53 = vsel %vm866_vm6, 0.0, %v766_v36  ;;  %v767_v54 = vadd.f32 %v667_v17, %v367_v5  ;;  %v268_v59 = vadd.f32 100.0, %v168_v26 }
 0x128   :  { %v2262_v50 = vsel %vm2162_vm5, 1.0, %v2062_v56  ;;  %v1963_v60 = vmul.f32 %v1863_v45, %v1763_v49  ;;  %v1361_v61 = vsel %vm1360_vm1, %v4070_v2, %v1359_v31  ;;  %2837 = vrsqrt.f32 %v4122_v53  ;;  %v1866_v45 = vld [vmem:[%s5203_s2 + $0x198] sm:$0xff] }
 0x129   :  { %vm2362_vm7 = vcmp.ge.f32.partialorder %v2262_v50, 4e+09  ;;  %v1364_v42 = vsel %vm1362_vm4, %v1363_v24, %v1361_v61  ;;  %vm1367_vm8 = vcmp.eq.f32.partialorder %v4098_v23, inf  ;;  %vm1369_vm9 = vcmp.eq.f32.partialorder %v4098_v23, 0.0 }
 0x12a   :  { %v2462_v46 = vsel %vm2362_vm7, 4e+09, %v2262_v50  ;;  %v2063_v32 = vadd.f32 %v1963_v60, %v4058_v58  ;;  %v1764_v39 = vmul.f32 100.0, %v1364_v42  ;;  %v1370_v1 = vand.u32 2147483648, %v4098_v23  ;;  %v70_v58 = vld [vmem:[%s5201_s0 + $0x1b8] sm:$0xff]  ;;  %v472_v42 = vld [vmem:[%s5202_s1 + $0x1c8] sm:$0xff] }
 0x12b   :  { %v2562_v63 = vmul.f32 2.5e-10, %v2462_v46  ;;  %vm867_vm10 = vcmp.le.f32.partialorder %v767_v54, 0.0  ;;  %v368_v51 = vadd.f32 100000.0, %v268_v59  ;;  %v668_v34 = vadd.f32 3e+08, %v568_v11 }
 0x12c   :  { %v269_v3 = vadd.f32 100.0, %v169_v47  ;;  %vm2163_vm11 = vcmp.le.f32.partialorder %v2063_v32, 10.0  ;;  %v1964_v55 = vmul.f32 %v1864_v62, %v1764_v39  ;;  %v4141_v52 = vsel %vm867_vm10, 0.0, %v767_v54 }
 0x12d   :  { %2663 = vst.msk [vmem:[#allocation2 + $0x178] sm:$0xff] %vm2616_vm3, %v2562_v63  ;;  %v569_v9 = vmul.f32 2e+08, %v469_v10  ;;  %v2836_v57 = vpop.eup %2835  ;;  %v2263_v20 = vsel %vm2163_vm11, 1.0, %v2063_v32  ;;  %vm1374_vm12 = vcmp.eq.f32.partialorder %v4122_v53, inf  ;;  %vm1376_vm13 = vcmp.eq.f32.partialorder %v4122_v53, 0.0 }
 0x12e   :  { %2839 = vrsqrt.f32 %v4141_v52  ;;  %vm2363_vm14 = vcmp.ge.f32.partialorder %v2263_v20, 4e+09  ;;  %v2064_v12 = vadd.f32 %v1964_v55, %v4070_v2  ;;  %v1366_v41 = vmul.f32 %v2836_v57, %v4098_v23  ;;  %v1865_v2 = vld [vmem:[%s5203_s2 + $0x190] sm:$0xff]  ;;  %v1867_v32 = vld [vmem:[%s5203_s2 + $0x1a0] sm:$0xff] }
 0x12f   :  { %v1377_v15 = vand.u32 2147483648, %v4122_v53  ;;  %v2463_v16 = vsel %vm2363_vm14, 4e+09, %v2263_v20  ;;  %v768_v43 = vadd.f32 %v668_v34, %v368_v51  ;;  %v369_v21 = vadd.f32 100000.0, %v269_v3 }
 0x130   :  { %v669_v22 = vadd.f32 3e+08, %v569_v9  ;;  %v2563_v7 = vmul.f32 2.5e-10, %v2463_v16  ;;  %vm2164_vm15 = vcmp.le.f32.partialorder %v2064_v12, 10.0  ;;  %v1368_v48 = vsel %vm1367_vm8, %v4098_v23, %v1366_v41 }
 0x131   :  { %v170_v0 = vmul.f32 2e-05, %v70_v58  ;;  %v2264_v25 = vsel %vm2164_vm15, 1.0, %v2064_v12  ;;  %v1371_v6 = vsel %vm1369_vm9, %v1370_v1, %v1368_v48  ;;  %vm868_vm0 = vcmp.le.f32.partialorder %v768_v43, 0.0 }
 0x132   :  { %v769_v27 = vadd.f32 %v669_v22, %v369_v21  ;;  %v2838_v35 = vpop.eup %2837  ;;  %2664 = vst [vmem:[#allocation2 + $0x180] sm:$0xff] %v2563_v7  ;;  %vm2364_vm1 = vcmp.ge.f32.partialorder %v2264_v25, 4e+09  ;;  %v1765_v13 = vmul.f32 100.0, %v1371_v6  ;;  %v4160_v28 = vsel %vm868_vm0, 0.0, %v768_v43  ;;  %v73_v21 = vld [vmem:[%s5201_s0 + $0x1d0] sm:$0xff] }
 0x133   :  { %v270_v14 = vadd.f32 100.0, %v170_v0  ;;  %v2464_v8 = vsel %vm2364_vm1, 4e+09, %v2264_v25  ;;  %v1373_v4 = vmul.f32 %v2838_v35, %v4122_v53  ;;  %vm1381_vm2 = vcmp.eq.f32.partialorder %v4141_v52, inf  ;;  %v1868_v0 = vld [vmem:[%s5203_s2 + $0x1a8] sm:$0xff] }
 0x134   :  { %2841 = vrsqrt.f32 %v4160_v28  ;;  %v2564_v18 = vmul.f32 2.5e-10, %v2464_v8  ;;  %v1965_v37 = vmul.f32 %v1865_v2, %v1765_v13  ;;  %vm1383_vm4 = vcmp.eq.f32.partialorder %v4141_v52, 0.0 }
 0x135   :  { %v1384_v38 = vand.u32 2147483648, %v4141_v52  ;;  %v1375_v40 = vsel %vm1374_vm12, %v4122_v53, %v1373_v4  ;;  %vm869_vm5 = vcmp.le.f32.partialorder %v769_v27, 0.0  ;;  %v370_v24 = vadd.f32 100000.0, %v270_v14  ;;  %v473_v4 = vld [vmem:[%s5202_s1 + $0x1d0] sm:$0xff] }
 0x136   :  { %v570_v17 = vmul.f32 2e+08, %v470_v30  ;;  %2665 = vst.msk [vmem:[#allocation2 + $0x188] sm:$0xff] %vm2616_vm3, %v2564_v18  ;;  %v2065_v56 = vadd.f32 %v1965_v37, %v4098_v23  ;;  %v1378_v44 = vsel %vm1376_vm13, %v1377_v15, %v1375_v40  ;;  %v4183_v36 = vsel %vm869_vm5, 0.0, %v769_v27  ;;  %v72_v23 = vld [vmem:[%s5201_s0 + $0x1c8] sm:$0xff]  ;;  %v1869_v37 = vld [vmem:[%s5203_s2 + $0x1b0] sm:$0xff] }
 0x137   :  { %v171_v5 = vmul.f32 2e-05, %v71_v19  ;;  %v1766_v26 = vmul.f32 100.0, %v1378_v44  ;;  %vm1388_vm6 = vcmp.eq.f32.partialorder %v4160_v28, inf  ;;  %vm1390_vm7 = vcmp.eq.f32.partialorder %v4160_v28, 0.0 }
 0x138   :  { %v2840_v29 = vpop.eup %2839  ;;  %2843 = vrsqrt.f32 %v4183_v36  ;;  %vm2165_vm8 = vcmp.le.f32.partialorder %v2065_v56, 10.0  ;;  %v1391_v47 = vand.u32 2147483648, %v4160_v28  ;;  %v670_v49 = vadd.f32 3e+08, %v570_v17 }
 0x139   :  { %v1380_v11 = vmul.f32 %v2840_v29, %v4141_v52  ;;  %v2265_v31 = vsel %vm2165_vm8, 1.0, %v2065_v56  ;;  %v1966_v50 = vmul.f32 %v1866_v45, %v1766_v26  ;;  %v271_v54 = vadd.f32 100.0, %v171_v5  ;;  %v474_v56 = vld [vmem:[%s5202_s1 + $0x1d8] sm:$0xff] }
 0x13a   :  { %v571_v59 = vmul.f32 2e+08, %v471_v33  ;;  %vm2365_vm9 = vcmp.ge.f32.partialorder %v2265_v31, 4e+09  ;;  %v770_v61 = vadd.f32 %v670_v49, %v370_v24  ;;  %v172_v46 = vmul.f32 2e-05, %v72_v23 }
 0x13b   :  { %v1382_v60 = vsel %vm1381_vm2, %v4141_v52, %v1380_v11  ;;  %v2465_v62 = vsel %vm2365_vm9, 4e+09, %v2265_v31  ;;  %v2066_v10 = vadd.f32 %v1966_v50, %v4122_v53  ;;  %v371_v39 = vadd.f32 100000.0, %v271_v54 }
 0x13c   :  { %v1385_v63 = vsel %vm1383_vm4, %v1384_v38, %v1382_v60  ;;  %v2565_v1 = vmul.f32 2.5e-10, %v2465_v62  ;;  %vm870_vm10 = vcmp.le.f32.partialorder %v770_v61, 0.0  ;;  %v671_v34 = vadd.f32 3e+08, %v571_v59  ;;  %v74_v38 = vld [vmem:[%s5201_s0 + $0x1d8] sm:$0xff] }
 0x13d   :  { %v1767_v51 = vmul.f32 100.0, %v1385_v63  ;;  %vm2166_vm11 = vcmp.le.f32.partialorder %v2066_v10, 10.0  ;;  %v4208_v55 = vsel %vm870_vm10, 0.0, %v770_v61  ;;  %v272_v9 = vadd.f32 100.0, %v172_v46  ;;  %v75_v60 = vld [vmem:[%s5201_s0 + $0x1e0] sm:$0xff]  ;;  %v1870_v46 = vld [vmem:[%s5203_s2 + $0x1b8] sm:$0xff] }
 0x13e   :  { %v2842_v3 = vpop.eup %2841  ;;  %v572_v57 = vmul.f32 2e+08, %v472_v42  ;;  %2666 = vst [vmem:[#allocation2 + $0x190] sm:$0xff] %v2565_v1  ;;  %v2266_v53 = vsel %vm2166_vm11, 1.0, %v2066_v10  ;;  %2845 = vrsqrt.f32 %v4208_v55  ;;  %vm1395_vm13 = vcmp.eq.f32.partialorder %v4183_v36, inf }
 0x13f   :  { %v1967_v20 = vmul.f32 %v1867_v32, %v1767_v51  ;;  %v1387_v58 = vmul.f32 %v2842_v3, %v4160_v28  ;;  %vm2366_vm12 = vcmp.ge.f32.partialorder %v2266_v53, 4e+09  ;;  %vm1397_vm14 = vcmp.eq.f32.partialorder %v4183_v36, 0.0 }
 0x140   :  { %v1398_v12 = vand.u32 2147483648, %v4183_v36  ;;  %v2466_v41 = vsel %vm2366_vm12, 4e+09, %v2266_v53  ;;  %v771_v43 = vadd.f32 %v671_v34, %v371_v39  ;;  %v372_v25 = vadd.f32 100000.0, %v272_v9 }
 0x141   :  { %v2067_v15 = vadd.f32 %v1967_v20, %v4141_v52  ;;  %v1389_v16 = vsel %vm1388_vm6, %v4160_v28, %v1387_v58  ;;  %v2566_v7 = vmul.f32 2.5e-10, %v2466_v41  ;;  %v672_v52 = vadd.f32 3e+08, %v572_v57 }
 0x142   :  { %v2844_v22 = vpop.eup %2843  ;;  %v1392_v48 = vsel %vm1390_vm7, %v1391_v47, %v1389_v16  ;;  %vm871_vm0 = vcmp.le.f32.partialorder %v771_v43, 0.0  ;;  %v173_v14 = vmul.f32 2e-05, %v73_v21  ;;  %vm1402_vm2 = vcmp.eq.f32.partialorder %v4208_v55, inf }
 0x143   :  { %vm2167_vm15 = vcmp.le.f32.partialorder %v2067_v15, 10.0  ;;  %v1768_v6 = vmul.f32 100.0, %v1392_v48  ;;  %v1394_v2 = vmul.f32 %v2844_v22, %v4183_v36  ;;  %2667 = vst.msk [vmem:[#allocation2 + $0x198] sm:$0xff] %vm2616_vm3, %v2566_v7  ;;  %v4229_v35 = vsel %vm871_vm0, 0.0, %v771_v43  ;;  %v1871_v43 = vld [vmem:[%s5203_s2 + $0x1c0] sm:$0xff] }
 0x144   :  { %v2267_v27 = vsel %vm2167_vm15, 1.0, %v2067_v15  ;;  %v772_v13 = vadd.f32 %v672_v52, %v372_v25  ;;  %2847 = vrsqrt.f32 %v4229_v35  ;;  %vm1404_vm4 = vcmp.eq.f32.partialorder %v4208_v55, 0.0  ;;  %v475_v48 = vld [vmem:[%s5202_s1 + $0x1e0] sm:$0xff] }
 0x145   :  { %vm2367_vm1 = vcmp.ge.f32.partialorder %v2267_v27, 4e+09  ;;  %v1968_v30 = vmul.f32 %v1868_v0, %v1768_v6  ;;  %v1396_v8 = vsel %vm1395_vm13, %v4183_v36, %v1394_v2  ;;  %v1405_v44 = vand.u32 2147483648, %v4208_v55  ;;  %v76_v0 = vld [vmem:[%s5201_s0 + $0x1e8] sm:$0xff] }
 0x146   :  { %v2467_v19 = vsel %vm2367_vm1, 4e+09, %v2267_v27  ;;  %v1399_v18 = vsel %vm1397_vm14, %v1398_v12, %v1396_v8  ;;  %vm872_vm5 = vcmp.le.f32.partialorder %v772_v13, 0.0  ;;  %v273_v45 = vadd.f32 100.0, %v173_v14  ;;  %v476_v6 = vld [vmem:[%s5202_s1 + $0x1e8] sm:$0xff]  ;;  %v477_v14 = vld [vmem:[%s5202_s1 + $0x1f0] sm:$0xff] }
 0x147   :  { %v2567_v40 = vmul.f32 2.5e-10, %v2467_v19  ;;  %v2068_v24 = vadd.f32 %v1968_v30, %v4160_v28  ;;  %v1769_v17 = vmul.f32 100.0, %v1399_v18  ;;  %v573_v5 = vmul.f32 2e+08, %v473_v4 }
 0x148   :  { %v2846_v33 = vpop.eup %2845  ;;  %v4253_v26 = vsel %vm872_vm5, 0.0, %v772_v13  ;;  %v174_v23 = vmul.f32 2e-05, %v74_v38  ;;  %v574_v47 = vmul.f32 2e+08, %v474_v56  ;;  %vm1409_vm8 = vcmp.eq.f32.partialorder %v4229_v35, inf }
 0x149   :  { %2668 = vst [vmem:[#allocation2 + $0x1a0] sm:$0xff] %v2567_v40  ;;  %vm2168_vm6 = vcmp.le.f32.partialorder %v2068_v24, 10.0  ;;  %v1969_v29 = vmul.f32 %v1869_v37, %v1769_v17  ;;  %v1401_v11 = vmul.f32 %v2846_v33, %v4208_v55  ;;  %2849 = vrsqrt.f32 %v4253_v26  ;;  %v77_v13 = vld [vmem:[%s5201_s0 + $0x1f0] sm:$0xff]  ;;  %v1872_v40 = vld [vmem:[%s5203_s2 + $0x1c8] sm:$0xff] }
 0x14a   :  { %v2268_v28 = vsel %vm2168_vm6, 1.0, %v2068_v24  ;;  %vm1411_vm9 = vcmp.eq.f32.partialorder %v4229_v35, 0.0  ;;  %v373_v54 = vadd.f32 100000.0, %v273_v45  ;;  %v673_v59 = vadd.f32 3e+08, %v573_v5 }
 0x14b   :  { %vm2368_vm7 = vcmp.ge.f32.partialorder %v2268_v28, 4e+09  ;;  %v2069_v49 = vadd.f32 %v1969_v29, %v4183_v36  ;;  %v1403_v50 = vsel %vm1402_vm2, %v4208_v55, %v1401_v11  ;;  %v274_v42 = vadd.f32 100.0, %v174_v23 }
 0x14c   :  { %v2468_v31 = vsel %vm2368_vm7, 4e+09, %v2268_v28  ;;  %v1406_v36 = vsel %vm1404_vm4, %v1405_v44, %v1403_v50  ;;  %v773_v63 = vadd.f32 %v673_v59, %v373_v54  ;;  %v674_v32 = vadd.f32 3e+08, %v574_v47 }
 0x14d   :  { %v2568_v61 = vmul.f32 2.5e-10, %v2468_v31  ;;  %vm2169_vm10 = vcmp.le.f32.partialorder %v2069_v49, 10.0  ;;  %v1770_v10 = vmul.f32 100.0, %v1406_v36  ;;  %v1412_v1 = vand.u32 2147483648, %v4229_v35 }
 0x14e   :  { %v2269_v62 = vsel %vm2169_vm10, 1.0, %v2069_v49  ;;  %v2848_v39 = vpop.eup %2847  ;;  %v374_v51 = vadd.f32 100000.0, %v274_v42  ;;  %v175_v34 = vmul.f32 2e-05, %v75_v60  ;;  %vm873_vm12 = vcmp.le.f32.partialorder %v773_v63, 0.0 }
 0x14f   :  { %2669 = vst.msk [vmem:[#allocation2 + $0x1a8] sm:$0xff] %vm2616_vm3, %v2568_v61  ;;  %vm2369_vm11 = vcmp.ge.f32.partialorder %v2269_v62, 4e+09  ;;  %v1970_v9 = vmul.f32 %v1870_v46, %v1770_v10  ;;  %v1408_v57 = vmul.f32 %v2848_v39, %v4229_v35  ;;  %v4274_v20 = vsel %vm873_vm12, 0.0, %v773_v63 }
 0x150   :  { %v2469_v3 = vsel %vm2369_vm11, 4e+09, %v2269_v62  ;;  %v774_v58 = vadd.f32 %v674_v32, %v374_v51  ;;  %2851 = vrsqrt.f32 %v4274_v20  ;;  %v275_v15 = vadd.f32 100.0, %v175_v34  ;;  %v1873_v32 = vld [vmem:[%s5203_s2 + $0x1d0] sm:$0xff] }
 0x151   :  { %v2569_v53 = vmul.f32 2.5e-10, %v2469_v3  ;;  %v2070_v12 = vadd.f32 %v1970_v9, %v4208_v55  ;;  %v1410_v41 = vsel %vm1409_vm8, %v4229_v35, %v1408_v57  ;;  %vm1416_vm13 = vcmp.eq.f32.partialorder %v4253_v26, inf  ;;  %v78_v57 = vld [vmem:[%s5201_s0 + $0x1f8] sm:$0xff] }
 0x152   :  { %v1413_v16 = vsel %vm1411_vm9, %v1412_v1, %v1410_v41  ;;  %vm1418_vm14 = vcmp.eq.f32.partialorder %v4253_v26, 0.0  ;;  %vm874_vm15 = vcmp.le.f32.partialorder %v774_v58, 0.0  ;;  %v1419_v22 = vand.u32 2147483648, %v4253_v26 }
 0x153   :  { %2670 = vst [vmem:[#allocation2 + $0x1b0] sm:$0xff] %v2569_v53  ;;  %v2850_v55 = vpop.eup %2849  ;;  %vm2170_vm0 = vcmp.le.f32.partialorder %v2070_v12, 10.0  ;;  %v1771_v21 = vmul.f32 100.0, %v1413_v16  ;;  %v4289_v7 = vsel %vm874_vm15, 0.0, %v774_v58  ;;  %vm1423_vm1 = vcmp.eq.f32.partialorder %v4274_v20, inf  ;;  %v478_v53 = vld [vmem:[%s5202_s1 + $0x1f8] sm:$0xff] }
 0x154   :  { %v2270_v25 = vsel %vm2170_vm0, 1.0, %v2070_v12  ;;  %v1415_v52 = vmul.f32 %v2850_v55, %v4253_v26  ;;  %2853 = vrsqrt.f32 %v4289_v7  ;;  %vm1425_vm4 = vcmp.eq.f32.partialorder %v4274_v20, 0.0  ;;  %v79_v16 = vld [vmem:[%s5201_s0 + $0x200] sm:$0xff] }
 0x155   :  { %vm2370_vm2 = vcmp.ge.f32.partialorder %v2270_v25, 4e+09  ;;  %v1971_v2 = vmul.f32 %v1871_v43, %v1771_v21  ;;  %v375_v27 = vadd.f32 100000.0, %v275_v15  ;;  %v575_v4 = vmul.f32 2e+08, %v475_v48  ;;  %v1874_v15 = vld [vmem:[%s5203_s2 + $0x1d8] sm:$0xff] }
 0x156   :  { %v2470_v30 = vsel %vm2370_vm2, 4e+09, %v2270_v25  ;;  %v1417_v8 = vsel %vm1416_vm13, %v4253_v26, %v1415_v52  ;;  %v176_v19 = vmul.f32 2e-05, %v76_v0  ;;  %v576_v24 = vmul.f32 2e+08, %v476_v6 }
 0x157   :  { %v2570_v18 = vmul.f32 2.5e-10, %v2470_v30  ;;  %v2071_v37 = vadd.f32 %v1971_v2, %v4229_v35  ;;  %v1420_v38 = vsel %vm1418_vm14, %v1419_v22, %v1417_v8  ;;  %v675_v56 = vadd.f32 3e+08, %v575_v4  ;;  %v479_v55 = vld [vmem:[%s5202_s1 + $0x200] sm:$0xff] }
 0x158   :  { %v1772_v17 = vmul.f32 100.0, %v1420_v38  ;;  %v276_v44 = vadd.f32 100.0, %v176_v19  ;;  %v177_v45 = vmul.f32 2e-05, %v77_v13  ;;  %v1426_v5 = vand.u32 2147483648, %v4274_v20 }
 0x159   :  { %2671 = vst.msk [vmem:[#allocation2 + $0x1b8] sm:$0xff] %vm2616_vm3, %v2570_v18  ;;  %vm2171_vm5 = vcmp.le.f32.partialorder %v2071_v37, 10.0  ;;  %v676_v33 = vadd.f32 3e+08, %v576_v24  ;;  %v577_v29 = vmul.f32 2e+08, %v477_v14  ;;  %v775_v28 = vadd.f32 %v675_v56, %v375_v27 }
 0x15a   :  { %v2271_v35 = vsel %vm2171_vm5, 1.0, %v2071_v37  ;;  %v1972_v23 = vmul.f32 %v1872_v40, %v1772_v17  ;;  %v376_v11 = vadd.f32 100000.0, %v276_v44  ;;  %v2852_v47 = vpop.eup %2851  ;;  %vm1430_vm7 = vcmp.eq.f32.partialorder %v4289_v7, inf  ;;  %v80_v14 = vld [vmem:[%s5201_s0 + $0x208] sm:$0xff] }
 0x15b   :  { %vm2371_vm6 = vcmp.ge.f32.partialorder %v2271_v35, 4e+09  ;;  %v277_v49 = vadd.f32 100.0, %v177_v45  ;;  %v677_v31 = vadd.f32 3e+08, %v577_v29  ;;  %v1422_v59 = vmul.f32 %v2852_v47, %v4274_v20 }
 0x15c   :  { %v2471_v50 = vsel %vm2371_vm6, 4e+09, %v2271_v35  ;;  %v2072_v54 = vadd.f32 %v1972_v23, %v4253_v26  ;;  %vm875_vm8 = vcmp.le.f32.partialorder %v775_v28, 0.0  ;;  %v776_v36 = vadd.f32 %v676_v33, %v376_v11  ;;  %v1875_v23 = vld [vmem:[%s5203_s2 + $0x1e0] sm:$0xff] }
 0x15d   :  { %v2571_v60 = vmul.f32 2.5e-10, %v2471_v50  ;;  %v4324_v61 = vsel %vm875_vm8, 0.0, %v775_v28  ;;  %v377_v46 = vadd.f32 100000.0, %v277_v49  ;;  %v1424_v62 = vsel %vm1423_vm1, %v4274_v20, %v1422_v59 }
 0x15e   :  { %v2854_v42 = vpop.eup %2853  ;;  %vm2172_vm9 = vcmp.le.f32.partialorder %v2072_v54, 10.0  ;;  %v1433_v10 = vand.u32 2147483648, %v4289_v7  ;;  %2855 = vrsqrt.f32 %v4324_v61  ;;  %v1427_v63 = vsel %vm1425_vm4, %v1426_v5, %v1424_v62 }
 0x15f   :  { %2672 = vst [vmem:[#allocation2 + $0x1c0] sm:$0xff] %v2571_v60  ;;  %v2272_v26 = vsel %vm2172_vm9, 1.0, %v2072_v54  ;;  %v1429_v39 = vmul.f32 %v2854_v42, %v4289_v7  ;;  %vm1432_vm10 = vcmp.eq.f32.partialorder %v4289_v7, 0.0  ;;  %v1773_v1 = vmul.f32 100.0, %v1427_v63  ;;  %v1876_v42 = vld [vmem:[%s5203_s2 + $0x1e8] sm:$0xff]  ;;  %v81_v63 = vld [vmem:[%s5201_s0 + $0x210] sm:$0xff] }
 0x160   :  { %vm2372_vm11 = vcmp.ge.f32.partialorder %v2272_v26, 4e+09  ;;  %vm876_vm12 = vcmp.le.f32.partialorder %v776_v36, 0.0  ;;  %v777_v9 = vadd.f32 %v677_v31, %v377_v46  ;;  %vm1437_vm13 = vcmp.eq.f32.partialorder %v4324_v61, inf }
 0x161   :  { %v2472_v51 = vsel %vm2372_vm11, 4e+09, %v2272_v26  ;;  %v1431_v34 = vsel %vm1430_vm7, %v4289_v7, %v1429_v39  ;;  %v4341_v3 = vsel %vm876_vm12, 0.0, %v776_v36  ;;  %v1973_v12 = vmul.f32 %v1873_v32, %v1773_v1 }
 0x162   :  { %v2572_v58 = vmul.f32 2.5e-10, %v2472_v51  ;;  %v1434_v41 = vsel %vm1432_vm10, %v1433_v10, %v1431_v34  ;;  %2857 = vrsqrt.f32 %v4341_v3  ;;  %vm1439_vm14 = vcmp.eq.f32.partialorder %v4324_v61, 0.0  ;;  %v481_v51 = vld [vmem:[%s5202_s1 + $0x210] sm:$0xff] }
 0x163   :  { %v1774_v43 = vmul.f32 100.0, %v1434_v41  ;;  %v2073_v21 = vadd.f32 %v1973_v12, %v4274_v20  ;;  %vm877_vm15 = vcmp.le.f32.partialorder %v777_v9, 0.0  ;;  %v178_v22 = vmul.f32 2e-05, %v78_v57  ;;  %v1877_v12 = vld [vmem:[%s5203_s2 + $0x1f0] sm:$0xff] }
 0x164   :  { %2673 = vst.msk [vmem:[#allocation2 + $0x1c8] sm:$0xff] %vm2616_vm3, %v2572_v58  ;;  %v578_v48 = vmul.f32 2e+08, %v478_v53  ;;  %v1440_v25 = vand.u32 2147483648, %v4324_v61  ;;  %v4364_v52 = vsel %vm877_vm15, 0.0, %v777_v9  ;;  %vm1444_vm1 = vcmp.eq.f32.partialorder %v4341_v3, inf }
 0x165   :  { %v1974_v0 = vmul.f32 %v1874_v15, %v1774_v43  ;;  %v179_v6 = vmul.f32 2e-05, %v79_v16  ;;  %vm2173_vm0 = vcmp.le.f32.partialorder %v2073_v21, 10.0  ;;  %2859 = vrsqrt.f32 %v4364_v52 }
 0x166   :  { %v579_v2 = vmul.f32 2e+08, %v479_v55  ;;  %v2273_v27 = vsel %vm2173_vm0, 1.0, %v2073_v21  ;;  %vm1446_vm2 = vcmp.eq.f32.partialorder %v4341_v3, 0.0  ;;  %v278_v20 = vadd.f32 100.0, %v178_v22 }
 0x167   :  { %v2074_v13 = vadd.f32 %v1974_v0, %v4289_v7  ;;  %vm2373_vm4 = vcmp.ge.f32.partialorder %v2273_v27, 4e+09  ;;  %v1447_v8 = vand.u32 2147483648, %v4341_v3  ;;  %v678_v4 = vadd.f32 3e+08, %v578_v48  ;;  %v480_v7 = vld [vmem:[%s5202_s1 + $0x208] sm:$0xff] }
 0x168   :  { %v2856_v30 = vpop.eup %2855  ;;  %v279_v19 = vadd.f32 100.0, %v179_v6  ;;  %v2473_v18 = vsel %vm2373_vm4, 4e+09, %v2273_v27  ;;  %v378_v38 = vadd.f32 100000.0, %v278_v20  ;;  %v679_v56 = vadd.f32 3e+08, %v579_v2 }
 0x169   :  { %vm2174_vm5 = vcmp.le.f32.partialorder %v2074_v13, 10.0  ;;  %v1436_v37 = vmul.f32 %v2856_v30, %v4324_v61  ;;  %v2573_v40 = vmul.f32 2.5e-10, %v2473_v18  ;;  %v180_v5 = vmul.f32 2e-05, %v80_v14  ;;  %v82_v2 = vld [vmem:[%s5201_s0 + $0x218] sm:$0xff] }
 0x16a   :  { %v2274_v24 = vsel %vm2174_vm5, 1.0, %v2074_v13  ;;  %v379_v17 = vadd.f32 100000.0, %v279_v19  ;;  %v778_v45 = vadd.f32 %v678_v4, %v378_v38  ;;  %v580_v11 = vmul.f32 2e+08, %v480_v7 }
 0x16b   :  { %vm2374_vm6 = vcmp.ge.f32.partialorder %v2274_v24, 4e+09  ;;  %v1438_v44 = vsel %vm1437_vm13, %v4324_v61, %v1436_v37  ;;  %2674 = vst [vmem:[#allocation2 + $0x1d0] sm:$0xff] %v2573_v40  ;;  %vm1451_vm8 = vcmp.eq.f32.partialorder %v4364_v52, inf  ;;  %v280_v54 = vadd.f32 100.0, %v180_v5 }
 0x16c   :  { %v2858_v33 = vpop.eup %2857  ;;  %v2474_v29 = vsel %vm2374_vm6, 4e+09, %v2274_v24  ;;  %v1441_v35 = vsel %vm1439_vm14, %v1440_v25, %v1438_v44  ;;  %v779_v28 = vadd.f32 %v679_v56, %v379_v17  ;;  %vm878_vm7 = vcmp.le.f32.partialorder %v778_v45, 0.0 }
 0x16d   :  { %v2574_v47 = vmul.f32 2.5e-10, %v2474_v29  ;;  %v1775_v49 = vmul.f32 100.0, %v1441_v35  ;;  %v1443_v31 = vmul.f32 %v2858_v33, %v4341_v3  ;;  %v4388_v50 = vsel %vm878_vm7, 0.0, %v778_v45  ;;  %v1878_v45 = vld [vmem:[%s5203_s2 + $0x1f8] sm:$0xff] }
 0x16e   :  { %vm879_vm9 = vcmp.le.f32.partialorder %v779_v28, 0.0  ;;  %vm1453_vm10 = vcmp.eq.f32.partialorder %v4364_v52, 0.0  ;;  %2861 = vrsqrt.f32 %v4388_v50  ;;  %v1454_v62 = vand.u32 2147483648, %v4364_v52 }
 0x16f   :  { %2675 = vst.msk [vmem:[#allocation2 + $0x1d8] sm:$0xff] %vm2616_vm3, %v2574_v47  ;;  %v1975_v59 = vmul.f32 %v1875_v23, %v1775_v49  ;;  %v1445_v60 = vsel %vm1444_vm1, %v4341_v3, %v1443_v31  ;;  %v2860_v36 = vpop.eup %2859  ;;  %v4402_v10 = vsel %vm879_vm9, 0.0, %v779_v28  ;;  %v680_v26 = vadd.f32 3e+08, %v580_v11  ;;  %v483_v28 = vld [vmem:[%s5202_s1 + $0x220] sm:$0xff]  ;;  %v84_v11 = vld [vmem:[%s5201_s0 + $0x228] sm:$0xff] }
 0x170   :  { %v1448_v46 = vsel %vm1446_vm2, %v1447_v8, %v1445_v60  ;;  %v1450_v1 = vmul.f32 %v2860_v36, %v4364_v52  ;;  %2863 = vrsqrt.f32 %v4402_v10  ;;  %vm1458_vm11 = vcmp.eq.f32.partialorder %v4388_v50, inf  ;;  %v83_v8 = vld [vmem:[%s5201_s0 + $0x220] sm:$0xff] }
 0x171   :  { %v2075_v32 = vadd.f32 %v1975_v59, %v4324_v61  ;;  %v1776_v39 = vmul.f32 100.0, %v1448_v46  ;;  %vm1460_vm12 = vcmp.eq.f32.partialorder %v4388_v50, 0.0  ;;  %v380_v34 = vadd.f32 100000.0, %v280_v54  ;;  %v1879_v31 = vld [vmem:[%s5203_s2 + $0x200] sm:$0xff]  ;;  %v484_v59 = vld [vmem:[%s5202_s1 + $0x228] sm:$0xff] }
 0x172   :  { %v1452_v61 = vsel %vm1451_vm8, %v4364_v52, %v1450_v1  ;;  %v181_v57 = vmul.f32 2e-05, %v81_v63  ;;  %v581_v15 = vmul.f32 2e+08, %v481_v51  ;;  %v1461_v22 = vand.u32 2147483648, %v4388_v50 }
 0x173   :  { %vm2175_vm13 = vcmp.le.f32.partialorder %v2075_v32, 10.0  ;;  %v1976_v9 = vmul.f32 %v1876_v42, %v1776_v39  ;;  %v1455_v58 = vsel %vm1453_vm10, %v1454_v62, %v1452_v61  ;;  %v780_v41 = vadd.f32 %v680_v26, %v380_v34  ;;  %v85_v42 = vld [vmem:[%s5201_s0 + $0x230] sm:$0xff] }
 0x174   :  { %v2275_v53 = vsel %vm2175_vm13, 1.0, %v2075_v32  ;;  %v1777_v43 = vmul.f32 100.0, %v1455_v58  ;;  %v281_v55 = vadd.f32 100.0, %v181_v57  ;;  %v681_v48 = vadd.f32 3e+08, %v581_v15 }
 0x175   :  { %vm2375_vm14 = vcmp.ge.f32.partialorder %v2275_v53, 4e+09  ;;  %v2076_v16 = vadd.f32 %v1976_v9, %v4341_v3  ;;  %vm880_vm15 = vcmp.le.f32.partialorder %v780_v41, 0.0  ;;  %vm1465_vm1 = vcmp.eq.f32.partialorder %v4402_v10, inf  ;;  %v482_v3 = vld [vmem:[%s5202_s1 + $0x218] sm:$0xff] }
 0x176   :  { %v2475_v21 = vsel %vm2375_vm14, 4e+09, %v2275_v53  ;;  %v1977_v25 = vmul.f32 %v1877_v12, %v1777_v43  ;;  %v4425_v6 = vsel %vm880_vm15, 0.0, %v780_v41  ;;  %vm1467_vm2 = vcmp.eq.f32.partialorder %v4402_v10, 0.0 }
 0x177   :  { %v2575_v0 = vmul.f32 2.5e-10, %v2475_v21  ;;  %vm2176_vm0 = vcmp.le.f32.partialorder %v2076_v16, 10.0  ;;  %2865 = vrsqrt.f32 %v4425_v6  ;;  %v1468_v14 = vand.u32 2147483648, %v4402_v10 }
 0x178   :  { %v2276_v27 = vsel %vm2176_vm0, 1.0, %v2076_v16  ;;  %v2862_v13 = vpop.eup %2861  ;;  %v2077_v20 = vadd.f32 %v1977_v25, %v4364_v52  ;;  %v381_v30 = vadd.f32 100000.0, %v281_v55  ;;  %vm1472_vm5 = vcmp.eq.f32.partialorder %v4425_v6, inf  ;;  %v1880_v55 = vld [vmem:[%s5203_s2 + $0x208] sm:$0xff] }
 0x179   :  { %2676 = vst [vmem:[#allocation2 + $0x1e0] sm:$0xff] %v2575_v0  ;;  %vm2376_vm4 = vcmp.ge.f32.partialorder %v2276_v27, 4e+09  ;;  %v1457_v19 = vmul.f32 %v2862_v13, %v4388_v50  ;;  %v182_v18 = vmul.f32 2e-05, %v82_v2  ;;  %vm1474_vm9 = vcmp.eq.f32.partialorder %v4425_v6, 0.0 }
 0x17a   :  { %v2476_v4 = vsel %vm2376_vm4, 4e+09, %v2276_v27  ;;  %v2864_v37 = vpop.eup %2863  ;;  %vm2177_vm6 = vcmp.le.f32.partialorder %v2077_v20, 10.0  ;;  %v781_v7 = vadd.f32 %v681_v48, %v381_v30  ;;  %v582_v40 = vmul.f32 2e+08, %v482_v3 }
 0x17b   :  { %v2576_v38 = vmul.f32 2.5e-10, %v2476_v4  ;;  %v2277_v24 = vsel %vm2177_vm6, 1.0, %v2077_v20  ;;  %v1459_v52 = vsel %vm1458_vm11, %v4388_v50, %v1457_v19  ;;  %v1464_v17 = vmul.f32 %v2864_v37, %v4402_v10  ;;  %v485_v4 = vld [vmem:[%s5202_s1 + $0x230] sm:$0xff]  ;;  %v86_v19 = vld [vmem:[%s5201_s0 + $0x238] sm:$0xff] }
 0x17c   :  { %v183_v56 = vmul.f32 2e-05, %v83_v8  ;;  %vm2377_vm7 = vcmp.ge.f32.partialorder %v2277_v24, 4e+09  ;;  %v1462_v44 = vsel %vm1460_vm12, %v1461_v22, %v1459_v52  ;;  %vm881_vm8 = vcmp.le.f32.partialorder %v781_v7, 0.0 }
 0x17d   :  { %2677 = vst.msk [vmem:[#allocation2 + $0x1e8] sm:$0xff] %vm2616_vm3, %v2576_v38  ;;  %v282_v5 = vadd.f32 100.0, %v182_v18  ;;  %v2477_v33 = vsel %vm2377_vm7, 4e+09, %v2277_v24  ;;  %v1778_v29 = vmul.f32 100.0, %v1462_v44  ;;  %v1466_v35 = vsel %vm1465_vm1, %v4402_v10, %v1464_v17 }
 0x17e   :  { %v4456_v23 = vsel %vm881_vm8, 0.0, %v781_v7  ;;  %v2577_v47 = vmul.f32 2.5e-10, %v2477_v33  ;;  %v1469_v49 = vsel %vm1467_vm2, %v1468_v14, %v1466_v35  ;;  %v682_v54 = vadd.f32 3e+08, %v582_v40 }
 0x17f   :  { %2867 = vrsqrt.f32 %v4456_v23  ;;  %v1978_v60 = vmul.f32 %v1878_v45, %v1778_v29  ;;  %v1779_v36 = vmul.f32 100.0, %v1469_v49  ;;  %v1475_v46 = vand.u32 2147483648, %v4425_v6  ;;  %v486_v45 = vld [vmem:[%s5202_s1 + $0x238] sm:$0xff]  ;;  %v487_v49 = vld [vmem:[%s5202_s1 + $0x240] sm:$0xff] }
 0x180   :  { %2678 = vst [vmem:[#allocation2 + $0x1f0] sm:$0xff] %v2577_v47  ;;  %vm1479_vm10 = vcmp.eq.f32.partialorder %v4456_v23, inf  ;;  %v382_v62 = vadd.f32 100000.0, %v282_v5  ;;  %v283_v26 = vadd.f32 100.0, %v183_v56  ;;  %v583_v63 = vmul.f32 2e+08, %v483_v28 }
 0x181   :  { %v184_v32 = vmul.f32 2e-05, %v84_v11  ;;  %v2866_v39 = vpop.eup %2865  ;;  %v2078_v1 = vadd.f32 %v1978_v60, %v4388_v50  ;;  %v1979_v51 = vmul.f32 %v1879_v31, %v1779_v36  ;;  %vm1481_vm11 = vcmp.eq.f32.partialorder %v4456_v23, 0.0  ;;  %v87_v47 = vld [vmem:[%s5201_s0 + $0x240] sm:$0xff] }
 0x182   :  { %v584_v34 = vmul.f32 2e+08, %v484_v59  ;;  %v1471_v9 = vmul.f32 %v2866_v39, %v4425_v6  ;;  %v782_v61 = vadd.f32 %v682_v54, %v382_v62  ;;  %v383_v57 = vadd.f32 100000.0, %v283_v26 }
 0x183   :  { %v683_v53 = vadd.f32 3e+08, %v583_v63  ;;  %vm2178_vm12 = vcmp.le.f32.partialorder %v2078_v1, 10.0  ;;  %v2079_v58 = vadd.f32 %v1979_v51, %v4402_v10  ;;  %v284_v12 = vadd.f32 100.0, %v184_v32 }
 0x184   :  { %v185_v41 = vmul.f32 2e-05, %v85_v42  ;;  %v2278_v15 = vsel %vm2178_vm12, 1.0, %v2078_v1  ;;  %v1473_v16 = vsel %vm1472_vm5, %v4425_v6, %v1471_v9  ;;  %vm882_vm13 = vcmp.le.f32.partialorder %v782_v61, 0.0  ;;  %v1882_v9 = vld [vmem:[%s5203_s2 + $0x218] sm:$0xff] }
 0x185   :  { %v783_v50 = vadd.f32 %v683_v53, %v383_v57  ;;  %vm2378_vm14 = vcmp.ge.f32.partialorder %v2278_v15, 4e+09  ;;  %vm2179_vm15 = vcmp.le.f32.partialorder %v2079_v58, 10.0  ;;  %v1476_v43 = vsel %vm1474_vm9, %v1475_v46, %v1473_v16  ;;  %v88_v53 = vld [vmem:[%s5201_s0 + $0x248] sm:$0xff] }
 0x186   :  { %v4491_v21 = vsel %vm882_vm13, 0.0, %v782_v61  ;;  %v2478_v10 = vsel %vm2378_vm14, 4e+09, %v2278_v15  ;;  %v2279_v22 = vsel %vm2179_vm15, 1.0, %v2079_v58  ;;  %v1780_v48 = vmul.f32 100.0, %v1476_v43  ;;  %v488_v16 = vld [vmem:[%s5202_s1 + $0x248] sm:$0xff] }
 0x187   :  { %2869 = vrsqrt.f32 %v4491_v21  ;;  %v2578_v0 = vmul.f32 2.5e-10, %v2478_v10  ;;  %vm2379_vm0 = vcmp.ge.f32.partialorder %v2279_v22, 4e+09  ;;  %v684_v25 = vadd.f32 3e+08, %v584_v34 }
 0x188   :  { %v2479_v27 = vsel %vm2379_vm0, 4e+09, %v2279_v22  ;;  %v1980_v3 = vmul.f32 %v1880_v55, %v1780_v48  ;;  %v1482_v13 = vand.u32 2147483648, %v4456_v23  ;;  %vm883_vm1 = vcmp.le.f32.partialorder %v783_v50, 0.0  ;;  %v1883_v48 = vld [vmem:[%s5203_s2 + $0x220] sm:$0xff] }
 0x189   :  { %v2868_v2 = vpop.eup %2867  ;;  %2679 = vst.msk [vmem:[#allocation2 + $0x1f8] sm:$0xff] %vm2616_vm3, %v2578_v0  ;;  %v2579_v20 = vmul.f32 2.5e-10, %v2479_v27  ;;  %v4497_v30 = vsel %vm883_vm1, 0.0, %v783_v50  ;;  %v384_v8 = vadd.f32 100000.0, %v284_v12  ;;  %vm1486_vm2 = vcmp.eq.f32.partialorder %v4491_v21, inf }
 0x18a   :  { %v1478_v14 = vmul.f32 %v2868_v2, %v4456_v23  ;;  %v2080_v18 = vadd.f32 %v1980_v3, %v4425_v6  ;;  %2871 = vrsqrt.f32 %v4497_v30  ;;  %vm1488_vm4 = vcmp.eq.f32.partialorder %v4491_v21, 0.0  ;;  %v1881_v6 = vld [vmem:[%s5203_s2 + $0x210] sm:$0xff] }
 0x18b   :  { %2680 = vst [vmem:[#allocation2 + $0x200] sm:$0xff] %v2579_v20  ;;  %v784_v38 = vadd.f32 %v684_v25, %v384_v8  ;;  %v285_v7 = vadd.f32 100.0, %v185_v41  ;;  %v585_v24 = vmul.f32 2e+08, %v485_v4  ;;  %v186_v52 = vmul.f32 2e-05, %v86_v19 }
 0x18c   :  { %v1480_v37 = vsel %vm1479_vm10, %v4456_v23, %v1478_v14  ;;  %vm2180_vm5 = vcmp.le.f32.partialorder %v2080_v18, 10.0  ;;  %v1489_v11 = vand.u32 2147483648, %v4491_v21  ;;  %vm1493_vm8 = vcmp.eq.f32.partialorder %v4497_v30, inf }
 0x18d   :  { %v1483_v40 = vsel %vm1481_vm11, %v1482_v13, %v1480_v37  ;;  %v2280_v17 = vsel %vm2180_vm5, 1.0, %v2080_v18  ;;  %vm884_vm6 = vcmp.le.f32.partialorder %v784_v38, 0.0  ;;  %v385_v44 = vadd.f32 100000.0, %v285_v7 }
 0x18e   :  { %v1781_v56 = vmul.f32 100.0, %v1483_v40  ;;  %vm2380_vm7 = vcmp.ge.f32.partialorder %v2280_v17, 4e+09  ;;  %v4520_v5 = vsel %vm884_vm6, 0.0, %v784_v38  ;;  %v685_v33 = vadd.f32 3e+08, %v585_v24 }
 0x18f   :  { %v286_v29 = vadd.f32 100.0, %v186_v52  ;;  %v2480_v35 = vsel %vm2380_vm7, 4e+09, %v2280_v17  ;;  %2873 = vrsqrt.f32 %v4520_v5  ;;  %vm1495_vm9 = vcmp.eq.f32.partialorder %v4497_v30, 0.0 }
 0x190   :  { %v1981_v28 = vmul.f32 %v1881_v6, %v1781_v56  ;;  %v2580_v54 = vmul.f32 2.5e-10, %v2480_v35  ;;  %v785_v59 = vadd.f32 %v685_v33, %v385_v44  ;;  %v1496_v46 = vand.u32 2147483648, %v4497_v30  ;;  %v1884_v6 = vld [vmem:[%s5203_s2 + $0x228] sm:$0xff] }
 0x191   :  { %v2870_v31 = vpop.eup %2869  ;;  %v586_v42 = vmul.f32 2e+08, %v486_v45  ;;  %v386_v62 = vadd.f32 100000.0, %v286_v29  ;;  %v187_v26 = vmul.f32 2e-05, %v87_v47  ;;  %vm1500_vm12 = vcmp.eq.f32.partialorder %v4520_v5, inf }
 0x192   :  { %v2081_v60 = vadd.f32 %v1981_v28, %v4456_v23  ;;  %v1485_v36 = vmul.f32 %v2870_v31, %v4491_v21  ;;  %2681 = vst.msk [vmem:[#allocation2 + $0x208] sm:$0xff] %vm2616_vm3, %v2580_v54  ;;  %vm885_vm10 = vcmp.le.f32.partialorder %v785_v59, 0.0  ;;  %v587_v63 = vmul.f32 2e+08, %v487_v49  ;;  %v489_v28 = vld [vmem:[%s5202_s1 + $0x250] sm:$0xff]  ;;  %v90_v31 = vld [vmem:[%s5201_s0 + $0x258] sm:$0xff] }
 0x193   :  { %v4539_v39 = vsel %vm885_vm10, 0.0, %v785_v59  ;;  %v686_v1 = vadd.f32 3e+08, %v586_v42  ;;  %vm1502_vm14 = vcmp.eq.f32.partialorder %v4520_v5, 0.0  ;;  %v1503_v12 = vand.u32 2147483648, %v4520_v5 }
 0x194   :  { %vm2181_vm11 = vcmp.le.f32.partialorder %v2081_v60, 10.0  ;;  %v1487_v32 = vsel %vm1486_vm2, %v4491_v21, %v1485_v36  ;;  %v2872_v23 = vpop.eup %2871  ;;  %2875 = vrsqrt.f32 %v4539_v39  ;;  %v287_v15 = vadd.f32 100.0, %v187_v26  ;;  %v1885_v36 = vld [vmem:[%s5203_s2 + $0x230] sm:$0xff] }
 0x195   :  { %v2281_v51 = vsel %vm2181_vm11, 1.0, %v2081_v60  ;;  %v1490_v34 = vsel %vm1488_vm4, %v1489_v11, %v1487_v32  ;;  %v1492_v57 = vmul.f32 %v2872_v23, %v4497_v30  ;;  %v786_v41 = vadd.f32 %v686_v1, %v386_v62 }
 0x196   :  { %vm2381_vm13 = vcmp.ge.f32.partialorder %v2281_v51, 4e+09  ;;  %v1782_v61 = vmul.f32 100.0, %v1490_v34  ;;  %v687_v10 = vadd.f32 3e+08, %v587_v63  ;;  %v387_v0 = vadd.f32 100000.0, %v287_v15 }
 0x197   :  { %v2481_v58 = vsel %vm2381_vm13, 4e+09, %v2281_v51  ;;  %v1494_v55 = vsel %vm1493_vm8, %v4497_v30, %v1492_v57  ;;  %vm886_vm15 = vcmp.le.f32.partialorder %v786_v41, 0.0  ;;  %v188_v25 = vmul.f32 2e-05, %v88_v53  ;;  %v91_v57 = vld [vmem:[%s5201_s0 + $0x260] sm:$0xff] }
 0x198   :  { %v2581_v50 = vmul.f32 2.5e-10, %v2481_v58  ;;  %v1982_v43 = vmul.f32 %v1882_v9, %v1782_v61  ;;  %v1497_v22 = vsel %vm1495_vm9, %v1496_v46, %v1494_v55  ;;  %v4566_v13 = vsel %vm886_vm15, 0.0, %v786_v41  ;;  %v490_v9 = vld [vmem:[%s5202_s1 + $0x258] sm:$0xff] }
 0x199   :  { %v2874_v2 = vpop.eup %2873  ;;  %v1783_v3 = vmul.f32 100.0, %v1497_v22  ;;  %v588_v20 = vmul.f32 2e+08, %v488_v16  ;;  %vm1507_vm0 = vcmp.eq.f32.partialorder %v4539_v39, inf  ;;  %vm1509_vm1 = vcmp.eq.f32.partialorder %v4539_v39, 0.0  ;;  %v1886_v41 = vld [vmem:[%s5203_s2 + $0x238] sm:$0xff] }
 0x19a   :  { %2682 = vst [vmem:[#allocation2 + $0x210] sm:$0xff] %v2581_v50  ;;  %v2082_v27 = vadd.f32 %v1982_v43, %v4491_v21  ;;  %v1499_v14 = vmul.f32 %v2874_v2, %v4520_v5  ;;  %2877 = vrsqrt.f32 %v4566_v13  ;;  %v1510_v4 = vand.u32 2147483648, %v4539_v39 }
 0x19b   :  { %v1983_v8 = vmul.f32 %v1883_v48, %v1783_v3  ;;  %v787_v19 = vadd.f32 %v687_v10, %v387_v0  ;;  %v288_v37 = vadd.f32 100.0, %v188_v25  ;;  %v688_v38 = vadd.f32 3e+08, %v588_v20  ;;  %v491_v10 = vld [vmem:[%s5202_s1 + $0x260] sm:$0xff] }
 0x19c   :  { %vm2182_vm2 = vcmp.le.f32.partialorder %v2082_v27, 10.0  ;;  %v1501_v21 = vsel %vm1500_vm12, %v4520_v5, %v1499_v14  ;;  %vm1514_vm7 = vcmp.eq.f32.partialorder %v4566_v13, inf  ;;  %vm1516_vm8 = vcmp.eq.f32.partialorder %v4566_v13, 0.0 }
 0x19d   :  { %v2282_v18 = vsel %vm2182_vm2, 1.0, %v2082_v27  ;;  %v2083_v7 = vadd.f32 %v1983_v8, %v4497_v30  ;;  %v1504_v40 = vsel %vm1502_vm14, %v1503_v12, %v1501_v21  ;;  %vm887_vm5 = vcmp.le.f32.partialorder %v787_v19, 0.0  ;;  %v89_v30 = vld [vmem:[%s5201_s0 + $0x250] sm:$0xff] }
 0x19e   :  { %vm2382_vm4 = vcmp.ge.f32.partialorder %v2282_v18, 4e+09  ;;  %v2876_v24 = vpop.eup %2875  ;;  %v1784_v17 = vmul.f32 100.0, %v1504_v40  ;;  %v4582_v56 = vsel %vm887_vm5, 0.0, %v787_v19  ;;  %v388_v44 = vadd.f32 100000.0, %v288_v37 }
 0x19f   :  { %v2482_v52 = vsel %vm2382_vm4, 4e+09, %v2282_v18  ;;  %vm2183_vm6 = vcmp.le.f32.partialorder %v2083_v7, 10.0  ;;  %v1506_v33 = vmul.f32 %v2876_v24, %v4539_v39  ;;  %2879 = vrsqrt.f32 %v4582_v56  ;;  %v92_v24 = vld [vmem:[%s5201_s0 + $0x268] sm:$0xff] }
 0x1a0   :  { %v2582_v45 = vmul.f32 2.5e-10, %v2482_v52  ;;  %v2283_v29 = vsel %vm2183_vm6, 1.0, %v2083_v7  ;;  %v1984_v35 = vmul.f32 %v1884_v6, %v1784_v17  ;;  %v1517_v47 = vand.u32 2147483648, %v4566_v13  ;;  %v1887_v7 = vld [vmem:[%s5203_s2 + $0x240] sm:$0xff] }
 0x1a1   :  { %vm2383_vm9 = vcmp.ge.f32.partialorder %v2283_v29, 4e+09  ;;  %v1508_v11 = vsel %vm1507_vm0, %v4539_v39, %v1506_v33  ;;  %v788_v49 = vadd.f32 %v688_v38, %v388_v44  ;;  %v189_v46 = vmul.f32 2e-05, %v89_v30 }
 0x1a2   :  { %2683 = vst.msk [vmem:[#allocation2 + $0x218] sm:$0xff] %vm2616_vm3, %v2582_v45  ;;  %v2483_v54 = vsel %vm2383_vm9, 4e+09, %v2283_v29  ;;  %v2084_v59 = vadd.f32 %v1984_v35, %v4520_v5  ;;  %v1511_v60 = vsel %vm1509_vm1, %v1510_v4, %v1508_v11  ;;  %v589_v26 = vmul.f32 2e+08, %v489_v28 }
 0x1a3   :  { %v2583_v42 = vmul.f32 2.5e-10, %v2483_v54  ;;  %v1785_v62 = vmul.f32 100.0, %v1511_v60  ;;  %vm888_vm10 = vcmp.le.f32.partialorder %v788_v49, 0.0  ;;  %v289_v1 = vadd.f32 100.0, %v189_v46  ;;  %v1888_v60 = vld [vmem:[%s5203_s2 + $0x248] sm:$0xff] }
 0x1a4   :  { %v2878_v63 = vpop.eup %2877  ;;  %vm2184_vm11 = vcmp.le.f32.partialorder %v2084_v59, 10.0  ;;  %v4608_v32 = vsel %vm888_vm10, 0.0, %v788_v49  ;;  %v190_v23 = vmul.f32 2e-05, %v90_v31  ;;  %vm1521_vm13 = vcmp.eq.f32.partialorder %v4582_v56, inf  ;;  %v492_v31 = vld [vmem:[%s5202_s1 + $0x268] sm:$0xff] }
 0x1a5   :  { %2684 = vst [vmem:[#allocation2 + $0x220] sm:$0xff] %v2583_v42  ;;  %v2284_v5 = vsel %vm2184_vm11, 1.0, %v2084_v59  ;;  %v1985_v51 = vmul.f32 %v1885_v36, %v1785_v62  ;;  %v1513_v34 = vmul.f32 %v2878_v63, %v4566_v13  ;;  %2881 = vrsqrt.f32 %v4608_v32  ;;  %v493_v36 = vld [vmem:[%s5202_s1 + $0x270] sm:$0xff] }
 0x1a6   :  { %vm2384_vm12 = vcmp.ge.f32.partialorder %v2284_v5, 4e+09  ;;  %vm1523_vm14 = vcmp.eq.f32.partialorder %v4582_v56, 0.0  ;;  %v1524_v61 = vand.u32 2147483648, %v4582_v56  ;;  %v389_v15 = vadd.f32 100000.0, %v289_v1 }
 0x1a7   :  { %v2484_v53 = vsel %vm2384_vm12, 4e+09, %v2284_v5  ;;  %v2085_v58 = vadd.f32 %v1985_v51, %v4539_v39  ;;  %v1515_v12 = vsel %vm1514_vm7, %v4566_v13, %v1513_v34  ;;  %v689_v43 = vadd.f32 3e+08, %v589_v26 }
 0x1a8   :  { %v2584_v16 = vmul.f32 2.5e-10, %v2484_v53  ;;  %v1518_v50 = vsel %vm1516_vm8, %v1517_v47, %v1515_v12  ;;  %v290_v55 = vadd.f32 100.0, %v190_v23  ;;  %v590_v48 = vmul.f32 2e+08, %v490_v9 }
 0x1a9   :  { %v2880_v39 = vpop.eup %2879  ;;  %vm2185_vm15 = vcmp.le.f32.partialorder %v2085_v58, 10.0  ;;  %v1786_v22 = vmul.f32 100.0, %v1518_v50  ;;  %v191_v0 = vmul.f32 2e-05, %v91_v57  ;;  %v789_v27 = vadd.f32 %v689_v43, %v389_v15  ;;  %v94_v15 = vld [vmem:[%s5201_s0 + $0x278] sm:$0xff] }
 0x1aa   :  { %2685 = vst.msk [vmem:[#allocation2 + $0x228] sm:$0xff] %vm2616_vm3, %v2584_v16  ;;  %v2285_v25 = vsel %vm2185_vm15, 1.0, %v2085_v58  ;;  %v1520_v2 = vmul.f32 %v2880_v39, %v4582_v56  ;;  %v390_v3 = vadd.f32 100000.0, %v290_v55  ;;  %v690_v14 = vadd.f32 3e+08, %v590_v48  ;;  %v494_v50 = vld [vmem:[%s5202_s1 + $0x278] sm:$0xff] }
 0x1ab   :  { %vm2385_vm0 = vcmp.ge.f32.partialorder %v2285_v25, 4e+09  ;;  %v1986_v20 = vmul.f32 %v1886_v41, %v1786_v22  ;;  %v291_v8 = vadd.f32 100.0, %v191_v0  ;;  %vm889_vm1 = vcmp.le.f32.partialorder %v789_v27, 0.0 }
 0x1ac   :  { %v2485_v4 = vsel %vm2385_vm0, 4e+09, %v2285_v25  ;;  %v1522_v19 = vsel %vm1521_vm13, %v4582_v56, %v1520_v2  ;;  %v591_v18 = vmul.f32 2e+08, %v491_v10  ;;  %v4644_v40 = vsel %vm889_vm1, 0.0, %v789_v27  ;;  %v1889_v25 = vld [vmem:[%s5203_s2 + $0x250] sm:$0xff] }
 0x1ad   :  { %v2585_v21 = vmul.f32 2.5e-10, %v2485_v4  ;;  %v2086_v37 = vadd.f32 %v1986_v20, %v4566_v13  ;;  %v1525_v38 = vsel %vm1523_vm14, %v1524_v61, %v1522_v19  ;;  %vm1528_vm2 = vcmp.eq.f32.partialorder %v4608_v32, inf }
 0x1ae   :  { %v1787_v6 = vmul.f32 100.0, %v1525_v38  ;;  %2883 = vrsqrt.f32 %v4644_v40  ;;  %vm1530_vm5 = vcmp.eq.f32.partialorder %v4608_v32, 0.0  ;;  %v1531_v13 = vand.u32 2147483648, %v4608_v32 }
 0x1af   :  { %v2882_v52 = vpop.eup %2881  ;;  %2686 = vst [vmem:[#allocation2 + $0x230] sm:$0xff] %v2585_v21  ;;  %vm2186_vm4 = vcmp.le.f32.partialorder %v2086_v37, 10.0  ;;  %v790_v17 = vadd.f32 %v690_v14, %v390_v3  ;;  %v691_v30 = vadd.f32 3e+08, %v591_v18  ;;  %v391_v29 = vadd.f32 100000.0, %v291_v8 }
 0x1b0   :  { %v2286_v44 = vsel %vm2186_vm4, 1.0, %v2086_v37  ;;  %v1987_v45 = vmul.f32 %v1887_v7, %v1787_v6  ;;  %v1527_v33 = vmul.f32 %v2882_v52, %v4608_v32  ;;  %v192_v35 = vmul.f32 2e-05, %v92_v24  ;;  %v95_v6 = vld [vmem:[%s5201_s0 + $0x280] sm:$0xff] }
 0x1b1   :  { %vm2386_vm6 = vcmp.ge.f32.partialorder %v2286_v44, 4e+09  ;;  %vm890_vm7 = vcmp.le.f32.partialorder %v790_v17, 0.0  ;;  %vm1535_vm9 = vcmp.eq.f32.partialorder %v4644_v40, inf  ;;  %v1538_v42 = vand.u32 2147483648, %v4644_v40  ;;  %v495_v24 = vld [vmem:[%s5202_s1 + $0x280] sm:$0xff] }
 0x1b2   :  { %v2486_v28 = vsel %vm2386_vm6, 4e+09, %v2286_v44  ;;  %v2087_v11 = vadd.f32 %v1987_v45, %v4582_v56  ;;  %v1529_v47 = vsel %vm1528_vm2, %v4608_v32, %v1527_v33  ;;  %v4658_v49 = vsel %vm890_vm7, 0.0, %v790_v17  ;;  %v93_v56 = vld [vmem:[%s5201_s0 + $0x270] sm:$0xff]  ;;  %v1890_v17 = vld [vmem:[%s5203_s2 + $0x258] sm:$0xff] }
 0x1b3   :  { %v2586_v54 = vmul.f32 2.5e-10, %v2486_v28  ;;  %v1532_v59 = vsel %vm1530_vm5, %v1531_v13, %v1529_v47  ;;  %2885 = vrsqrt.f32 %v4658_v49  ;;  %v791_v26 = vadd.f32 %v691_v30, %v391_v29 }
 0x1b4   :  { %vm2187_vm8 = vcmp.le.f32.partialorder %v2087_v11, 10.0  ;;  %v1788_v46 = vmul.f32 100.0, %v1532_v59  ;;  %v292_v63 = vadd.f32 100.0, %v192_v35  ;;  %v592_v1 = vmul.f32 2e+08, %v492_v31 }
 0x1b5   :  { %2687 = vst.msk [vmem:[#allocation2 + $0x238] sm:$0xff] %vm2616_vm3, %v2586_v54  ;;  %v2287_v62 = vsel %vm2187_vm8, 1.0, %v2087_v11  ;;  %v193_v5 = vmul.f32 2e-05, %v93_v56  ;;  %v593_v51 = vmul.f32 2e+08, %v493_v36 }
 0x1b6   :  { %vm2387_vm10 = vcmp.ge.f32.partialorder %v2287_v62, 4e+09  ;;  %v1988_v23 = vmul.f32 %v1888_v60, %v1788_v46  ;;  %vm891_vm11 = vcmp.le.f32.partialorder %v791_v26, 0.0  ;;  %v392_v9 = vadd.f32 100000.0, %v292_v63 }
 0x1b7   :  { %v2487_v34 = vsel %vm2387_vm10, 4e+09, %v2287_v62  ;;  %v692_v61 = vadd.f32 3e+08, %v592_v1  ;;  %v4679_v12 = vsel %vm891_vm11, 0.0, %v791_v26  ;;  %v293_v41 = vadd.f32 100.0, %v193_v5 }
 0x1b8   :  { %v2884_v57 = vpop.eup %2883  ;;  %v2587_v53 = vmul.f32 2.5e-10, %v2487_v34  ;;  %v2088_v58 = vadd.f32 %v1988_v23, %v4608_v32  ;;  %vm1537_vm12 = vcmp.eq.f32.partialorder %v4644_v40, 0.0  ;;  %vm1542_vm13 = vcmp.eq.f32.partialorder %v4658_v49, inf  ;;  %v1891_v62 = vld [vmem:[%s5203_s2 + $0x260] sm:$0xff]  ;;  %v496_v5 = vld [vmem:[%s5202_s1 + $0x288] sm:$0xff] }
 0x1b9   :  { %v1534_v16 = vmul.f32 %v2884_v57, %v4644_v40  ;;  %2887 = vrsqrt.f32 %v4679_v12  ;;  %v1545_v32 = vand.u32 2147483648, %v4658_v49  ;;  %v792_v43 = vadd.f32 %v692_v61, %v392_v9 }
 0x1ba   :  { %2688 = vst [vmem:[#allocation2 + $0x240] sm:$0xff] %v2587_v53  ;;  %vm2188_vm14 = vcmp.le.f32.partialorder %v2088_v58, 10.0  ;;  %v393_v55 = vadd.f32 100000.0, %v293_v41  ;;  %v693_v22 = vadd.f32 3e+08, %v593_v51  ;;  %vm1544_vm1 = vcmp.eq.f32.partialorder %v4658_v49, 0.0 }
 0x1bb   :  { %v2288_v10 = vsel %vm2188_vm14, 1.0, %v2088_v58  ;;  %v1536_v39 = vsel %vm1535_vm9, %v4644_v40, %v1534_v16  ;;  %v194_v48 = vmul.f32 2e-05, %v94_v15  ;;  %vm892_vm0 = vcmp.le.f32.partialorder %v792_v43, 0.0  ;;  %v97_v51 = vld [vmem:[%s5201_s0 + $0x290] sm:$0xff] }
 0x1bc   :  { %vm2388_vm15 = vcmp.ge.f32.partialorder %v2288_v10, 4e+09  ;;  %v1539_v0 = vsel %vm1537_vm12, %v1538_v42, %v1536_v39  ;;  %v594_v2 = vmul.f32 2e+08, %v494_v50  ;;  %v4698_v14 = vsel %vm892_vm0, 0.0, %v792_v43  ;;  %v1892_v39 = vld [vmem:[%s5203_s2 + $0x268] sm:$0xff] }
 0x1bd   :  { %v2886_v27 = vpop.eup %2885  ;;  %v2488_v3 = vsel %vm2388_vm15, 4e+09, %v2288_v10  ;;  %v1789_v20 = vmul.f32 100.0, %v1539_v0  ;;  %v793_v8 = vadd.f32 %v693_v22, %v393_v55  ;;  %2889 = vrsqrt.f32 %v4698_v14 }
 0x1be   :  { %v2588_v4 = vmul.f32 2.5e-10, %v2488_v3  ;;  %v1541_v19 = vmul.f32 %v2886_v27, %v4658_v49  ;;  %vm1549_vm2 = vcmp.eq.f32.partialorder %v4679_v12, inf  ;;  %v294_v38 = vadd.f32 100.0, %v194_v48 }
 0x1bf   :  { %v1989_v18 = vmul.f32 %v1889_v25, %v1789_v20  ;;  %vm893_vm4 = vcmp.le.f32.partialorder %v793_v8, 0.0  ;;  %v694_v7 = vadd.f32 3e+08, %v594_v2  ;;  %vm1551_vm5 = vcmp.eq.f32.partialorder %v4679_v12, 0.0 }
 0x1c0   :  { %2689 = vst.msk [vmem:[#allocation2 + $0x248] sm:$0xff] %vm2616_vm3, %v2588_v4  ;;  %v1543_v21 = vsel %vm1542_vm13, %v4658_v49, %v1541_v19  ;;  %v4708_v37 = vsel %vm893_vm4, 0.0, %v793_v8  ;;  %v1552_v45 = vand.u32 2147483648, %v4679_v12  ;;  %vm1556_vm6 = vcmp.eq.f32.partialorder %v4698_v14, inf  ;;  %v1893_v4 = vld [vmem:[%s5203_s2 + $0x270] sm:$0xff] }
 0x1c1   :  { %v2089_v52 = vadd.f32 %v1989_v18, %v4644_v40  ;;  %v1546_v13 = vsel %vm1544_vm1, %v1545_v32, %v1543_v21  ;;  %2891 = vrsqrt.f32 %v4708_v37  ;;  %v394_v33 = vadd.f32 100000.0, %v294_v38  ;;  %v497_v19 = vld [vmem:[%s5202_s1 + $0x290] sm:$0xff]  ;;  %v98_v21 = vld [vmem:[%s5201_s0 + $0x298] sm:$0xff] }
 0x1c2   :  { %v1790_v44 = vmul.f32 100.0, %v1546_v13  ;;  %vm1558_vm8 = vcmp.eq.f32.partialorder %v4698_v14, 0.0  ;;  %v195_v40 = vmul.f32 2e-05, %v95_v6  ;;  %v595_v29 = vmul.f32 2e+08, %v495_v24 }
 0x1c3   :  { %v2888_v30 = vpop.eup %2887  ;;  %vm2189_vm7 = vcmp.le.f32.partialorder %v2089_v52, 10.0  ;;  %v794_v47 = vadd.f32 %v694_v7, %v394_v33  ;;  %v1559_v31 = vand.u32 2147483648, %v4698_v14  ;;  %vm1563_vm12 = vcmp.eq.f32.partialorder %v4708_v37, inf }
 0x1c4   :  { %v2289_v35 = vsel %vm2189_vm7, 1.0, %v2089_v52  ;;  %v1990_v28 = vmul.f32 %v1890_v17, %v1790_v44  ;;  %v1548_v11 = vmul.f32 %v2888_v30, %v4679_v12  ;;  %v295_v54 = vadd.f32 100.0, %v195_v40  ;;  %v498_v52 = vld [vmem:[%s5202_s1 + $0x298] sm:$0xff] }
 0x1c5   :  { %vm2389_vm9 = vcmp.ge.f32.partialorder %v2289_v35, 4e+09  ;;  %v695_v59 = vadd.f32 3e+08, %v595_v29  ;;  %vm894_vm10 = vcmp.le.f32.partialorder %v794_v47, 0.0  ;;  %vm1565_vm13 = vcmp.eq.f32.partialorder %v4708_v37, 0.0 }
 0x1c6   :  { %v2489_v60 = vsel %vm2389_vm9, 4e+09, %v2289_v35  ;;  %v2090_v56 = vadd.f32 %v1990_v28, %v4658_v49  ;;  %v1550_v36 = vsel %vm1549_vm2, %v4679_v12, %v1548_v11  ;;  %v4736_v26 = vsel %vm894_vm10, 0.0, %v794_v47  ;;  %v96_v49 = vld [vmem:[%s5201_s0 + $0x288] sm:$0xff] }
 0x1c7   :  { %v2589_v46 = vmul.f32 2.5e-10, %v2489_v60  ;;  %v1553_v42 = vsel %vm1551_vm5, %v1552_v45, %v1550_v36  ;;  %v395_v63 = vadd.f32 100000.0, %v295_v54  ;;  %v2890_v1 = vpop.eup %2889  ;;  %2893 = vrsqrt.f32 %v4736_v26  ;;  %v1894_v60 = vld [vmem:[%s5203_s2 + $0x278] sm:$0xff] }
 0x1c8   :  { %vm2190_vm11 = vcmp.le.f32.partialorder %v2090_v56, 10.0  ;;  %v1791_v23 = vmul.f32 100.0, %v1553_v42  ;;  %v1555_v9 = vmul.f32 %v2890_v1, %v4698_v14  ;;  %v1566_v61 = vand.u32 2147483648, %v4708_v37  ;;  %v99_v42 = vld [vmem:[%s5201_s0 + $0x2a0] sm:$0xff] }
 0x1c9   :  { %2690 = vst [vmem:[#allocation2 + $0x250] sm:$0xff] %v2589_v46  ;;  %v2290_v34 = vsel %vm2190_vm11, 1.0, %v2090_v56  ;;  %v795_v53 = vadd.f32 %v695_v59, %v395_v63  ;;  %v196_v58 = vmul.f32 2e-05, %v96_v49  ;;  %v596_v50 = vmul.f32 2e+08, %v496_v5 }
 0x1ca   :  { %vm2390_vm14 = vcmp.ge.f32.partialorder %v2290_v34, 4e+09  ;;  %v1991_v57 = vmul.f32 %v1891_v62, %v1791_v23  ;;  %v1557_v16 = vsel %vm1556_vm6, %v4698_v14, %v1555_v9  ;;  %v197_v32 = vmul.f32 2e-05, %v97_v51  ;;  %v100_v62 = vld [vmem:[%s5201_s0 + $0x2a8] sm:$0xff]  ;;  %v499_v49 = vld [vmem:[%s5202_s1 + $0x2a0] sm:$0xff] }
 0x1cb   :  { %v2892_v41 = vpop.eup %2891  ;;  %v2490_v15 = vsel %vm2390_vm14, 4e+09, %v2290_v34  ;;  %v1560_v10 = vsel %vm1558_vm8, %v1559_v31, %v1557_v16  ;;  %vm895_vm15 = vcmp.le.f32.partialorder %v795_v53, 0.0  ;;  %v296_v0 = vadd.f32 100.0, %v196_v58 }
 0x1cc   :  { %v2590_v43 = vmul.f32 2.5e-10, %v2490_v15  ;;  %v2091_v55 = vadd.f32 %v1991_v57, %v4679_v12  ;;  %v1562_v22 = vmul.f32 %v2892_v41, %v4708_v37  ;;  %v1792_v48 = vmul.f32 100.0, %v1560_v10 }
 0x1cd   :  { %v696_v25 = vadd.f32 3e+08, %v596_v50  ;;  %v4766_v2 = vsel %vm895_vm15, 0.0, %v795_v53  ;;  %v297_v27 = vadd.f32 100.0, %v197_v32  ;;  %vm1570_vm2 = vcmp.eq.f32.partialorder %v4736_v26, inf }
 0x1ce   :  { %2691 = vst.msk [vmem:[#allocation2 + $0x258] sm:$0xff] %vm2616_vm3, %v2590_v43  ;;  %vm2191_vm0 = vcmp.le.f32.partialorder %v2091_v55, 10.0  ;;  %v1564_v12 = vsel %vm1563_vm12, %v4708_v37, %v1562_v22  ;;  %v1992_v20 = vmul.f32 %v1892_v39, %v1792_v48  ;;  %2895 = vrsqrt.f32 %v4766_v2 }
 0x1cf   :  { %v2291_v3 = vsel %vm2191_vm0, 1.0, %v2091_v55  ;;  %v1567_v8 = vsel %vm1565_vm13, %v1566_v61, %v1564_v12  ;;  %vm1572_vm4 = vcmp.eq.f32.partialorder %v4736_v26, 0.0  ;;  %v1573_v6 = vand.u32 2147483648, %v4736_v26 }
 0x1d0   :  { %vm2391_vm1 = vcmp.ge.f32.partialorder %v2291_v3, 4e+09  ;;  %v1793_v18 = vmul.f32 100.0, %v1567_v8  ;;  %v2092_v7 = vadd.f32 %v1992_v20, %v4698_v14  ;;  %v396_v24 = vadd.f32 100000.0, %v296_v0  ;;  %v101_v20 = vld [vmem:[%s5201_s0 + $0x2b0] sm:$0xff] }
 0x1d1   :  { %v2491_v38 = vsel %vm2391_vm1, 4e+09, %v2291_v3  ;;  %v2894_v13 = vpop.eup %2893  ;;  %v397_v45 = vadd.f32 100000.0, %v297_v27  ;;  %v597_v33 = vmul.f32 2e+08, %v497_v19  ;;  %vm1577_vm10 = vcmp.eq.f32.partialorder %v4766_v2, inf }
 0x1d2   :  { %v2591_v17 = vmul.f32 2.5e-10, %v2491_v38  ;;  %v1993_v44 = vmul.f32 %v1893_v4, %v1793_v18  ;;  %vm2192_vm5 = vcmp.le.f32.partialorder %v2092_v7, 10.0  ;;  %v1569_v30 = vmul.f32 %v2894_v13, %v4736_v26  ;;  %v500_v3 = vld [vmem:[%s5202_s1 + $0x2a8] sm:$0xff]  ;;  %v501_v18 = vld [vmem:[%s5202_s1 + $0x2b0] sm:$0xff] }
 0x1d3   :  { %v796_v40 = vadd.f32 %v696_v25, %v396_v24  ;;  %v198_v29 = vmul.f32 2e-05, %v98_v21  ;;  %v2292_v35 = vsel %vm2192_vm5, 1.0, %v2092_v7  ;;  %v697_v28 = vadd.f32 3e+08, %v597_v33 }
 0x1d4   :  { %2692 = vst [vmem:[#allocation2 + $0x260] sm:$0xff] %v2591_v17  ;;  %v2093_v14 = vadd.f32 %v1993_v44, %v4708_v37  ;;  %v598_v11 = vmul.f32 2e+08, %v498_v52  ;;  %vm2392_vm6 = vcmp.ge.f32.partialorder %v2292_v35, 4e+09  ;;  %v1571_v47 = vsel %vm1570_vm2, %v4736_v26, %v1569_v30 }
 0x1d5   :  { %vm896_vm7 = vcmp.le.f32.partialorder %v796_v40, 0.0  ;;  %v298_v31 = vadd.f32 100.0, %v198_v29  ;;  %v2492_v54 = vsel %vm2392_vm6, 4e+09, %v2292_v35  ;;  %v1574_v59 = vsel %vm1572_vm4, %v1573_v6, %v1571_v47  ;;  %v102_v35 = vld [vmem:[%s5201_s0 + $0x2b8] sm:$0xff] }
 0x1d6   :  { %vm2193_vm8 = vcmp.le.f32.partialorder %v2093_v14, 10.0  ;;  %v4797_v56 = vsel %vm896_vm7, 0.0, %v796_v40  ;;  %v2592_v37 = vmul.f32 2.5e-10, %v2492_v54  ;;  %v1794_v46 = vmul.f32 100.0, %v1574_v59 }
 0x1d7   :  { %v2293_v36 = vsel %vm2193_vm8, 1.0, %v2093_v14  ;;  %2897 = vrsqrt.f32 %v4797_v56  ;;  %vm1579_vm11 = vcmp.eq.f32.partialorder %v4766_v2, 0.0  ;;  %v1580_v63 = vand.u32 2147483648, %v4766_v2 }
 0x1d8   :  { %vm2393_vm9 = vcmp.ge.f32.partialorder %v2293_v36, 4e+09  ;;  %v2896_v1 = vpop.eup %2895  ;;  %2693 = vst.msk [vmem:[#allocation2 + $0x268] sm:$0xff] %vm2616_vm3, %v2592_v37  ;;  %v1994_v5 = vmul.f32 %v1894_v60, %v1794_v46  ;;  %v797_v51 = vadd.f32 %v697_v28, %v397_v45  ;;  %v398_v34 = vadd.f32 100000.0, %v298_v31  ;;  %v1896_v45 = vld [vmem:[%s5203_s2 + $0x288] sm:$0xff] }
 0x1d9   :  { %v2493_v23 = vsel %vm2393_vm9, 4e+09, %v2293_v36  ;;  %v1576_v61 = vmul.f32 %v2896_v1, %v4766_v2  ;;  %v698_v57 = vadd.f32 3e+08, %v598_v11  ;;  %v199_v53 = vmul.f32 2e-05, %v99_v42 }
 0x1da   :  { %v2593_v9 = vmul.f32 2.5e-10, %v2493_v23  ;;  %v2094_v58 = vadd.f32 %v1994_v5, %v4736_v26  ;;  %vm897_vm12 = vcmp.le.f32.partialorder %v797_v51, 0.0  ;;  %v599_v41 = vmul.f32 2e+08, %v499_v49  ;;  %v1895_v26 = vld [vmem:[%s5203_s2 + $0x280] sm:$0xff] }
 0x1db   :  { %v200_v15 = vmul.f32 2e-05, %v100_v62  ;;  %v1578_v16 = vsel %vm1577_vm10, %v4766_v2, %v1576_v61  ;;  %v4818_v50 = vsel %vm897_vm12, 0.0, %v797_v51  ;;  %v798_v32 = vadd.f32 %v698_v57, %v398_v34  ;;  %v502_v49 = vld [vmem:[%s5202_s1 + $0x2b8] sm:$0xff]  ;;  %v1897_v5 = vld [vmem:[%s5203_s2 + $0x290] sm:$0xff] }
 0x1dc   :  { %2694 = vst [vmem:[#allocation2 + $0x270] sm:$0xff] %v2593_v9  ;;  %v299_v43 = vadd.f32 100.0, %v199_v53  ;;  %vm2194_vm13 = vcmp.le.f32.partialorder %v2094_v58, 10.0  ;;  %v1581_v55 = vsel %vm1579_vm11, %v1580_v63, %v1578_v16  ;;  %2899 = vrsqrt.f32 %v4818_v50 }
 0x1dd   :  { %v2294_v10 = vsel %vm2194_vm13, 1.0, %v2094_v58  ;;  %v1795_v39 = vmul.f32 100.0, %v1581_v55  ;;  %vm1584_vm14 = vcmp.eq.f32.partialorder %v4797_v56, inf  ;;  %vm898_vm0 = vcmp.le.f32.partialorder %v798_v32, 0.0  ;;  %v1898_v55 = vld [vmem:[%s5203_s2 + $0x298] sm:$0xff] }
 0x1de   :  { %vm2394_vm15 = vcmp.ge.f32.partialorder %v2294_v10, 4e+09  ;;  %v399_v22 = vadd.f32 100000.0, %v299_v43  ;;  %v699_v48 = vadd.f32 3e+08, %v599_v41  ;;  %v4827_v12 = vsel %vm898_vm0, 0.0, %v798_v32 }
 0x1df   :  { %v2494_v0 = vsel %vm2394_vm15, 4e+09, %v2294_v10  ;;  %v1995_v25 = vmul.f32 %v1895_v26, %v1795_v39  ;;  %v300_v27 = vadd.f32 100.0, %v200_v15  ;;  %vm1586_vm1 = vcmp.eq.f32.partialorder %v4797_v56, 0.0 }
 0x1e0   :  { %v2594_v4 = vmul.f32 2.5e-10, %v2494_v0  ;;  %v1587_v19 = vand.u32 2147483648, %v4797_v56  ;;  %2901 = vrsqrt.f32 %v4827_v12  ;;  %vm1591_vm2 = vcmp.eq.f32.partialorder %v4818_v50, inf }
 0x1e1   :  { %v2898_v8 = vpop.eup %2897  ;;  %v2095_v21 = vadd.f32 %v1995_v25, %v4766_v2  ;;  %v799_v7 = vadd.f32 %v699_v48, %v399_v22  ;;  %vm1593_vm4 = vcmp.eq.f32.partialorder %v4818_v50, 0.0  ;;  %v400_v6 = vadd.f32 100000.0, %v300_v27  ;;  %v503_v25 = vld [vmem:[%s5202_s1 + $0x2c0] sm:$0xff] }
 0x1e2   :  { %v1583_v38 = vmul.f32 %v2898_v8, %v4797_v56  ;;  %2695 = vst.msk [vmem:[#allocation2 + $0x278] sm:$0xff] %vm2616_vm3, %v2594_v4  ;;  %v600_v24 = vmul.f32 2e+08, %v500_v3  ;;  %v201_v52 = vmul.f32 2e-05, %v101_v20  ;;  %v1594_v29 = vand.u32 2147483648, %v4818_v50 }
 0x1e3   :  { %vm2195_vm5 = vcmp.le.f32.partialorder %v2095_v21, 10.0  ;;  %vm899_vm6 = vcmp.le.f32.partialorder %v799_v7, 0.0  ;;  %v601_v17 = vmul.f32 2e+08, %v501_v18  ;;  %vm1598_vm8 = vcmp.eq.f32.partialorder %v4827_v12, inf }
 0x1e4   :  { %v1585_v13 = vsel %vm1584_vm14, %v4797_v56, %v1583_v38  ;;  %v2295_v2 = vsel %vm2195_vm5, 1.0, %v2095_v21  ;;  %v4854_v33 = vsel %vm899_vm6, 0.0, %v799_v7  ;;  %v700_v30 = vadd.f32 3e+08, %v600_v24  ;;  %v1899_v7 = vld [vmem:[%s5203_s2 + $0x2a0] sm:$0xff] }
 0x1e5   :  { %v1588_v44 = vsel %vm1586_vm1, %v1587_v19, %v1585_v13  ;;  %vm2395_vm7 = vcmp.ge.f32.partialorder %v2295_v2, 4e+09  ;;  %2903 = vrsqrt.f32 %v4854_v33  ;;  %vm1600_vm9 = vcmp.eq.f32.partialorder %v4827_v12, 0.0 }
 0x1e6   :  { %v1796_v40 = vmul.f32 100.0, %v1588_v44  ;;  %v2900_v14 = vpop.eup %2899  ;;  %v2495_v28 = vsel %vm2395_vm7, 4e+09, %v2295_v2  ;;  %v800_v11 = vadd.f32 %v700_v30, %v400_v6  ;;  %v301_v59 = vadd.f32 100.0, %v201_v52 }
 0x1e7   :  { %v2595_v47 = vmul.f32 2.5e-10, %v2495_v28  ;;  %v1590_v54 = vmul.f32 %v2900_v14, %v4818_v50  ;;  %v1601_v60 = vand.u32 2147483648, %v4827_v12  ;;  %v701_v37 = vadd.f32 3e+08, %v601_v17  ;;  %v104_v14 = vld [vmem:[%s5201_s0 + $0x2c8] sm:$0xff] }
 0x1e8   :  { %v1996_v31 = vmul.f32 %v1896_v45, %v1796_v40  ;;  %vm900_vm10 = vcmp.le.f32.partialorder %v800_v11, 0.0  ;;  %v202_v36 = vmul.f32 2e-05, %v102_v35  ;;  %v401_v63 = vadd.f32 100000.0, %v301_v59  ;;  %v504_v28 = vld [vmem:[%s5202_s1 + $0x2c8] sm:$0xff] }
 0x1e9   :  { %2696 = vst [vmem:[#allocation2 + $0x280] sm:$0xff] %v2595_v47  ;;  %v1592_v42 = vsel %vm1591_vm2, %v4818_v50, %v1590_v54  ;;  %v4869_v62 = vsel %vm900_vm10, 0.0, %v800_v11  ;;  %vm1605_vm11 = vcmp.eq.f32.partialorder %v4854_v33, inf  ;;  %vm1607_vm12 = vcmp.eq.f32.partialorder %v4854_v33, 0.0  ;;  %v1900_v54 = vld [vmem:[%s5203_s2 + $0x2a8] sm:$0xff] }
 0x1ea   :  { %v2096_v46 = vadd.f32 %v1996_v31, %v4797_v56  ;;  %v2902_v1 = vpop.eup %2901  ;;  %v1595_v23 = vsel %vm1593_vm4, %v1594_v29, %v1592_v42  ;;  %2905 = vrsqrt.f32 %v4869_v62  ;;  %v103_v56 = vld [vmem:[%s5201_s0 + $0x2c0] sm:$0xff]  ;;  %v1608_v9 = vand.u32 2147483648, %v4854_v33 }
 0x1eb   :  { %v1797_v51 = vmul.f32 100.0, %v1595_v23  ;;  %v1597_v34 = vmul.f32 %v2902_v1, %v4827_v12  ;;  %v801_v57 = vadd.f32 %v701_v37, %v401_v63  ;;  %v302_v53 = vadd.f32 100.0, %v202_v36  ;;  %v105_v23 = vld [vmem:[%s5201_s0 + $0x2d0] sm:$0xff] }
 0x1ec   :  { %vm2196_vm13 = vcmp.le.f32.partialorder %v2096_v46, 10.0  ;;  %v602_v58 = vmul.f32 2e+08, %v502_v49  ;;  %v203_v16 = vmul.f32 2e-05, %v103_v56  ;;  %vm1612_vm0 = vcmp.eq.f32.partialorder %v4869_v62, inf }
 0x1ed   :  { %v2296_v61 = vsel %vm2196_vm13, 1.0, %v2096_v46  ;;  %v1997_v41 = vmul.f32 %v1897_v5, %v1797_v51  ;;  %v1599_v15 = vsel %vm1598_vm8, %v4827_v12, %v1597_v34  ;;  %vm901_vm15 = vcmp.le.f32.partialorder %v801_v57, 0.0  ;;  %v505_v56 = vld [vmem:[%s5202_s1 + $0x2d0] sm:$0xff] }
 0x1ee   :  { %vm2396_vm14 = vcmp.ge.f32.partialorder %v2296_v61, 4e+09  ;;  %v1602_v43 = vsel %vm1600_vm9, %v1601_v60, %v1599_v15  ;;  %v402_v26 = vadd.f32 100000.0, %v302_v53  ;;  %v4896_v0 = vsel %vm901_vm15, 0.0, %v801_v57  ;;  %v106_v53 = vld [vmem:[%s5201_s0 + $0x2d8] sm:$0xff] }
 0x1ef   :  { %v2496_v32 = vsel %vm2396_vm14, 4e+09, %v2296_v61  ;;  %v2904_v10 = vpop.eup %2903  ;;  %v2097_v22 = vadd.f32 %v1997_v41, %v4818_v50  ;;  %v1798_v48 = vmul.f32 100.0, %v1602_v43  ;;  %vm1614_vm1 = vcmp.eq.f32.partialorder %v4869_v62, 0.0  ;;  %v1901_v61 = vld [vmem:[%s5203_s2 + $0x2b0] sm:$0xff] }
 0x1f0   :  { %v2596_v39 = vmul.f32 2.5e-10, %v2496_v32  ;;  %v1604_v27 = vmul.f32 %v2904_v10, %v4854_v33  ;;  %2907 = vrsqrt.f32 %v4896_v0  ;;  %v1615_v50 = vand.u32 2147483648, %v4869_v62 }
 0x1f1   :  { %vm2197_vm2 = vcmp.le.f32.partialorder %v2097_v22, 10.0  ;;  %v1998_v3 = vmul.f32 %v1898_v55, %v1798_v48  ;;  %v702_v20 = vadd.f32 3e+08, %v602_v58  ;;  %v303_v19 = vadd.f32 100.0, %v203_v16  ;;  %v506_v58 = vld [vmem:[%s5202_s1 + $0x2d8] sm:$0xff] }
 0x1f2   :  { %2697 = vst.msk [vmem:[#allocation2 + $0x288] sm:$0xff] %vm2616_vm3, %v2596_v39  ;;  %v2297_v8 = vsel %vm2197_vm2, 1.0, %v2097_v22  ;;  %v1606_v4 = vsel %vm1605_vm11, %v4854_v33, %v1604_v27  ;;  %v603_v18 = vmul.f32 2e+08, %v503_v25  ;;  %vm1619_vm8 = vcmp.eq.f32.partialorder %v4896_v0, inf }
 0x1f3   :  { %vm2397_vm4 = vcmp.ge.f32.partialorder %v2297_v8, 4e+09  ;;  %v2098_v21 = vadd.f32 %v1998_v3, %v4827_v12  ;;  %v1609_v38 = vsel %vm1607_vm12, %v1608_v9, %v1606_v4  ;;  %v802_v6 = vadd.f32 %v702_v20, %v402_v26 }
 0x1f4   :  { %v2906_v24 = vpop.eup %2905  ;;  %v2497_v52 = vsel %vm2397_vm4, 4e+09, %v2297_v8  ;;  %v1799_v13 = vmul.f32 100.0, %v1609_v38  ;;  %v403_v17 = vadd.f32 100000.0, %v303_v19  ;;  %v703_v2 = vadd.f32 3e+08, %v603_v18 }
 0x1f5   :  { %v2597_v44 = vmul.f32 2.5e-10, %v2497_v52  ;;  %vm2198_vm5 = vcmp.le.f32.partialorder %v2098_v21, 10.0  ;;  %v1611_v45 = vmul.f32 %v2906_v24, %v4869_v62  ;;  %vm902_vm6 = vcmp.le.f32.partialorder %v802_v6, 0.0 }
 0x1f6   :  { %v2298_v30 = vsel %vm2198_vm5, 1.0, %v2098_v21  ;;  %v1999_v12 = vmul.f32 %v1899_v7, %v1799_v13  ;;  %v4917_v40 = vsel %vm902_vm6, 0.0, %v802_v6  ;;  %v803_v29 = vadd.f32 %v703_v2, %v403_v17 }
 0x1f7   :  { %2698 = vst [vmem:[#allocation2 + $0x290] sm:$0xff] %v2597_v44  ;;  %vm2398_vm7 = vcmp.ge.f32.partialorder %v2298_v30, 4e+09  ;;  %v1613_v35 = vsel %vm1612_vm0, %v4869_v62, %v1611_v45  ;;  %2909 = vrsqrt.f32 %v4917_v40  ;;  %vm1621_vm9 = vcmp.eq.f32.partialorder %v4896_v0, 0.0 }
 0x1f8   :  { %v2498_v11 = vsel %vm2398_vm7, 4e+09, %v2298_v30  ;;  %v2099_v47 = vadd.f32 %v1999_v12, %v4854_v33  ;;  %v1616_v31 = vsel %vm1614_vm1, %v1615_v50, %v1613_v35  ;;  %v1622_v37 = vand.u32 2147483648, %v4896_v0 }
 0x1f9   :  { %v2598_v59 = vmul.f32 2.5e-10, %v2498_v11  ;;  %v1800_v60 = vmul.f32 100.0, %v1616_v31  ;;  %vm903_vm10 = vcmp.le.f32.partialorder %v803_v29, 0.0  ;;  %v204_v42 = vmul.f32 2e-05, %v104_v14 }
 0x1fa   :  { %v2908_v36 = vpop.eup %2907  ;;  %vm2199_vm11 = vcmp.le.f32.partialorder %v2099_v47, 10.0  ;;  %v4938_v46 = vsel %vm903_vm10, 0.0, %v803_v29  ;;  %v604_v33 = vmul.f32 2e+08, %v504_v28  ;;  %vm1626_vm13 = vcmp.eq.f32.partialorder %v4917_v40, inf  ;;  %v107_v28 = vld [vmem:[%s5201_s0 + $0x2e0] sm:$0xff] }
 0x1fb   :  { %2699 = vst.msk [vmem:[#allocation2 + $0x298] sm:$0xff] %vm2616_vm3, %v2598_v59  ;;  %v2299_v63 = vsel %vm2199_vm11, 1.0, %v2099_v47  ;;  %v2000_v49 = vmul.f32 %v1900_v54, %v1800_v60  ;;  %v1618_v1 = vmul.f32 %v2908_v36, %v4896_v0  ;;  %2911 = vrsqrt.f32 %v4938_v46  ;;  %v507_v11 = vld [vmem:[%s5202_s1 + $0x2e0] sm:$0xff]  ;;  %v108_v59 = vld [vmem:[%s5201_s0 + $0x2e8] sm:$0xff] }
 0x1fc   :  { %vm2399_vm12 = vcmp.ge.f32.partialorder %v2299_v63, 4e+09  ;;  %vm1628_vm14 = vcmp.eq.f32.partialorder %v4917_v40, 0.0  ;;  %v1629_v5 = vand.u32 2147483648, %v4917_v40  ;;  %vm1633_vm15 = vcmp.eq.f32.partialorder %v4938_v46, inf  ;;  %v1903_v54 = vld [vmem:[%s5203_s2 + $0x2c0] sm:$0xff] }
 0x1fd   :  { %v2499_v51 = vsel %vm2399_vm12, 4e+09, %v2299_v63  ;;  %v2100_v34 = vadd.f32 %v2000_v49, %v4869_v62  ;;  %v1620_v9 = vsel %vm1619_vm8, %v4896_v0, %v1618_v1  ;;  %v304_v57 = vadd.f32 100.0, %v204_v42 }
 0x1fe   :  { %v2599_v62 = vmul.f32 2.5e-10, %v2499_v51  ;;  %v1623_v41 = vsel %vm1621_vm9, %v1622_v37, %v1620_v9  ;;  %v704_v15 = vadd.f32 3e+08, %v604_v33  ;;  %v205_v16 = vmul.f32 2e-05, %v105_v23 }
 0x1ff   :  { %vm2200_vm0 = vcmp.le.f32.partialorder %v2100_v34, 10.0  ;;  %v1801_v32 = vmul.f32 100.0, %v1623_v41  ;;  %v404_v43 = vadd.f32 100000.0, %v304_v57  ;;  %v605_v55 = vmul.f32 2e+08, %v505_v56  ;;  %v109_v51 = vld [vmem:[%s5201_s0 + $0x2f0] sm:$0xff] }
 0x200   :  { %2700 = vst [vmem:[#allocation2 + $0x2a0] sm:$0xff] %v2599_v62  ;;  %v2300_v26 = vsel %vm2200_vm0, 1.0, %v2100_v34  ;;  %v305_v10 = vadd.f32 100.0, %v205_v16  ;;  %v206_v39 = vmul.f32 2e-05, %v106_v53  ;;  %v1636_v17 = vand.u32 2147483648, %v4938_v46 }
 0x201   :  { %v606_v22 = vmul.f32 2e+08, %v506_v58  ;;  %v2910_v48 = vpop.eup %2909  ;;  %vm2400_vm1 = vcmp.ge.f32.partialorder %v2300_v26, 4e+09  ;;  %v2001_v25 = vmul.f32 %v1901_v61, %v1801_v32  ;;  %v804_v27 = vadd.f32 %v704_v15, %v404_v43  ;;  %v509_v34 = vld [vmem:[%s5202_s1 + $0x2f0] sm:$0xff] }
 0x202   :  { %v705_v3 = vadd.f32 3e+08, %v605_v55  ;;  %v2500_v50 = vsel %vm2400_vm1, 4e+09, %v2300_v26  ;;  %v1625_v20 = vmul.f32 %v2910_v48, %v4917_v40  ;;  %v405_v8 = vadd.f32 100000.0, %v305_v10 }
 0x203   :  { %v306_v4 = vadd.f32 100.0, %v206_v39  ;;  %v2600_v19 = vmul.f32 2.5e-10, %v2500_v50  ;;  %v2101_v18 = vadd.f32 %v2001_v25, %v4896_v0  ;;  %vm904_vm2 = vcmp.le.f32.partialorder %v804_v27, 0.0  ;;  %v1902_v0 = vld [vmem:[%s5203_s2 + $0x2b8] sm:$0xff]  ;;  %v1904_v25 = vld [vmem:[%s5203_s2 + $0x2c8] sm:$0xff] }
 0x204   :  { %v706_v21 = vadd.f32 3e+08, %v606_v22  ;;  %v1627_v38 = vsel %vm1626_vm13, %v4917_v40, %v1625_v20  ;;  %v4973_v7 = vsel %vm904_vm2, 0.0, %v804_v27  ;;  %v805_v6 = vadd.f32 %v705_v3, %v405_v8 }
 0x205   :  { %v406_v24 = vadd.f32 100000.0, %v306_v4  ;;  %v2912_v52 = vpop.eup %2911  ;;  %2701 = vst.msk [vmem:[#allocation2 + $0x2a8] sm:$0xff] %vm2616_vm3, %v2600_v19  ;;  %vm2201_vm4 = vcmp.le.f32.partialorder %v2101_v18, 10.0  ;;  %v1630_v13 = vsel %vm1628_vm14, %v1629_v5, %v1627_v38  ;;  %2913 = vrsqrt.f32 %v4973_v7 }
 0x206   :  { %v2301_v2 = vsel %vm2201_vm4, 1.0, %v2101_v18  ;;  %v1802_v44 = vmul.f32 100.0, %v1630_v13  ;;  %v1632_v45 = vmul.f32 %v2912_v52, %v4938_v46  ;;  %vm1635_vm5 = vcmp.eq.f32.partialorder %v4938_v46, 0.0  ;;  %v1905_v13 = vld [vmem:[%s5203_s2 + $0x2d0] sm:$0xff] }
 0x207   :  { %vm2401_vm6 = vcmp.ge.f32.partialorder %v2301_v2, 4e+09  ;;  %vm905_vm7 = vcmp.le.f32.partialorder %v805_v6, 0.0  ;;  %v806_v30 = vadd.f32 %v706_v21, %v406_v24  ;;  %vm1640_vm8 = vcmp.eq.f32.partialorder %v4973_v7, inf }
 0x208   :  { %v2501_v12 = vsel %vm2401_vm6, 4e+09, %v2301_v2  ;;  %v2002_v29 = vmul.f32 %v1902_v0, %v1802_v44  ;;  %v1634_v35 = vsel %vm1633_vm15, %v4938_v46, %v1632_v45  ;;  %v4988_v14 = vsel %vm905_vm7, 0.0, %v805_v6 }
 0x209   :  { %v2601_v47 = vmul.f32 2.5e-10, %v2501_v12  ;;  %v1637_v31 = vsel %vm1635_vm5, %v1636_v17, %v1634_v35  ;;  %2915 = vrsqrt.f32 %v4988_v14  ;;  %vm1642_vm9 = vcmp.eq.f32.partialorder %v4973_v7, 0.0  ;;  %v510_v12 = vld [vmem:[%s5202_s1 + $0x2f8] sm:$0xff] }
 0x20a   :  { %v2102_v60 = vadd.f32 %v2002_v29, %v4917_v40  ;;  %v1803_v37 = vmul.f32 100.0, %v1637_v31  ;;  %vm906_vm10 = vcmp.le.f32.partialorder %v806_v30, 0.0  ;;  %v207_v36 = vmul.f32 2e-05, %v107_v28  ;;  %v508_v40 = vld [vmem:[%s5202_s1 + $0x2e8] sm:$0xff]  ;;  %v1906_v31 = vld [vmem:[%s5203_s2 + $0x2d8] sm:$0xff] }
 0x20b   :  { %2702 = vst [vmem:[#allocation2 + $0x2b0] sm:$0xff] %v2601_v47  ;;  %v607_v42 = vmul.f32 2e+08, %v507_v11  ;;  %v5006_v63 = vsel %vm906_vm10, 0.0, %v806_v30  ;;  %v208_v49 = vmul.f32 2e-05, %v108_v59 }
 0x20c   :  { %vm2202_vm11 = vcmp.le.f32.partialorder %v2102_v60, 10.0  ;;  %v2003_v33 = vmul.f32 %v1903_v54, %v1803_v37  ;;  %v1643_v23 = vand.u32 2147483648, %v4973_v7  ;;  %vm1647_vm12 = vcmp.eq.f32.partialorder %v4988_v14, inf  ;;  %v110_v30 = vld [vmem:[%s5201_s0 + $0x2f8] sm:$0xff] }
 0x20d   :  { %v2302_v1 = vsel %vm2202_vm11, 1.0, %v2102_v60  ;;  %2917 = vrsqrt.f32 %v5006_v63  ;;  %vm1649_vm14 = vcmp.eq.f32.partialorder %v4988_v14, 0.0  ;;  %v307_v56 = vadd.f32 100.0, %v207_v36  ;;  %v111_v36 = vld [vmem:[%s5201_s0 + $0x300] sm:$0xff] }
 0x20e   :  { %vm2402_vm13 = vcmp.ge.f32.partialorder %v2302_v1, 4e+09  ;;  %v2103_v5 = vadd.f32 %v2003_v33, %v4938_v46  ;;  %v1650_v57 = vand.u32 2147483648, %v4988_v14  ;;  %v707_v53 = vadd.f32 3e+08, %v607_v42 }
 0x20f   :  { %v2914_v9 = vpop.eup %2913  ;;  %v2502_v61 = vsel %vm2402_vm13, 4e+09, %v2302_v1  ;;  %v308_v58 = vadd.f32 100.0, %v208_v49  ;;  %v407_v41 = vadd.f32 100000.0, %v307_v56  ;;  %v608_v32 = vmul.f32 2e+08, %v508_v40 }
 0x210   :  { %v2602_v62 = vmul.f32 2.5e-10, %v2502_v61  ;;  %vm2203_vm15 = vcmp.le.f32.partialorder %v2103_v5, 10.0  ;;  %v1639_v46 = vmul.f32 %v2914_v9, %v4973_v7  ;;  %v209_v43 = vmul.f32 2e-05, %v109_v51 }
 0x211   :  { %v2303_v15 = vsel %vm2203_vm15, 1.0, %v2103_v5  ;;  %v408_v16 = vadd.f32 100000.0, %v308_v58  ;;  %v807_v26 = vadd.f32 %v707_v53, %v407_v41  ;;  %v609_v10 = vmul.f32 2e+08, %v509_v34  ;;  %v112_v5 = vld [vmem:[%s5201_s0 + $0x308] sm:$0xff] }
 0x212   :  { %2703 = vst.msk [vmem:[#allocation2 + $0x2b8] sm:$0xff] %vm2616_vm3, %v2602_v62  ;;  %vm2403_vm0 = vcmp.ge.f32.partialorder %v2303_v15, 4e+09  ;;  %v1641_v55 = vsel %vm1640_vm8, %v4973_v7, %v1639_v46  ;;  %v708_v27 = vadd.f32 3e+08, %v608_v32  ;;  %v309_v3 = vadd.f32 100.0, %v209_v43 }
 0x213   :  { %v2916_v39 = vpop.eup %2915  ;;  %v2503_v22 = vsel %vm2403_vm0, 4e+09, %v2303_v15  ;;  %v1644_v48 = vsel %vm1642_vm9, %v1643_v23, %v1641_v55  ;;  %vm907_vm1 = vcmp.le.f32.partialorder %v807_v26, 0.0  ;;  %vm1654_vm2 = vcmp.eq.f32.partialorder %v5006_v63, inf }
 0x214   :  { %v2603_v50 = vmul.f32 2.5e-10, %v2503_v22  ;;  %v1804_v20 = vmul.f32 100.0, %v1644_v48  ;;  %v1646_v8 = vmul.f32 %v2916_v39, %v4988_v14  ;;  %v5035_v4 = vsel %vm907_vm1, 0.0, %v807_v26  ;;  %v1907_v39 = vld [vmem:[%s5203_s2 + $0x2e0] sm:$0xff] }
 0x215   :  { %v808_v19 = vadd.f32 %v708_v27, %v408_v16  ;;  %v409_v18 = vadd.f32 100000.0, %v309_v3  ;;  %2919 = vrsqrt.f32 %v5035_v4  ;;  %v709_v6 = vadd.f32 3e+08, %v609_v10 }
 0x216   :  { %2704 = vst [vmem:[#allocation2 + $0x2c0] sm:$0xff] %v2603_v50  ;;  %v2004_v21 = vmul.f32 %v1904_v25, %v1804_v20  ;;  %v1648_v38 = vsel %vm1647_vm12, %v4988_v14, %v1646_v8  ;;  %vm1656_vm4 = vcmp.eq.f32.partialorder %v5006_v63, 0.0  ;;  %v1657_v0 = vand.u32 2147483648, %v5006_v63  ;;  %v512_v50 = vld [vmem:[%s5202_s1 + $0x308] sm:$0xff] }
 0x217   :  { %v2918_v24 = vpop.eup %2917  ;;  %v1651_v52 = vsel %vm1649_vm14, %v1650_v57, %v1648_v38  ;;  %vm908_vm5 = vcmp.le.f32.partialorder %v808_v19, 0.0  ;;  %vm1661_vm6 = vcmp.eq.f32.partialorder %v5035_v4, inf  ;;  %vm1663_vm7 = vcmp.eq.f32.partialorder %v5035_v4, 0.0 }
 0x218   :  { %v2104_v17 = vadd.f32 %v2004_v21, %v4973_v7  ;;  %v1805_v2 = vmul.f32 100.0, %v1651_v52  ;;  %v1653_v44 = vmul.f32 %v2918_v24, %v5006_v63  ;;  %v5050_v45 = vsel %vm908_vm5, 0.0, %v808_v19  ;;  %v113_v19 = vld [vmem:[%s5201_s0 + $0x310] sm:$0xff]  ;;  %v114_v52 = vld [vmem:[%s5201_s0 + $0x318] sm:$0xff] }
 0x219   :  { %v1664_v29 = vand.u32 2147483648, %v5035_v4  ;;  %2921 = vrsqrt.f32 %v5050_v45  ;;  %v809_v28 = vadd.f32 %v709_v6, %v409_v18  ;;  %v210_v54 = vmul.f32 2e-05, %v110_v30  ;;  %v513_v18 = vld [vmem:[%s5202_s1 + $0x310] sm:$0xff]  ;;  %v1908_v6 = vld [vmem:[%s5203_s2 + $0x2e8] sm:$0xff] }
 0x21a   :  { %vm2204_vm8 = vcmp.le.f32.partialorder %v2104_v17, 10.0  ;;  %v2005_v7 = vmul.f32 %v1905_v13, %v1805_v2  ;;  %v1655_v35 = vsel %vm1654_vm2, %v5006_v63, %v1653_v44  ;;  %v610_v59 = vmul.f32 2e+08, %v510_v12 }
 0x21b   :  { %v2304_v11 = vsel %vm2204_vm8, 1.0, %v2104_v17  ;;  %v1658_v47 = vsel %vm1656_vm4, %v1657_v0, %v1655_v35  ;;  %vm909_vm10 = vcmp.le.f32.partialorder %v809_v28, 0.0  ;;  %v310_v49 = vadd.f32 100.0, %v210_v54 }
 0x21c   :  { %vm2404_vm9 = vcmp.ge.f32.partialorder %v2304_v11, 4e+09  ;;  %v2105_v60 = vadd.f32 %v2005_v7, %v4988_v14  ;;  %v1806_v37 = vmul.f32 100.0, %v1658_v47  ;;  %v5074_v33 = vsel %vm909_vm10, 0.0, %v809_v28  ;;  %v511_v14 = vld [vmem:[%s5202_s1 + $0x300] sm:$0xff] }
 0x21d   :  { %v2504_v42 = vsel %vm2404_vm9, 4e+09, %v2304_v11  ;;  %v710_v1 = vadd.f32 3e+08, %v610_v59  ;;  %2923 = vrsqrt.f32 %v5074_v33  ;;  %vm1668_vm12 = vcmp.eq.f32.partialorder %v5050_v45, inf }
 0x21e   :  { %v2604_v23 = vmul.f32 2.5e-10, %v2504_v42  ;;  %vm2205_vm11 = vcmp.le.f32.partialorder %v2105_v60, 10.0  ;;  %v2006_v40 = vmul.f32 %v1906_v31, %v1806_v37  ;;  %vm1670_vm13 = vcmp.eq.f32.partialorder %v5050_v45, 0.0  ;;  %v1909_v37 = vld [vmem:[%s5203_s2 + $0x2f0] sm:$0xff] }
 0x21f   :  { %v2305_v56 = vsel %vm2205_vm11, 1.0, %v2105_v60  ;;  %v1671_v51 = vand.u32 2147483648, %v5050_v45  ;;  %v2920_v34 = vpop.eup %2919  ;;  %v410_v61 = vadd.f32 100000.0, %v310_v49  ;;  %v211_v57 = vmul.f32 2e-05, %v111_v36 }
 0x220   :  { %2705 = vst.msk [vmem:[#allocation2 + $0x2c8] sm:$0xff] %vm2616_vm3, %v2604_v23  ;;  %vm2405_vm14 = vcmp.ge.f32.partialorder %v2305_v56, 4e+09  ;;  %v2106_v9 = vadd.f32 %v2006_v40, %v5006_v63  ;;  %v1660_v58 = vmul.f32 %v2920_v34, %v5035_v4  ;;  %v611_v62 = vmul.f32 2e+08, %v511_v14 }
 0x221   :  { %v2505_v53 = vsel %vm2405_vm14, 4e+09, %v2305_v56  ;;  %v212_v46 = vmul.f32 2e-05, %v112_v5  ;;  %v810_v15 = vadd.f32 %v710_v1, %v410_v61  ;;  %v311_v16 = vadd.f32 100.0, %v211_v57 }
 0x222   :  { %v2605_v41 = vmul.f32 2.5e-10, %v2505_v53  ;;  %vm2206_vm15 = vcmp.le.f32.partialorder %v2106_v9, 10.0  ;;  %v1662_v55 = vsel %vm1661_vm6, %v5035_v4, %v1660_v58  ;;  %v711_v26 = vadd.f32 3e+08, %v611_v62  ;;  %v514_v53 = vld [vmem:[%s5202_s1 + $0x318] sm:$0xff] }
 0x223   :  { %v2922_v32 = vpop.eup %2921  ;;  %v2306_v43 = vsel %vm2206_vm15, 1.0, %v2106_v9  ;;  %v312_v10 = vadd.f32 100.0, %v212_v46  ;;  %v1665_v63 = vsel %vm1663_vm7, %v1664_v29, %v1662_v55  ;;  %vm910_vm1 = vcmp.le.f32.partialorder %v810_v15, 0.0 }
 0x224   :  { %2706 = vst [vmem:[#allocation2 + $0x2d0] sm:$0xff] %v2605_v41  ;;  %vm2406_vm0 = vcmp.ge.f32.partialorder %v2306_v43, 4e+09  ;;  %v1667_v22 = vmul.f32 %v2922_v32, %v5050_v45  ;;  %v1807_v25 = vmul.f32 100.0, %v1665_v63  ;;  %v5098_v27 = vsel %vm910_vm1, 0.0, %v810_v15  ;;  %v1910_v15 = vld [vmem:[%s5203_s2 + $0x2f8] sm:$0xff] }
 0x225   :  { %v2506_v48 = vsel %vm2406_vm0, 4e+09, %v2306_v43  ;;  %v411_v3 = vadd.f32 100000.0, %v311_v16  ;;  %vm1675_vm2 = vcmp.eq.f32.partialorder %v5074_v33, inf  ;;  %2925 = vrsqrt.f32 %v5098_v27 }
 0x226   :  { %v2606_v20 = vmul.f32 2.5e-10, %v2506_v48  ;;  %v1669_v8 = vsel %vm1668_vm12, %v5050_v45, %v1667_v22  ;;  %v2007_v21 = vmul.f32 %v1907_v39, %v1807_v25  ;;  %vm1677_vm4 = vcmp.eq.f32.partialorder %v5074_v33, 0.0 }
 0x227   :  { %v1672_v38 = vsel %vm1670_vm13, %v1671_v51, %v1669_v8  ;;  %v1678_v24 = vand.u32 2147483648, %v5074_v33  ;;  %v2924_v13 = vpop.eup %2923  ;;  %v811_v17 = vadd.f32 %v711_v26, %v411_v3  ;;  %v412_v2 = vadd.f32 100000.0, %v312_v10 }
 0x228   :  { %2707 = vst.msk [vmem:[#allocation2 + $0x2d8] sm:$0xff] %vm2616_vm3, %v2606_v20  ;;  %v1808_v0 = vmul.f32 100.0, %v1672_v38  ;;  %v612_v44 = vmul.f32 2e+08, %v512_v50  ;;  %v2107_v30 = vadd.f32 %v2007_v21, %v5035_v4  ;;  %v1674_v12 = vmul.f32 %v2924_v13, %v5074_v33 }
 0x229   :  { %v213_v29 = vmul.f32 2e-05, %v113_v19  ;;  %v613_v7 = vmul.f32 2e+08, %v513_v18  ;;  %vm911_vm5 = vcmp.le.f32.partialorder %v811_v17, 0.0  ;;  %vm1682_vm8 = vcmp.eq.f32.partialorder %v5098_v27, inf }
 0x22a   :  { %v2008_v35 = vmul.f32 %v1908_v6, %v1808_v0  ;;  %v712_v28 = vadd.f32 3e+08, %v612_v44  ;;  %v214_v11 = vmul.f32 2e-05, %v114_v52  ;;  %vm2207_vm6 = vcmp.le.f32.partialorder %v2107_v30, 10.0  ;;  %v1911_v19 = vld [vmem:[%s5203_s2 + $0x300] sm:$0xff] }
 0x22b   :  { %v1676_v47 = vsel %vm1675_vm2, %v5074_v33, %v1674_v12  ;;  %v5130_v31 = vsel %vm911_vm5, 0.0, %v811_v17  ;;  %v313_v54 = vadd.f32 100.0, %v213_v29  ;;  %v2307_v59 = vsel %vm2207_vm6, 1.0, %v2107_v30  ;;  %v1912_v30 = vld [vmem:[%s5203_s2 + $0x308] sm:$0xff] }
 0x22c   :  { %v2108_v60 = vadd.f32 %v2008_v35, %v5050_v45  ;;  %v1679_v4 = vsel %vm1677_vm4, %v1678_v24, %v1676_v47  ;;  %2927 = vrsqrt.f32 %v5130_v31  ;;  %vm2407_vm7 = vcmp.ge.f32.partialorder %v2307_v59, 4e+09 }
 0x22d   :  { %v1809_v36 = vmul.f32 100.0, %v1679_v4  ;;  %vm1684_vm9 = vcmp.eq.f32.partialorder %v5098_v27, 0.0  ;;  %v2507_v42 = vsel %vm2407_vm7, 4e+09, %v2307_v59  ;;  %v1685_v49 = vand.u32 2147483648, %v5098_v27  ;;  %v1913_v4 = vld [vmem:[%s5203_s2 + $0x310] sm:$0xff] }
 0x22e   :  { %vm2208_vm10 = vcmp.le.f32.partialorder %v2108_v60, 10.0  ;;  %v812_v45 = vadd.f32 %v712_v28, %v412_v2  ;;  %v2607_v1 = vmul.f32 2.5e-10, %v2507_v42  ;;  %v413_v14 = vadd.f32 100000.0, %v313_v54 }
 0x22f   :  { %v2308_v23 = vsel %vm2208_vm10, 1.0, %v2108_v60  ;;  %v2009_v40 = vmul.f32 %v1909_v37, %v1809_v36  ;;  %v2926_v5 = vpop.eup %2925  ;;  %v713_v56 = vadd.f32 3e+08, %v613_v7  ;;  %v314_v51 = vadd.f32 100.0, %v214_v11 }
 0x230   :  { %vm2408_vm11 = vcmp.ge.f32.partialorder %v2308_v23, 4e+09  ;;  %vm912_vm12 = vcmp.le.f32.partialorder %v812_v45, 0.0  ;;  %2708 = vst [vmem:[#allocation2 + $0x2e0] sm:$0xff] %v2607_v1  ;;  %v1681_v61 = vmul.f32 %v2926_v5, %v5098_v27  ;;  %vm1689_vm14 = vcmp.eq.f32.partialorder %v5130_v31, inf }
 0x231   :  { %v2508_v34 = vsel %vm2408_vm11, 4e+09, %v2308_v23  ;;  %v2109_v9 = vadd.f32 %v2009_v40, %v5074_v33  ;;  %v5144_v57 = vsel %vm912_vm12, 0.0, %v812_v45  ;;  %v813_v46 = vadd.f32 %v713_v56, %v413_v14  ;;  %v1914_v56 = vld [vmem:[%s5203_s2 + $0x318] sm:$0xff]  ;;  %s2935_s2 = scalar_lea.vmem %s2722_s17, 12800 }
 0x232   :  { %v2608_v58 = vmul.f32 2.5e-10, %v2508_v34  ;;  %2929 = vrsqrt.f32 %v5144_v57  ;;  %v1683_v62 = vsel %vm1682_vm8, %v5098_v27, %v1681_v61  ;;  %v414_v16 = vadd.f32 100000.0, %v314_v51  ;;  %p2936_p0 = scmp.ne.s32.totalorder %s2722_s17, %s2935_s2  ;;  %p2941_p2 = scmp.lt.s32.totalorder %s2935_s2, %s2935_s2 }
 0x233   :  { %vm2209_vm13 = vcmp.le.f32.partialorder %v2109_v9, 10.0  ;;  %v1686_v41 = vsel %vm1684_vm9, %v1685_v49, %v1683_v62  ;;  %v614_v32 = vmul.f32 2e+08, %v514_v53  ;;  %vm1691_vm0 = vcmp.eq.f32.partialorder %v5130_v31, 0.0 }
 0x234   :  { %2709 = vst.msk [vmem:[#allocation2 + $0x2e8] sm:$0xff] %vm2616_vm3, %v2608_v58  ;;  %v2309_v33 = vsel %vm2209_vm13, 1.0, %v2109_v9  ;;  %v1810_v43 = vmul.f32 100.0, %v1686_v41  ;;  %vm913_vm1 = vcmp.le.f32.partialorder %v813_v46, 0.0  ;;  %v1692_v10 = vand.u32 2147483648, %v5130_v31  ;;  %p2942_p3 = por %p2941_p2, %p2940_p1 }
 0x235   :  { %vm2409_vm15 = vcmp.ge.f32.partialorder %v2309_v33, 4e+09  ;;  %v1013_v63 = vsel %vm913_vm1, 0.0, %v813_v46  ;;  %v714_v39 = vadd.f32 3e+08, %v614_v32  ;;  %vm1696_vm5 = vcmp.eq.f32.partialorder %v5144_v57, inf }
 0x236   :  { %v2928_v55 = vpop.eup %2927  ;;  %v2509_v26 = vsel %vm2409_vm15, 4e+09, %v2309_v33  ;;  %v2010_v48 = vmul.f32 %v1910_v15, %v1810_v43  ;;  %2931 = vrsqrt.f32 %v1013_v63  ;;  %v1699_v24 = vand.u32 2147483648, %v5144_v57  ;;  %p2943_p4 = pnand %p2942_p3, %p2936_p0 }
 0x237   :  { %v2609_v22 = vmul.f32 2.5e-10, %v2509_v26  ;;  %v1688_v25 = vmul.f32 %v2928_v55, %v5130_v31  ;;  %v814_v3 = vadd.f32 %v714_v39, %v414_v16  ;;  %vm1698_vm7 = vcmp.eq.f32.partialorder %v5144_v57, 0.0 }
 0x238   :  { %v2110_v50 = vadd.f32 %v2010_v48, %v5098_v27  ;;  %vm1703_vm9 = vcmp.eq.f32.partialorder %v1013_v63, inf  ;;  %v1706_v7 = vand.u32 2147483648, %v1013_v63  ;;  %vm1705_vm10 = vcmp.eq.f32.partialorder %v1013_v63, 0.0 }
 0x239   :  { %2710 = vst [vmem:[#allocation2 + $0x2f0] sm:$0xff] %v2609_v22  ;;  %v1690_v20 = vsel %vm1689_vm14, %v5130_v31, %v1688_v25  ;;  %vm914_vm2 = vcmp.le.f32.partialorder %v814_v3, 0.0 }
 0x23a   :  { %v1693_v8 = vsel %vm1691_vm0, %v1692_v10, %v1690_v20  ;;  %vm2210_vm4 = vcmp.le.f32.partialorder %v2110_v50, 10.0  ;;  %v1014_v21 = vsel %vm914_vm2, 0.0, %v814_v3 }
 0x23b   :  { %v1811_v18 = vmul.f32 100.0, %v1693_v8  ;;  %v2310_v6 = vsel %vm2210_vm4, 1.0, %v2110_v50  ;;  %2933 = vrsqrt.f32 %v1014_v21  ;;  %vm1710_vm12 = vcmp.eq.f32.partialorder %v1014_v21, inf }
 0x23c   :  { %v2930_v38 = vpop.eup %2929  ;;  %vm2410_vm6 = vcmp.ge.f32.partialorder %v2310_v6, 4e+09  ;;  %v1713_v42 = vand.u32 2147483648, %v1014_v21  ;;  %vm1712_vm14 = vcmp.eq.f32.partialorder %v1014_v21, 0.0 }
 0x23d   :  { %v2011_v27 = vmul.f32 %v1911_v19, %v1811_v18  ;;  %v1695_v52 = vmul.f32 %v2930_v38, %v5144_v57  ;;  %v2510_v13 = vsel %vm2410_vm6, 4e+09, %v2310_v6 }
 0x23e   :  { %v2610_v0 = vmul.f32 2.5e-10, %v2510_v13 }
 0x23f   :  { %v2111_v17 = vadd.f32 %v2011_v27, %v5130_v31  ;;  %v1697_v2 = vsel %vm1696_vm5, %v5144_v57, %v1695_v52 }
 0x240   :  { %v1700_v44 = vsel %vm1698_vm7, %v1699_v24, %v1697_v2  ;;  %v2932_v12 = vpop.eup %2931  ;;  %2711 = vst.msk [vmem:[#allocation2 + $0x2f8] sm:$0xff] %vm2616_vm3, %v2610_v0 }
 0x241   :  { %vm2211_vm8 = vcmp.le.f32.partialorder %v2111_v17, 10.0  ;;  %v1812_v29 = vmul.f32 100.0, %v1700_v44  ;;  %v1702_v28 = vmul.f32 %v2932_v12, %v1013_v63 }
 0x242   :  { %v2311_v35 = vsel %vm2211_vm8, 1.0, %v2111_v17 }
 0x243   :  { %vm2411_vm11 = vcmp.ge.f32.partialorder %v2311_v35, 4e+09  ;;  %v2012_v11 = vmul.f32 %v1912_v30, %v1812_v29  ;;  %v1704_v31 = vsel %vm1703_vm9, %v1013_v63, %v1702_v28 }
 0x244   :  { %v2511_v47 = vsel %vm2411_vm11, 4e+09, %v2311_v35  ;;  %v1707_v60 = vsel %vm1705_vm10, %v1706_v7, %v1704_v31 }
 0x245   :  { %v2611_v54 = vmul.f32 2.5e-10, %v2511_v47  ;;  %v2112_v59 = vadd.f32 %v2012_v11, %v5144_v57  ;;  %v2934_v37 = vpop.eup %2933  ;;  %v1813_v36 = vmul.f32 100.0, %v1707_v60 }
 0x246   :  { %v1709_v49 = vmul.f32 %v2934_v37, %v1014_v21 }
 0x247   :  { %2712 = vst [vmem:[#allocation2 + $0x300] sm:$0xff] %v2611_v54  ;;  %vm2212_vm13 = vcmp.le.f32.partialorder %v2112_v59, 10.0  ;;  %v2013_v1 = vmul.f32 %v1913_v4, %v1813_v36 }
 0x248   :  { %v2312_v45 = vsel %vm2212_vm13, 1.0, %v2112_v59  ;;  %v1711_v23 = vsel %vm1710_vm12, %v1014_v21, %v1709_v49 }
 0x249   :  { %vm2412_vm15 = vcmp.ge.f32.partialorder %v2312_v45, 4e+09  ;;  %v2113_v14 = vadd.f32 %v2013_v1, %v1013_v63  ;;  %v1714_v5 = vsel %vm1712_vm14, %v1713_v42, %v1711_v23 }
 0x24a   :  { %v2512_v40 = vsel %vm2412_vm15, 4e+09, %v2312_v45  ;;  %v1814_v34 = vmul.f32 100.0, %v1714_v5 }
 0x24b   :  { %v2612_v51 = vmul.f32 2.5e-10, %v2512_v40  ;;  %vm2213_vm0 = vcmp.le.f32.partialorder %v2113_v14, 10.0 }
 0x24c   :  { %v2313_v9 = vsel %vm2213_vm0, 1.0, %v2113_v14  ;;  %v2014_v61 = vmul.f32 %v1914_v56, %v1814_v34 }
 0x24d   :  { %2713 = vst.msk [vmem:[#allocation2 + $0x308] sm:$0xff] %vm2616_vm3, %v2612_v51  ;;  %vm2413_vm1 = vcmp.ge.f32.partialorder %v2313_v9, 4e+09 }
 0x24e   :  { %v2513_v57 = vsel %vm2413_vm1, 4e+09, %v2313_v9  ;;  %v2114_v53 = vadd.f32 %v2014_v61, %v1014_v21 }
 0x24f   :  { %v2613_v58 = vmul.f32 2.5e-10, %v2513_v57 }
 0x250   :  { %vm2214_vm2 = vcmp.le.f32.partialorder %v2114_v53, 10.0 }
 0x251   :  { %2714 = vst [vmem:[#allocation2 + $0x310] sm:$0xff] %v2613_v58  ;;  %v2314_v62 = vsel %vm2214_vm2, 1.0, %v2114_v53 }
 0x252   :  { %vm2414_vm4 = vcmp.ge.f32.partialorder %v2314_v62, 4e+09 }
 0x253   :  { %v2514_v46 = vsel %vm2414_vm4, 4e+09, %v2314_v62 }
 0x254   :  { %v2614_v33 = vmul.f32 2.5e-10, %v2514_v46 }
 0x256   :  { %2715 = vst.msk [vmem:[#allocation2 + $0x318] sm:$0xff] %vm2616_vm3, %v2614_v33 }
 0x257   :  { %2946 = shalt.err (!%p2943_p4)
}
 0x258   :  { %s2947_s20 = scalar_lea.hbm %s5204_s3, 12800 }
 0x259   :  { %p2948_p5 = scmp.ne.s32.totalorder %s5204_s3, %s2947_s20  ;;  %p2951_p6 = scmp.lt.u32.totalorder %s2947_s20, %s5204_s3 }
 0x25b   :  { %p2953_p7 = pnand %p2951_p6, %p2948_p5 }
 0x25d   :  { %2956 = shalt.err (!%p2953_p7)
}
 0x25e   :  { %s2960_s25 = smov 256   ;;  %s2961_s26 = smov 16  }
 0x25f   :  { %2727 = dma.vmem_to_hbm [thread:$0]  %s2722_s17, 12800, %s5204_s3, [#allocation3], %s2960_s25, %s2960_s25, %s2961_s26  }
 0x260   :  { %2957 = dma.done.wait [#allocation3], 12800  }
 0x261   :  { %2958 = vsyncadd [#allocation3], 4294954496 }
 0x262   :  { %2731 = vsyncpa [#allocation3], 1 }

</bundles_post_ra>
